<compile_context>
chip_gen: v6e
topology: v6e:2x2x1
jax: 0.10.0
libtpu: 0.0.40
codegen_flags: <defaults>
</compile_context>

<pallas_src>
import functools

import jax
import jax.numpy as jnp
from jax.experimental import pallas as pl
from jax.experimental.pallas import tpu as pltpu

# ----------------------------- configuration -------------------------------

CLASSES = 10                      # probe heads AND backbone fc output (so stack works)
RESOLUTIONS = [32, 16, 8, 4]      # len 4 -> 12 channels after multichannel_fn
CH = 3 * len(RESOLUTIONS)         # 12
S = 32                            # scaled stand-in for the 224x224 resize target
OUT_PAD = 128                     # lane-dense padded head width (>= CLASSES)
F_PAD = 2048                      # common padded probe input width

_VMEM_LIMIT = 32 * 1024 * 1024    # explicit budget, safe on v5e/v6e/v7x
_ARB = pltpu.CompilerParams(dimension_semantics=("arbitrary",),
                            vmem_limit_bytes=_VMEM_LIMIT)
_PAR = pltpu.CompilerParams(dimension_semantics=("parallel",),
                            vmem_limit_bytes=_VMEM_LIMIT)

# Scaled ResNet-152-like plan (layer-op indices):
#   0 stem | 1 l1b0 | 2-3 l1 run | 4 l2b0 | 5-11 l2 run | 12 l3b0 |
#   13-47 l3 run | 48 l4b0 | 49-50 l4 run | 51 avgpool | 52 fc        (53 ops)
# Probe taps used by forward(): ops 19,29,34,39,44 -> l3-run idx 6,16,21,26,31
#                               op 49 -> l4-run idx 0; op 51 -> avgpool out.

# ----------------------------- Pallas kernels ------------------------------


def _linear_kernel(x_ref, w_ref, b_ref, o_ref, *, relu):
    """y = x @ w + b  (x cast to bf16 in-kernel, f32 accumulation)."""
    x = x_ref[...].astype(jnp.bfloat16)
    y = jnp.dot(x, w_ref[...], preferred_element_type=jnp.float32) + b_ref[...]
    if relu:
        y = jnp.maximum(y, 0.0)
    o_ref[...] = y


def linear(x, w, b, relu=False):
    M = x.shape[0]
    N = w.shape[1]
    return pl.pallas_call(
        functools.partial(_linear_kernel, relu=relu),
        out_shape=jax.ShapeDtypeStruct((M, N), jnp.float32),
        in_specs=[pl.BlockSpec(memory_space=pltpu.MemorySpace.VMEM)] * 3,
        out_specs=pl.BlockSpec(memory_space=pltpu.MemorySpace.VMEM),
    )(x, w, b)


def _fused_blocks_kernel(x_ref, w_ref, b_ref, o_ref, acc_ref):
    """Chain of n square (C->C) 1x1-conv + ReLU blocks.

    The activation is carried in VMEM scratch across the 'arbitrary' grid axis;
    each block's output is also written to o_ref[i] so probe taps are free.
    """
    @pl.when(pl.program_id(0) == 0)
    def _():
        acc_ref[...] = x_ref[...]
    a = acc_ref[...].astype(jnp.bfloat16)
    y = jnp.dot(a, w_ref[0], preferred_element_type=jnp.float32) + b_ref[0]
    y = jnp.maximum(y, 0.0)
    acc_ref[...] = y
    o_ref[0] = y


def fused_blocks(x, w_stack, b_stack):
    n, C, _ = w_stack.shape
    M = x.shape[0]
    return pl.pallas_call(
        _fused_blocks_kernel,
        out_shape=jax.ShapeDtypeStruct((n, M, C), jnp.float32),
        grid_spec=pltpu.PrefetchScalarGridSpec(
            num_scalar_prefetch=0,
            grid=(n,),
            in_specs=[pl.BlockSpec((M, C), lambda i: (0, 0)),
                      pl.BlockSpec((1, C, C), lambda i: (i, 0, 0)),
                      pl.BlockSpec((1, 1, C), lambda i: (i, 0, 0))],
            out_specs=pl.BlockSpec((1, M, C), lambda i: (i, 0, 0)),
            scratch_shapes=[pltpu.VMEM((M, C), jnp.float32)],
        ),
        compiler_params=_ARB,
    )(x, w_stack, b_stack)


def _bn_linear_batch_kernel(x_ref, g_ref, bt_ref, w_ref, b_ref, o_ref):
    """BatchNorm1d (training-mode batch stats, eps=1e-5) + Linear, one probe/step."""
    x = x_ref[0].astype(jnp.float32)                          # [B, F]
    mean = jnp.mean(x, axis=0, keepdims=True)
    var = jnp.mean((x - mean) ** 2, axis=0, keepdims=True)    # biased, like torch
    xhat = (x - mean) * jax.lax.rsqrt(var + 1e-5)
    xhat = xhat * g_ref[0] + bt_ref[0]
    y = jnp.dot(xhat.astype(jnp.bfloat16), w_ref[0],
                preferred_element_type=jnp.float32) + b_ref[0]
    o_ref[0] = y


def bn_linear_batch(x, gamma, beta, w, b):
    """x: [n, B, F] stacked (zero-padded) probe inputs; heads padded to OUT_PAD lanes."""
    n, B, F = x.shape
    N = w.shape[-1]
    return pl.pallas_call(
        _bn_linear_batch_kernel,
        out_shape=jax.ShapeDtypeStruct((n, B, N), jnp.float32),
        grid_spec=pltpu.PrefetchScalarGridSpec(
            num_scalar_prefetch=0,
            grid=(n,),
            in_specs=[pl.BlockSpec((1, B, F), lambda i: (i, 0, 0)),
                      pl.BlockSpec((1, 1, F), lambda i: (i, 0, 0)),
                      pl.BlockSpec((1, 1, F), lambda i: (i, 0, 0)),
                      pl.BlockSpec((1, F, N), lambda i: (i, 0, 0)),
                      pl.BlockSpec((1, 1, N), lambda i: (i, 0, 0))],
            out_specs=pl.BlockSpec((1, B, N), lambda i: (i, 0, 0)),
        ),
        compiler_params=_PAR,
    )(x, gamma, beta, w, b)


def _combine_kernel(s_ref, o_ref, *, n_valid):
    """stack - max(classes) - max(layers), then third-largest over layers."""
    s = s_ref[...]                                            # [L, B, N] f32
    L, Bv, N = s.shape
    col = jax.lax.broadcasted_iota(jnp.int32, (L, Bv, N), 2)
    s = jnp.where(col < n_valid, s, -1e30)                    # mask padded lanes
    s = s - jnp.max(s, axis=2, keepdims=True)                 # torch max(dim=2)
    s = s - jnp.max(s, axis=0, keepdims=True)                 # torch max(dim=1)
    neg = jnp.full((Bv, N), -1e30, dtype=s.dtype)
    t1, t2, t3 = neg, neg, neg
    for i in range(L):                                        # static unroll, L == 8
        v = s[i]
        c1, c2, c3 = v > t1, v > t2, v > t3
        t1, t2, t3 = (jnp.where(c1, v, t1),
                      jnp.where(c1, t1, jnp.where(c2, v, t2)),
                      jnp.where(c2, t2, jnp.where(c3, v, t3)))
    o_ref[...] = t3                                           # topk(3, dim=1).values[:, 2]


def combine_logits(stack):
    L, B, N = stack.shape
    return pl.pallas_call(
        functools.partial(_combine_kernel, n_valid=CLASSES),
        out_shape=jax.ShapeDtypeStruct((B, N), jnp.float32),
        in_specs=[pl.BlockSpec(memory_space=pltpu.MemorySpace.VMEM)],
        out_specs=pl.BlockSpec(memory_space=pltpu.MemorySpace.VMEM),
    )(stack)


# ------------------------------- JAX glue -----------------------------------


def prepare_input(x):
    """multichannel_fn + resize + normalize (glue); returns NHWC."""
    x = jnp.tile(x, (1, len(RESOLUTIONS), 1, 1))              # [B, 12, h, w]
    x = jax.image.resize(x, (x.shape[0], x.shape[1], S, S), method="cubic")
    mean = jnp.array([0.485, 0.456, 0.406] * len(RESOLUTIONS),
                     jnp.float32).reshape(1, -1, 1, 1)
    std = jnp.array([0.229, 0.224, 0.225] * len(RESOLUTIONS),
                    jnp.float32).reshape(1, -1, 1, 1)
    x = (x - mean) / std
    return jnp.transpose(x, (0, 2, 3, 1))                     # [B, S, S, 12] NHWC


def pool_nhwc(x, f):
    B, H, W, C = x.shape
    return x.reshape(B, H // f, f, W // f, f, C).mean(axis=(2, 4))


def target_model_forward(x, params):
    B = x.shape[0]
    h = prepare_input(x)                                      # [B, 32, 32, 12]

    # ---------------- backbone: single pass, layer ops 0..52 ----------------
    y = linear(h.reshape(-1, CH), *params["stem"], relu=True)            # op 0
    h = pool_nhwc(y.reshape(B, S, S, 16), 2)                              # [B,16,16,16]

    y = linear(h.reshape(-1, 16), *params["l1b0"], relu=True)            # op 1
    h = fused_blocks(y, *params["l1r"])[-1]                               # ops 2-3

    y = linear(h, *params["l2b0"], relu=True)                             # op 4
    h = pool_nhwc(y.reshape(B, 16, 16, 64), 2)                            # [B,8,8,64]
    h = fused_blocks(h.reshape(-1, 64), *params["l2r"])[-1]               # ops 5-11

    y = linear(h, *params["l3b0"], relu=True)                             # op 12
    h = pool_nhwc(y.reshape(B, 8, 8, 128), 2)                             # [B,4,4,128]
    outs3 = fused_blocks(h.reshape(-1, 128), *params["l3r"])              # ops 13-47

    y = linear(outs3[-1], *params["l4b0"], relu=True)                     # op 48
    h = pool_nhwc(y.reshape(B, 4, 4, 256), 2)                             # [B,2,2,256]
    outs4 = fused_blocks(h.reshape(-1, 256), *params["l4r"])              # ops 49-50

    pooled = outs4[-1].reshape(B, 2, 2, 256).mean(axis=(1, 2))            # op 51
    fc_logits = linear(pooled, *params["fc"], relu=False)                 # op 52
    # fc_logits doubles as all_logits[54] (== imported_model(prepare_input(x)))

    # ------------- probe heads feeding the logit stack (keys 20..52) --------
    x2048 = jnp.stack([outs3[j].reshape(B, -1) for j in (6, 16, 21, 26, 31)])
    x50 = outs4[0].reshape(1, B, -1)                                      # [1,B,1024]
    x52 = pooled.reshape(1, B, -1)                                        # [1,B,256]
    x_probe = jnp.concatenate(
        [x2048,
         jnp.pad(x50, ((0, 0), (0, 0), (0, F_PAD - x50.shape[-1]))),
         jnp.pad(x52, ((0, 0), (0, 0), (0, F_PAD - x52.shape[-1])))],
        axis=0)                                                           # [7,B,2048]
    probes = bn_linear_batch(x_probe, *params["probes"])                  # keys 20..52

    stack = jnp.concatenate([probes, fc_logits[None]], axis=0)            # [8, B, 128]
    return combine_logits(stack)[:, :CLASSES]                             # [B, CLASSES]


# ----------------------------- parameter init -------------------------------


def _fold(key, i):
    return jax.random.fold_in(key, i)


def _dense(k, fin, fout, pad_to=None):
    w = jax.random.normal(k, (fin, fout), jnp.float32) / jnp.sqrt(float(fin))
    b = jnp.zeros((1, fout), jnp.float32)
    if pad_to is not None and pad_to > fout:
        w = jnp.pad(w, ((0, 0), (0, pad_to - fout)))
        b = jnp.pad(b, ((0, 0), (0, pad_to - fout)))
    return w.astype(jnp.bfloat16), b


def _block_run(k, C, n):
    w = jax.random.normal(k, (n, C, C), jnp.float32) / jnp.sqrt(float(C))
    b = jnp.zeros((n, 1, C), jnp.float32)
    return w.astype(jnp.bfloat16), b


def _probe_stack(key, feat_dims):
    """Stacked BN+Linear probe heads, feature-padded to F_PAD, lanes to OUT_PAD.

    Padded feature columns are exactly 0 after batch-norm (mean=var=0) and
    their weight rows are 0, so padding does not change the result.
    """
    n = len(feat_dims)
    gamma = jnp.ones((n, 1, F_PAD), jnp.float32)
    beta = jnp.zeros((n, 1, F_PAD), jnp.float32)
    ws = []
    for i, F in enumerate(feat_dims):
        w = jax.random.normal(_fold(key, i), (F, CLASSES),
                              jnp.float32) / jnp.sqrt(float(F))
        ws.append(jnp.pad(w, ((0, F_PAD - F), (0, OUT_PAD - CLASSES))))
    w = jnp.stack(ws).astype(jnp.bfloat16)
    b = jnp.zeros((n, 1, OUT_PAD), jnp.float32)
    return gamma, beta, w, b


def init_params(key):
    p = {}
    p["stem"] = _dense(_fold(key, 100), CH, 16)
    p["l1b0"] = _dense(_fold(key, 101), 16, 32)
    p["l2b0"] = _dense(_fold(key, 102), 32, 64)
    p["l3b0"] = _dense(_fold(key, 103), 64, 128)
    p["l4b0"] = _dense(_fold(key, 104), 128, 256)
    p["fc"] = _dense(_fold(key, 999), 256, CLASSES, pad_to=OUT_PAD)
    p["l1r"] = _block_run(_fold(key, 110), 32, 2)
    p["l2r"] = _block_run(_fold(key, 111), 64, 7)
    p["l3r"] = _block_run(_fold(key, 112), 128, 35)
    p["l4r"] = _block_run(_fold(key, 113), 256, 2)
    # probe heads for stack keys 20,30,35,40,45 (F=2048), 50 (F=1024), 52 (F=256)
    p["probes"] = _probe_stack(_fold(key, 5000), [2048] * 5 + [1024, 256])
    return p


# --------------------------------- main --------------------------------------

if __name__ == "__main__":
    key = jax.random.PRNGKey(0)
    x = jax.random.normal(jax.random.fold_in(key, 1), (2, 3, 8, 8), jnp.float32)
    params = init_params(key)

    fwd = jax.jit(target_model_forward)
    logits = jax.block_until_ready(fwd(x, params))

    assert logits.shape == (2, CLASSES), logits.shape
    assert bool(jnp.all(jnp.isfinite(logits)))
    print("KERNEL_OK")
</pallas_src>

<mosaic_0001>
module attributes {stable_mosaic.version = 11 : i64} {
  func.func @_linear_kernel(%arg0: memref<2048x12xf32, #tpu.memory_space<vmem>>, %arg1: memref<12x16xbf16, #tpu.memory_space<vmem>>, %arg2: memref<1x16xf32, #tpu.memory_space<vmem>>, %arg3: memref<2048x16xf32, #tpu.memory_space<vmem>>) attributes {dimension_semantics = [], scalar_prefetch = 0 : i64, scratch_operands = 0 : i64, tpu.core_type = #tpu.core_type<tc>} {
    %c0 = arith.constant 0 : index
    %c0_0 = arith.constant 0 : index
    %0 = vector.load %arg0[%c0, %c0_0] : memref<2048x12xf32, #tpu.memory_space<vmem>>, vector<2048x12xf32>
    %1 = arith.truncf %0 : vector<2048x12xf32> to vector<2048x12xbf16>
    %c0_1 = arith.constant 0 : index
    %c0_2 = arith.constant 0 : index
    %2 = vector.load %arg1[%c0_1, %c0_2] : memref<12x16xbf16, #tpu.memory_space<vmem>>, vector<12x16xbf16>
    %cst = arith.constant dense<0.000000e+00> : vector<2048x16xf32>
    %3 = tpu.matmul %1, %2, %cst {dimension_numbers = #tpu.dot_dimension_numbers<[1], [0], [0], [1], [0, 0, 1, 1], [], []>} : vector<2048x12xbf16>, vector<12x16xbf16>, vector<2048x16xf32> -> vector<2048x16xf32>
    %c0_3 = arith.constant 0 : index
    %c0_4 = arith.constant 0 : index
    %4 = vector.load %arg2[%c0_3, %c0_4] : memref<1x16xf32, #tpu.memory_space<vmem>>, vector<1x16xf32>
    %5 = vector.broadcast %4 : vector<1x16xf32> to vector<2048x16xf32>
    %6 = arith.addf %3, %5 : vector<2048x16xf32>
    %cst_5 = arith.constant 0.000000e+00 : f32
    %7 = vector.broadcast %cst_5 : f32 to vector<2048x16xf32>
    %8 = arith.maximumf %6, %7 : vector<2048x16xf32>
    %c0_6 = arith.constant 0 : index
    %c0_7 = arith.constant 0 : index
    %9 = vector.load %arg3[%c0_6, %c0_7] : memref<2048x16xf32, #tpu.memory_space<vmem>>, vector<2048x16xf32>
    tpu.vector_store %arg3[%c0_6, %c0_7], %8 {strides = array<i32>} : memref<2048x16xf32, #tpu.memory_space<vmem>>, vector<2048x16xf32>,
    return
  }
}

module attributes {stable_mosaic.version = 11 : i64} {
  func.func @_linear_kernel(%arg0: memref<512x16xf32, #tpu.memory_space<vmem>>, %arg1: memref<16x32xbf16, #tpu.memory_space<vmem>>, %arg2: memref<1x32xf32, #tpu.memory_space<vmem>>, %arg3: memref<512x32xf32, #tpu.memory_space<vmem>>) attributes {dimension_semantics = [], scalar_prefetch = 0 : i64, scratch_operands = 0 : i64, tpu.core_type = #tpu.core_type<tc>} {
    %c0 = arith.constant 0 : index
    %c0_0 = arith.constant 0 : index
    %0 = vector.load %arg0[%c0, %c0_0] : memref<512x16xf32, #tpu.memory_space<vmem>>, vector<512x16xf32>
    %1 = arith.truncf %0 : vector<512x16xf32> to vector<512x16xbf16>
    %c0_1 = arith.constant 0 : index
    %c0_2 = arith.constant 0 : index
    %2 = vector.load %arg1[%c0_1, %c0_2] : memref<16x32xbf16, #tpu.memory_space<vmem>>, vector<16x32xbf16>
    %cst = arith.constant dense<0.000000e+00> : vector<512x32xf32>
    %3 = tpu.matmul %1, %2, %cst {dimension_numbers = #tpu.dot_dimension_numbers<[1], [0], [0], [1], [0, 0, 1, 1], [], []>} : vector<512x16xbf16>, vector<16x32xbf16>, vector<512x32xf32> -> vector<512x32xf32>
    %c0_3 = arith.constant 0 : index
    %c0_4 = arith.constant 0 : index
    %4 = vector.load %arg2[%c0_3, %c0_4] : memref<1x32xf32, #tpu.memory_space<vmem>>, vector<1x32xf32>
    %5 = vector.broadcast %4 : vector<1x32xf32> to vector<512x32xf32>
    %6 = arith.addf %3, %5 : vector<512x32xf32>
    %cst_5 = arith.constant 0.000000e+00 : f32
    %7 = vector.broadcast %cst_5 : f32 to vector<512x32xf32>
    %8 = arith.maximumf %6, %7 : vector<512x32xf32>
    %c0_6 = arith.constant 0 : index
    %c0_7 = arith.constant 0 : index
    %9 = vector.load %arg3[%c0_6, %c0_7] : memref<512x32xf32, #tpu.memory_space<vmem>>, vector<512x32xf32>
    tpu.vector_store %arg3[%c0_6, %c0_7], %8 {strides = array<i32>} : memref<512x32xf32, #tpu.memory_space<vmem>>, vector<512x32xf32>,
    return
  }
}

module attributes {stable_mosaic.version = 11 : i64} {
  func.func @_fused_blocks_kernel(%arg0: i32, %arg1: memref<512x32xf32, #tpu.memory_space<vmem>>, %arg2: memref<1x32x32xbf16, #tpu.memory_space<vmem>>, %arg3: memref<1x1x32xf32, #tpu.memory_space<vmem>>, %arg4: memref<1x512x32xf32, #tpu.memory_space<vmem>>, %arg5: memref<512x32xf32, #tpu.memory_space<vmem>>) attributes {dimension_semantics = [#tpu.dimension_semantics<arbitrary>], iteration_bounds = array<i64: 2>, scalar_prefetch = 0 : i64, scratch_operands = 1 : i64, tpu.core_type = #tpu.core_type<tc>, window_params = [{pipeline_mode = #tpu.pipeline_mode<synchronous>, transform_indices = @transform_0, window_bounds = array<i64: 512, 32>}, {transform_indices = @transform_1, window_bounds = array<i64: 1, 32, 32>}, {transform_indices = @transform_2, window_bounds = array<i64: 1, 1, 32>}, {transform_indices = @transform_3, window_bounds = array<i64: 1, 512, 32>}]} {
    %c0_i32 = arith.constant 0 : i32
    %0 = arith.cmpi eq, %arg0, %c0_i32 : i32
    %1 = arith.extui %0 : i1 to i32
    %c0_i32_0 = arith.constant 0 : i32
    %2 = arith.cmpi ne, %1, %c0_i32_0 : i32
    scf.if %2 {
      %c0_14 = arith.constant 0 : index
      %c0_15 = arith.constant 0 : index
      %18 = vector.load %arg1[%c0_14, %c0_15] : memref<512x32xf32, #tpu.memory_space<vmem>>, vector<512x32xf32>
      %c0_16 = arith.constant 0 : index
      %c0_17 = arith.constant 0 : index
      %19 = vector.load %arg5[%c0_16, %c0_17] : memref<512x32xf32, #tpu.memory_space<vmem>>, vector<512x32xf32>
      tpu.vector_store %arg5[%c0_16, %c0_17], %18 {strides = array<i32>} : memref<512x32xf32, #tpu.memory_space<vmem>>, vector<512x32xf32>,
    } else {
    }
    %c0 = arith.constant 0 : index
    %c0_1 = arith.constant 0 : index
    %3 = vector.load %arg5[%c0, %c0_1] : memref<512x32xf32, #tpu.memory_space<vmem>>, vector<512x32xf32>
    %4 = arith.truncf %3 : vector<512x32xf32> to vector<512x32xbf16>
    %c0_2 = arith.constant 0 : index
    %c0_3 = arith.constant 0 : index
    %c0_4 = arith.constant 0 : index
    %5 = vector.load %arg2[%c0_2, %c0_3, %c0_4] : memref<1x32x32xbf16, #tpu.memory_space<vmem>>, vector<1x32x32xbf16>
    %6 = vector.shape_cast %5 : vector<1x32x32xbf16> to vector<32x32xbf16>
    %cst = arith.constant dense<0.000000e+00> : vector<512x32xf32>
    %7 = tpu.matmul %4, %6, %cst {dimension_numbers = #tpu.dot_dimension_numbers<[1], [0], [0], [1], [0, 0, 1, 1], [], []>} : vector<512x32xbf16>, vector<32x32xbf16>, vector<512x32xf32> -> vector<512x32xf32>
    %c0_5 = arith.constant 0 : index
    %c0_6 = arith.constant 0 : index
    %c0_7 = arith.constant 0 : index
    %8 = vector.load %arg3[%c0_5, %c0_6, %c0_7] : memref<1x1x32xf32, #tpu.memory_space<vmem>>, vector<1x1x32xf32>
    %9 = vector.shape_cast %8 : vector<1x1x32xf32> to vector<1x32xf32>
    %10 = vector.broadcast %9 : vector<1x32xf32> to vector<512x32xf32>
    %11 = arith.addf %7, %10 : vector<512x32xf32>
    %cst_8 = arith.constant 0.000000e+00 : f32
    %12 = vector.broadcast %cst_8 : f32 to vector<512x32xf32>
    %13 = arith.maximumf %11, %12 : vector<512x32xf32>
    %c0_9 = arith.constant 0 : index
    %c0_10 = arith.constant 0 : index
    %14 = vector.load %arg5[%c0_9, %c0_10] : memref<512x32xf32, #tpu.memory_space<vmem>>, vector<512x32xf32>
    tpu.vector_store %arg5[%c0_9, %c0_10], %13 {strides = array<i32>} : memref<512x32xf32, #tpu.memory_space<vmem>>, vector<512x32xf32>,
    %c0_11 = arith.constant 0 : index
    %c0_12 = arith.constant 0 : index
    %c0_13 = arith.constant 0 : index
    %15 = vector.load %arg4[%c0_11, %c0_12, %c0_13] : memref<1x512x32xf32, #tpu.memory_space<vmem>>, vector<1x512x32xf32>
    %16 = vector.shape_cast %15 : vector<1x512x32xf32> to vector<512x32xf32>
    %17 = vector.shape_cast %13 : vector<512x32xf32> to vector<1x512x32xf32>
    tpu.vector_store %arg4[%c0_11, %c0_12, %c0_13], %17 {strides = array<i32>} : memref<1x512x32xf32, #tpu.memory_space<vmem>>, vector<1x512x32xf32>,
    return
  }
  func.func @transform_0(%arg0: i32) -> (i32, i32) {
    %c0_i32 = arith.constant 0 : i32
    %c0_i32_0 = arith.constant 0 : i32
    %c0_i32_1 = arith.constant 0 : i32
    return %c0_i32, %c0_i32_0 : i32, i32
  }
  func.func @transform_1(%arg0: i32) -> (i32, i32, i32) {
    %c0_i32 = arith.constant 0 : i32
    %c0_i32_0 = arith.constant 0 : i32
    %c0_i32_1 = arith.constant 0 : i32
    return %arg0, %c0_i32, %c0_i32_0 : i32, i32, i32
  }
  func.func @transform_2(%arg0: i32) -> (i32, i32, i32) {
    %c0_i32 = arith.constant 0 : i32
    %c0_i32_0 = arith.constant 0 : i32
    %c0_i32_1 = arith.constant 0 : i32
    return %arg0, %c0_i32, %c0_i32_0 : i32, i32, i32
  }
  func.func @transform_3(%arg0: i32) -> (i32, i32, i32) {
    %c0_i32 = arith.constant 0 : i32
    %c0_i32_0 = arith.constant 0 : i32
    %c0_i32_1 = arith.constant 0 : i32
    return %arg0, %c0_i32, %c0_i32_0 : i32, i32, i32
  }
}

module attributes {stable_mosaic.version = 11 : i64} {
  func.func @_linear_kernel(%arg0: memref<512x32xf32, #tpu.memory_space<vmem>>, %arg1: memref<32x64xbf16, #tpu.memory_space<vmem>>, %arg2: memref<1x64xf32, #tpu.memory_space<vmem>>, %arg3: memref<512x64xf32, #tpu.memory_space<vmem>>) attributes {dimension_semantics = [], scalar_prefetch = 0 : i64, scratch_operands = 0 : i64, tpu.core_type = #tpu.core_type<tc>} {
    %c0 = arith.constant 0 : index
    %c0_0 = arith.constant 0 : index
    %0 = vector.load %arg0[%c0, %c0_0] : memref<512x32xf32, #tpu.memory_space<vmem>>, vector<512x32xf32>
    %1 = arith.truncf %0 : vector<512x32xf32> to vector<512x32xbf16>
    %c0_1 = arith.constant 0 : index
    %c0_2 = arith.constant 0 : index
    %2 = vector.load %arg1[%c0_1, %c0_2] : memref<32x64xbf16, #tpu.memory_space<vmem>>, vector<32x64xbf16>
    %cst = arith.constant dense<0.000000e+00> : vector<512x64xf32>
    %3 = tpu.matmul %1, %2, %cst {dimension_numbers = #tpu.dot_dimension_numbers<[1], [0], [0], [1], [0, 0, 1, 1], [], []>} : vector<512x32xbf16>, vector<32x64xbf16>, vector<512x64xf32> -> vector<512x64xf32>
    %c0_3 = arith.constant 0 : index
    %c0_4 = arith.constant 0 : index
    %4 = vector.load %arg2[%c0_3, %c0_4] : memref<1x64xf32, #tpu.memory_space<vmem>>, vector<1x64xf32>
    %5 = vector.broadcast %4 : vector<1x64xf32> to vector<512x64xf32>
    %6 = arith.addf %3, %5 : vector<512x64xf32>
    %cst_5 = arith.constant 0.000000e+00 : f32
    %7 = vector.broadcast %cst_5 : f32 to vector<512x64xf32>
    %8 = arith.maximumf %6, %7 : vector<512x64xf32>
    %c0_6 = arith.constant 0 : index
    %c0_7 = arith.constant 0 : index
    %9 = vector.load %arg3[%c0_6, %c0_7] : memref<512x64xf32, #tpu.memory_space<vmem>>, vector<512x64xf32>
    tpu.vector_store %arg3[%c0_6, %c0_7], %8 {strides = array<i32>} : memref<512x64xf32, #tpu.memory_space<vmem>>, vector<512x64xf32>,
    return
  }
}

module attributes {stable_mosaic.version = 11 : i64} {
  func.func @_fused_blocks_kernel(%arg0: i32, %arg1: memref<128x64xf32, #tpu.memory_space<vmem>>, %arg2: memref<1x64x64xbf16, #tpu.memory_space<vmem>>, %arg3: memref<1x1x64xf32, #tpu.memory_space<vmem>>, %arg4: memref<1x128x64xf32, #tpu.memory_space<vmem>>, %arg5: memref<128x64xf32, #tpu.memory_space<vmem>>) attributes {dimension_semantics = [#tpu.dimension_semantics<arbitrary>], iteration_bounds = array<i64: 7>, scalar_prefetch = 0 : i64, scratch_operands = 1 : i64, tpu.core_type = #tpu.core_type<tc>, window_params = [{pipeline_mode = #tpu.pipeline_mode<synchronous>, transform_indices = @transform_0, window_bounds = array<i64: 128, 64>}, {transform_indices = @transform_1, window_bounds = array<i64: 1, 64, 64>}, {transform_indices = @transform_2, window_bounds = array<i64: 1, 1, 64>}, {transform_indices = @transform_3, window_bounds = array<i64: 1, 128, 64>}]} {
    %c0_i32 = arith.constant 0 : i32
    %0 = arith.cmpi eq, %arg0, %c0_i32 : i32
    %1 = arith.extui %0 : i1 to i32
    %c0_i32_0 = arith.constant 0 : i32
    %2 = arith.cmpi ne, %1, %c0_i32_0 : i32
    scf.if %2 {
      %c0_14 = arith.constant 0 : index
      %c0_15 = arith.constant 0 : index
      %18 = vector.load %arg1[%c0_14, %c0_15] : memref<128x64xf32, #tpu.memory_space<vmem>>, vector<128x64xf32>
      %c0_16 = arith.constant 0 : index
      %c0_17 = arith.constant 0 : index
      %19 = vector.load %arg5[%c0_16, %c0_17] : memref<128x64xf32, #tpu.memory_space<vmem>>, vector<128x64xf32>
      tpu.vector_store %arg5[%c0_16, %c0_17], %18 {strides = array<i32>} : memref<128x64xf32, #tpu.memory_space<vmem>>, vector<128x64xf32>,
    } else {
    }
    %c0 = arith.constant 0 : index
    %c0_1 = arith.constant 0 : index
    %3 = vector.load %arg5[%c0, %c0_1] : memref<128x64xf32, #tpu.memory_space<vmem>>, vector<128x64xf32>
    %4 = arith.truncf %3 : vector<128x64xf32> to vector<128x64xbf16>
    %c0_2 = arith.constant 0 : index
    %c0_3 = arith.constant 0 : index
    %c0_4 = arith.constant 0 : index
    %5 = vector.load %arg2[%c0_2, %c0_3, %c0_4] : memref<1x64x64xbf16, #tpu.memory_space<vmem>>, vector<1x64x64xbf16>
    %6 = vector.shape_cast %5 : vector<1x64x64xbf16> to vector<64x64xbf16>
    %cst = arith.constant dense<0.000000e+00> : vector<128x64xf32>
    %7 = tpu.matmul %4, %6, %cst {dimension_numbers = #tpu.dot_dimension_numbers<[1], [0], [0], [1], [0, 0, 1, 1], [], []>} : vector<128x64xbf16>, vector<64x64xbf16>, vector<128x64xf32> -> vector<128x64xf32>
    %c0_5 = arith.constant 0 : index
    %c0_6 = arith.constant 0 : index
    %c0_7 = arith.constant 0 : index
    %8 = vector.load %arg3[%c0_5, %c0_6, %c0_7] : memref<1x1x64xf32, #tpu.memory_space<vmem>>, vector<1x1x64xf32>
    %9 = vector.shape_cast %8 : vector<1x1x64xf32> to vector<1x64xf32>
    %10 = vector.broadcast %9 : vector<1x64xf32> to vector<128x64xf32>
    %11 = arith.addf %7, %10 : vector<128x64xf32>
    %cst_8 = arith.constant 0.000000e+00 : f32
    %12 = vector.broadcast %cst_8 : f32 to vector<128x64xf32>
    %13 = arith.maximumf %11, %12 : vector<128x64xf32>
    %c0_9 = arith.constant 0 : index
    %c0_10 = arith.constant 0 : index
    %14 = vector.load %arg5[%c0_9, %c0_10] : memref<128x64xf32, #tpu.memory_space<vmem>>, vector<128x64xf32>
    tpu.vector_store %arg5[%c0_9, %c0_10], %13 {strides = array<i32>} : memref<128x64xf32, #tpu.memory_space<vmem>>, vector<128x64xf32>,
    %c0_11 = arith.constant 0 : index
    %c0_12 = arith.constant 0 : index
    %c0_13 = arith.constant 0 : index
    %15 = vector.load %arg4[%c0_11, %c0_12, %c0_13] : memref<1x128x64xf32, #tpu.memory_space<vmem>>, vector<1x128x64xf32>
    %16 = vector.shape_cast %15 : vector<1x128x64xf32> to vector<128x64xf32>
    %17 = vector.shape_cast %13 : vector<128x64xf32> to vector<1x128x64xf32>
    tpu.vector_store %arg4[%c0_11, %c0_12, %c0_13], %17 {strides = array<i32>} : memref<1x128x64xf32, #tpu.memory_space<vmem>>, vector<1x128x64xf32>,
    return
  }
  func.func @transform_0(%arg0: i32) -> (i32, i32) {
    %c0_i32 = arith.constant 0 : i32
    %c0_i32_0 = arith.constant 0 : i32
    %c0_i32_1 = arith.constant 0 : i32
    return %c0_i32, %c0_i32_0 : i32, i32
  }
  func.func @transform_1(%arg0: i32) -> (i32, i32, i32) {
    %c0_i32 = arith.constant 0 : i32
    %c0_i32_0 = arith.constant 0 : i32
    %c0_i32_1 = arith.constant 0 : i32
    return %arg0, %c0_i32, %c0_i32_0 : i32, i32, i32
  }
  func.func @transform_2(%arg0: i32) -> (i32, i32, i32) {
    %c0_i32 = arith.constant 0 : i32
    %c0_i32_0 = arith.constant 0 : i32
    %c0_i32_1 = arith.constant 0 : i32
    return %arg0, %c0_i32, %c0_i32_0 : i32, i32, i32
  }
  func.func @transform_3(%arg0: i32) -> (i32, i32, i32) {
    %c0_i32 = arith.constant 0 : i32
    %c0_i32_0 = arith.constant 0 : i32
    %c0_i32_1 = arith.constant 0 : i32
    return %arg0, %c0_i32, %c0_i32_0 : i32, i32, i32
  }
}

module attributes {stable_mosaic.version = 11 : i64} {
  func.func @_linear_kernel(%arg0: memref<128x64xf32, #tpu.memory_space<vmem>>, %arg1: memref<64x128xbf16, #tpu.memory_space<vmem>>, %arg2: memref<1x128xf32, #tpu.memory_space<vmem>>, %arg3: memref<128x128xf32, #tpu.memory_space<vmem>>) attributes {dimension_semantics = [], scalar_prefetch = 0 : i64, scratch_operands = 0 : i64, tpu.core_type = #tpu.core_type<tc>} {
    %c0 = arith.constant 0 : index
    %c0_0 = arith.constant 0 : index
    %0 = vector.load %arg0[%c0, %c0_0] : memref<128x64xf32, #tpu.memory_space<vmem>>, vector<128x64xf32>
    %1 = arith.truncf %0 : vector<128x64xf32> to vector<128x64xbf16>
    %c0_1 = arith.constant 0 : index
    %c0_2 = arith.constant 0 : index
    %2 = vector.load %arg1[%c0_1, %c0_2] : memref<64x128xbf16, #tpu.memory_space<vmem>>, vector<64x128xbf16>
    %cst = arith.constant dense<0.000000e+00> : vector<128x128xf32>
    %3 = tpu.matmul %1, %2, %cst {dimension_numbers = #tpu.dot_dimension_numbers<[1], [0], [0], [1], [0, 0, 1, 1], [], []>} : vector<128x64xbf16>, vector<64x128xbf16>, vector<128x128xf32> -> vector<128x128xf32>
    %c0_3 = arith.constant 0 : index
    %c0_4 = arith.constant 0 : index
    %4 = vector.load %arg2[%c0_3, %c0_4] : memref<1x128xf32, #tpu.memory_space<vmem>>, vector<1x128xf32>
    %5 = vector.broadcast %4 : vector<1x128xf32> to vector<128x128xf32>
    %6 = arith.addf %3, %5 : vector<128x128xf32>
    %cst_5 = arith.constant 0.000000e+00 : f32
    %7 = vector.broadcast %cst_5 : f32 to vector<128x128xf32>
    %8 = arith.maximumf %6, %7 : vector<128x128xf32>
    %c0_6 = arith.constant 0 : index
    %c0_7 = arith.constant 0 : index
    %9 = vector.load %arg3[%c0_6, %c0_7] : memref<128x128xf32, #tpu.memory_space<vmem>>, vector<128x128xf32>
    tpu.vector_store %arg3[%c0_6, %c0_7], %8 {strides = array<i32>} : memref<128x128xf32, #tpu.memory_space<vmem>>, vector<128x128xf32>,
    return
  }
}

module attributes {stable_mosaic.version = 11 : i64} {
  func.func @_fused_blocks_kernel(%arg0: i32, %arg1: memref<32x128xf32, #tpu.memory_space<vmem>>, %arg2: memref<1x128x128xbf16, #tpu.memory_space<vmem>>, %arg3: memref<1x1x128xf32, #tpu.memory_space<vmem>>, %arg4: memref<1x32x128xf32, #tpu.memory_space<vmem>>, %arg5: memref<32x128xf32, #tpu.memory_space<vmem>>) attributes {dimension_semantics = [#tpu.dimension_semantics<arbitrary>], iteration_bounds = array<i64: 35>, scalar_prefetch = 0 : i64, scratch_operands = 1 : i64, tpu.core_type = #tpu.core_type<tc>, window_params = [{pipeline_mode = #tpu.pipeline_mode<synchronous>, transform_indices = @transform_0, window_bounds = array<i64: 32, 128>}, {transform_indices = @transform_1, window_bounds = array<i64: 1, 128, 128>}, {transform_indices = @transform_2, window_bounds = array<i64: 1, 1, 128>}, {transform_indices = @transform_3, window_bounds = array<i64: 1, 32, 128>}]} {
    %c0_i32 = arith.constant 0 : i32
    %0 = arith.cmpi eq, %arg0, %c0_i32 : i32
    %1 = arith.extui %0 : i1 to i32
    %c0_i32_0 = arith.constant 0 : i32
    %2 = arith.cmpi ne, %1, %c0_i32_0 : i32
    scf.if %2 {
      %c0_14 = arith.constant 0 : index
      %c0_15 = arith.constant 0 : index
      %18 = vector.load %arg1[%c0_14, %c0_15] : memref<32x128xf32, #tpu.memory_space<vmem>>, vector<32x128xf32>
      %c0_16 = arith.constant 0 : index
      %c0_17 = arith.constant 0 : index
      %19 = vector.load %arg5[%c0_16, %c0_17] : memref<32x128xf32, #tpu.memory_space<vmem>>, vector<32x128xf32>
      tpu.vector_store %arg5[%c0_16, %c0_17], %18 {strides = array<i32>} : memref<32x128xf32, #tpu.memory_space<vmem>>, vector<32x128xf32>,
    } else {
    }
    %c0 = arith.constant 0 : index
    %c0_1 = arith.constant 0 : index
    %3 = vector.load %arg5[%c0, %c0_1] : memref<32x128xf32, #tpu.memory_space<vmem>>, vector<32x128xf32>
    %4 = arith.truncf %3 : vector<32x128xf32> to vector<32x128xbf16>
    %c0_2 = arith.constant 0 : index
    %c0_3 = arith.constant 0 : index
    %c0_4 = arith.constant 0 : index
    %5 = vector.load %arg2[%c0_2, %c0_3, %c0_4] : memref<1x128x128xbf16, #tpu.memory_space<vmem>>, vector<1x128x128xbf16>
    %6 = vector.shape_cast %5 : vector<1x128x128xbf16> to vector<128x128xbf16>
    %cst = arith.constant dense<0.000000e+00> : vector<32x128xf32>
    %7 = tpu.matmul %4, %6, %cst {dimension_numbers = #tpu.dot_dimension_numbers<[1], [0], [0], [1], [0, 0, 1, 1], [], []>} : vector<32x128xbf16>, vector<128x128xbf16>, vector<32x128xf32> -> vector<32x128xf32>
    %c0_5 = arith.constant 0 : index
    %c0_6 = arith.constant 0 : index
    %c0_7 = arith.constant 0 : index
    %8 = vector.load %arg3[%c0_5, %c0_6, %c0_7] : memref<1x1x128xf32, #tpu.memory_space<vmem>>, vector<1x1x128xf32>
    %9 = vector.shape_cast %8 : vector<1x1x128xf32> to vector<1x128xf32>
    %10 = vector.broadcast %9 : vector<1x128xf32> to vector<32x128xf32>
    %11 = arith.addf %7, %10 : vector<32x128xf32>
    %cst_8 = arith.constant 0.000000e+00 : f32
    %12 = vector.broadcast %cst_8 : f32 to vector<32x128xf32>
    %13 = arith.maximumf %11, %12 : vector<32x128xf32>
    %c0_9 = arith.constant 0 : index
    %c0_10 = arith.constant 0 : index
    %14 = vector.load %arg5[%c0_9, %c0_10] : memref<32x128xf32, #tpu.memory_space<vmem>>, vector<32x128xf32>
    tpu.vector_store %arg5[%c0_9, %c0_10], %13 {strides = array<i32>} : memref<32x128xf32, #tpu.memory_space<vmem>>, vector<32x128xf32>,
    %c0_11 = arith.constant 0 : index
    %c0_12 = arith.constant 0 : index
    %c0_13 = arith.constant 0 : index
    %15 = vector.load %arg4[%c0_11, %c0_12, %c0_13] : memref<1x32x128xf32, #tpu.memory_space<vmem>>, vector<1x32x128xf32>
    %16 = vector.shape_cast %15 : vector<1x32x128xf32> to vector<32x128xf32>
    %17 = vector.shape_cast %13 : vector<32x128xf32> to vector<1x32x128xf32>
    tpu.vector_store %arg4[%c0_11, %c0_12, %c0_13], %17 {strides = array<i32>} : memref<1x32x128xf32, #tpu.memory_space<vmem>>, vector<1x32x128xf32>,
    return
  }
  func.func @transform_0(%arg0: i32) -> (i32, i32) {
    %c0_i32 = arith.constant 0 : i32
    %c0_i32_0 = arith.constant 0 : i32
    %c0_i32_1 = arith.constant 0 : i32
    return %c0_i32, %c0_i32_0 : i32, i32
  }
  func.func @transform_1(%arg0: i32) -> (i32, i32, i32) {
    %c0_i32 = arith.constant 0 : i32
    %c0_i32_0 = arith.constant 0 : i32
    %c0_i32_1 = arith.constant 0 : i32
    return %arg0, %c0_i32, %c0_i32_0 : i32, i32, i32
  }
  func.func @transform_2(%arg0: i32) -> (i32, i32, i32) {
    %c0_i32 = arith.constant 0 : i32
    %c0_i32_0 = arith.constant 0 : i32
    %c0_i32_1 = arith.constant 0 : i32
    return %arg0, %c0_i32, %c0_i32_0 : i32, i32, i32
  }
  func.func @transform_3(%arg0: i32) -> (i32, i32, i32) {
    %c0_i32 = arith.constant 0 : i32
    %c0_i32_0 = arith.constant 0 : i32
    %c0_i32_1 = arith.constant 0 : i32
    return %arg0, %c0_i32, %c0_i32_0 : i32, i32, i32
  }
}

module attributes {stable_mosaic.version = 11 : i64} {
  func.func @_linear_kernel(%arg0: memref<32x128xf32, #tpu.memory_space<vmem>>, %arg1: memref<128x256xbf16, #tpu.memory_space<vmem>>, %arg2: memref<1x256xf32, #tpu.memory_space<vmem>>, %arg3: memref<32x256xf32, #tpu.memory_space<vmem>>) attributes {dimension_semantics = [], scalar_prefetch = 0 : i64, scratch_operands = 0 : i64, tpu.core_type = #tpu.core_type<tc>} {
    %c0 = arith.constant 0 : index
    %c0_0 = arith.constant 0 : index
    %0 = vector.load %arg0[%c0, %c0_0] : memref<32x128xf32, #tpu.memory_space<vmem>>, vector<32x128xf32>
    %1 = arith.truncf %0 : vector<32x128xf32> to vector<32x128xbf16>
    %c0_1 = arith.constant 0 : index
    %c0_2 = arith.constant 0 : index
    %2 = vector.load %arg1[%c0_1, %c0_2] : memref<128x256xbf16, #tpu.memory_space<vmem>>, vector<128x256xbf16>
    %cst = arith.constant dense<0.000000e+00> : vector<32x256xf32>
    %3 = tpu.matmul %1, %2, %cst {dimension_numbers = #tpu.dot_dimension_numbers<[1], [0], [0], [1], [0, 0, 1, 1], [], []>} : vector<32x128xbf16>, vector<128x256xbf16>, vector<32x256xf32> -> vector<32x256xf32>
    %c0_3 = arith.constant 0 : index
    %c0_4 = arith.constant 0 : index
    %4 = vector.load %arg2[%c0_3, %c0_4] : memref<1x256xf32, #tpu.memory_space<vmem>>, vector<1x256xf32>
    %5 = vector.broadcast %4 : vector<1x256xf32> to vector<32x256xf32>
    %6 = arith.addf %3, %5 : vector<32x256xf32>
    %cst_5 = arith.constant 0.000000e+00 : f32
    %7 = vector.broadcast %cst_5 : f32 to vector<32x256xf32>
    %8 = arith.maximumf %6, %7 : vector<32x256xf32>
    %c0_6 = arith.constant 0 : index
    %c0_7 = arith.constant 0 : index
    %9 = vector.load %arg3[%c0_6, %c0_7] : memref<32x256xf32, #tpu.memory_space<vmem>>, vector<32x256xf32>
    tpu.vector_store %arg3[%c0_6, %c0_7], %8 {strides = array<i32>} : memref<32x256xf32, #tpu.memory_space<vmem>>, vector<32x256xf32>,
    return
  }
}

module attributes {stable_mosaic.version = 11 : i64} {
  func.func @_fused_blocks_kernel(%arg0: i32, %arg1: memref<8x256xf32, #tpu.memory_space<vmem>>, %arg2: memref<1x256x256xbf16, #tpu.memory_space<vmem>>, %arg3: memref<1x1x256xf32, #tpu.memory_space<vmem>>, %arg4: memref<1x8x256xf32, #tpu.memory_space<vmem>>, %arg5: memref<8x256xf32, #tpu.memory_space<vmem>>) attributes {dimension_semantics = [#tpu.dimension_semantics<arbitrary>], iteration_bounds = array<i64: 2>, scalar_prefetch = 0 : i64, scratch_operands = 1 : i64, tpu.core_type = #tpu.core_type<tc>, window_params = [{pipeline_mode = #tpu.pipeline_mode<synchronous>, transform_indices = @transform_0, window_bounds = array<i64: 8, 256>}, {transform_indices = @transform_1, window_bounds = array<i64: 1, 256, 256>}, {transform_indices = @transform_2, window_bounds = array<i64: 1, 1, 256>}, {transform_indices = @transform_3, window_bounds = array<i64: 1, 8, 256>}]} {
    %c0_i32 = arith.constant 0 : i32
    %0 = arith.cmpi eq, %arg0, %c0_i32 : i32
    %1 = arith.extui %0 : i1 to i32
    %c0_i32_0 = arith.constant 0 : i32
    %2 = arith.cmpi ne, %1, %c0_i32_0 : i32
    scf.if %2 {
      %c0_14 = arith.constant 0 : index
      %c0_15 = arith.constant 0 : index
      %18 = vector.load %arg1[%c0_14, %c0_15] : memref<8x256xf32, #tpu.memory_space<vmem>>, vector<8x256xf32>
      %c0_16 = arith.constant 0 : index
      %c0_17 = arith.constant 0 : index
      %19 = vector.load %arg5[%c0_16, %c0_17] : memref<8x256xf32, #tpu.memory_space<vmem>>, vector<8x256xf32>
      tpu.vector_store %arg5[%c0_16, %c0_17], %18 {strides = array<i32>} : memref<8x256xf32, #tpu.memory_space<vmem>>, vector<8x256xf32>,
    } else {
    }
    %c0 = arith.constant 0 : index
    %c0_1 = arith.constant 0 : index
    %3 = vector.load %arg5[%c0, %c0_1] : memref<8x256xf32, #tpu.memory_space<vmem>>, vector<8x256xf32>
    %4 = arith.truncf %3 : vector<8x256xf32> to vector<8x256xbf16>
    %c0_2 = arith.constant 0 : index
    %c0_3 = arith.constant 0 : index
    %c0_4 = arith.constant 0 : index
    %5 = vector.load %arg2[%c0_2, %c0_3, %c0_4] : memref<1x256x256xbf16, #tpu.memory_space<vmem>>, vector<1x256x256xbf16>
    %6 = vector.shape_cast %5 : vector<1x256x256xbf16> to vector<256x256xbf16>
    %cst = arith.constant dense<0.000000e+00> : vector<8x256xf32>
    %7 = tpu.matmul %4, %6, %cst {dimension_numbers = #tpu.dot_dimension_numbers<[1], [0], [0], [1], [0, 0, 1, 1], [], []>} : vector<8x256xbf16>, vector<256x256xbf16>, vector<8x256xf32> -> vector<8x256xf32>
    %c0_5 = arith.constant 0 : index
    %c0_6 = arith.constant 0 : index
    %c0_7 = arith.constant 0 : index
    %8 = vector.load %arg3[%c0_5, %c0_6, %c0_7] : memref<1x1x256xf32, #tpu.memory_space<vmem>>, vector<1x1x256xf32>
    %9 = vector.shape_cast %8 : vector<1x1x256xf32> to vector<1x256xf32>
    %10 = vector.broadcast %9 : vector<1x256xf32> to vector<8x256xf32>
    %11 = arith.addf %7, %10 : vector<8x256xf32>
    %cst_8 = arith.constant 0.000000e+00 : f32
    %12 = vector.broadcast %cst_8 : f32 to vector<8x256xf32>
    %13 = arith.maximumf %11, %12 : vector<8x256xf32>
    %c0_9 = arith.constant 0 : index
    %c0_10 = arith.constant 0 : index
    %14 = vector.load %arg5[%c0_9, %c0_10] : memref<8x256xf32, #tpu.memory_space<vmem>>, vector<8x256xf32>
    tpu.vector_store %arg5[%c0_9, %c0_10], %13 {strides = array<i32>} : memref<8x256xf32, #tpu.memory_space<vmem>>, vector<8x256xf32>,
    %c0_11 = arith.constant 0 : index
    %c0_12 = arith.constant 0 : index
    %c0_13 = arith.constant 0 : index
    %15 = vector.load %arg4[%c0_11, %c0_12, %c0_13] : memref<1x8x256xf32, #tpu.memory_space<vmem>>, vector<1x8x256xf32>
    %16 = vector.shape_cast %15 : vector<1x8x256xf32> to vector<8x256xf32>
    %17 = vector.shape_cast %13 : vector<8x256xf32> to vector<1x8x256xf32>
    tpu.vector_store %arg4[%c0_11, %c0_12, %c0_13], %17 {strides = array<i32>} : memref<1x8x256xf32, #tpu.memory_space<vmem>>, vector<1x8x256xf32>,
    return
  }
  func.func @transform_0(%arg0: i32) -> (i32, i32) {
    %c0_i32 = arith.constant 0 : i32
    %c0_i32_0 = arith.constant 0 : i32
    %c0_i32_1 = arith.constant 0 : i32
    return %c0_i32, %c0_i32_0 : i32, i32
  }
  func.func @transform_1(%arg0: i32) -> (i32, i32, i32) {
    %c0_i32 = arith.constant 0 : i32
    %c0_i32_0 = arith.constant 0 : i32
    %c0_i32_1 = arith.constant 0 : i32
    return %arg0, %c0_i32, %c0_i32_0 : i32, i32, i32
  }
  func.func @transform_2(%arg0: i32) -> (i32, i32, i32) {
    %c0_i32 = arith.constant 0 : i32
    %c0_i32_0 = arith.constant 0 : i32
    %c0_i32_1 = arith.constant 0 : i32
    return %arg0, %c0_i32, %c0_i32_0 : i32, i32, i32
  }
  func.func @transform_3(%arg0: i32) -> (i32, i32, i32) {
    %c0_i32 = arith.constant 0 : i32
    %c0_i32_0 = arith.constant 0 : i32
    %c0_i32_1 = arith.constant 0 : i32
    return %arg0, %c0_i32, %c0_i32_0 : i32, i32, i32
  }
}

module attributes {stable_mosaic.version = 11 : i64} {
  func.func @_linear_kernel(%arg0: memref<2x256xf32, #tpu.memory_space<vmem>>, %arg1: memref<256x128xbf16, #tpu.memory_space<vmem>>, %arg2: memref<1x128xf32, #tpu.memory_space<vmem>>, %arg3: memref<2x128xf32, #tpu.memory_space<vmem>>) attributes {dimension_semantics = [], scalar_prefetch = 0 : i64, scratch_operands = 0 : i64, tpu.core_type = #tpu.core_type<tc>} {
    %c0 = arith.constant 0 : index
    %c0_0 = arith.constant 0 : index
    %0 = vector.load %arg0[%c0, %c0_0] : memref<2x256xf32, #tpu.memory_space<vmem>>, vector<2x256xf32>
    %1 = arith.truncf %0 : vector<2x256xf32> to vector<2x256xbf16>
    %c0_1 = arith.constant 0 : index
    %c0_2 = arith.constant 0 : index
    %2 = vector.load %arg1[%c0_1, %c0_2] : memref<256x128xbf16, #tpu.memory_space<vmem>>, vector<256x128xbf16>
    %cst = arith.constant dense<0.000000e+00> : vector<2x128xf32>
    %3 = tpu.matmul %1, %2, %cst {dimension_numbers = #tpu.dot_dimension_numbers<[1], [0], [0], [1], [0, 0, 1, 1], [], []>} : vector<2x256xbf16>, vector<256x128xbf16>, vector<2x128xf32> -> vector<2x128xf32>
    %c0_3 = arith.constant 0 : index
    %c0_4 = arith.constant 0 : index
    %4 = vector.load %arg2[%c0_3, %c0_4] : memref<1x128xf32, #tpu.memory_space<vmem>>, vector<1x128xf32>
    %5 = vector.broadcast %4 : vector<1x128xf32> to vector<2x128xf32>
    %6 = arith.addf %3, %5 : vector<2x128xf32>
    %c0_5 = arith.constant 0 : index
    %c0_6 = arith.constant 0 : index
    %7 = vector.load %arg3[%c0_5, %c0_6] : memref<2x128xf32, #tpu.memory_space<vmem>>, vector<2x128xf32>
    tpu.vector_store %arg3[%c0_5, %c0_6], %6 {strides = array<i32>} : memref<2x128xf32, #tpu.memory_space<vmem>>, vector<2x128xf32>,
    return
  }
}

module attributes {stable_mosaic.version = 11 : i64} {
  func.func @_bn_linear_batch_kernel(%arg0: i32, %arg1: memref<1x2x2048xf32, #tpu.memory_space<vmem>>, %arg2: memref<1x1x2048xf32, #tpu.memory_space<vmem>>, %arg3: memref<1x1x2048xf32, #tpu.memory_space<vmem>>, %arg4: memref<1x2048x128xbf16, #tpu.memory_space<vmem>>, %arg5: memref<1x1x128xf32, #tpu.memory_space<vmem>>, %arg6: memref<1x2x128xf32, #tpu.memory_space<vmem>>) attributes {dimension_semantics = [#tpu.dimension_semantics<parallel>], iteration_bounds = array<i64: 7>, scalar_prefetch = 0 : i64, scratch_operands = 0 : i64, tpu.core_type = #tpu.core_type<tc>, window_params = [{transform_indices = @transform_0, window_bounds = array<i64: 1, 2, 2048>}, {transform_indices = @transform_1, window_bounds = array<i64: 1, 1, 2048>}, {transform_indices = @transform_2, window_bounds = array<i64: 1, 1, 2048>}, {transform_indices = @transform_3, window_bounds = array<i64: 1, 2048, 128>}, {transform_indices = @transform_4, window_bounds = array<i64: 1, 1, 128>}, {transform_indices = @transform_5, window_bounds = array<i64: 1, 2, 128>}]} {
    %c0 = arith.constant 0 : index
    %c0_0 = arith.constant 0 : index
    %c0_1 = arith.constant 0 : index
    %0 = vector.load %arg1[%c0, %c0_0, %c0_1] : memref<1x2x2048xf32, #tpu.memory_space<vmem>>, vector<1x2x2048xf32>
    %1 = vector.shape_cast %0 : vector<1x2x2048xf32> to vector<2x2048xf32>
    %cst = arith.constant dense<0.000000e+00> : vector<2048xf32>
    %2 = vector.multi_reduction <add>, %1, %cst [0] : vector<2x2048xf32> to vector<2048xf32>
    %3 = vector.shape_cast %2 : vector<2048xf32> to vector<1x2048xf32>
    %cst_2 = arith.constant 2.000000e+00 : f32
    %4 = vector.broadcast %cst_2 : f32 to vector<1x2048xf32>
    %5 = arith.divf %3, %4 : vector<1x2048xf32>
    %6 = vector.broadcast %5 : vector<1x2048xf32> to vector<2x2048xf32>
    %7 = arith.subf %1, %6 : vector<2x2048xf32>
    %8 = arith.mulf %7, %7 : vector<2x2048xf32>
    %cst_3 = arith.constant dense<0.000000e+00> : vector<2048xf32>
    %9 = vector.multi_reduction <add>, %8, %cst_3 [0] : vector<2x2048xf32> to vector<2048xf32>
    %10 = vector.shape_cast %9 : vector<2048xf32> to vector<1x2048xf32>
    %cst_4 = arith.constant 2.000000e+00 : f32
    %11 = vector.broadcast %cst_4 : f32 to vector<1x2048xf32>
    %12 = arith.divf %10, %11 : vector<1x2048xf32>
    %13 = vector.broadcast %5 : vector<1x2048xf32> to vector<2x2048xf32>
    %14 = arith.subf %1, %13 : vector<2x2048xf32>
    %cst_5 = arith.constant 9.99999974E-6 : f32
    %15 = vector.broadcast %cst_5 : f32 to vector<1x2048xf32>
    %16 = arith.addf %12, %15 : vector<1x2048xf32>
    %17 = math.rsqrt %16 : vector<1x2048xf32>
    %18 = vector.broadcast %17 : vector<1x2048xf32> to vector<2x2048xf32>
    %19 = arith.mulf %14, %18 : vector<2x2048xf32>
    %c0_6 = arith.constant 0 : index
    %c0_7 = arith.constant 0 : index
    %c0_8 = arith.constant 0 : index
    %20 = vector.load %arg2[%c0_6, %c0_7, %c0_8] : memref<1x1x2048xf32, #tpu.memory_space<vmem>>, vector<1x1x2048xf32>
    %21 = vector.shape_cast %20 : vector<1x1x2048xf32> to vector<1x2048xf32>
    %22 = vector.broadcast %21 : vector<1x2048xf32> to vector<2x2048xf32>
    %23 = arith.mulf %19, %22 : vector<2x2048xf32>
    %c0_9 = arith.constant 0 : index
    %c0_10 = arith.constant 0 : index
    %c0_11 = arith.constant 0 : index
    %24 = vector.load %arg3[%c0_9, %c0_10, %c0_11] : memref<1x1x2048xf32, #tpu.memory_space<vmem>>, vector<1x1x2048xf32>
    %25 = vector.shape_cast %24 : vector<1x1x2048xf32> to vector<1x2048xf32>
    %26 = vector.broadcast %25 : vector<1x2048xf32> to vector<2x2048xf32>
    %27 = arith.addf %23, %26 : vector<2x2048xf32>
    %28 = arith.truncf %27 : vector<2x2048xf32> to vector<2x2048xbf16>
    %c0_12 = arith.constant 0 : index
    %c0_13 = arith.constant 0 : index
    %c0_14 = arith.constant 0 : index
    %29 = vector.load %arg4[%c0_12, %c0_13, %c0_14] : memref<1x2048x128xbf16, #tpu.memory_space<vmem>>, vector<1x2048x128xbf16>
    %30 = vector.shape_cast %29 : vector<1x2048x128xbf16> to vector<2048x128xbf16>
    %cst_15 = arith.constant dense<0.000000e+00> : vector<2x128xf32>
    %31 = tpu.matmul %28, %30, %cst_15 {dimension_numbers = #tpu.dot_dimension_numbers<[1], [0], [0], [1], [0, 0, 1, 1], [], []>} : vector<2x2048xbf16>, vector<2048x128xbf16>, vector<2x128xf32> -> vector<2x128xf32>
    %c0_16 = arith.constant 0 : index
    %c0_17 = arith.constant 0 : index
    %c0_18 = arith.constant 0 : index
    %32 = vector.load %arg5[%c0_16, %c0_17, %c0_18] : memref<1x1x128xf32, #tpu.memory_space<vmem>>, vector<1x1x128xf32>
    %33 = vector.shape_cast %32 : vector<1x1x128xf32> to vector<1x128xf32>
    %34 = vector.broadcast %33 : vector<1x128xf32> to vector<2x128xf32>
    %35 = arith.addf %31, %34 : vector<2x128xf32>
    %c0_19 = arith.constant 0 : index
    %c0_20 = arith.constant 0 : index
    %c0_21 = arith.constant 0 : index
    %36 = vector.load %arg6[%c0_19, %c0_20, %c0_21] : memref<1x2x128xf32, #tpu.memory_space<vmem>>, vector<1x2x128xf32>
    %37 = vector.shape_cast %36 : vector<1x2x128xf32> to vector<2x128xf32>
    %38 = vector.shape_cast %35 : vector<2x128xf32> to vector<1x2x128xf32>
    tpu.vector_store %arg6[%c0_19, %c0_20, %c0_21], %38 {strides = array<i32>} : memref<1x2x128xf32, #tpu.memory_space<vmem>>, vector<1x2x128xf32>,
    return
  }
  func.func @transform_0(%arg0: i32) -> (i32, i32, i32) {
    %c0_i32 = arith.constant 0 : i32
    %c0_i32_0 = arith.constant 0 : i32
    %c0_i32_1 = arith.constant 0 : i32
    return %arg0, %c0_i32, %c0_i32_0 : i32, i32, i32
  }
  func.func @transform_1(%arg0: i32) -> (i32, i32, i32) {
    %c0_i32 = arith.constant 0 : i32
    %c0_i32_0 = arith.constant 0 : i32
    %c0_i32_1 = arith.constant 0 : i32
    return %arg0, %c0_i32, %c0_i32_0 : i32, i32, i32
  }
  func.func @transform_2(%arg0: i32) -> (i32, i32, i32) {
    %c0_i32 = arith.constant 0 : i32
    %c0_i32_0 = arith.constant 0 : i32
    %c0_i32_1 = arith.constant 0 : i32
    return %arg0, %c0_i32, %c0_i32_0 : i32, i32, i32
  }
  func.func @transform_3(%arg0: i32) -> (i32, i32, i32) {
    %c0_i32 = arith.constant 0 : i32
    %c0_i32_0 = arith.constant 0 : i32
    %c0_i32_1 = arith.constant 0 : i32
    return %arg0, %c0_i32, %c0_i32_0 : i32, i32, i32
  }
  func.func @transform_4(%arg0: i32) -> (i32, i32, i32) {
    %c0_i32 = arith.constant 0 : i32
    %c0_i32_0 = arith.constant 0 : i32
    %c0_i32_1 = arith.constant 0 : i32
    return %arg0, %c0_i32, %c0_i32_0 : i32, i32, i32
  }
  func.func @transform_5(%arg0: i32) -> (i32, i32, i32) {
    %c0_i32 = arith.constant 0 : i32
    %c0_i32_0 = arith.constant 0 : i32
    %c0_i32_1 = arith.constant 0 : i32
    return %arg0, %c0_i32, %c0_i32_0 : i32, i32, i32
  }
}

module attributes {stable_mosaic.version = 11 : i64} {
  func.func @_combine_kernel(%arg0: memref<8x2x128xf32, #tpu.memory_space<vmem>>, %arg1: memref<2x128xf32, #tpu.memory_space<vmem>>) attributes {dimension_semantics = [], scalar_prefetch = 0 : i64, scratch_operands = 0 : i64, tpu.core_type = #tpu.core_type<tc>} {
    %c0 = arith.constant 0 : index
    %c0_0 = arith.constant 0 : index
    %c0_1 = arith.constant 0 : index
    %0 = vector.load %arg0[%c0, %c0_0, %c0_1] : memref<8x2x128xf32, #tpu.memory_space<vmem>>, vector<8x2x128xf32>
    %1 = tpu.iota {dimensions = array<i32: 2>} : vector<8x2x128xi32>
    %c10_i32 = arith.constant 10 : i32
    %2 = vector.broadcast %c10_i32 : i32 to vector<8x2x128xi32>
    %3 = arith.cmpi slt, %1, %2 : vector<8x2x128xi32>
    %cst = arith.constant -1.000000e+30 : f32
    %4 = vector.broadcast %cst : f32 to vector<8x2x128xf32>
    %5 = arith.select %3, %0, %4 : vector<8x2x128xi1>, vector<8x2x128xf32>
    %cst_2 = arith.constant dense<0xFF800000> : vector<8x2xf32>
    %6 = vector.multi_reduction <maximumf>, %5, %cst_2 [2] : vector<8x2x128xf32> to vector<8x2xf32>
    %7 = vector.shape_cast %6 : vector<8x2xf32> to vector<8x2x1xf32>
    %8 = vector.broadcast %7 : vector<8x2x1xf32> to vector<8x2x128xf32>
    %9 = arith.subf %5, %8 : vector<8x2x128xf32>
    %cst_3 = arith.constant dense<0xFF800000> : vector<2x128xf32>
    %10 = vector.multi_reduction <maximumf>, %9, %cst_3 [0] : vector<8x2x128xf32> to vector<2x128xf32>
    %11 = vector.shape_cast %10 : vector<2x128xf32> to vector<1x2x128xf32>
    %12 = vector.broadcast %11 : vector<1x2x128xf32> to vector<8x2x128xf32>
    %13 = arith.subf %9, %12 : vector<8x2x128xf32>
    %cst_4 = arith.constant -1.000000e+30 : f32
    %14 = vector.broadcast %cst_4 : f32 to vector<2x128xf32>
    %15 = vector.extract_strided_slice %13 {offsets = [0, 0, 0], sizes = [1, 2, 128], strides = [1, 1, 1]} : vector<8x2x128xf32> to vector<1x2x128xf32>
    %16 = vector.shape_cast %15 : vector<1x2x128xf32> to vector<2x128xf32>
    %17 = arith.cmpf ogt, %16, %14 : vector<2x128xf32>
    %18 = arith.cmpf ogt, %16, %14 : vector<2x128xf32>
    %19 = arith.cmpf ogt, %16, %14 : vector<2x128xf32>
    %20 = arith.select %17, %16, %14 : vector<2x128xi1>, vector<2x128xf32>
    %21 = arith.select %18, %16, %14 : vector<2x128xi1>, vector<2x128xf32>
    %22 = arith.select %17, %14, %21 : vector<2x128xi1>, vector<2x128xf32>
    %23 = arith.select %19, %16, %14 : vector<2x128xi1>, vector<2x128xf32>
    %24 = arith.select %18, %14, %23 : vector<2x128xi1>, vector<2x128xf32>
    %25 = vector.extract_strided_slice %13 {offsets = [1, 0, 0], sizes = [1, 2, 128], strides = [1, 1, 1]} : vector<8x2x128xf32> to vector<1x2x128xf32>
    %26 = vector.shape_cast %25 : vector<1x2x128xf32> to vector<2x128xf32>
    %27 = arith.cmpf ogt, %26, %20 : vector<2x128xf32>
    %28 = arith.cmpf ogt, %26, %22 : vector<2x128xf32>
    %29 = arith.cmpf ogt, %26, %24 : vector<2x128xf32>
    %30 = arith.select %27, %26, %20 : vector<2x128xi1>, vector<2x128xf32>
    %31 = arith.select %28, %26, %22 : vector<2x128xi1>, vector<2x128xf32>
    %32 = arith.select %27, %20, %31 : vector<2x128xi1>, vector<2x128xf32>
    %33 = arith.select %29, %26, %24 : vector<2x128xi1>, vector<2x128xf32>
    %34 = arith.select %28, %22, %33 : vector<2x128xi1>, vector<2x128xf32>
    %35 = vector.extract_strided_slice %13 {offsets = [2, 0, 0], sizes = [1, 2, 128], strides = [1, 1, 1]} : vector<8x2x128xf32> to vector<1x2x128xf32>
    %36 = vector.shape_cast %35 : vector<1x2x128xf32> to vector<2x128xf32>
    %37 = arith.cmpf ogt, %36, %30 : vector<2x128xf32>
    %38 = arith.cmpf ogt, %36, %32 : vector<2x128xf32>
    %39 = arith.cmpf ogt, %36, %34 : vector<2x128xf32>
    %40 = arith.select %37, %36, %30 : vector<2x128xi1>, vector<2x128xf32>
    %41 = arith.select %38, %36, %32 : vector<2x128xi1>, vector<2x128xf32>
    %42 = arith.select %37, %30, %41 : vector<2x128xi1>, vector<2x128xf32>
    %43 = arith.select %39, %36, %34 : vector<2x128xi1>, vector<2x128xf32>
    %44 = arith.select %38, %32, %43 : vector<2x128xi1>, vector<2x128xf32>
    %45 = vector.extract_strided_slice %13 {offsets = [3, 0, 0], sizes = [1, 2, 128], strides = [1, 1, 1]} : vector<8x2x128xf32> to vector<1x2x128xf32>
    %46 = vector.shape_cast %45 : vector<1x2x128xf32> to vector<2x128xf32>
    %47 = arith.cmpf ogt, %46, %40 : vector<2x128xf32>
    %48 = arith.cmpf ogt, %46, %42 : vector<2x128xf32>
    %49 = arith.cmpf ogt, %46, %44 : vector<2x128xf32>
    %50 = arith.select %47, %46, %40 : vector<2x128xi1>, vector<2x128xf32>
    %51 = arith.select %48, %46, %42 : vector<2x128xi1>, vector<2x128xf32>
    %52 = arith.select %47, %40, %51 : vector<2x128xi1>, vector<2x128xf32>
    %53 = arith.select %49, %46, %44 : vector<2x128xi1>, vector<2x128xf32>
    %54 = arith.select %48, %42, %53 : vector<2x128xi1>, vector<2x128xf32>
    %55 = vector.extract_strided_slice %13 {offsets = [4, 0, 0], sizes = [1, 2, 128], strides = [1, 1, 1]} : vector<8x2x128xf32> to vector<1x2x128xf32>
    %56 = vector.shape_cast %55 : vector<1x2x128xf32> to vector<2x128xf32>
    %57 = arith.cmpf ogt, %56, %50 : vector<2x128xf32>
    %58 = arith.cmpf ogt, %56, %52 : vector<2x128xf32>
    %59 = arith.cmpf ogt, %56, %54 : vector<2x128xf32>
    %60 = arith.select %57, %56, %50 : vector<2x128xi1>, vector<2x128xf32>
    %61 = arith.select %58, %56, %52 : vector<2x128xi1>, vector<2x128xf32>
    %62 = arith.select %57, %50, %61 : vector<2x128xi1>, vector<2x128xf32>
    %63 = arith.select %59, %56, %54 : vector<2x128xi1>, vector<2x128xf32>
    %64 = arith.select %58, %52, %63 : vector<2x128xi1>, vector<2x128xf32>
    %65 = vector.extract_strided_slice %13 {offsets = [5, 0, 0], sizes = [1, 2, 128], strides = [1, 1, 1]} : vector<8x2x128xf32> to vector<1x2x128xf32>
    %66 = vector.shape_cast %65 : vector<1x2x128xf32> to vector<2x128xf32>
    %67 = arith.cmpf ogt, %66, %60 : vector<2x128xf32>
    %68 = arith.cmpf ogt, %66, %62 : vector<2x128xf32>
    %69 = arith.cmpf ogt, %66, %64 : vector<2x128xf32>
    %70 = arith.select %67, %66, %60 : vector<2x128xi1>, vector<2x128xf32>
    %71 = arith.select %68, %66, %62 : vector<2x128xi1>, vector<2x128xf32>
    %72 = arith.select %67, %60, %71 : vector<2x128xi1>, vector<2x128xf32>
    %73 = arith.select %69, %66, %64 : vector<2x128xi1>, vector<2x128xf32>
    %74 = arith.select %68, %62, %73 : vector<2x128xi1>, vector<2x128xf32>
    %75 = vector.extract_strided_slice %13 {offsets = [6, 0, 0], sizes = [1, 2, 128], strides = [1, 1, 1]} : vector<8x2x128xf32> to vector<1x2x128xf32>
    %76 = vector.shape_cast %75 : vector<1x2x128xf32> to vector<2x128xf32>
    %77 = arith.cmpf ogt, %76, %70 : vector<2x128xf32>
    %78 = arith.cmpf ogt, %76, %72 : vector<2x128xf32>
    %79 = arith.cmpf ogt, %76, %74 : vector<2x128xf32>
    %80 = arith.select %78, %76, %72 : vector<2x128xi1>, vector<2x128xf32>
    %81 = arith.select %77, %70, %80 : vector<2x128xi1>, vector<2x128xf32>
    %82 = arith.select %79, %76, %74 : vector<2x128xi1>, vector<2x128xf32>
    %83 = arith.select %78, %72, %82 : vector<2x128xi1>, vector<2x128xf32>
    %84 = vector.extract_strided_slice %13 {offsets = [7, 0, 0], sizes = [1, 2, 128], strides = [1, 1, 1]} : vector<8x2x128xf32> to vector<1x2x128xf32>
    %85 = vector.shape_cast %84 : vector<1x2x128xf32> to vector<2x128xf32>
    %86 = arith.cmpf ogt, %85, %81 : vector<2x128xf32>
    %87 = arith.cmpf ogt, %85, %83 : vector<2x128xf32>
    %88 = arith.select %87, %85, %83 : vector<2x128xi1>, vector<2x128xf32>
    %89 = arith.select %86, %81, %88 : vector<2x128xi1>, vector<2x128xf32>
    %c0_5 = arith.constant 0 : index
    %c0_6 = arith.constant 0 : index
    %90 = vector.load %arg1[%c0_5, %c0_6] : memref<2x128xf32, #tpu.memory_space<vmem>>, vector<2x128xf32>
    tpu.vector_store %arg1[%c0_5, %c0_6], %89 {strides = array<i32>} : memref<2x128xf32, #tpu.memory_space<vmem>>, vector<2x128xf32>,
    return
  }
}

</mosaic_0001>

<bundles_post_ra>
// kernel: target_model_forward.12
= control target key start
LH: loop header
LB: loop body
LE: loop exit
PB: predicated region body
PF: predicated region fallthrough
CT: control target
= control target key end

     0   :  { %8 = vsyncpa [#allocation3], 0  ;;  %s5188_s0 = inlined_call_operand.vmem [shape: f32[2048,12], index: 0, kind: input, shape index: {}]   ;;  %s5189_s1 = inlined_call_operand.hbm [shape: bf16[12,16], index: 1, kind: input, shape index: {}]   ;;  %s5190_s2 = inlined_call_operand.hbm [shape: f32[1,16], index: 2, kind: input, shape index: {}]   ;;  %s5191_s3 = inlined_call_operand.vmem [shape: f32[2048,16], index: 3, kind: output, shape index: {}]  }
   0x1   :  { %9 = vsyncpa [#allocation5], 0  ;;  %s2976_s12 = smov [#allocation2]  }
   0x2   :  { %s17_s13 = sshll.u32 %s2976_s12, 4  ;;  %s18_s13 = int_to_ptr.vmem [resolvable:$true] %s17_s13 }
   0x3   :  { %s2940_s14 = scalar_lea.vmem %s18_s13, 128  ;;  %p2945_p1 = scmp.lt.s32.totalorder %s18_s13, %s18_s13 }
   0x4   :  { %p2941_p0 = scmp.ne.s32.totalorder %s18_s13, %s2940_s14  ;;  %p2946_p2 = scmp.lt.s32.totalorder %s2940_s14, %s2940_s14 }
   0x6   :  { %p2947_p3 = por %p2946_p2, %p2945_p1 }
   0x8   :  { %p2948_p4 = pnand %p2947_p3, %p2941_p0 }
   0xa   :  { %2951 = shalt.err (!%p2948_p4)
}
   0xb   :  { %s2977_s15 = smov 64   ;;  %s2978_s16 = smov 4  }
   0xc   :  { %23 = dma.hbm_to_vmem [thread:$0]  %s5189_s1, 128, %s18_s13, [#allocation3], %s2977_s15, %s2977_s15, %s2978_s16  }
   0xd   :  { %s2979_s19 = smov [#allocation4]  }
   0xe   :  { %s30_s20 = sshll.u32 %s2979_s19, 4  ;;  %s31_s20 = int_to_ptr.vmem [resolvable:$true] %s30_s20 }
   0xf   :  { %s2960_s21 = scalar_lea.vmem %s31_s20, 16  ;;  %s2964_s22 = scalar_lea.vmem %s31_s20, 32 }
  0x10   :  { %p2961_p5 = scmp.ne.s32.totalorder %s31_s20, %s2960_s21  ;;  %p2965_p6 = scmp.lt.s32.totalorder %s31_s20, %s31_s20 }
  0x11   :  { %p2966_p7 = scmp.lt.s32.totalorder %s2964_s22, %s2960_s21 }
  0x13   :  { %p2967_p8 = por %p2966_p7, %p2965_p6 }
  0x15   :  { %p2968_p9 = pnand %p2967_p8, %p2961_p5 }
  0x17   :  { %2971 = shalt.err (!%p2968_p9)
}
  0x18   :  { %33 = dma.hbm_to_vmem [thread:$0]  %s5190_s2, 16, %s31_s20, [#allocation5]  }
  0x19   :  { %2972 = dma.done.wait [#allocation3], 128  }
  0x1a   :  { %2973 = vsyncadd [#allocation3], 4294967168 }
  0x1b   :  { %2974 = dma.done.wait [#allocation5], 16  }
  0x1c   :  { %2975 = vsyncadd [#allocation5], 4294967280  ;;  %vm824_vm0 = vcmask 1045504   ;;  %v2929_v0 = vld [vmem:[#allocation2] sm:$0x3f]   ;;  %v42_v2 = vld [vmem:[%s5188_s0 + $0x8] sm:$0xff] }
  0x1d   :  { %v41_v1 = vld [vmem:[%s5188_s0] sm:$0xff]  ;;  %vm439_vm1 = vcmask 97280   ;;  %2923 = vmatprep.subr.msk.bf16.mxu0 %vm824_vm0, %v2929_v0  ;;  %2924 = vmatprep.subr.msk.bf16.mxu1 %vm824_vm0, %v2929_v0  ;;  %v826_v4 = vsel %vm824_vm0, %v2929_v0, 0  ;;  %v170_v6 = vld [vmem:[%s5188_s0 + $0x408] sm:$0xff]  ;;  %v43_v7 = vld [vmem:[%s5188_s0 + $0x10] sm:$0xff]  ;;  %vm2141_vm2 = vcmask 130048  }
  0x1e   :  { %v169_v3 = vld [vmem:[%s5188_s0 + $0x400] sm:$0xff]  ;;  %v297_v5 = vpack.c.bf16 %v42_v2, %v41_v1  ;;  %v44_v8 = vld [vmem:[%s5188_s0 + $0x18] sm:$0xff]  ;;  %2664 = vmatpush3.bf16.msra.mxu0 %v826_v4  ;;  %2922 = vmatpush3.bf16.msra.mxu1 %v826_v4  ;;  %v171_v11 = vld [vmem:[%s5188_s0 + $0x410] sm:$0xff] }
  0x1f   :  { %v361_v9 = vpack.c.bf16 %v170_v6, %v169_v3  ;;  %v298_v10 = vpack.c.bf16 %v44_v8, %v43_v7  ;;  %v172_v12 = vld [vmem:[%s5188_s0 + $0x418] sm:$0xff]  ;;  %v45_v13 = vld [vmem:[%s5188_s0 + $0x20] sm:$0xff]  ;;  %v46_v15 = vld [vmem:[%s5188_s0 + $0x28] sm:$0xff] }
  0x20   :  { %2665 = vmatprep.mubr.msk.bf16.mxu0 %vm439_vm1, %v297_v5  ;;  %v362_v14 = vpack.c.bf16 %v172_v12, %v171_v11  ;;  %v173_v16 = vld [vmem:[%s5188_s0 + $0x420] sm:$0xff]  ;;  %v174_v17 = vld [vmem:[%s5188_s0 + $0x428] sm:$0xff]  ;;  %v299_v18 = vpack.c.bf16 %v46_v15, %v45_v13  ;;  %v47_v20 = vld [vmem:[%s5188_s0 + $0x30] sm:$0xff] }
  0x21   :  { %2793 = vmatprep.mubr.msk.bf16.mxu1 %vm439_vm1, %v361_v9  ;;  %v363_v19 = vpack.c.bf16 %v174_v17, %v173_v16  ;;  %2666 = vmatmul.mubr.msk.bf16.vlgmr.msra.gmra.mxu0 %vm439_vm1, %v298_v10  ;;  %v48_v21 = vld [vmem:[%s5188_s0 + $0x38] sm:$0xff]  ;;  %v175_v22 = vld [vmem:[%s5188_s0 + $0x430] sm:$0xff]  ;;  %v49_v24 = vld [vmem:[%s5188_s0 + $0x40] sm:$0xff] }
  0x22   :  { %2794 = vmatmul.mubr.msk.bf16.vlgmr.msra.gmra.mxu1 %vm439_vm1, %v362_v14  ;;  %2669 = vmatprep.mubr.msk.bf16.mxu0 %vm439_vm1, %v299_v18  ;;  %v176_v23 = vld [vmem:[%s5188_s0 + $0x438] sm:$0xff]  ;;  %v50_v25 = vld [vmem:[%s5188_s0 + $0x48] sm:$0xff]  ;;  %v177_v26 = vld [vmem:[%s5188_s0 + $0x440] sm:$0xff]  ;;  %v300_v28 = vpack.c.bf16 %v48_v21, %v47_v20 }
  0x23   :  { %2797 = vmatprep.mubr.msk.bf16.mxu1 %vm439_vm1, %v363_v19  ;;  %v178_v27 = vld [vmem:[%s5188_s0 + $0x448] sm:$0xff]  ;;  %v364_v29 = vpack.c.bf16 %v176_v23, %v175_v22  ;;  %v301_v30 = vpack.c.bf16 %v50_v25, %v49_v24  ;;  %v51_v32 = vld [vmem:[%s5188_s0 + $0x50] sm:$0xff]  ;;  %v52_v33 = vld [vmem:[%s5188_s0 + $0x58] sm:$0xff] }
  0x24   :  { %v365_v31 = vpack.c.bf16 %v178_v27, %v177_v26  ;;  %v179_v34 = vld [vmem:[%s5188_s0 + $0x450] sm:$0xff]  ;;  %v180_v35 = vld [vmem:[%s5188_s0 + $0x458] sm:$0xff]  ;;  %v53_v36 = vld [vmem:[%s5188_s0 + $0x60] sm:$0xff]  ;;  %v302_v40 = vpack.c.bf16 %v52_v33, %v51_v32 }
  0x25   :  { %v54_v37 = vld [vmem:[%s5188_s0 + $0x68] sm:$0xff]  ;;  %v181_v38 = vld [vmem:[%s5188_s0 + $0x460] sm:$0xff]  ;;  %v366_v41 = vpack.c.bf16 %v180_v35, %v179_v34  ;;  %v55_v44 = vld [vmem:[%s5188_s0 + $0x70] sm:$0xff] }
  0x26   :  { %v182_v39 = vld [vmem:[%s5188_s0 + $0x468] sm:$0xff]  ;;  %v303_v42 = vpack.c.bf16 %v54_v37, %v53_v36  ;;  %v56_v45 = vld [vmem:[%s5188_s0 + $0x78] sm:$0xff]  ;;  %v183_v46 = vld [vmem:[%s5188_s0 + $0x470] sm:$0xff] }
  0x27   :  { %v367_v43 = vpack.c.bf16 %v182_v39, %v181_v38  ;;  %v184_v47 = vld [vmem:[%s5188_s0 + $0x478] sm:$0xff]  ;;  %v57_v48 = vld [vmem:[%s5188_s0 + $0x80] sm:$0xff]  ;;  %v58_v49 = vld [vmem:[%s5188_s0 + $0x88] sm:$0xff]  ;;  %v304_v52 = vpack.c.bf16 %v56_v45, %v55_v44 }
  0x28   :  { %v185_v50 = vld [vmem:[%s5188_s0 + $0x480] sm:$0xff]  ;;  %v186_v51 = vld [vmem:[%s5188_s0 + $0x488] sm:$0xff]  ;;  %v368_v53 = vpack.c.bf16 %v184_v47, %v183_v46  ;;  %v305_v54 = vpack.c.bf16 %v58_v49, %v57_v48  ;;  %v59_v56 = vld [vmem:[%s5188_s0 + $0x90] sm:$0xff] }
  0x29   :  { %2670 = vmatmul.mubr.msk.bf16.gmra.mxu0 %vm439_vm1, %v300_v28  ;;  %v369_v55 = vpack.c.bf16 %v186_v51, %v185_v50  ;;  %v60_v57 = vld [vmem:[%s5188_s0 + $0x98] sm:$0xff]  ;;  %v187_v58 = vld [vmem:[%s5188_s0 + $0x490] sm:$0xff]  ;;  %v61_v60 = vld [vmem:[%s5188_s0 + $0xa0] sm:$0xff] }
  0x2a   :  { %2798 = vmatmul.mubr.msk.bf16.gmra.mxu1 %vm439_vm1, %v364_v29  ;;  %2673 = vmatprep.mubr.msk.bf16.mxu0 %vm439_vm1, %v301_v30  ;;  %v188_v59 = vld [vmem:[%s5188_s0 + $0x498] sm:$0xff]  ;;  %v62_v61 = vld [vmem:[%s5188_s0 + $0xa8] sm:$0xff]  ;;  %v189_v62 = vld [vmem:[%s5188_s0 + $0x4a0] sm:$0xff]  ;;  %v306_v0 = vpack.c.bf16 %v60_v57, %v59_v56 }
  0x2b   :  { %2801 = vmatprep.mubr.msk.bf16.mxu1 %vm439_vm1, %v365_v31  ;;  %v190_v63 = vld [vmem:[%s5188_s0 + $0x4a8] sm:$0xff]  ;;  %v370_v1 = vpack.c.bf16 %v188_v59, %v187_v58  ;;  %v307_v2 = vpack.c.bf16 %v62_v61, %v61_v60  ;;  %v63_v4 = vld [vmem:[%s5188_s0 + $0xb0] sm:$0xff]  ;;  %v64_v5 = vld [vmem:[%s5188_s0 + $0xb8] sm:$0xff] }
  0x2c   :  { %v371_v3 = vpack.c.bf16 %v190_v63, %v189_v62  ;;  %v191_v6 = vld [vmem:[%s5188_s0 + $0x4b0] sm:$0xff]  ;;  %v192_v7 = vld [vmem:[%s5188_s0 + $0x4b8] sm:$0xff]  ;;  %v65_v8 = vld [vmem:[%s5188_s0 + $0xc0] sm:$0xff]  ;;  %v308_v12 = vpack.c.bf16 %v64_v5, %v63_v4 }
  0x2d   :  { %v66_v9 = vld [vmem:[%s5188_s0 + $0xc8] sm:$0xff]  ;;  %v193_v10 = vld [vmem:[%s5188_s0 + $0x4c0] sm:$0xff]  ;;  %v372_v13 = vpack.c.bf16 %v192_v7, %v191_v6  ;;  %v67_v16 = vld [vmem:[%s5188_s0 + $0xd0] sm:$0xff] }
  0x2e   :  { %v194_v11 = vld [vmem:[%s5188_s0 + $0x4c8] sm:$0xff]  ;;  %v309_v14 = vpack.c.bf16 %v66_v9, %v65_v8  ;;  %v68_v17 = vld [vmem:[%s5188_s0 + $0xd8] sm:$0xff]  ;;  %v195_v18 = vld [vmem:[%s5188_s0 + $0x4d0] sm:$0xff] }
  0x2f   :  { %v373_v15 = vpack.c.bf16 %v194_v11, %v193_v10  ;;  %v196_v19 = vld [vmem:[%s5188_s0 + $0x4d8] sm:$0xff]  ;;  %v69_v20 = vld [vmem:[%s5188_s0 + $0xe0] sm:$0xff]  ;;  %v70_v21 = vld [vmem:[%s5188_s0 + $0xe8] sm:$0xff]  ;;  %v310_v24 = vpack.c.bf16 %v68_v17, %v67_v16 }
  0x30   :  { %v197_v22 = vld [vmem:[%s5188_s0 + $0x4e0] sm:$0xff]  ;;  %v198_v23 = vld [vmem:[%s5188_s0 + $0x4e8] sm:$0xff]  ;;  %v374_v25 = vpack.c.bf16 %v196_v19, %v195_v18  ;;  %v311_v26 = vpack.c.bf16 %v70_v21, %v69_v20  ;;  %v71_v28 = vld [vmem:[%s5188_s0 + $0xf0] sm:$0xff] }
  0x31   :  { %2674 = vmatmul.mubr.msk.bf16.gmra.mxu0 %vm439_vm1, %v302_v40  ;;  %v375_v27 = vpack.c.bf16 %v198_v23, %v197_v22  ;;  %v72_v29 = vld [vmem:[%s5188_s0 + $0xf8] sm:$0xff]  ;;  %v199_v30 = vld [vmem:[%s5188_s0 + $0x4f0] sm:$0xff]  ;;  %v73_v32 = vld [vmem:[%s5188_s0 + $0x100] sm:$0xff] }
  0x32   :  { %2802 = vmatmul.mubr.msk.bf16.gmra.mxu1 %vm439_vm1, %v366_v41  ;;  %2677 = vmatprep.mubr.msk.bf16.mxu0 %vm439_vm1, %v303_v42  ;;  %v200_v31 = vld [vmem:[%s5188_s0 + $0x4f8] sm:$0xff]  ;;  %v74_v33 = vld [vmem:[%s5188_s0 + $0x108] sm:$0xff]  ;;  %v201_v34 = vld [vmem:[%s5188_s0 + $0x500] sm:$0xff]  ;;  %v312_v36 = vpack.c.bf16 %v72_v29, %v71_v28 }
  0x33   :  { %2805 = vmatprep.mubr.msk.bf16.mxu1 %vm439_vm1, %v367_v43  ;;  %v202_v35 = vld [vmem:[%s5188_s0 + $0x508] sm:$0xff]  ;;  %v376_v37 = vpack.c.bf16 %v200_v31, %v199_v30  ;;  %v313_v38 = vpack.c.bf16 %v74_v33, %v73_v32  ;;  %v75_v40 = vld [vmem:[%s5188_s0 + $0x110] sm:$0xff]  ;;  %v76_v41 = vld [vmem:[%s5188_s0 + $0x118] sm:$0xff] }
  0x34   :  { %v377_v39 = vpack.c.bf16 %v202_v35, %v201_v34  ;;  %v203_v42 = vld [vmem:[%s5188_s0 + $0x510] sm:$0xff]  ;;  %v204_v43 = vld [vmem:[%s5188_s0 + $0x518] sm:$0xff]  ;;  %v77_v44 = vld [vmem:[%s5188_s0 + $0x120] sm:$0xff]  ;;  %v314_v48 = vpack.c.bf16 %v76_v41, %v75_v40 }
  0x35   :  { %v78_v45 = vld [vmem:[%s5188_s0 + $0x128] sm:$0xff]  ;;  %v205_v46 = vld [vmem:[%s5188_s0 + $0x520] sm:$0xff]  ;;  %v378_v49 = vpack.c.bf16 %v204_v43, %v203_v42 }
  0x36   :  { %v206_v47 = vld [vmem:[%s5188_s0 + $0x528] sm:$0xff]  ;;  %v315_v50 = vpack.c.bf16 %v78_v45, %v77_v44  ;;  %v81_v56 = vld [vmem:[%s5188_s0 + $0x140] sm:$0xff] }
  0x37   :  { %v379_v51 = vpack.c.bf16 %v206_v47, %v205_v46  ;;  %v82_v57 = vld [vmem:[%s5188_s0 + $0x148] sm:$0xff]  ;;  %v209_v58 = vld [vmem:[%s5188_s0 + $0x540] sm:$0xff] }
  0x38   :  { %v210_v59 = vld [vmem:[%s5188_s0 + $0x548] sm:$0xff]  ;;  %v317_v62 = vpack.c.bf16 %v82_v57, %v81_v56  ;;  %v85_v4 = vld [vmem:[%s5188_s0 + $0x160] sm:$0xff] }
  0x39   :  { %2678 = vmatmul.mubr.msk.bf16.gmra.mxu0 %vm439_vm1, %v304_v52  ;;  %v79_v52 = vld [vmem:[%s5188_s0 + $0x130] sm:$0xff]  ;;  %v381_v63 = vpack.c.bf16 %v210_v59, %v209_v58  ;;  %v86_v5 = vld [vmem:[%s5188_s0 + $0x168] sm:$0xff]  ;;  %v213_v6 = vld [vmem:[%s5188_s0 + $0x560] sm:$0xff] }
  0x3a   :  { %2806 = vmatmul.mubr.msk.bf16.gmra.mxu1 %vm439_vm1, %v368_v53  ;;  %2681 = vmatprep.mubr.msk.bf16.mxu0 %vm439_vm1, %v305_v54  ;;  %v80_v53 = vld [vmem:[%s5188_s0 + $0x138] sm:$0xff]  ;;  %v207_v54 = vld [vmem:[%s5188_s0 + $0x530] sm:$0xff]  ;;  %v214_v7 = vld [vmem:[%s5188_s0 + $0x568] sm:$0xff]  ;;  %v319_v10 = vpack.c.bf16 %v86_v5, %v85_v4 }
  0x3b   :  { %2809 = vmatprep.mubr.msk.bf16.mxu1 %vm439_vm1, %v369_v55  ;;  %v208_v55 = vld [vmem:[%s5188_s0 + $0x538] sm:$0xff]  ;;  %v316_v60 = vpack.c.bf16 %v80_v53, %v79_v52  ;;  %v383_v11 = vpack.c.bf16 %v214_v7, %v213_v6  ;;  %v89_v16 = vld [vmem:[%s5188_s0 + $0x180] sm:$0xff]  ;;  %v90_v17 = vld [vmem:[%s5188_s0 + $0x188] sm:$0xff] }
  0x3c   :  { %v380_v61 = vpack.c.bf16 %v208_v55, %v207_v54  ;;  %v217_v18 = vld [vmem:[%s5188_s0 + $0x580] sm:$0xff]  ;;  %v218_v19 = vld [vmem:[%s5188_s0 + $0x588] sm:$0xff]  ;;  %v321_v22 = vpack.c.bf16 %v90_v17, %v89_v16 }
  0x3d   :  { %v385_v23 = vpack.c.bf16 %v218_v19, %v217_v18  ;;  %v93_v28 = vld [vmem:[%s5188_s0 + $0x1a0] sm:$0xff]  ;;  %v94_v29 = vld [vmem:[%s5188_s0 + $0x1a8] sm:$0xff] }
  0x3e   :  { %v221_v30 = vld [vmem:[%s5188_s0 + $0x5a0] sm:$0xff]  ;;  %v222_v31 = vld [vmem:[%s5188_s0 + $0x5a8] sm:$0xff]  ;;  %v323_v34 = vpack.c.bf16 %v94_v29, %v93_v28 }
  0x3f   :  { %v387_v35 = vpack.c.bf16 %v222_v31, %v221_v30  ;;  %v97_v40 = vld [vmem:[%s5188_s0 + $0x1c0] sm:$0xff]  ;;  %v98_v41 = vld [vmem:[%s5188_s0 + $0x1c8] sm:$0xff] }
  0x40   :  { %v225_v42 = vld [vmem:[%s5188_s0 + $0x5c0] sm:$0xff]  ;;  %v226_v43 = vld [vmem:[%s5188_s0 + $0x5c8] sm:$0xff]  ;;  %v325_v46 = vpack.c.bf16 %v98_v41, %v97_v40 }
  0x41   :  { %2682 = vmatmul.mubr.msk.bf16.gmra.mxu0 %vm439_vm1, %v306_v0  ;;  %v83_v0 = vld [vmem:[%s5188_s0 + $0x150] sm:$0xff]  ;;  %v389_v47 = vpack.c.bf16 %v226_v43, %v225_v42  ;;  %v101_v52 = vld [vmem:[%s5188_s0 + $0x1e0] sm:$0xff]  ;;  %v102_v53 = vld [vmem:[%s5188_s0 + $0x1e8] sm:$0xff] }
  0x42   :  { %2810 = vmatmul.mubr.msk.bf16.gmra.mxu1 %vm439_vm1, %v370_v1  ;;  %2685 = vmatprep.mubr.msk.bf16.mxu0 %vm439_vm1, %v307_v2  ;;  %v84_v1 = vld [vmem:[%s5188_s0 + $0x158] sm:$0xff]  ;;  %v211_v2 = vld [vmem:[%s5188_s0 + $0x550] sm:$0xff]  ;;  %v229_v54 = vld [vmem:[%s5188_s0 + $0x5e0] sm:$0xff]  ;;  %v327_v58 = vpack.c.bf16 %v102_v53, %v101_v52 }
  0x43   :  { %2813 = vmatprep.mubr.msk.bf16.mxu1 %vm439_vm1, %v371_v3  ;;  %v212_v3 = vld [vmem:[%s5188_s0 + $0x558] sm:$0xff]  ;;  %v318_v8 = vpack.c.bf16 %v84_v1, %v83_v0  ;;  %v230_v55 = vld [vmem:[%s5188_s0 + $0x5e8] sm:$0xff]  ;;  %v105_v0 = vld [vmem:[%s5188_s0 + $0x200] sm:$0xff] }
  0x44   :  { %v382_v9 = vpack.c.bf16 %v212_v3, %v211_v2  ;;  %v391_v59 = vpack.c.bf16 %v230_v55, %v229_v54  ;;  %v106_v1 = vld [vmem:[%s5188_s0 + $0x208] sm:$0xff]  ;;  %v233_v2 = vld [vmem:[%s5188_s0 + $0x600] sm:$0xff] }
  0x45   :  { %v234_v3 = vld [vmem:[%s5188_s0 + $0x608] sm:$0xff]  ;;  %v329_v6 = vpack.c.bf16 %v106_v1, %v105_v0 }
  0x46   :  { %v393_v7 = vpack.c.bf16 %v234_v3, %v233_v2 }
  0x49   :  { %2686 = vmatmul.mubr.msk.bf16.gmra.mxu0 %vm439_vm1, %v308_v12  ;;  %v87_v12 = vld [vmem:[%s5188_s0 + $0x170] sm:$0xff] }
  0x4a   :  { %2814 = vmatmul.mubr.msk.bf16.gmra.mxu1 %vm439_vm1, %v372_v13  ;;  %2689 = vmatprep.mubr.msk.bf16.mxu0 %vm439_vm1, %v309_v14  ;;  %v88_v13 = vld [vmem:[%s5188_s0 + $0x178] sm:$0xff]  ;;  %v215_v14 = vld [vmem:[%s5188_s0 + $0x570] sm:$0xff] }
  0x4b   :  { %2817 = vmatprep.mubr.msk.bf16.mxu1 %vm439_vm1, %v373_v15  ;;  %v216_v15 = vld [vmem:[%s5188_s0 + $0x578] sm:$0xff]  ;;  %v320_v20 = vpack.c.bf16 %v88_v13, %v87_v12  ;;  %v109_v12 = vld [vmem:[%s5188_s0 + $0x220] sm:$0xff]  ;;  %v110_v13 = vld [vmem:[%s5188_s0 + $0x228] sm:$0xff] }
  0x4c   :  { %v384_v21 = vpack.c.bf16 %v216_v15, %v215_v14  ;;  %v237_v14 = vld [vmem:[%s5188_s0 + $0x620] sm:$0xff]  ;;  %v238_v15 = vld [vmem:[%s5188_s0 + $0x628] sm:$0xff]  ;;  %v331_v18 = vpack.c.bf16 %v110_v13, %v109_v12 }
  0x4d   :  { %v395_v19 = vpack.c.bf16 %v238_v15, %v237_v14 }
  0x51   :  { %2690 = vmatmul.mubr.msk.bf16.gmra.mxu0 %vm439_vm1, %v310_v24  ;;  %v91_v24 = vld [vmem:[%s5188_s0 + $0x190] sm:$0xff] }
  0x52   :  { %2818 = vmatmul.mubr.msk.bf16.gmra.mxu1 %vm439_vm1, %v374_v25  ;;  %2693 = vmatprep.mubr.msk.bf16.mxu0 %vm439_vm1, %v311_v26  ;;  %v92_v25 = vld [vmem:[%s5188_s0 + $0x198] sm:$0xff]  ;;  %v219_v26 = vld [vmem:[%s5188_s0 + $0x590] sm:$0xff] }
  0x53   :  { %2821 = vmatprep.mubr.msk.bf16.mxu1 %vm439_vm1, %v375_v27  ;;  %v220_v27 = vld [vmem:[%s5188_s0 + $0x598] sm:$0xff]  ;;  %v322_v32 = vpack.c.bf16 %v92_v25, %v91_v24  ;;  %v113_v24 = vld [vmem:[%s5188_s0 + $0x240] sm:$0xff]  ;;  %v114_v25 = vld [vmem:[%s5188_s0 + $0x248] sm:$0xff] }
  0x54   :  { %v386_v33 = vpack.c.bf16 %v220_v27, %v219_v26  ;;  %v241_v26 = vld [vmem:[%s5188_s0 + $0x640] sm:$0xff]  ;;  %v242_v27 = vld [vmem:[%s5188_s0 + $0x648] sm:$0xff]  ;;  %v333_v30 = vpack.c.bf16 %v114_v25, %v113_v24 }
  0x55   :  { %v397_v31 = vpack.c.bf16 %v242_v27, %v241_v26 }
  0x59   :  { %2694 = vmatmul.mubr.msk.bf16.gmra.mxu0 %vm439_vm1, %v312_v36  ;;  %v95_v36 = vld [vmem:[%s5188_s0 + $0x1b0] sm:$0xff] }
  0x5a   :  { %2822 = vmatmul.mubr.msk.bf16.gmra.mxu1 %vm439_vm1, %v376_v37  ;;  %2697 = vmatprep.mubr.msk.bf16.mxu0 %vm439_vm1, %v313_v38  ;;  %v96_v37 = vld [vmem:[%s5188_s0 + $0x1b8] sm:$0xff]  ;;  %v223_v38 = vld [vmem:[%s5188_s0 + $0x5b0] sm:$0xff] }
  0x5b   :  { %2825 = vmatprep.mubr.msk.bf16.mxu1 %vm439_vm1, %v377_v39  ;;  %v224_v39 = vld [vmem:[%s5188_s0 + $0x5b8] sm:$0xff]  ;;  %v324_v44 = vpack.c.bf16 %v96_v37, %v95_v36  ;;  %v117_v36 = vld [vmem:[%s5188_s0 + $0x260] sm:$0xff]  ;;  %v118_v37 = vld [vmem:[%s5188_s0 + $0x268] sm:$0xff] }
  0x5c   :  { %v388_v45 = vpack.c.bf16 %v224_v39, %v223_v38  ;;  %v245_v38 = vld [vmem:[%s5188_s0 + $0x660] sm:$0xff]  ;;  %v246_v39 = vld [vmem:[%s5188_s0 + $0x668] sm:$0xff]  ;;  %v335_v42 = vpack.c.bf16 %v118_v37, %v117_v36 }
  0x5d   :  { %v399_v43 = vpack.c.bf16 %v246_v39, %v245_v38 }
  0x61   :  { %2698 = vmatmul.mubr.msk.bf16.gmra.mxu0 %vm439_vm1, %v314_v48  ;;  %v99_v48 = vld [vmem:[%s5188_s0 + $0x1d0] sm:$0xff] }
  0x62   :  { %2826 = vmatmul.mubr.msk.bf16.gmra.mxu1 %vm439_vm1, %v378_v49  ;;  %2701 = vmatprep.mubr.msk.bf16.mxu0 %vm439_vm1, %v315_v50  ;;  %v100_v49 = vld [vmem:[%s5188_s0 + $0x1d8] sm:$0xff]  ;;  %v227_v50 = vld [vmem:[%s5188_s0 + $0x5d0] sm:$0xff] }
  0x63   :  { %2829 = vmatprep.mubr.msk.bf16.mxu1 %vm439_vm1, %v379_v51  ;;  %v228_v51 = vld [vmem:[%s5188_s0 + $0x5d8] sm:$0xff]  ;;  %v326_v56 = vpack.c.bf16 %v100_v49, %v99_v48  ;;  %v121_v48 = vld [vmem:[%s5188_s0 + $0x280] sm:$0xff]  ;;  %v122_v49 = vld [vmem:[%s5188_s0 + $0x288] sm:$0xff] }
  0x64   :  { %v390_v57 = vpack.c.bf16 %v228_v51, %v227_v50  ;;  %v249_v50 = vld [vmem:[%s5188_s0 + $0x680] sm:$0xff]  ;;  %v250_v51 = vld [vmem:[%s5188_s0 + $0x688] sm:$0xff]  ;;  %v337_v54 = vpack.c.bf16 %v122_v49, %v121_v48 }
  0x65   :  { %v401_v55 = vpack.c.bf16 %v250_v51, %v249_v50 }
  0x69   :  { %2702 = vmatmul.mubr.msk.bf16.gmra.mxu0 %vm439_vm1, %v316_v60  ;;  %v103_v60 = vld [vmem:[%s5188_s0 + $0x1f0] sm:$0xff] }
  0x6a   :  { %2830 = vmatmul.mubr.msk.bf16.gmra.mxu1 %vm439_vm1, %v380_v61  ;;  %2705 = vmatprep.mubr.msk.bf16.mxu0 %vm439_vm1, %v317_v62  ;;  %v104_v61 = vld [vmem:[%s5188_s0 + $0x1f8] sm:$0xff]  ;;  %v231_v62 = vld [vmem:[%s5188_s0 + $0x5f0] sm:$0xff] }
  0x6b   :  { %2833 = vmatprep.mubr.msk.bf16.mxu1 %vm439_vm1, %v381_v63  ;;  %v232_v63 = vld [vmem:[%s5188_s0 + $0x5f8] sm:$0xff]  ;;  %v328_v4 = vpack.c.bf16 %v104_v61, %v103_v60  ;;  %v125_v60 = vld [vmem:[%s5188_s0 + $0x2a0] sm:$0xff]  ;;  %v126_v61 = vld [vmem:[%s5188_s0 + $0x2a8] sm:$0xff] }
  0x6c   :  { %v392_v5 = vpack.c.bf16 %v232_v63, %v231_v62  ;;  %v253_v62 = vld [vmem:[%s5188_s0 + $0x6a0] sm:$0xff]  ;;  %v254_v63 = vld [vmem:[%s5188_s0 + $0x6a8] sm:$0xff]  ;;  %v339_v2 = vpack.c.bf16 %v126_v61, %v125_v60 }
  0x6d   :  { %v403_v3 = vpack.c.bf16 %v254_v63, %v253_v62  ;;  %v146_v62 = vld [vmem:[%s5188_s0 + $0x348] sm:$0xff]  ;;  %v273_v63 = vld [vmem:[%s5188_s0 + $0x740] sm:$0xff] }
  0x71   :  { %2706 = vmatmul.mubr.msk.bf16.gmra.mxu0 %vm439_vm1, %v318_v8  ;;  %v107_v8 = vld [vmem:[%s5188_s0 + $0x210] sm:$0xff] }
  0x72   :  { %2834 = vmatmul.mubr.msk.bf16.gmra.mxu1 %vm439_vm1, %v382_v9  ;;  %2709 = vmatprep.mubr.msk.bf16.mxu0 %vm439_vm1, %v319_v10  ;;  %v108_v9 = vld [vmem:[%s5188_s0 + $0x218] sm:$0xff]  ;;  %v235_v10 = vld [vmem:[%s5188_s0 + $0x610] sm:$0xff] }
  0x73   :  { %2837 = vmatprep.mubr.msk.bf16.mxu1 %vm439_vm1, %v383_v11  ;;  %v236_v11 = vld [vmem:[%s5188_s0 + $0x618] sm:$0xff]  ;;  %v330_v16 = vpack.c.bf16 %v108_v9, %v107_v8  ;;  %v129_v8 = vld [vmem:[%s5188_s0 + $0x2c0] sm:$0xff]  ;;  %v130_v9 = vld [vmem:[%s5188_s0 + $0x2c8] sm:$0xff] }
  0x74   :  { %v394_v17 = vpack.c.bf16 %v236_v11, %v235_v10  ;;  %v257_v10 = vld [vmem:[%s5188_s0 + $0x6c0] sm:$0xff]  ;;  %v258_v11 = vld [vmem:[%s5188_s0 + $0x6c8] sm:$0xff]  ;;  %v341_v14 = vpack.c.bf16 %v130_v9, %v129_v8 }
  0x75   :  { %v405_v15 = vpack.c.bf16 %v258_v11, %v257_v10 }
  0x79   :  { %2710 = vmatmul.mubr.msk.bf16.gmra.mxu0 %vm439_vm1, %v320_v20  ;;  %v111_v20 = vld [vmem:[%s5188_s0 + $0x230] sm:$0xff] }
  0x7a   :  { %2838 = vmatmul.mubr.msk.bf16.gmra.mxu1 %vm439_vm1, %v384_v21  ;;  %2713 = vmatprep.mubr.msk.bf16.mxu0 %vm439_vm1, %v321_v22  ;;  %v112_v21 = vld [vmem:[%s5188_s0 + $0x238] sm:$0xff]  ;;  %v239_v22 = vld [vmem:[%s5188_s0 + $0x630] sm:$0xff] }
  0x7b   :  { %2841 = vmatprep.mubr.msk.bf16.mxu1 %vm439_vm1, %v385_v23  ;;  %v240_v23 = vld [vmem:[%s5188_s0 + $0x638] sm:$0xff]  ;;  %v332_v28 = vpack.c.bf16 %v112_v21, %v111_v20  ;;  %v133_v20 = vld [vmem:[%s5188_s0 + $0x2e0] sm:$0xff]  ;;  %v134_v21 = vld [vmem:[%s5188_s0 + $0x2e8] sm:$0xff] }
  0x7c   :  { %v396_v29 = vpack.c.bf16 %v240_v23, %v239_v22  ;;  %v261_v22 = vld [vmem:[%s5188_s0 + $0x6e0] sm:$0xff]  ;;  %v262_v23 = vld [vmem:[%s5188_s0 + $0x6e8] sm:$0xff]  ;;  %v343_v26 = vpack.c.bf16 %v134_v21, %v133_v20 }
  0x7d   :  { %v407_v27 = vpack.c.bf16 %v262_v23, %v261_v22  ;;  %v147_v23 = vld [vmem:[%s5188_s0 + $0x350] sm:$0xff] }
  0x81   :  { %2714 = vmatmul.mubr.msk.bf16.gmra.mxu0 %vm439_vm1, %v322_v32  ;;  %v115_v32 = vld [vmem:[%s5188_s0 + $0x250] sm:$0xff] }
  0x82   :  { %2842 = vmatmul.mubr.msk.bf16.gmra.mxu1 %vm439_vm1, %v386_v33  ;;  %2717 = vmatprep.mubr.msk.bf16.mxu0 %vm439_vm1, %v323_v34  ;;  %v116_v33 = vld [vmem:[%s5188_s0 + $0x258] sm:$0xff]  ;;  %v243_v34 = vld [vmem:[%s5188_s0 + $0x650] sm:$0xff] }
  0x83   :  { %2845 = vmatprep.mubr.msk.bf16.mxu1 %vm439_vm1, %v387_v35  ;;  %v244_v35 = vld [vmem:[%s5188_s0 + $0x658] sm:$0xff]  ;;  %v334_v40 = vpack.c.bf16 %v116_v33, %v115_v32  ;;  %v137_v32 = vld [vmem:[%s5188_s0 + $0x300] sm:$0xff]  ;;  %v138_v33 = vld [vmem:[%s5188_s0 + $0x308] sm:$0xff] }
  0x84   :  { %v398_v41 = vpack.c.bf16 %v244_v35, %v243_v34  ;;  %v265_v34 = vld [vmem:[%s5188_s0 + $0x700] sm:$0xff]  ;;  %v266_v35 = vld [vmem:[%s5188_s0 + $0x708] sm:$0xff]  ;;  %v345_v38 = vpack.c.bf16 %v138_v33, %v137_v32 }
  0x85   :  { %v409_v39 = vpack.c.bf16 %v266_v35, %v265_v34  ;;  %v150_v34 = vld [vmem:[%s5188_s0 + $0x368] sm:$0xff]  ;;  %v277_v35 = vld [vmem:[%s5188_s0 + $0x760] sm:$0xff] }
  0x89   :  { %2718 = vmatmul.mubr.msk.bf16.gmra.mxu0 %vm439_vm1, %v324_v44  ;;  %v119_v44 = vld [vmem:[%s5188_s0 + $0x270] sm:$0xff] }
  0x8a   :  { %2846 = vmatmul.mubr.msk.bf16.gmra.mxu1 %vm439_vm1, %v388_v45  ;;  %2721 = vmatprep.mubr.msk.bf16.mxu0 %vm439_vm1, %v325_v46  ;;  %v120_v45 = vld [vmem:[%s5188_s0 + $0x278] sm:$0xff]  ;;  %v247_v46 = vld [vmem:[%s5188_s0 + $0x670] sm:$0xff] }
  0x8b   :  { %2849 = vmatprep.mubr.msk.bf16.mxu1 %vm439_vm1, %v389_v47  ;;  %v248_v47 = vld [vmem:[%s5188_s0 + $0x678] sm:$0xff]  ;;  %v336_v52 = vpack.c.bf16 %v120_v45, %v119_v44  ;;  %v141_v44 = vld [vmem:[%s5188_s0 + $0x320] sm:$0xff]  ;;  %v142_v45 = vld [vmem:[%s5188_s0 + $0x328] sm:$0xff] }
  0x8c   :  { %v400_v53 = vpack.c.bf16 %v248_v47, %v247_v46  ;;  %v269_v46 = vld [vmem:[%s5188_s0 + $0x720] sm:$0xff]  ;;  %v270_v47 = vld [vmem:[%s5188_s0 + $0x728] sm:$0xff]  ;;  %v347_v50 = vpack.c.bf16 %v142_v45, %v141_v44 }
  0x8d   :  { %v411_v51 = vpack.c.bf16 %v270_v47, %v269_v46 }
  0x91   :  { %2722 = vmatmul.mubr.msk.bf16.gmra.mxu0 %vm439_vm1, %v326_v56  ;;  %v123_v56 = vld [vmem:[%s5188_s0 + $0x290] sm:$0xff] }
  0x92   :  { %2850 = vmatmul.mubr.msk.bf16.gmra.mxu1 %vm439_vm1, %v390_v57  ;;  %2725 = vmatprep.mubr.msk.bf16.mxu0 %vm439_vm1, %v327_v58  ;;  %v124_v57 = vld [vmem:[%s5188_s0 + $0x298] sm:$0xff]  ;;  %v251_v58 = vld [vmem:[%s5188_s0 + $0x690] sm:$0xff] }
  0x93   :  { %2853 = vmatprep.mubr.msk.bf16.mxu1 %vm439_vm1, %v391_v59  ;;  %v252_v59 = vld [vmem:[%s5188_s0 + $0x698] sm:$0xff]  ;;  %v338_v0 = vpack.c.bf16 %v124_v57, %v123_v56  ;;  %v271_v57 = vld [vmem:[%s5188_s0 + $0x730] sm:$0xff] }
  0x94   :  { %v402_v1 = vpack.c.bf16 %v252_v59, %v251_v58  ;;  %v272_v58 = vld [vmem:[%s5188_s0 + $0x738] sm:$0xff]  ;;  %v145_v59 = vld [vmem:[%s5188_s0 + $0x340] sm:$0xff] }
  0x95   :  { %v412_v10 = vpack.c.bf16 %v272_v58, %v271_v57  ;;  %v349_v11 = vpack.c.bf16 %v146_v62, %v145_v59 }
  0x99   :  { %2726 = vmatmul.mubr.msk.bf16.gmra.mxu0 %vm439_vm1, %v328_v4  ;;  %v127_v4 = vld [vmem:[%s5188_s0 + $0x2b0] sm:$0xff] }
  0x9a   :  { %2854 = vmatmul.mubr.msk.bf16.gmra.mxu1 %vm439_vm1, %v392_v5  ;;  %2729 = vmatprep.mubr.msk.bf16.mxu0 %vm439_vm1, %v329_v6  ;;  %v128_v5 = vld [vmem:[%s5188_s0 + $0x2b8] sm:$0xff]  ;;  %v255_v6 = vld [vmem:[%s5188_s0 + $0x6b0] sm:$0xff] }
  0x9b   :  { %2857 = vmatprep.mubr.msk.bf16.mxu1 %vm439_vm1, %v393_v7  ;;  %v256_v7 = vld [vmem:[%s5188_s0 + $0x6b8] sm:$0xff]  ;;  %v340_v12 = vpack.c.bf16 %v128_v5, %v127_v4 }
  0x9c   :  { %v404_v13 = vpack.c.bf16 %v256_v7, %v255_v6 }
  0xa1   :  { %2730 = vmatmul.mubr.msk.bf16.gmra.mxu0 %vm439_vm1, %v330_v16  ;;  %v131_v16 = vld [vmem:[%s5188_s0 + $0x2d0] sm:$0xff] }
  0xa2   :  { %2858 = vmatmul.mubr.msk.bf16.gmra.mxu1 %vm439_vm1, %v394_v17  ;;  %2733 = vmatprep.mubr.msk.bf16.mxu0 %vm439_vm1, %v331_v18  ;;  %v132_v17 = vld [vmem:[%s5188_s0 + $0x2d8] sm:$0xff]  ;;  %v259_v18 = vld [vmem:[%s5188_s0 + $0x6d0] sm:$0xff] }
  0xa3   :  { %2861 = vmatprep.mubr.msk.bf16.mxu1 %vm439_vm1, %v395_v19  ;;  %v260_v19 = vld [vmem:[%s5188_s0 + $0x6d8] sm:$0xff]  ;;  %v342_v24 = vpack.c.bf16 %v132_v17, %v131_v16 }
  0xa4   :  { %v406_v25 = vpack.c.bf16 %v260_v19, %v259_v18 }
  0xa9   :  { %2734 = vmatmul.mubr.msk.bf16.gmra.mxu0 %vm439_vm1, %v332_v28  ;;  %v135_v28 = vld [vmem:[%s5188_s0 + $0x2f0] sm:$0xff] }
  0xaa   :  { %2862 = vmatmul.mubr.msk.bf16.gmra.mxu1 %vm439_vm1, %v396_v29  ;;  %2737 = vmatprep.mubr.msk.bf16.mxu0 %vm439_vm1, %v333_v30  ;;  %v136_v29 = vld [vmem:[%s5188_s0 + $0x2f8] sm:$0xff]  ;;  %v263_v30 = vld [vmem:[%s5188_s0 + $0x6f0] sm:$0xff] }
  0xab   :  { %2865 = vmatprep.mubr.msk.bf16.mxu1 %vm439_vm1, %v397_v31  ;;  %v264_v31 = vld [vmem:[%s5188_s0 + $0x6f8] sm:$0xff]  ;;  %v344_v36 = vpack.c.bf16 %v136_v29, %v135_v28  ;;  %v149_v29 = vld [vmem:[%s5188_s0 + $0x360] sm:$0xff] }
  0xac   :  { %v408_v37 = vpack.c.bf16 %v264_v31, %v263_v30  ;;  %v276_v28 = vld [vmem:[%s5188_s0 + $0x758] sm:$0xff]  ;;  %v351_v47 = vpack.c.bf16 %v150_v34, %v149_v29 }
  0xb1   :  { %2738 = vmatmul.mubr.msk.bf16.gmra.mxu0 %vm439_vm1, %v334_v40  ;;  %v139_v40 = vld [vmem:[%s5188_s0 + $0x310] sm:$0xff] }
  0xb2   :  { %2866 = vmatmul.mubr.msk.bf16.gmra.mxu1 %vm439_vm1, %v398_v41  ;;  %2741 = vmatprep.mubr.msk.bf16.mxu0 %vm439_vm1, %v335_v42  ;;  %v140_v41 = vld [vmem:[%s5188_s0 + $0x318] sm:$0xff]  ;;  %v267_v42 = vld [vmem:[%s5188_s0 + $0x710] sm:$0xff] }
  0xb3   :  { %2869 = vmatprep.mubr.msk.bf16.mxu1 %vm439_vm1, %v399_v43  ;;  %v268_v43 = vld [vmem:[%s5188_s0 + $0x718] sm:$0xff]  ;;  %v346_v48 = vpack.c.bf16 %v140_v41, %v139_v40 }
  0xb4   :  { %v410_v49 = vpack.c.bf16 %v268_v43, %v267_v42 }
  0xb9   :  { %2742 = vmatmul.mubr.msk.bf16.gmra.mxu0 %vm439_vm1, %v336_v52  ;;  %v3716_v52 = vld [vmem:[#allocation4] ss:$0 sm:$0xff] }
  0xba   :  { %2870 = vmatmul.mubr.msk.bf16.gmra.mxu1 %vm439_vm1, %v400_v53  ;;  %2745 = vmatprep.mubr.msk.bf16.mxu0 %vm439_vm1, %v337_v54  ;;  %v143_v53 = vld [vmem:[%s5188_s0 + $0x330] sm:$0xff]  ;;  %v144_v54 = vld [vmem:[%s5188_s0 + $0x338] sm:$0xff] }
  0xbb   :  { %2873 = vmatprep.mubr.msk.bf16.mxu1 %vm439_vm1, %v401_v55  ;;  %v348_v9 = vpack.c.bf16 %v144_v54, %v143_v53 }
  0xc1   :  { %2746 = vmatmul.mubr.msk.bf16.gmra.mxu0 %vm439_vm1, %v338_v0  ;;  %v274_v0 = vld [vmem:[%s5188_s0 + $0x748] sm:$0xff] }
  0xc2   :  { %2874 = vmatmul.mubr.msk.bf16.gmra.mxu1 %vm439_vm1, %v402_v1  ;;  %2749 = vmatprep.mubr.msk.bf16.mxu0 %vm439_vm1, %v339_v2 }
  0xc3   :  { %2877 = vmatprep.mubr.msk.bf16.mxu1 %vm439_vm1, %v403_v3 }
  0xc9   :  { %2750 = vmatmul.mubr.msk.bf16.gmra.mxu0 %vm439_vm1, %v340_v12  ;;  %v413_v12 = vpack.c.bf16 %v274_v0, %v273_v63  ;;  %v279_v0 = vld [vmem:[%s5188_s0 + $0x770] sm:$0xff] }
  0xca   :  { %2878 = vmatmul.mubr.msk.bf16.gmra.mxu1 %vm439_vm1, %v404_v13  ;;  %2753 = vmatprep.mubr.msk.bf16.mxu0 %vm439_vm1, %v341_v14 }
  0xcb   :  { %2881 = vmatprep.mubr.msk.bf16.mxu1 %vm439_vm1, %v405_v15 }
  0xd1   :  { %2754 = vmatmul.mubr.msk.bf16.gmra.mxu0 %vm439_vm1, %v342_v24  ;;  %v148_v24 = vld [vmem:[%s5188_s0 + $0x358] sm:$0xff] }
  0xd2   :  { %2882 = vmatmul.mubr.msk.bf16.gmra.mxu1 %vm439_vm1, %v406_v25  ;;  %2757 = vmatprep.mubr.msk.bf16.mxu0 %vm439_vm1, %v343_v26  ;;  %v350_v45 = vpack.c.bf16 %v148_v24, %v147_v23 }
  0xd3   :  { %2885 = vmatprep.mubr.msk.bf16.mxu1 %vm439_vm1, %v407_v27  ;;  %v275_v27 = vld [vmem:[%s5188_s0 + $0x750] sm:$0xff] }
  0xd4   :  { %v414_v46 = vpack.c.bf16 %v276_v28, %v275_v27 }
  0xd9   :  { %2758 = vmatmul.mubr.msk.bf16.gmra.mxu0 %vm439_vm1, %v344_v36  ;;  %v278_v36 = vld [vmem:[%s5188_s0 + $0x768] sm:$0xff] }
  0xda   :  { %2886 = vmatmul.mubr.msk.bf16.gmra.mxu1 %vm439_vm1, %v408_v37  ;;  %2761 = vmatprep.mubr.msk.bf16.mxu0 %vm439_vm1, %v345_v38 }
  0xdb   :  { %2889 = vmatprep.mubr.msk.bf16.mxu1 %vm439_vm1, %v409_v39 }
  0xe1   :  { %v2667_v55 = vpop.f32.mrf.mxu0  ;;  %2762 = vmatmul.mubr.msk.bf16.gmra.mxu0 %vm439_vm1, %v346_v48  ;;  %v415_v48 = vpack.c.bf16 %v278_v36, %v277_v35  ;;  %v283_v36 = vld [vmem:[%s5188_s0 + $0x790] sm:$0xff] }
  0xe2   :  { %v2795_v56 = vpop.f32.mrf.mxu1  ;;  %2890 = vmatmul.mubr.msk.bf16.gmra.mxu1 %vm439_vm1, %v410_v49  ;;  %v871_v60 = vadd.f32 %v2667_v55, %v3716_v52  ;;  %2765 = vmatprep.mubr.msk.bf16.mxu0 %vm439_vm1, %v347_v50 }
  0xe3   :  { %v1383_v61 = vadd.f32 %v2795_v56, %v3716_v52  ;;  %2893 = vmatprep.mubr.msk.bf16.mxu1 %vm439_vm1, %v411_v51  ;;  %v862_v1 = vpop.f32.mrf.mxu0 }
  0xe4   :  { %v1374_v2 = vpop.f32.mrf.mxu1  ;;  %v1887_v3 = vmax.f32 %v871_v60, 0.0  ;;  %v863_v5 = vadd.f32 %v3716_v52, %v862_v1  ;;  %v151_v60 = vld [vmem:[%s5188_s0 + $0x370] sm:$0xff]  ;;  %v280_v1 = vld [vmem:[%s5188_s0 + $0x778] sm:$0xff] }
  0xe5   :  { %v2015_v4 = vmax.f32 %v1383_v61, 0.0  ;;  %v1375_v6 = vadd.f32 %v3716_v52, %v1374_v2  ;;  %v2668_v7 = vpop.f32.mrf.mxu0  ;;  %v152_v61 = vld [vmem:[%s5188_s0 + $0x378] sm:$0xff]  ;;  %v153_v2 = vld [vmem:[%s5188_s0 + $0x380] sm:$0xff] }
  0xe6   :  { %v2796_v8 = vpop.f32.mrf.mxu1  ;;  %2144 = vst.msk [vmem:[%s5191_s3 + $0x10] sm:$0xff] %vm2141_vm2, %v1887_v3  ;;  %v1885_v13 = vmax.f32 %v863_v5, 0.0  ;;  %v874_v15 = vadd.f32 %v2668_v7, %v3716_v52  ;;  %v154_v7 = vld [vmem:[%s5188_s0 + $0x388] sm:$0xff] }
  0xe7   :  { %2272 = vst.msk [vmem:[%s5191_s3 + $0x410] sm:$0xff] %vm2141_vm2, %v2015_v4  ;;  %v2013_v14 = vmax.f32 %v1375_v6, 0.0  ;;  %v1386_v16 = vadd.f32 %v2796_v8, %v3716_v52  ;;  %v865_v17 = vpop.f32.mrf.mxu0  ;;  %v281_v8 = vld [vmem:[%s5188_s0 + $0x780] sm:$0xff] }
  0xe8   :  { %v1377_v18 = vpop.f32.mrf.mxu1  ;;  %2142 = vst.msk [vmem:[%s5191_s3] sm:$0xff] %vm2141_vm2, %v1885_v13  ;;  %v1888_v19 = vmax.f32 %v874_v15, 0.0  ;;  %v866_v21 = vadd.f32 %v3716_v52, %v865_v17 }
  0xe9   :  { %2270 = vst.msk [vmem:[%s5191_s3 + $0x400] sm:$0xff] %vm2141_vm2, %v2013_v14  ;;  %v2016_v20 = vmax.f32 %v1386_v16, 0.0  ;;  %v1378_v22 = vadd.f32 %v3716_v52, %v1377_v18  ;;  %v2671_v25 = vpop.f32.mrf.mxu0  ;;  %2766 = vmatmul.mubr.msk.bf16.gmra.mxu0 %vm439_vm1, %v348_v9  ;;  %v282_v9 = vld [vmem:[%s5188_s0 + $0x788] sm:$0xff]  ;;  %v352_v18 = vpack.c.bf16 %v152_v61, %v151_v60 }
  0xea   :  { %v2799_v26 = vpop.f32.mrf.mxu1  ;;  %2894 = vmatmul.mubr.msk.bf16.gmra.mxu1 %vm439_vm1, %v412_v10  ;;  %2145 = vst.msk [vmem:[%s5191_s3 + $0x18] sm:$0xff] %vm2141_vm2, %v1888_v19  ;;  %v1886_v30 = vmax.f32 %v866_v21, 0.0  ;;  %v887_v32 = vadd.f32 %v2671_v25, %v3716_v52  ;;  %2769 = vmatprep.mubr.msk.bf16.mxu0 %vm439_vm1, %v349_v11  ;;  %v416_v19 = vpack.c.bf16 %v280_v1, %v279_v0 }
  0xeb   :  { %2273 = vst.msk [vmem:[%s5191_s3 + $0x418] sm:$0xff] %vm2141_vm2, %v2016_v20  ;;  %v2014_v31 = vmax.f32 %v1378_v22, 0.0  ;;  %v1399_v33 = vadd.f32 %v2799_v26, %v3716_v52  ;;  %2897 = vmatprep.mubr.msk.bf16.mxu1 %vm439_vm1, %v413_v12  ;;  %v878_v37 = vpop.f32.mrf.mxu0  ;;  %v353_v20 = vpack.c.bf16 %v154_v7, %v153_v2  ;;  %v417_v21 = vpack.c.bf16 %v282_v9, %v281_v8  ;;  %v287_v9 = vld [vmem:[%s5188_s0 + $0x7b0] sm:$0xff] }
  0xec   :  { %v1390_v38 = vpop.f32.mrf.mxu1  ;;  %2143 = vst.msk [vmem:[%s5191_s3 + $0x8] sm:$0xff] %vm2141_vm2, %v1886_v30  ;;  %v1891_v39 = vmax.f32 %v887_v32, 0.0  ;;  %v879_v41 = vadd.f32 %v3716_v52, %v878_v37  ;;  %v155_v32 = vld [vmem:[%s5188_s0 + $0x390] sm:$0xff]  ;;  %v284_v37 = vld [vmem:[%s5188_s0 + $0x798] sm:$0xff] }
  0xed   :  { %2271 = vst.msk [vmem:[%s5191_s3 + $0x408] sm:$0xff] %vm2141_vm2, %v2014_v31  ;;  %v2019_v40 = vmax.f32 %v1399_v33, 0.0  ;;  %v1391_v42 = vadd.f32 %v3716_v52, %v1390_v38  ;;  %v2672_v43 = vpop.f32.mrf.mxu0  ;;  %v156_v33 = vld [vmem:[%s5188_s0 + $0x398] sm:$0xff]  ;;  %v157_v38 = vld [vmem:[%s5188_s0 + $0x3a0] sm:$0xff] }
  0xee   :  { %v2800_v44 = vpop.f32.mrf.mxu1  ;;  %2148 = vst.msk [vmem:[%s5191_s3 + $0x30] sm:$0xff] %vm2141_vm2, %v1891_v39  ;;  %v1889_v49 = vmax.f32 %v879_v41, 0.0  ;;  %v890_v51 = vadd.f32 %v2672_v43, %v3716_v52  ;;  %v158_v43 = vld [vmem:[%s5188_s0 + $0x3a8] sm:$0xff] }
  0xef   :  { %2276 = vst.msk [vmem:[%s5191_s3 + $0x430] sm:$0xff] %vm2141_vm2, %v2019_v40  ;;  %v2017_v50 = vmax.f32 %v1391_v42, 0.0  ;;  %v1402_v53 = vadd.f32 %v2800_v44, %v3716_v52  ;;  %v881_v54 = vpop.f32.mrf.mxu0  ;;  %v285_v44 = vld [vmem:[%s5188_s0 + $0x7a0] sm:$0xff] }
  0xf0   :  { %v1393_v55 = vpop.f32.mrf.mxu1  ;;  %2146 = vst.msk [vmem:[%s5191_s3 + $0x20] sm:$0xff] %vm2141_vm2, %v1889_v49  ;;  %v1892_v56 = vmax.f32 %v890_v51, 0.0  ;;  %v882_v58 = vadd.f32 %v3716_v52, %v881_v54 }
  0xf1   :  { %2274 = vst.msk [vmem:[%s5191_s3 + $0x420] sm:$0xff] %vm2141_vm2, %v2017_v50  ;;  %v2020_v57 = vmax.f32 %v1402_v53, 0.0  ;;  %v1394_v59 = vadd.f32 %v3716_v52, %v1393_v55  ;;  %v2675_v62 = vpop.f32.mrf.mxu0  ;;  %2770 = vmatmul.mubr.msk.bf16.gmra.mxu0 %vm439_vm1, %v350_v45  ;;  %v286_v45 = vld [vmem:[%s5188_s0 + $0x7a8] sm:$0xff]  ;;  %v354_v55 = vpack.c.bf16 %v156_v33, %v155_v32 }
  0xf2   :  { %v2803_v63 = vpop.f32.mrf.mxu1  ;;  %2898 = vmatmul.mubr.msk.bf16.gmra.mxu1 %vm439_vm1, %v414_v46  ;;  %2149 = vst.msk [vmem:[%s5191_s3 + $0x38] sm:$0xff] %vm2141_vm2, %v1892_v56  ;;  %v1890_v3 = vmax.f32 %v882_v58, 0.0  ;;  %v903_v5 = vadd.f32 %v2675_v62, %v3716_v52  ;;  %2773 = vmatprep.mubr.msk.bf16.mxu0 %vm439_vm1, %v351_v47  ;;  %v418_v56 = vpack.c.bf16 %v284_v37, %v283_v36 }
  0xf3   :  { %2277 = vst.msk [vmem:[%s5191_s3 + $0x438] sm:$0xff] %vm2141_vm2, %v2020_v57  ;;  %v2018_v4 = vmax.f32 %v1394_v59, 0.0  ;;  %v1415_v6 = vadd.f32 %v2803_v63, %v3716_v52  ;;  %2901 = vmatprep.mubr.msk.bf16.mxu1 %vm439_vm1, %v415_v48  ;;  %v894_v10 = vpop.f32.mrf.mxu0  ;;  %v355_v57 = vpack.c.bf16 %v158_v43, %v157_v38  ;;  %v419_v58 = vpack.c.bf16 %v286_v45, %v285_v44  ;;  %v291_v45 = vld [vmem:[%s5188_s0 + $0x7d0] sm:$0xff] }
  0xf4   :  { %v1406_v11 = vpop.f32.mrf.mxu1  ;;  %2147 = vst.msk [vmem:[%s5191_s3 + $0x28] sm:$0xff] %vm2141_vm2, %v1890_v3  ;;  %v1895_v12 = vmax.f32 %v903_v5, 0.0  ;;  %v895_v14 = vadd.f32 %v3716_v52, %v894_v10  ;;  %v159_v5 = vld [vmem:[%s5188_s0 + $0x3b0] sm:$0xff]  ;;  %v288_v10 = vld [vmem:[%s5188_s0 + $0x7b8] sm:$0xff] }
  0xf5   :  { %2275 = vst.msk [vmem:[%s5191_s3 + $0x428] sm:$0xff] %vm2141_vm2, %v2018_v4  ;;  %v2023_v13 = vmax.f32 %v1415_v6, 0.0  ;;  %v1407_v15 = vadd.f32 %v3716_v52, %v1406_v11  ;;  %v2676_v16 = vpop.f32.mrf.mxu0  ;;  %v160_v6 = vld [vmem:[%s5188_s0 + $0x3b8] sm:$0xff]  ;;  %v161_v11 = vld [vmem:[%s5188_s0 + $0x3c0] sm:$0xff] }
  0xf6   :  { %v2804_v17 = vpop.f32.mrf.mxu1  ;;  %2152 = vst.msk [vmem:[%s5191_s3 + $0x50] sm:$0xff] %vm2141_vm2, %v1895_v12  ;;  %v1893_v22 = vmax.f32 %v895_v14, 0.0  ;;  %v906_v24 = vadd.f32 %v2676_v16, %v3716_v52  ;;  %v162_v16 = vld [vmem:[%s5188_s0 + $0x3c8] sm:$0xff] }
  0xf7   :  { %2280 = vst.msk [vmem:[%s5191_s3 + $0x450] sm:$0xff] %vm2141_vm2, %v2023_v13  ;;  %v2021_v23 = vmax.f32 %v1407_v15, 0.0  ;;  %v1418_v25 = vadd.f32 %v2804_v17, %v3716_v52  ;;  %v897_v26 = vpop.f32.mrf.mxu0  ;;  %v289_v17 = vld [vmem:[%s5188_s0 + $0x7c0] sm:$0xff] }
  0xf8   :  { %v1409_v27 = vpop.f32.mrf.mxu1  ;;  %2150 = vst.msk [vmem:[%s5191_s3 + $0x40] sm:$0xff] %vm2141_vm2, %v1893_v22  ;;  %v1896_v28 = vmax.f32 %v906_v24, 0.0  ;;  %v898_v30 = vadd.f32 %v3716_v52, %v897_v26 }
  0xf9   :  { %2278 = vst.msk [vmem:[%s5191_s3 + $0x440] sm:$0xff] %vm2141_vm2, %v2021_v23  ;;  %v2024_v29 = vmax.f32 %v1418_v25, 0.0  ;;  %v1410_v31 = vadd.f32 %v3716_v52, %v1409_v27  ;;  %v2679_v34 = vpop.f32.mrf.mxu0  ;;  %2774 = vmatmul.mubr.msk.bf16.gmra.mxu0 %vm439_vm1, %v352_v18  ;;  %v290_v18 = vld [vmem:[%s5188_s0 + $0x7c8] sm:$0xff]  ;;  %v356_v27 = vpack.c.bf16 %v160_v6, %v159_v5 }
  0xfa   :  { %v2807_v35 = vpop.f32.mrf.mxu1  ;;  %2902 = vmatmul.mubr.msk.bf16.gmra.mxu1 %vm439_vm1, %v416_v19  ;;  %2153 = vst.msk [vmem:[%s5191_s3 + $0x58] sm:$0xff] %vm2141_vm2, %v1896_v28  ;;  %v1894_v39 = vmax.f32 %v898_v30, 0.0  ;;  %v919_v41 = vadd.f32 %v2679_v34, %v3716_v52  ;;  %2777 = vmatprep.mubr.msk.bf16.mxu0 %vm439_vm1, %v353_v20  ;;  %v420_v28 = vpack.c.bf16 %v288_v10, %v287_v9 }
  0xfb   :  { %2281 = vst.msk [vmem:[%s5191_s3 + $0x458] sm:$0xff] %vm2141_vm2, %v2024_v29  ;;  %v2022_v40 = vmax.f32 %v1410_v31, 0.0  ;;  %v1431_v42 = vadd.f32 %v2807_v35, %v3716_v52  ;;  %2905 = vmatprep.mubr.msk.bf16.mxu1 %vm439_vm1, %v417_v21  ;;  %v910_v46 = vpop.f32.mrf.mxu0  ;;  %v357_v29 = vpack.c.bf16 %v162_v16, %v161_v11  ;;  %v421_v30 = vpack.c.bf16 %v290_v18, %v289_v17  ;;  %v167_v16 = vld [vmem:[%s5188_s0 + $0x3f0] sm:$0xff] }
  0xfc   :  { %v1422_v47 = vpop.f32.mrf.mxu1  ;;  %2151 = vst.msk [vmem:[%s5191_s3 + $0x48] sm:$0xff] %vm2141_vm2, %v1894_v39  ;;  %v1899_v48 = vmax.f32 %v919_v41, 0.0  ;;  %v911_v50 = vadd.f32 %v3716_v52, %v910_v46  ;;  %v163_v41 = vld [vmem:[%s5188_s0 + $0x3d0] sm:$0xff]  ;;  %v292_v46 = vld [vmem:[%s5188_s0 + $0x7d8] sm:$0xff] }
  0xfd   :  { %2279 = vst.msk [vmem:[%s5191_s3 + $0x448] sm:$0xff] %vm2141_vm2, %v2022_v40  ;;  %v2027_v49 = vmax.f32 %v1431_v42, 0.0  ;;  %v1423_v51 = vadd.f32 %v3716_v52, %v1422_v47  ;;  %v2680_v53 = vpop.f32.mrf.mxu0  ;;  %v164_v42 = vld [vmem:[%s5188_s0 + $0x3d8] sm:$0xff]  ;;  %v165_v47 = vld [vmem:[%s5188_s0 + $0x3e0] sm:$0xff] }
  0xfe   :  { %v2808_v54 = vpop.f32.mrf.mxu1  ;;  %2156 = vst.msk [vmem:[%s5191_s3 + $0x70] sm:$0xff] %vm2141_vm2, %v1899_v48  ;;  %v1897_v59 = vmax.f32 %v911_v50, 0.0  ;;  %v922_v61 = vadd.f32 %v2680_v53, %v3716_v52  ;;  %v166_v53 = vld [vmem:[%s5188_s0 + $0x3e8] sm:$0xff] }
  0xff   :  { %2284 = vst.msk [vmem:[%s5191_s3 + $0x470] sm:$0xff] %vm2141_vm2, %v2027_v49  ;;  %v2025_v60 = vmax.f32 %v1423_v51, 0.0  ;;  %v1434_v62 = vadd.f32 %v2808_v54, %v3716_v52  ;;  %v913_v63 = vpop.f32.mrf.mxu0  ;;  %v293_v54 = vld [vmem:[%s5188_s0 + $0x7e0] sm:$0xff] }
 0x100   :  { %v1425_v0 = vpop.f32.mrf.mxu1  ;;  %2154 = vst.msk [vmem:[%s5191_s3 + $0x60] sm:$0xff] %vm2141_vm2, %v1897_v59  ;;  %v1900_v1 = vmax.f32 %v922_v61, 0.0  ;;  %v914_v3 = vadd.f32 %v3716_v52, %v913_v63 }
 0x101   :  { %2282 = vst.msk [vmem:[%s5191_s3 + $0x460] sm:$0xff] %vm2141_vm2, %v2025_v60  ;;  %v2028_v2 = vmax.f32 %v1434_v62, 0.0  ;;  %v1426_v4 = vadd.f32 %v3716_v52, %v1425_v0  ;;  %v2683_v7 = vpop.f32.mrf.mxu0  ;;  %2778 = vmatmul.mubr.msk.bf16.gmra.mxu0 %vm439_vm1, %v354_v55  ;;  %v294_v55 = vld [vmem:[%s5188_s0 + $0x7e8] sm:$0xff]  ;;  %v358_v0 = vpack.c.bf16 %v164_v42, %v163_v41 }
 0x102   :  { %v2811_v8 = vpop.f32.mrf.mxu1  ;;  %2906 = vmatmul.mubr.msk.bf16.gmra.mxu1 %vm439_vm1, %v418_v56  ;;  %2157 = vst.msk [vmem:[%s5191_s3 + $0x78] sm:$0xff] %vm2141_vm2, %v1900_v1  ;;  %v1898_v12 = vmax.f32 %v914_v3, 0.0  ;;  %v935_v14 = vadd.f32 %v2683_v7, %v3716_v52  ;;  %2781 = vmatprep.mubr.msk.bf16.mxu0 %vm439_vm1, %v355_v57  ;;  %v422_v1 = vpack.c.bf16 %v292_v46, %v291_v45 }
 0x103   :  { %2285 = vst.msk [vmem:[%s5191_s3 + $0x478] sm:$0xff] %vm2141_vm2, %v2028_v2  ;;  %v2026_v13 = vmax.f32 %v1426_v4, 0.0  ;;  %v1447_v15 = vadd.f32 %v2811_v8, %v3716_v52  ;;  %2909 = vmatprep.mubr.msk.bf16.mxu1 %vm439_vm1, %v419_v58  ;;  %v926_v19 = vpop.f32.mrf.mxu0  ;;  %v359_v2 = vpack.c.bf16 %v166_v53, %v165_v47  ;;  %v423_v3 = vpack.c.bf16 %v294_v55, %v293_v54 }
 0x104   :  { %v1438_v20 = vpop.f32.mrf.mxu1  ;;  %2155 = vst.msk [vmem:[%s5191_s3 + $0x68] sm:$0xff] %vm2141_vm2, %v1898_v12  ;;  %v1903_v21 = vmax.f32 %v935_v14, 0.0  ;;  %v927_v23 = vadd.f32 %v3716_v52, %v926_v19 }
 0x105   :  { %2283 = vst.msk [vmem:[%s5191_s3 + $0x468] sm:$0xff] %vm2141_vm2, %v2026_v13  ;;  %v2031_v22 = vmax.f32 %v1447_v15, 0.0  ;;  %v1439_v24 = vadd.f32 %v3716_v52, %v1438_v20  ;;  %v2684_v25 = vpop.f32.mrf.mxu0 }
 0x106   :  { %v2812_v26 = vpop.f32.mrf.mxu1  ;;  %2160 = vst.msk [vmem:[%s5191_s3 + $0x90] sm:$0xff] %vm2141_vm2, %v1903_v21  ;;  %v1901_v31 = vmax.f32 %v927_v23, 0.0  ;;  %v938_v33 = vadd.f32 %v2684_v25, %v3716_v52  ;;  %v168_v21 = vld [vmem:[%s5188_s0 + $0x3f8] sm:$0xff] }
 0x107   :  { %2288 = vst.msk [vmem:[%s5191_s3 + $0x490] sm:$0xff] %vm2141_vm2, %v2031_v22  ;;  %v2029_v32 = vmax.f32 %v1439_v24, 0.0  ;;  %v1450_v34 = vadd.f32 %v2812_v26, %v3716_v52  ;;  %v929_v35 = vpop.f32.mrf.mxu0  ;;  %v295_v22 = vld [vmem:[%s5188_s0 + $0x7f0] sm:$0xff]  ;;  %v296_v23 = vld [vmem:[%s5188_s0 + $0x7f8] sm:$0xff] }
 0x108   :  { %v1441_v36 = vpop.f32.mrf.mxu1  ;;  %2158 = vst.msk [vmem:[%s5191_s3 + $0x80] sm:$0xff] %vm2141_vm2, %v1901_v31  ;;  %v1904_v37 = vmax.f32 %v938_v33, 0.0  ;;  %v930_v39 = vadd.f32 %v3716_v52, %v929_v35  ;;  %v424_v33 = vpack.c.bf16 %v296_v23, %v295_v22 }
 0x109   :  { %2286 = vst.msk [vmem:[%s5191_s3 + $0x480] sm:$0xff] %vm2141_vm2, %v2029_v32  ;;  %v2032_v38 = vmax.f32 %v1450_v34, 0.0  ;;  %v1442_v40 = vadd.f32 %v3716_v52, %v1441_v36  ;;  %v2687_v43 = vpop.f32.mrf.mxu0  ;;  %2782 = vmatmul.mubr.msk.bf16.gmra.mxu0 %vm439_vm1, %v356_v27  ;;  %v360_v32 = vpack.c.bf16 %v168_v21, %v167_v16 }
 0x10a   :  { %v2815_v44 = vpop.f32.mrf.mxu1  ;;  %2910 = vmatmul.mubr.msk.bf16.gmra.mxu1 %vm439_vm1, %v420_v28  ;;  %2161 = vst.msk [vmem:[%s5191_s3 + $0x98] sm:$0xff] %vm2141_vm2, %v1904_v37  ;;  %v1902_v48 = vmax.f32 %v930_v39, 0.0  ;;  %v951_v50 = vadd.f32 %v2687_v43, %v3716_v52  ;;  %2785 = vmatprep.mubr.msk.bf16.mxu0 %vm439_vm1, %v357_v29 }
 0x10b   :  { %2289 = vst.msk [vmem:[%s5191_s3 + $0x498] sm:$0xff] %vm2141_vm2, %v2032_v38  ;;  %v2030_v49 = vmax.f32 %v1442_v40, 0.0  ;;  %v1463_v51 = vadd.f32 %v2815_v44, %v3716_v52  ;;  %2913 = vmatprep.mubr.msk.bf16.mxu1 %vm439_vm1, %v421_v30  ;;  %v942_v56 = vpop.f32.mrf.mxu0 }
 0x10c   :  { %v1454_v57 = vpop.f32.mrf.mxu1  ;;  %2159 = vst.msk [vmem:[%s5191_s3 + $0x88] sm:$0xff] %vm2141_vm2, %v1902_v48  ;;  %v1907_v58 = vmax.f32 %v951_v50, 0.0  ;;  %v943_v60 = vadd.f32 %v3716_v52, %v942_v56 }
 0x10d   :  { %2287 = vst.msk [vmem:[%s5191_s3 + $0x488] sm:$0xff] %vm2141_vm2, %v2030_v49  ;;  %v2035_v59 = vmax.f32 %v1463_v51, 0.0  ;;  %v1455_v61 = vadd.f32 %v3716_v52, %v1454_v57  ;;  %v2688_v62 = vpop.f32.mrf.mxu0 }
 0x10e   :  { %v2816_v63 = vpop.f32.mrf.mxu1  ;;  %2164 = vst.msk [vmem:[%s5191_s3 + $0xb0] sm:$0xff] %vm2141_vm2, %v1907_v58  ;;  %v1905_v4 = vmax.f32 %v943_v60, 0.0  ;;  %v954_v6 = vadd.f32 %v2688_v62, %v3716_v52 }
 0x10f   :  { %2292 = vst.msk [vmem:[%s5191_s3 + $0x4b0] sm:$0xff] %vm2141_vm2, %v2035_v59  ;;  %v2033_v5 = vmax.f32 %v1455_v61, 0.0  ;;  %v1466_v7 = vadd.f32 %v2816_v63, %v3716_v52  ;;  %v945_v8 = vpop.f32.mrf.mxu0 }
 0x110   :  { %v1457_v9 = vpop.f32.mrf.mxu1  ;;  %2162 = vst.msk [vmem:[%s5191_s3 + $0xa0] sm:$0xff] %vm2141_vm2, %v1905_v4  ;;  %v1908_v10 = vmax.f32 %v954_v6, 0.0  ;;  %v946_v12 = vadd.f32 %v3716_v52, %v945_v8 }
 0x111   :  { %2290 = vst.msk [vmem:[%s5191_s3 + $0x4a0] sm:$0xff] %vm2141_vm2, %v2033_v5  ;;  %v2036_v11 = vmax.f32 %v1466_v7, 0.0  ;;  %v1458_v13 = vadd.f32 %v3716_v52, %v1457_v9  ;;  %v2691_v14 = vpop.f32.mrf.mxu0  ;;  %2786 = vmatmul.mubr.msk.bf16.gmra.mxu0 %vm439_vm1, %v358_v0 }
 0x112   :  { %v2819_v15 = vpop.f32.mrf.mxu1  ;;  %2914 = vmatmul.mubr.msk.bf16.gmra.mxu1 %vm439_vm1, %v422_v1  ;;  %2165 = vst.msk [vmem:[%s5191_s3 + $0xb8] sm:$0xff] %vm2141_vm2, %v1908_v10  ;;  %v1906_v17 = vmax.f32 %v946_v12, 0.0  ;;  %v967_v19 = vadd.f32 %v2691_v14, %v3716_v52  ;;  %2789 = vmatprep.mubr.msk.bf16.mxu0 %vm439_vm1, %v359_v2 }
 0x113   :  { %2293 = vst.msk [vmem:[%s5191_s3 + $0x4b8] sm:$0xff] %vm2141_vm2, %v2036_v11  ;;  %v2034_v18 = vmax.f32 %v1458_v13, 0.0  ;;  %v1479_v20 = vadd.f32 %v2819_v15, %v3716_v52  ;;  %2917 = vmatprep.mubr.msk.bf16.mxu1 %vm439_vm1, %v423_v3  ;;  %v958_v24 = vpop.f32.mrf.mxu0 }
 0x114   :  { %v1470_v25 = vpop.f32.mrf.mxu1  ;;  %2163 = vst.msk [vmem:[%s5191_s3 + $0xa8] sm:$0xff] %vm2141_vm2, %v1906_v17  ;;  %v1911_v26 = vmax.f32 %v967_v19, 0.0  ;;  %v959_v28 = vadd.f32 %v3716_v52, %v958_v24 }
 0x115   :  { %2291 = vst.msk [vmem:[%s5191_s3 + $0x4a8] sm:$0xff] %vm2141_vm2, %v2034_v18  ;;  %v2039_v27 = vmax.f32 %v1479_v20, 0.0  ;;  %v1471_v29 = vadd.f32 %v3716_v52, %v1470_v25  ;;  %v2692_v30 = vpop.f32.mrf.mxu0 }
 0x116   :  { %v2820_v31 = vpop.f32.mrf.mxu1  ;;  %2168 = vst.msk [vmem:[%s5191_s3 + $0xd0] sm:$0xff] %vm2141_vm2, %v1911_v26  ;;  %v1909_v34 = vmax.f32 %v959_v28, 0.0  ;;  %v970_v36 = vadd.f32 %v2692_v30, %v3716_v52 }
 0x117   :  { %2296 = vst.msk [vmem:[%s5191_s3 + $0x4d0] sm:$0xff] %vm2141_vm2, %v2039_v27  ;;  %v2037_v35 = vmax.f32 %v1471_v29, 0.0  ;;  %v1482_v37 = vadd.f32 %v2820_v31, %v3716_v52  ;;  %v961_v38 = vpop.f32.mrf.mxu0 }
 0x118   :  { %v1473_v39 = vpop.f32.mrf.mxu1  ;;  %2166 = vst.msk [vmem:[%s5191_s3 + $0xc0] sm:$0xff] %vm2141_vm2, %v1909_v34  ;;  %v1912_v40 = vmax.f32 %v970_v36, 0.0  ;;  %v962_v42 = vadd.f32 %v3716_v52, %v961_v38 }
 0x119   :  { %2294 = vst.msk [vmem:[%s5191_s3 + $0x4c0] sm:$0xff] %vm2141_vm2, %v2037_v35  ;;  %v2040_v41 = vmax.f32 %v1482_v37, 0.0  ;;  %v1474_v43 = vadd.f32 %v3716_v52, %v1473_v39  ;;  %v2695_v44 = vpop.f32.mrf.mxu0  ;;  %2790 = vmatmul.mubr.msk.bf16.gmra.mxu0 %vm439_vm1, %v360_v32 }
 0x11a   :  { %v2823_v45 = vpop.f32.mrf.mxu1  ;;  %2918 = vmatmul.mubr.msk.bf16.gmra.mxu1 %vm439_vm1, %v424_v33  ;;  %2169 = vst.msk [vmem:[%s5191_s3 + $0xd8] sm:$0xff] %vm2141_vm2, %v1912_v40  ;;  %v1910_v46 = vmax.f32 %v962_v42, 0.0  ;;  %v983_v48 = vadd.f32 %v2695_v44, %v3716_v52 }
 0x11b   :  { %2297 = vst.msk [vmem:[%s5191_s3 + $0x4d8] sm:$0xff] %vm2141_vm2, %v2040_v41  ;;  %v2038_v47 = vmax.f32 %v1474_v43, 0.0  ;;  %v1495_v49 = vadd.f32 %v2823_v45, %v3716_v52  ;;  %v974_v50 = vpop.f32.mrf.mxu0 }
 0x11c   :  { %v1486_v51 = vpop.f32.mrf.mxu1  ;;  %2167 = vst.msk [vmem:[%s5191_s3 + $0xc8] sm:$0xff] %vm2141_vm2, %v1910_v46  ;;  %v1915_v53 = vmax.f32 %v983_v48, 0.0  ;;  %v975_v55 = vadd.f32 %v3716_v52, %v974_v50 }
 0x11d   :  { %2295 = vst.msk [vmem:[%s5191_s3 + $0x4c8] sm:$0xff] %vm2141_vm2, %v2038_v47  ;;  %v2043_v54 = vmax.f32 %v1495_v49, 0.0  ;;  %v1487_v56 = vadd.f32 %v3716_v52, %v1486_v51  ;;  %v2696_v57 = vpop.f32.mrf.mxu0 }
 0x11e   :  { %v2824_v58 = vpop.f32.mrf.mxu1  ;;  %2172 = vst.msk [vmem:[%s5191_s3 + $0xf0] sm:$0xff] %vm2141_vm2, %v1915_v53  ;;  %v1913_v59 = vmax.f32 %v975_v55, 0.0  ;;  %v986_v61 = vadd.f32 %v2696_v57, %v3716_v52 }
 0x11f   :  { %2300 = vst.msk [vmem:[%s5191_s3 + $0x4f0] sm:$0xff] %vm2141_vm2, %v2043_v54  ;;  %v2041_v60 = vmax.f32 %v1487_v56, 0.0  ;;  %v1498_v62 = vadd.f32 %v2824_v58, %v3716_v52  ;;  %v977_v63 = vpop.f32.mrf.mxu0 }
 0x120   :  { %v1489_v0 = vpop.f32.mrf.mxu1  ;;  %2170 = vst.msk [vmem:[%s5191_s3 + $0xe0] sm:$0xff] %vm2141_vm2, %v1913_v59  ;;  %v1916_v1 = vmax.f32 %v986_v61, 0.0  ;;  %v978_v3 = vadd.f32 %v3716_v52, %v977_v63 }
 0x121   :  { %2298 = vst.msk [vmem:[%s5191_s3 + $0x4e0] sm:$0xff] %vm2141_vm2, %v2041_v60  ;;  %v2044_v2 = vmax.f32 %v1498_v62, 0.0  ;;  %v1490_v4 = vadd.f32 %v3716_v52, %v1489_v0  ;;  %v2699_v5 = vpop.f32.mrf.mxu0 }
 0x122   :  { %v2827_v6 = vpop.f32.mrf.mxu1  ;;  %2173 = vst.msk [vmem:[%s5191_s3 + $0xf8] sm:$0xff] %vm2141_vm2, %v1916_v1  ;;  %v1914_v7 = vmax.f32 %v978_v3, 0.0  ;;  %v999_v9 = vadd.f32 %v2699_v5, %v3716_v52 }
 0x123   :  { %2301 = vst.msk [vmem:[%s5191_s3 + $0x4f8] sm:$0xff] %vm2141_vm2, %v2044_v2  ;;  %v2042_v8 = vmax.f32 %v1490_v4, 0.0  ;;  %v1511_v10 = vadd.f32 %v2827_v6, %v3716_v52  ;;  %v990_v11 = vpop.f32.mrf.mxu0 }
 0x124   :  { %v1502_v12 = vpop.f32.mrf.mxu1  ;;  %2171 = vst.msk [vmem:[%s5191_s3 + $0xe8] sm:$0xff] %vm2141_vm2, %v1914_v7  ;;  %v1919_v13 = vmax.f32 %v999_v9, 0.0  ;;  %v991_v15 = vadd.f32 %v3716_v52, %v990_v11 }
 0x125   :  { %2299 = vst.msk [vmem:[%s5191_s3 + $0x4e8] sm:$0xff] %vm2141_vm2, %v2042_v8  ;;  %v2047_v14 = vmax.f32 %v1511_v10, 0.0  ;;  %v1503_v16 = vadd.f32 %v3716_v52, %v1502_v12  ;;  %v2700_v17 = vpop.f32.mrf.mxu0 }
 0x126   :  { %v2828_v18 = vpop.f32.mrf.mxu1  ;;  %2176 = vst.msk [vmem:[%s5191_s3 + $0x110] sm:$0xff] %vm2141_vm2, %v1919_v13  ;;  %v1917_v19 = vmax.f32 %v991_v15, 0.0  ;;  %v1002_v21 = vadd.f32 %v2700_v17, %v3716_v52 }
 0x127   :  { %2304 = vst.msk [vmem:[%s5191_s3 + $0x510] sm:$0xff] %vm2141_vm2, %v2047_v14  ;;  %v2045_v20 = vmax.f32 %v1503_v16, 0.0  ;;  %v1514_v22 = vadd.f32 %v2828_v18, %v3716_v52  ;;  %v993_v23 = vpop.f32.mrf.mxu0 }
 0x128   :  { %v1505_v24 = vpop.f32.mrf.mxu1  ;;  %2174 = vst.msk [vmem:[%s5191_s3 + $0x100] sm:$0xff] %vm2141_vm2, %v1917_v19  ;;  %v1920_v25 = vmax.f32 %v1002_v21, 0.0  ;;  %v994_v27 = vadd.f32 %v3716_v52, %v993_v23 }
 0x129   :  { %2302 = vst.msk [vmem:[%s5191_s3 + $0x500] sm:$0xff] %vm2141_vm2, %v2045_v20  ;;  %v2048_v26 = vmax.f32 %v1514_v22, 0.0  ;;  %v1506_v28 = vadd.f32 %v3716_v52, %v1505_v24  ;;  %v2703_v29 = vpop.f32.mrf.mxu0 }
 0x12a   :  { %v2831_v30 = vpop.f32.mrf.mxu1  ;;  %2177 = vst.msk [vmem:[%s5191_s3 + $0x118] sm:$0xff] %vm2141_vm2, %v1920_v25  ;;  %v1918_v31 = vmax.f32 %v994_v27, 0.0  ;;  %v1015_v33 = vadd.f32 %v2703_v29, %v3716_v52 }
 0x12b   :  { %2305 = vst.msk [vmem:[%s5191_s3 + $0x518] sm:$0xff] %vm2141_vm2, %v2048_v26  ;;  %v2046_v32 = vmax.f32 %v1506_v28, 0.0  ;;  %v1527_v34 = vadd.f32 %v2831_v30, %v3716_v52  ;;  %v1006_v35 = vpop.f32.mrf.mxu0 }
 0x12c   :  { %v1518_v36 = vpop.f32.mrf.mxu1  ;;  %2175 = vst.msk [vmem:[%s5191_s3 + $0x108] sm:$0xff] %vm2141_vm2, %v1918_v31  ;;  %v1923_v37 = vmax.f32 %v1015_v33, 0.0  ;;  %v1007_v39 = vadd.f32 %v3716_v52, %v1006_v35 }
 0x12d   :  { %2303 = vst.msk [vmem:[%s5191_s3 + $0x508] sm:$0xff] %vm2141_vm2, %v2046_v32  ;;  %v2051_v38 = vmax.f32 %v1527_v34, 0.0  ;;  %v1519_v40 = vadd.f32 %v3716_v52, %v1518_v36  ;;  %v2704_v41 = vpop.f32.mrf.mxu0 }
 0x12e   :  { %v2832_v42 = vpop.f32.mrf.mxu1  ;;  %2180 = vst.msk [vmem:[%s5191_s3 + $0x130] sm:$0xff] %vm2141_vm2, %v1923_v37  ;;  %v1921_v43 = vmax.f32 %v1007_v39, 0.0  ;;  %v1018_v45 = vadd.f32 %v2704_v41, %v3716_v52 }
 0x12f   :  { %2308 = vst.msk [vmem:[%s5191_s3 + $0x530] sm:$0xff] %vm2141_vm2, %v2051_v38  ;;  %v2049_v44 = vmax.f32 %v1519_v40, 0.0  ;;  %v1530_v46 = vadd.f32 %v2832_v42, %v3716_v52  ;;  %v1009_v47 = vpop.f32.mrf.mxu0 }
 0x130   :  { %v1521_v48 = vpop.f32.mrf.mxu1  ;;  %2178 = vst.msk [vmem:[%s5191_s3 + $0x120] sm:$0xff] %vm2141_vm2, %v1921_v43  ;;  %v1924_v49 = vmax.f32 %v1018_v45, 0.0  ;;  %v1010_v51 = vadd.f32 %v3716_v52, %v1009_v47 }
 0x131   :  { %2306 = vst.msk [vmem:[%s5191_s3 + $0x520] sm:$0xff] %vm2141_vm2, %v2049_v44  ;;  %v2052_v50 = vmax.f32 %v1530_v46, 0.0  ;;  %v1522_v53 = vadd.f32 %v3716_v52, %v1521_v48  ;;  %v2707_v54 = vpop.f32.mrf.mxu0 }
 0x132   :  { %v2835_v55 = vpop.f32.mrf.mxu1  ;;  %2181 = vst.msk [vmem:[%s5191_s3 + $0x138] sm:$0xff] %vm2141_vm2, %v1924_v49  ;;  %v1922_v56 = vmax.f32 %v1010_v51, 0.0  ;;  %v1031_v58 = vadd.f32 %v2707_v54, %v3716_v52 }
 0x133   :  { %2309 = vst.msk [vmem:[%s5191_s3 + $0x538] sm:$0xff] %vm2141_vm2, %v2052_v50  ;;  %v2050_v57 = vmax.f32 %v1522_v53, 0.0  ;;  %v1543_v59 = vadd.f32 %v2835_v55, %v3716_v52  ;;  %v1022_v60 = vpop.f32.mrf.mxu0 }
 0x134   :  { %v1534_v61 = vpop.f32.mrf.mxu1  ;;  %2179 = vst.msk [vmem:[%s5191_s3 + $0x128] sm:$0xff] %vm2141_vm2, %v1922_v56  ;;  %v1927_v62 = vmax.f32 %v1031_v58, 0.0  ;;  %v1023_v0 = vadd.f32 %v3716_v52, %v1022_v60 }
 0x135   :  { %2307 = vst.msk [vmem:[%s5191_s3 + $0x528] sm:$0xff] %vm2141_vm2, %v2050_v57  ;;  %v2055_v63 = vmax.f32 %v1543_v59, 0.0  ;;  %v1535_v1 = vadd.f32 %v3716_v52, %v1534_v61  ;;  %v2708_v2 = vpop.f32.mrf.mxu0  ;;  %v4406_v61 = vld [vmem:[#allocation4] ss:$0 sm:$0xff] }
 0x136   :  { %v2836_v3 = vpop.f32.mrf.mxu1  ;;  %2184 = vst.msk [vmem:[%s5191_s3 + $0x150] sm:$0xff] %vm2141_vm2, %v1927_v62  ;;  %v1925_v4 = vmax.f32 %v1023_v0, 0.0  ;;  %v1034_v6 = vadd.f32 %v2708_v2, %v3716_v52 }
 0x137   :  { %2312 = vst.msk [vmem:[%s5191_s3 + $0x550] sm:$0xff] %vm2141_vm2, %v2055_v63  ;;  %v2053_v5 = vmax.f32 %v1535_v1, 0.0  ;;  %v1546_v7 = vadd.f32 %v2836_v3, %v3716_v52  ;;  %v1025_v8 = vpop.f32.mrf.mxu0 }
 0x138   :  { %v1537_v9 = vpop.f32.mrf.mxu1  ;;  %2182 = vst.msk [vmem:[%s5191_s3 + $0x140] sm:$0xff] %vm2141_vm2, %v1925_v4  ;;  %v1928_v10 = vmax.f32 %v1034_v6, 0.0  ;;  %v1026_v12 = vadd.f32 %v3716_v52, %v1025_v8 }
 0x139   :  { %2310 = vst.msk [vmem:[%s5191_s3 + $0x540] sm:$0xff] %vm2141_vm2, %v2053_v5  ;;  %v2056_v11 = vmax.f32 %v1546_v7, 0.0  ;;  %v1538_v13 = vadd.f32 %v3716_v52, %v1537_v9  ;;  %v2711_v14 = vpop.f32.mrf.mxu0 }
 0x13a   :  { %v2839_v15 = vpop.f32.mrf.mxu1  ;;  %2185 = vst.msk [vmem:[%s5191_s3 + $0x158] sm:$0xff] %vm2141_vm2, %v1928_v10  ;;  %v1926_v16 = vmax.f32 %v1026_v12, 0.0  ;;  %v1047_v18 = vadd.f32 %v2711_v14, %v3716_v52 }
 0x13b   :  { %2313 = vst.msk [vmem:[%s5191_s3 + $0x558] sm:$0xff] %vm2141_vm2, %v2056_v11  ;;  %v2054_v17 = vmax.f32 %v1538_v13, 0.0  ;;  %v1559_v19 = vadd.f32 %v2839_v15, %v3716_v52  ;;  %v1038_v20 = vpop.f32.mrf.mxu0 }
 0x13c   :  { %v1550_v21 = vpop.f32.mrf.mxu1  ;;  %2183 = vst.msk [vmem:[%s5191_s3 + $0x148] sm:$0xff] %vm2141_vm2, %v1926_v16  ;;  %v1931_v22 = vmax.f32 %v1047_v18, 0.0  ;;  %v1039_v24 = vadd.f32 %v3716_v52, %v1038_v20 }
 0x13d   :  { %2311 = vst.msk [vmem:[%s5191_s3 + $0x548] sm:$0xff] %vm2141_vm2, %v2054_v17  ;;  %v2059_v23 = vmax.f32 %v1559_v19, 0.0  ;;  %v1551_v25 = vadd.f32 %v3716_v52, %v1550_v21  ;;  %v2712_v26 = vpop.f32.mrf.mxu0 }
 0x13e   :  { %v2840_v27 = vpop.f32.mrf.mxu1  ;;  %2188 = vst.msk [vmem:[%s5191_s3 + $0x170] sm:$0xff] %vm2141_vm2, %v1931_v22  ;;  %v1929_v28 = vmax.f32 %v1039_v24, 0.0  ;;  %v1050_v30 = vadd.f32 %v2712_v26, %v3716_v52 }
 0x13f   :  { %2316 = vst.msk [vmem:[%s5191_s3 + $0x570] sm:$0xff] %vm2141_vm2, %v2059_v23  ;;  %v2057_v29 = vmax.f32 %v1551_v25, 0.0  ;;  %v1562_v31 = vadd.f32 %v2840_v27, %v3716_v52  ;;  %v1041_v32 = vpop.f32.mrf.mxu0 }
 0x140   :  { %v1553_v33 = vpop.f32.mrf.mxu1  ;;  %2186 = vst.msk [vmem:[%s5191_s3 + $0x160] sm:$0xff] %vm2141_vm2, %v1929_v28  ;;  %v1932_v34 = vmax.f32 %v1050_v30, 0.0  ;;  %v1042_v36 = vadd.f32 %v3716_v52, %v1041_v32 }
 0x141   :  { %2314 = vst.msk [vmem:[%s5191_s3 + $0x560] sm:$0xff] %vm2141_vm2, %v2057_v29  ;;  %v2060_v35 = vmax.f32 %v1562_v31, 0.0  ;;  %v1554_v37 = vadd.f32 %v3716_v52, %v1553_v33  ;;  %v2715_v38 = vpop.f32.mrf.mxu0 }
 0x142   :  { %v2843_v39 = vpop.f32.mrf.mxu1  ;;  %2189 = vst.msk [vmem:[%s5191_s3 + $0x178] sm:$0xff] %vm2141_vm2, %v1932_v34  ;;  %v1930_v40 = vmax.f32 %v1042_v36, 0.0  ;;  %v1063_v42 = vadd.f32 %v2715_v38, %v3716_v52 }
 0x143   :  { %2317 = vst.msk [vmem:[%s5191_s3 + $0x578] sm:$0xff] %vm2141_vm2, %v2060_v35  ;;  %v2058_v41 = vmax.f32 %v1554_v37, 0.0  ;;  %v1575_v43 = vadd.f32 %v2843_v39, %v3716_v52  ;;  %v1054_v44 = vpop.f32.mrf.mxu0 }
 0x144   :  { %v1566_v45 = vpop.f32.mrf.mxu1  ;;  %2187 = vst.msk [vmem:[%s5191_s3 + $0x168] sm:$0xff] %vm2141_vm2, %v1930_v40  ;;  %v1935_v46 = vmax.f32 %v1063_v42, 0.0  ;;  %v1055_v48 = vadd.f32 %v3716_v52, %v1054_v44 }
 0x145   :  { %2315 = vst.msk [vmem:[%s5191_s3 + $0x568] sm:$0xff] %vm2141_vm2, %v2058_v41  ;;  %v2063_v47 = vmax.f32 %v1575_v43, 0.0  ;;  %v1567_v49 = vadd.f32 %v3716_v52, %v1566_v45  ;;  %v2716_v50 = vpop.f32.mrf.mxu0 }
 0x146   :  { %v2844_v51 = vpop.f32.mrf.mxu1  ;;  %2192 = vst.msk [vmem:[%s5191_s3 + $0x190] sm:$0xff] %vm2141_vm2, %v1935_v46  ;;  %v1933_v53 = vmax.f32 %v1055_v48, 0.0  ;;  %v1066_v55 = vadd.f32 %v2716_v50, %v3716_v52 }
 0x147   :  { %2320 = vst.msk [vmem:[%s5191_s3 + $0x590] sm:$0xff] %vm2141_vm2, %v2063_v47  ;;  %v2061_v54 = vmax.f32 %v1567_v49, 0.0  ;;  %v1578_v56 = vadd.f32 %v2844_v51, %v3716_v52  ;;  %v1057_v57 = vpop.f32.mrf.mxu0 }
 0x148   :  { %v1569_v58 = vpop.f32.mrf.mxu1  ;;  %2190 = vst.msk [vmem:[%s5191_s3 + $0x180] sm:$0xff] %vm2141_vm2, %v1933_v53  ;;  %v1936_v59 = vmax.f32 %v1066_v55, 0.0  ;;  %v1058_v62 = vadd.f32 %v4406_v61, %v1057_v57 }
 0x149   :  { %2318 = vst.msk [vmem:[%s5191_s3 + $0x580] sm:$0xff] %vm2141_vm2, %v2061_v54  ;;  %v2064_v60 = vmax.f32 %v1578_v56, 0.0  ;;  %v1570_v52 = vadd.f32 %v4406_v61, %v1569_v58  ;;  %v2719_v63 = vpop.f32.mrf.mxu0 }
 0x14a   :  { %v2847_v0 = vpop.f32.mrf.mxu1  ;;  %2193 = vst.msk [vmem:[%s5191_s3 + $0x198] sm:$0xff] %vm2141_vm2, %v1936_v59  ;;  %v1934_v1 = vmax.f32 %v1058_v62, 0.0  ;;  %v1079_v3 = vadd.f32 %v4406_v61, %v2719_v63 }
 0x14b   :  { %2321 = vst.msk [vmem:[%s5191_s3 + $0x598] sm:$0xff] %vm2141_vm2, %v2064_v60  ;;  %v2062_v2 = vmax.f32 %v1570_v52, 0.0  ;;  %v1591_v4 = vadd.f32 %v4406_v61, %v2847_v0  ;;  %v1070_v5 = vpop.f32.mrf.mxu0 }
 0x14c   :  { %v1582_v6 = vpop.f32.mrf.mxu1  ;;  %2191 = vst.msk [vmem:[%s5191_s3 + $0x188] sm:$0xff] %vm2141_vm2, %v1934_v1  ;;  %v1939_v7 = vmax.f32 %v1079_v3, 0.0  ;;  %v1071_v9 = vadd.f32 %v4406_v61, %v1070_v5 }
 0x14d   :  { %2319 = vst.msk [vmem:[%s5191_s3 + $0x588] sm:$0xff] %vm2141_vm2, %v2062_v2  ;;  %v2067_v8 = vmax.f32 %v1591_v4, 0.0  ;;  %v1583_v10 = vadd.f32 %v4406_v61, %v1582_v6  ;;  %v2720_v11 = vpop.f32.mrf.mxu0 }
 0x14e   :  { %v2848_v12 = vpop.f32.mrf.mxu1  ;;  %2196 = vst.msk [vmem:[%s5191_s3 + $0x1b0] sm:$0xff] %vm2141_vm2, %v1939_v7  ;;  %v1937_v13 = vmax.f32 %v1071_v9, 0.0  ;;  %v1082_v15 = vadd.f32 %v4406_v61, %v2720_v11 }
 0x14f   :  { %2324 = vst.msk [vmem:[%s5191_s3 + $0x5b0] sm:$0xff] %vm2141_vm2, %v2067_v8  ;;  %v2065_v14 = vmax.f32 %v1583_v10, 0.0  ;;  %v1594_v16 = vadd.f32 %v4406_v61, %v2848_v12  ;;  %v1073_v17 = vpop.f32.mrf.mxu0 }
 0x150   :  { %v1585_v18 = vpop.f32.mrf.mxu1  ;;  %2194 = vst.msk [vmem:[%s5191_s3 + $0x1a0] sm:$0xff] %vm2141_vm2, %v1937_v13  ;;  %v1940_v19 = vmax.f32 %v1082_v15, 0.0  ;;  %v1074_v21 = vadd.f32 %v4406_v61, %v1073_v17 }
 0x151   :  { %2322 = vst.msk [vmem:[%s5191_s3 + $0x5a0] sm:$0xff] %vm2141_vm2, %v2065_v14  ;;  %v2068_v20 = vmax.f32 %v1594_v16, 0.0  ;;  %v1586_v22 = vadd.f32 %v4406_v61, %v1585_v18  ;;  %v2723_v23 = vpop.f32.mrf.mxu0 }
 0x152   :  { %v2851_v24 = vpop.f32.mrf.mxu1  ;;  %2197 = vst.msk [vmem:[%s5191_s3 + $0x1b8] sm:$0xff] %vm2141_vm2, %v1940_v19  ;;  %v1938_v25 = vmax.f32 %v1074_v21, 0.0  ;;  %v1095_v27 = vadd.f32 %v4406_v61, %v2723_v23 }
 0x153   :  { %2325 = vst.msk [vmem:[%s5191_s3 + $0x5b8] sm:$0xff] %vm2141_vm2, %v2068_v20  ;;  %v2066_v26 = vmax.f32 %v1586_v22, 0.0  ;;  %v1607_v28 = vadd.f32 %v4406_v61, %v2851_v24  ;;  %v1086_v29 = vpop.f32.mrf.mxu0 }
 0x154   :  { %v1598_v30 = vpop.f32.mrf.mxu1  ;;  %2195 = vst.msk [vmem:[%s5191_s3 + $0x1a8] sm:$0xff] %vm2141_vm2, %v1938_v25  ;;  %v1943_v31 = vmax.f32 %v1095_v27, 0.0  ;;  %v1087_v33 = vadd.f32 %v4406_v61, %v1086_v29 }
 0x155   :  { %2323 = vst.msk [vmem:[%s5191_s3 + $0x5a8] sm:$0xff] %vm2141_vm2, %v2066_v26  ;;  %v2071_v32 = vmax.f32 %v1607_v28, 0.0  ;;  %v1599_v34 = vadd.f32 %v4406_v61, %v1598_v30  ;;  %v2724_v35 = vpop.f32.mrf.mxu0 }
 0x156   :  { %v2852_v36 = vpop.f32.mrf.mxu1  ;;  %2200 = vst.msk [vmem:[%s5191_s3 + $0x1d0] sm:$0xff] %vm2141_vm2, %v1943_v31  ;;  %v1941_v37 = vmax.f32 %v1087_v33, 0.0  ;;  %v1098_v39 = vadd.f32 %v4406_v61, %v2724_v35 }
 0x157   :  { %2328 = vst.msk [vmem:[%s5191_s3 + $0x5d0] sm:$0xff] %vm2141_vm2, %v2071_v32  ;;  %v2069_v38 = vmax.f32 %v1599_v34, 0.0  ;;  %v1610_v40 = vadd.f32 %v4406_v61, %v2852_v36  ;;  %v1089_v41 = vpop.f32.mrf.mxu0 }
 0x158   :  { %v1601_v42 = vpop.f32.mrf.mxu1  ;;  %2198 = vst.msk [vmem:[%s5191_s3 + $0x1c0] sm:$0xff] %vm2141_vm2, %v1941_v37  ;;  %v1944_v43 = vmax.f32 %v1098_v39, 0.0  ;;  %v1090_v45 = vadd.f32 %v4406_v61, %v1089_v41 }
 0x159   :  { %2326 = vst.msk [vmem:[%s5191_s3 + $0x5c0] sm:$0xff] %vm2141_vm2, %v2069_v38  ;;  %v2072_v44 = vmax.f32 %v1610_v40, 0.0  ;;  %v1602_v46 = vadd.f32 %v4406_v61, %v1601_v42  ;;  %v2727_v47 = vpop.f32.mrf.mxu0 }
 0x15a   :  { %v2855_v48 = vpop.f32.mrf.mxu1  ;;  %2201 = vst.msk [vmem:[%s5191_s3 + $0x1d8] sm:$0xff] %vm2141_vm2, %v1944_v43  ;;  %v1942_v49 = vmax.f32 %v1090_v45, 0.0  ;;  %v1111_v51 = vadd.f32 %v4406_v61, %v2727_v47 }
 0x15b   :  { %2329 = vst.msk [vmem:[%s5191_s3 + $0x5d8] sm:$0xff] %vm2141_vm2, %v2072_v44  ;;  %v2070_v50 = vmax.f32 %v1602_v46, 0.0  ;;  %v1623_v53 = vadd.f32 %v4406_v61, %v2855_v48  ;;  %v1102_v54 = vpop.f32.mrf.mxu0 }
 0x15c   :  { %v1614_v55 = vpop.f32.mrf.mxu1  ;;  %2199 = vst.msk [vmem:[%s5191_s3 + $0x1c8] sm:$0xff] %vm2141_vm2, %v1942_v49  ;;  %v1947_v56 = vmax.f32 %v1111_v51, 0.0  ;;  %v1103_v58 = vadd.f32 %v4406_v61, %v1102_v54 }
 0x15d   :  { %2327 = vst.msk [vmem:[%s5191_s3 + $0x5c8] sm:$0xff] %vm2141_vm2, %v2070_v50  ;;  %v2075_v57 = vmax.f32 %v1623_v53, 0.0  ;;  %v1615_v59 = vadd.f32 %v4406_v61, %v1614_v55  ;;  %v2728_v60 = vpop.f32.mrf.mxu0 }
 0x15e   :  { %v2856_v62 = vpop.f32.mrf.mxu1  ;;  %2204 = vst.msk [vmem:[%s5191_s3 + $0x1f0] sm:$0xff] %vm2141_vm2, %v1947_v56  ;;  %v1945_v52 = vmax.f32 %v1103_v58, 0.0  ;;  %v1114_v0 = vadd.f32 %v4406_v61, %v2728_v60 }
 0x15f   :  { %2332 = vst.msk [vmem:[%s5191_s3 + $0x5f0] sm:$0xff] %vm2141_vm2, %v2075_v57  ;;  %v2073_v63 = vmax.f32 %v1615_v59, 0.0  ;;  %v1626_v1 = vadd.f32 %v4406_v61, %v2856_v62  ;;  %v1105_v2 = vpop.f32.mrf.mxu0 }
 0x160   :  { %v1617_v3 = vpop.f32.mrf.mxu1  ;;  %2202 = vst.msk [vmem:[%s5191_s3 + $0x1e0] sm:$0xff] %vm2141_vm2, %v1945_v52  ;;  %v1948_v4 = vmax.f32 %v1114_v0, 0.0  ;;  %v1106_v6 = vadd.f32 %v4406_v61, %v1105_v2 }
 0x161   :  { %2330 = vst.msk [vmem:[%s5191_s3 + $0x5e0] sm:$0xff] %vm2141_vm2, %v2073_v63  ;;  %v2076_v5 = vmax.f32 %v1626_v1, 0.0  ;;  %v1618_v7 = vadd.f32 %v4406_v61, %v1617_v3  ;;  %v2731_v8 = vpop.f32.mrf.mxu0 }
 0x162   :  { %v2859_v9 = vpop.f32.mrf.mxu1  ;;  %2205 = vst.msk [vmem:[%s5191_s3 + $0x1f8] sm:$0xff] %vm2141_vm2, %v1948_v4  ;;  %v1946_v10 = vmax.f32 %v1106_v6, 0.0  ;;  %v1127_v12 = vadd.f32 %v4406_v61, %v2731_v8 }
 0x163   :  { %2333 = vst.msk [vmem:[%s5191_s3 + $0x5f8] sm:$0xff] %vm2141_vm2, %v2076_v5  ;;  %v2074_v11 = vmax.f32 %v1618_v7, 0.0  ;;  %v1639_v13 = vadd.f32 %v4406_v61, %v2859_v9  ;;  %v1118_v14 = vpop.f32.mrf.mxu0 }
 0x164   :  { %v1630_v15 = vpop.f32.mrf.mxu1  ;;  %2203 = vst.msk [vmem:[%s5191_s3 + $0x1e8] sm:$0xff] %vm2141_vm2, %v1946_v10  ;;  %v1951_v16 = vmax.f32 %v1127_v12, 0.0  ;;  %v1119_v18 = vadd.f32 %v4406_v61, %v1118_v14 }
 0x165   :  { %2331 = vst.msk [vmem:[%s5191_s3 + $0x5e8] sm:$0xff] %vm2141_vm2, %v2074_v11  ;;  %v2079_v17 = vmax.f32 %v1639_v13, 0.0  ;;  %v1631_v19 = vadd.f32 %v4406_v61, %v1630_v15  ;;  %v2732_v20 = vpop.f32.mrf.mxu0 }
 0x166   :  { %v2860_v21 = vpop.f32.mrf.mxu1  ;;  %2208 = vst.msk [vmem:[%s5191_s3 + $0x210] sm:$0xff] %vm2141_vm2, %v1951_v16  ;;  %v1949_v22 = vmax.f32 %v1119_v18, 0.0  ;;  %v1130_v24 = vadd.f32 %v4406_v61, %v2732_v20 }
 0x167   :  { %2336 = vst.msk [vmem:[%s5191_s3 + $0x610] sm:$0xff] %vm2141_vm2, %v2079_v17  ;;  %v2077_v23 = vmax.f32 %v1631_v19, 0.0  ;;  %v1642_v25 = vadd.f32 %v4406_v61, %v2860_v21  ;;  %v1121_v26 = vpop.f32.mrf.mxu0 }
 0x168   :  { %v1633_v27 = vpop.f32.mrf.mxu1  ;;  %2206 = vst.msk [vmem:[%s5191_s3 + $0x200] sm:$0xff] %vm2141_vm2, %v1949_v22  ;;  %v1952_v28 = vmax.f32 %v1130_v24, 0.0  ;;  %v1122_v30 = vadd.f32 %v4406_v61, %v1121_v26 }
 0x169   :  { %2334 = vst.msk [vmem:[%s5191_s3 + $0x600] sm:$0xff] %vm2141_vm2, %v2077_v23  ;;  %v2080_v29 = vmax.f32 %v1642_v25, 0.0  ;;  %v1634_v31 = vadd.f32 %v4406_v61, %v1633_v27  ;;  %v2735_v32 = vpop.f32.mrf.mxu0 }
 0x16a   :  { %v2863_v33 = vpop.f32.mrf.mxu1  ;;  %2209 = vst.msk [vmem:[%s5191_s3 + $0x218] sm:$0xff] %vm2141_vm2, %v1952_v28  ;;  %v1950_v34 = vmax.f32 %v1122_v30, 0.0  ;;  %v1143_v36 = vadd.f32 %v4406_v61, %v2735_v32 }
 0x16b   :  { %2337 = vst.msk [vmem:[%s5191_s3 + $0x618] sm:$0xff] %vm2141_vm2, %v2080_v29  ;;  %v2078_v35 = vmax.f32 %v1634_v31, 0.0  ;;  %v1655_v37 = vadd.f32 %v4406_v61, %v2863_v33  ;;  %v1134_v38 = vpop.f32.mrf.mxu0 }
 0x16c   :  { %v1646_v39 = vpop.f32.mrf.mxu1  ;;  %2207 = vst.msk [vmem:[%s5191_s3 + $0x208] sm:$0xff] %vm2141_vm2, %v1950_v34  ;;  %v1955_v40 = vmax.f32 %v1143_v36, 0.0  ;;  %v1135_v42 = vadd.f32 %v4406_v61, %v1134_v38 }
 0x16d   :  { %2335 = vst.msk [vmem:[%s5191_s3 + $0x608] sm:$0xff] %vm2141_vm2, %v2078_v35  ;;  %v2083_v41 = vmax.f32 %v1655_v37, 0.0  ;;  %v1647_v43 = vadd.f32 %v4406_v61, %v1646_v39  ;;  %v2736_v44 = vpop.f32.mrf.mxu0 }
 0x16e   :  { %v2864_v45 = vpop.f32.mrf.mxu1  ;;  %2212 = vst.msk [vmem:[%s5191_s3 + $0x230] sm:$0xff] %vm2141_vm2, %v1955_v40  ;;  %v1953_v46 = vmax.f32 %v1135_v42, 0.0  ;;  %v1146_v48 = vadd.f32 %v4406_v61, %v2736_v44 }
 0x16f   :  { %2340 = vst.msk [vmem:[%s5191_s3 + $0x630] sm:$0xff] %vm2141_vm2, %v2083_v41  ;;  %v2081_v47 = vmax.f32 %v1647_v43, 0.0  ;;  %v1658_v49 = vadd.f32 %v4406_v61, %v2864_v45  ;;  %v1137_v50 = vpop.f32.mrf.mxu0 }
 0x170   :  { %v1649_v51 = vpop.f32.mrf.mxu1  ;;  %2210 = vst.msk [vmem:[%s5191_s3 + $0x220] sm:$0xff] %vm2141_vm2, %v1953_v46  ;;  %v1956_v53 = vmax.f32 %v1146_v48, 0.0  ;;  %v1138_v55 = vadd.f32 %v4406_v61, %v1137_v50 }
 0x171   :  { %2338 = vst.msk [vmem:[%s5191_s3 + $0x620] sm:$0xff] %vm2141_vm2, %v2081_v47  ;;  %v2084_v54 = vmax.f32 %v1658_v49, 0.0  ;;  %v1650_v56 = vadd.f32 %v4406_v61, %v1649_v51  ;;  %v2739_v57 = vpop.f32.mrf.mxu0 }
 0x172   :  { %v2867_v58 = vpop.f32.mrf.mxu1  ;;  %2213 = vst.msk [vmem:[%s5191_s3 + $0x238] sm:$0xff] %vm2141_vm2, %v1956_v53  ;;  %v1954_v59 = vmax.f32 %v1138_v55, 0.0  ;;  %v1159_v62 = vadd.f32 %v4406_v61, %v2739_v57 }
 0x173   :  { %2341 = vst.msk [vmem:[%s5191_s3 + $0x638] sm:$0xff] %vm2141_vm2, %v2084_v54  ;;  %v2082_v60 = vmax.f32 %v1650_v56, 0.0  ;;  %v1671_v52 = vadd.f32 %v4406_v61, %v2867_v58  ;;  %v1150_v63 = vpop.f32.mrf.mxu0 }
 0x174   :  { %v1662_v0 = vpop.f32.mrf.mxu1  ;;  %2211 = vst.msk [vmem:[%s5191_s3 + $0x228] sm:$0xff] %vm2141_vm2, %v1954_v59  ;;  %v1959_v1 = vmax.f32 %v1159_v62, 0.0  ;;  %v1151_v3 = vadd.f32 %v4406_v61, %v1150_v63 }
 0x175   :  { %2339 = vst.msk [vmem:[%s5191_s3 + $0x628] sm:$0xff] %vm2141_vm2, %v2082_v60  ;;  %v2087_v2 = vmax.f32 %v1671_v52, 0.0  ;;  %v1663_v4 = vadd.f32 %v4406_v61, %v1662_v0  ;;  %v2740_v5 = vpop.f32.mrf.mxu0 }
 0x176   :  { %v2868_v6 = vpop.f32.mrf.mxu1  ;;  %2216 = vst.msk [vmem:[%s5191_s3 + $0x250] sm:$0xff] %vm2141_vm2, %v1959_v1  ;;  %v1957_v7 = vmax.f32 %v1151_v3, 0.0  ;;  %v1162_v9 = vadd.f32 %v4406_v61, %v2740_v5 }
 0x177   :  { %2344 = vst.msk [vmem:[%s5191_s3 + $0x650] sm:$0xff] %vm2141_vm2, %v2087_v2  ;;  %v2085_v8 = vmax.f32 %v1663_v4, 0.0  ;;  %v1674_v10 = vadd.f32 %v4406_v61, %v2868_v6  ;;  %v1153_v11 = vpop.f32.mrf.mxu0 }
 0x178   :  { %v1665_v12 = vpop.f32.mrf.mxu1  ;;  %2214 = vst.msk [vmem:[%s5191_s3 + $0x240] sm:$0xff] %vm2141_vm2, %v1957_v7  ;;  %v1960_v13 = vmax.f32 %v1162_v9, 0.0  ;;  %v1154_v15 = vadd.f32 %v4406_v61, %v1153_v11 }
 0x179   :  { %2342 = vst.msk [vmem:[%s5191_s3 + $0x640] sm:$0xff] %vm2141_vm2, %v2085_v8  ;;  %v2088_v14 = vmax.f32 %v1674_v10, 0.0  ;;  %v1666_v16 = vadd.f32 %v4406_v61, %v1665_v12  ;;  %v2743_v17 = vpop.f32.mrf.mxu0 }
 0x17a   :  { %v2871_v18 = vpop.f32.mrf.mxu1  ;;  %2217 = vst.msk [vmem:[%s5191_s3 + $0x258] sm:$0xff] %vm2141_vm2, %v1960_v13  ;;  %v1958_v19 = vmax.f32 %v1154_v15, 0.0  ;;  %v1175_v21 = vadd.f32 %v4406_v61, %v2743_v17 }
 0x17b   :  { %2345 = vst.msk [vmem:[%s5191_s3 + $0x658] sm:$0xff] %vm2141_vm2, %v2088_v14  ;;  %v2086_v20 = vmax.f32 %v1666_v16, 0.0  ;;  %v1687_v22 = vadd.f32 %v4406_v61, %v2871_v18  ;;  %v1166_v23 = vpop.f32.mrf.mxu0 }
 0x17c   :  { %v1678_v24 = vpop.f32.mrf.mxu1  ;;  %2215 = vst.msk [vmem:[%s5191_s3 + $0x248] sm:$0xff] %vm2141_vm2, %v1958_v19  ;;  %v1963_v25 = vmax.f32 %v1175_v21, 0.0  ;;  %v1167_v27 = vadd.f32 %v4406_v61, %v1166_v23 }
 0x17d   :  { %2343 = vst.msk [vmem:[%s5191_s3 + $0x648] sm:$0xff] %vm2141_vm2, %v2086_v20  ;;  %v2091_v26 = vmax.f32 %v1687_v22, 0.0  ;;  %v1679_v28 = vadd.f32 %v4406_v61, %v1678_v24  ;;  %v2744_v29 = vpop.f32.mrf.mxu0 }
 0x17e   :  { %v2872_v30 = vpop.f32.mrf.mxu1  ;;  %2220 = vst.msk [vmem:[%s5191_s3 + $0x270] sm:$0xff] %vm2141_vm2, %v1963_v25  ;;  %v1961_v31 = vmax.f32 %v1167_v27, 0.0  ;;  %v1178_v33 = vadd.f32 %v4406_v61, %v2744_v29 }
 0x17f   :  { %2348 = vst.msk [vmem:[%s5191_s3 + $0x670] sm:$0xff] %vm2141_vm2, %v2091_v26  ;;  %v2089_v32 = vmax.f32 %v1679_v28, 0.0  ;;  %v1690_v34 = vadd.f32 %v4406_v61, %v2872_v30  ;;  %v1169_v35 = vpop.f32.mrf.mxu0 }
 0x180   :  { %v1681_v36 = vpop.f32.mrf.mxu1  ;;  %2218 = vst.msk [vmem:[%s5191_s3 + $0x260] sm:$0xff] %vm2141_vm2, %v1961_v31  ;;  %v1964_v37 = vmax.f32 %v1178_v33, 0.0  ;;  %v1170_v39 = vadd.f32 %v4406_v61, %v1169_v35 }
 0x181   :  { %2346 = vst.msk [vmem:[%s5191_s3 + $0x660] sm:$0xff] %vm2141_vm2, %v2089_v32  ;;  %v2092_v38 = vmax.f32 %v1690_v34, 0.0  ;;  %v1682_v40 = vadd.f32 %v4406_v61, %v1681_v36  ;;  %v2747_v41 = vpop.f32.mrf.mxu0 }
 0x182   :  { %v2875_v42 = vpop.f32.mrf.mxu1  ;;  %2221 = vst.msk [vmem:[%s5191_s3 + $0x278] sm:$0xff] %vm2141_vm2, %v1964_v37  ;;  %v1962_v43 = vmax.f32 %v1170_v39, 0.0  ;;  %v1191_v45 = vadd.f32 %v4406_v61, %v2747_v41 }
 0x183   :  { %2349 = vst.msk [vmem:[%s5191_s3 + $0x678] sm:$0xff] %vm2141_vm2, %v2092_v38  ;;  %v2090_v44 = vmax.f32 %v1682_v40, 0.0  ;;  %v1703_v46 = vadd.f32 %v4406_v61, %v2875_v42  ;;  %v1182_v47 = vpop.f32.mrf.mxu0 }
 0x184   :  { %v1694_v48 = vpop.f32.mrf.mxu1  ;;  %2219 = vst.msk [vmem:[%s5191_s3 + $0x268] sm:$0xff] %vm2141_vm2, %v1962_v43  ;;  %v1967_v49 = vmax.f32 %v1191_v45, 0.0  ;;  %v1183_v51 = vadd.f32 %v4406_v61, %v1182_v47 }
 0x185   :  { %2347 = vst.msk [vmem:[%s5191_s3 + $0x668] sm:$0xff] %vm2141_vm2, %v2090_v44  ;;  %v2095_v50 = vmax.f32 %v1703_v46, 0.0  ;;  %v1695_v53 = vadd.f32 %v4406_v61, %v1694_v48  ;;  %v2748_v54 = vpop.f32.mrf.mxu0 }
 0x186   :  { %v2876_v55 = vpop.f32.mrf.mxu1  ;;  %2224 = vst.msk [vmem:[%s5191_s3 + $0x290] sm:$0xff] %vm2141_vm2, %v1967_v49  ;;  %v1965_v56 = vmax.f32 %v1183_v51, 0.0  ;;  %v1194_v58 = vadd.f32 %v4406_v61, %v2748_v54 }
 0x187   :  { %2352 = vst.msk [vmem:[%s5191_s3 + $0x690] sm:$0xff] %vm2141_vm2, %v2095_v50  ;;  %v2093_v57 = vmax.f32 %v1695_v53, 0.0  ;;  %v1706_v59 = vadd.f32 %v4406_v61, %v2876_v55  ;;  %v1185_v60 = vpop.f32.mrf.mxu0 }
 0x188   :  { %v1697_v62 = vpop.f32.mrf.mxu1  ;;  %2222 = vst.msk [vmem:[%s5191_s3 + $0x280] sm:$0xff] %vm2141_vm2, %v1965_v56  ;;  %v1968_v52 = vmax.f32 %v1194_v58, 0.0  ;;  %v1186_v0 = vadd.f32 %v4406_v61, %v1185_v60 }
 0x189   :  { %2350 = vst.msk [vmem:[%s5191_s3 + $0x680] sm:$0xff] %vm2141_vm2, %v2093_v57  ;;  %v2096_v63 = vmax.f32 %v1706_v59, 0.0  ;;  %v1698_v1 = vadd.f32 %v4406_v61, %v1697_v62  ;;  %v2751_v2 = vpop.f32.mrf.mxu0 }
 0x18a   :  { %v2879_v3 = vpop.f32.mrf.mxu1  ;;  %2225 = vst.msk [vmem:[%s5191_s3 + $0x298] sm:$0xff] %vm2141_vm2, %v1968_v52  ;;  %v1966_v4 = vmax.f32 %v1186_v0, 0.0  ;;  %v1207_v6 = vadd.f32 %v4406_v61, %v2751_v2 }
 0x18b   :  { %2353 = vst.msk [vmem:[%s5191_s3 + $0x698] sm:$0xff] %vm2141_vm2, %v2096_v63  ;;  %v2094_v5 = vmax.f32 %v1698_v1, 0.0  ;;  %v1719_v7 = vadd.f32 %v4406_v61, %v2879_v3  ;;  %v1198_v8 = vpop.f32.mrf.mxu0 }
 0x18c   :  { %v1710_v9 = vpop.f32.mrf.mxu1  ;;  %2223 = vst.msk [vmem:[%s5191_s3 + $0x288] sm:$0xff] %vm2141_vm2, %v1966_v4  ;;  %v1971_v10 = vmax.f32 %v1207_v6, 0.0  ;;  %v1199_v12 = vadd.f32 %v4406_v61, %v1198_v8 }
 0x18d   :  { %2351 = vst.msk [vmem:[%s5191_s3 + $0x688] sm:$0xff] %vm2141_vm2, %v2094_v5  ;;  %v2099_v11 = vmax.f32 %v1719_v7, 0.0  ;;  %v1711_v13 = vadd.f32 %v4406_v61, %v1710_v9  ;;  %v2752_v14 = vpop.f32.mrf.mxu0 }
 0x18e   :  { %v2880_v15 = vpop.f32.mrf.mxu1  ;;  %2228 = vst.msk [vmem:[%s5191_s3 + $0x2b0] sm:$0xff] %vm2141_vm2, %v1971_v10  ;;  %v1969_v16 = vmax.f32 %v1199_v12, 0.0  ;;  %v1210_v18 = vadd.f32 %v4406_v61, %v2752_v14 }
 0x18f   :  { %2356 = vst.msk [vmem:[%s5191_s3 + $0x6b0] sm:$0xff] %vm2141_vm2, %v2099_v11  ;;  %v2097_v17 = vmax.f32 %v1711_v13, 0.0  ;;  %v1722_v19 = vadd.f32 %v4406_v61, %v2880_v15  ;;  %v1201_v20 = vpop.f32.mrf.mxu0 }
 0x190   :  { %v1713_v21 = vpop.f32.mrf.mxu1  ;;  %2226 = vst.msk [vmem:[%s5191_s3 + $0x2a0] sm:$0xff] %vm2141_vm2, %v1969_v16  ;;  %v1972_v22 = vmax.f32 %v1210_v18, 0.0  ;;  %v1202_v24 = vadd.f32 %v4406_v61, %v1201_v20 }
 0x191   :  { %2354 = vst.msk [vmem:[%s5191_s3 + $0x6a0] sm:$0xff] %vm2141_vm2, %v2097_v17  ;;  %v2100_v23 = vmax.f32 %v1722_v19, 0.0  ;;  %v1714_v25 = vadd.f32 %v4406_v61, %v1713_v21  ;;  %v2755_v26 = vpop.f32.mrf.mxu0 }
 0x192   :  { %v2883_v27 = vpop.f32.mrf.mxu1  ;;  %2229 = vst.msk [vmem:[%s5191_s3 + $0x2b8] sm:$0xff] %vm2141_vm2, %v1972_v22  ;;  %v1970_v28 = vmax.f32 %v1202_v24, 0.0  ;;  %v1223_v30 = vadd.f32 %v4406_v61, %v2755_v26 }
 0x193   :  { %2357 = vst.msk [vmem:[%s5191_s3 + $0x6b8] sm:$0xff] %vm2141_vm2, %v2100_v23  ;;  %v2098_v29 = vmax.f32 %v1714_v25, 0.0  ;;  %v1735_v31 = vadd.f32 %v4406_v61, %v2883_v27  ;;  %v1214_v32 = vpop.f32.mrf.mxu0 }
 0x194   :  { %v1726_v33 = vpop.f32.mrf.mxu1  ;;  %2227 = vst.msk [vmem:[%s5191_s3 + $0x2a8] sm:$0xff] %vm2141_vm2, %v1970_v28  ;;  %v1975_v34 = vmax.f32 %v1223_v30, 0.0  ;;  %v1215_v36 = vadd.f32 %v4406_v61, %v1214_v32 }
 0x195   :  { %2355 = vst.msk [vmem:[%s5191_s3 + $0x6a8] sm:$0xff] %vm2141_vm2, %v2098_v29  ;;  %v2103_v35 = vmax.f32 %v1735_v31, 0.0  ;;  %v1727_v37 = vadd.f32 %v4406_v61, %v1726_v33  ;;  %v2756_v38 = vpop.f32.mrf.mxu0 }
 0x196   :  { %v2884_v39 = vpop.f32.mrf.mxu1  ;;  %2232 = vst.msk [vmem:[%s5191_s3 + $0x2d0] sm:$0xff] %vm2141_vm2, %v1975_v34  ;;  %v1973_v40 = vmax.f32 %v1215_v36, 0.0  ;;  %v1226_v42 = vadd.f32 %v4406_v61, %v2756_v38 }
 0x197   :  { %2360 = vst.msk [vmem:[%s5191_s3 + $0x6d0] sm:$0xff] %vm2141_vm2, %v2103_v35  ;;  %v2101_v41 = vmax.f32 %v1727_v37, 0.0  ;;  %v1738_v43 = vadd.f32 %v4406_v61, %v2884_v39  ;;  %v1217_v44 = vpop.f32.mrf.mxu0 }
 0x198   :  { %v1729_v45 = vpop.f32.mrf.mxu1  ;;  %2230 = vst.msk [vmem:[%s5191_s3 + $0x2c0] sm:$0xff] %vm2141_vm2, %v1973_v40  ;;  %v1976_v46 = vmax.f32 %v1226_v42, 0.0  ;;  %v1218_v48 = vadd.f32 %v4406_v61, %v1217_v44 }
 0x199   :  { %2358 = vst.msk [vmem:[%s5191_s3 + $0x6c0] sm:$0xff] %vm2141_vm2, %v2101_v41  ;;  %v2104_v47 = vmax.f32 %v1738_v43, 0.0  ;;  %v1730_v49 = vadd.f32 %v4406_v61, %v1729_v45  ;;  %v2759_v50 = vpop.f32.mrf.mxu0 }
 0x19a   :  { %v2887_v51 = vpop.f32.mrf.mxu1  ;;  %2233 = vst.msk [vmem:[%s5191_s3 + $0x2d8] sm:$0xff] %vm2141_vm2, %v1976_v46  ;;  %v1974_v53 = vmax.f32 %v1218_v48, 0.0  ;;  %v1239_v55 = vadd.f32 %v4406_v61, %v2759_v50 }
 0x19b   :  { %2361 = vst.msk [vmem:[%s5191_s3 + $0x6d8] sm:$0xff] %vm2141_vm2, %v2104_v47  ;;  %v2102_v54 = vmax.f32 %v1730_v49, 0.0  ;;  %v1751_v56 = vadd.f32 %v4406_v61, %v2887_v51  ;;  %v1230_v57 = vpop.f32.mrf.mxu0 }
 0x19c   :  { %v1742_v58 = vpop.f32.mrf.mxu1  ;;  %2231 = vst.msk [vmem:[%s5191_s3 + $0x2c8] sm:$0xff] %vm2141_vm2, %v1974_v53  ;;  %v1979_v59 = vmax.f32 %v1239_v55, 0.0  ;;  %v1231_v62 = vadd.f32 %v4406_v61, %v1230_v57 }
 0x19d   :  { %2359 = vst.msk [vmem:[%s5191_s3 + $0x6c8] sm:$0xff] %vm2141_vm2, %v2102_v54  ;;  %v2107_v60 = vmax.f32 %v1751_v56, 0.0  ;;  %v1743_v52 = vadd.f32 %v4406_v61, %v1742_v58  ;;  %v2760_v63 = vpop.f32.mrf.mxu0 }
 0x19e   :  { %v2888_v0 = vpop.f32.mrf.mxu1  ;;  %2236 = vst.msk [vmem:[%s5191_s3 + $0x2f0] sm:$0xff] %vm2141_vm2, %v1979_v59  ;;  %v1977_v1 = vmax.f32 %v1231_v62, 0.0  ;;  %v1242_v3 = vadd.f32 %v4406_v61, %v2760_v63 }
 0x19f   :  { %2364 = vst.msk [vmem:[%s5191_s3 + $0x6f0] sm:$0xff] %vm2141_vm2, %v2107_v60  ;;  %v2105_v2 = vmax.f32 %v1743_v52, 0.0  ;;  %v1754_v4 = vadd.f32 %v4406_v61, %v2888_v0  ;;  %v1233_v5 = vpop.f32.mrf.mxu0 }
 0x1a0   :  { %v1745_v6 = vpop.f32.mrf.mxu1  ;;  %2234 = vst.msk [vmem:[%s5191_s3 + $0x2e0] sm:$0xff] %vm2141_vm2, %v1977_v1  ;;  %v1980_v7 = vmax.f32 %v1242_v3, 0.0  ;;  %v1234_v9 = vadd.f32 %v4406_v61, %v1233_v5 }
 0x1a1   :  { %2362 = vst.msk [vmem:[%s5191_s3 + $0x6e0] sm:$0xff] %vm2141_vm2, %v2105_v2  ;;  %v2108_v8 = vmax.f32 %v1754_v4, 0.0  ;;  %v1746_v10 = vadd.f32 %v4406_v61, %v1745_v6  ;;  %v2763_v11 = vpop.f32.mrf.mxu0 }
 0x1a2   :  { %v2891_v12 = vpop.f32.mrf.mxu1  ;;  %2237 = vst.msk [vmem:[%s5191_s3 + $0x2f8] sm:$0xff] %vm2141_vm2, %v1980_v7  ;;  %v1978_v13 = vmax.f32 %v1234_v9, 0.0  ;;  %v1255_v15 = vadd.f32 %v4406_v61, %v2763_v11 }
 0x1a3   :  { %2365 = vst.msk [vmem:[%s5191_s3 + $0x6f8] sm:$0xff] %vm2141_vm2, %v2108_v8  ;;  %v2106_v14 = vmax.f32 %v1746_v10, 0.0  ;;  %v1767_v16 = vadd.f32 %v4406_v61, %v2891_v12  ;;  %v1246_v17 = vpop.f32.mrf.mxu0 }
 0x1a4   :  { %v1758_v18 = vpop.f32.mrf.mxu1  ;;  %2235 = vst.msk [vmem:[%s5191_s3 + $0x2e8] sm:$0xff] %vm2141_vm2, %v1978_v13  ;;  %v1983_v19 = vmax.f32 %v1255_v15, 0.0  ;;  %v1247_v21 = vadd.f32 %v4406_v61, %v1246_v17 }
 0x1a5   :  { %2363 = vst.msk [vmem:[%s5191_s3 + $0x6e8] sm:$0xff] %vm2141_vm2, %v2106_v14  ;;  %v2111_v20 = vmax.f32 %v1767_v16, 0.0  ;;  %v1759_v22 = vadd.f32 %v4406_v61, %v1758_v18  ;;  %v2764_v23 = vpop.f32.mrf.mxu0 }
 0x1a6   :  { %v2892_v24 = vpop.f32.mrf.mxu1  ;;  %2240 = vst.msk [vmem:[%s5191_s3 + $0x310] sm:$0xff] %vm2141_vm2, %v1983_v19  ;;  %v1981_v25 = vmax.f32 %v1247_v21, 0.0  ;;  %v1258_v27 = vadd.f32 %v4406_v61, %v2764_v23 }
 0x1a7   :  { %2368 = vst.msk [vmem:[%s5191_s3 + $0x710] sm:$0xff] %vm2141_vm2, %v2111_v20  ;;  %v2109_v26 = vmax.f32 %v1759_v22, 0.0  ;;  %v1770_v28 = vadd.f32 %v4406_v61, %v2892_v24  ;;  %v1249_v29 = vpop.f32.mrf.mxu0 }
 0x1a8   :  { %v1761_v30 = vpop.f32.mrf.mxu1  ;;  %2238 = vst.msk [vmem:[%s5191_s3 + $0x300] sm:$0xff] %vm2141_vm2, %v1981_v25  ;;  %v1984_v31 = vmax.f32 %v1258_v27, 0.0  ;;  %v1250_v33 = vadd.f32 %v4406_v61, %v1249_v29 }
 0x1a9   :  { %2366 = vst.msk [vmem:[%s5191_s3 + $0x700] sm:$0xff] %vm2141_vm2, %v2109_v26  ;;  %v2112_v32 = vmax.f32 %v1770_v28, 0.0  ;;  %v1762_v34 = vadd.f32 %v4406_v61, %v1761_v30  ;;  %v2767_v35 = vpop.f32.mrf.mxu0 }
 0x1aa   :  { %v2895_v36 = vpop.f32.mrf.mxu1  ;;  %2241 = vst.msk [vmem:[%s5191_s3 + $0x318] sm:$0xff] %vm2141_vm2, %v1984_v31  ;;  %v1982_v37 = vmax.f32 %v1250_v33, 0.0  ;;  %v1271_v39 = vadd.f32 %v4406_v61, %v2767_v35 }
 0x1ab   :  { %2369 = vst.msk [vmem:[%s5191_s3 + $0x718] sm:$0xff] %vm2141_vm2, %v2112_v32  ;;  %v2110_v38 = vmax.f32 %v1762_v34, 0.0  ;;  %v1783_v40 = vadd.f32 %v4406_v61, %v2895_v36  ;;  %v1262_v41 = vpop.f32.mrf.mxu0 }
 0x1ac   :  { %v1774_v42 = vpop.f32.mrf.mxu1  ;;  %2239 = vst.msk [vmem:[%s5191_s3 + $0x308] sm:$0xff] %vm2141_vm2, %v1982_v37  ;;  %v1987_v43 = vmax.f32 %v1271_v39, 0.0  ;;  %v1263_v45 = vadd.f32 %v4406_v61, %v1262_v41 }
 0x1ad   :  { %2367 = vst.msk [vmem:[%s5191_s3 + $0x708] sm:$0xff] %vm2141_vm2, %v2110_v38  ;;  %v2115_v44 = vmax.f32 %v1783_v40, 0.0  ;;  %v1775_v46 = vadd.f32 %v4406_v61, %v1774_v42  ;;  %v2768_v47 = vpop.f32.mrf.mxu0 }
 0x1ae   :  { %v2896_v48 = vpop.f32.mrf.mxu1  ;;  %2244 = vst.msk [vmem:[%s5191_s3 + $0x330] sm:$0xff] %vm2141_vm2, %v1987_v43  ;;  %v1985_v49 = vmax.f32 %v1263_v45, 0.0  ;;  %v1274_v51 = vadd.f32 %v4406_v61, %v2768_v47 }
 0x1af   :  { %2372 = vst.msk [vmem:[%s5191_s3 + $0x730] sm:$0xff] %vm2141_vm2, %v2115_v44  ;;  %v2113_v50 = vmax.f32 %v1775_v46, 0.0  ;;  %v1786_v53 = vadd.f32 %v4406_v61, %v2896_v48  ;;  %v1265_v54 = vpop.f32.mrf.mxu0 }
 0x1b0   :  { %v1777_v55 = vpop.f32.mrf.mxu1  ;;  %2242 = vst.msk [vmem:[%s5191_s3 + $0x320] sm:$0xff] %vm2141_vm2, %v1985_v49  ;;  %v1988_v56 = vmax.f32 %v1274_v51, 0.0  ;;  %v1266_v58 = vadd.f32 %v4406_v61, %v1265_v54 }
 0x1b1   :  { %2370 = vst.msk [vmem:[%s5191_s3 + $0x720] sm:$0xff] %vm2141_vm2, %v2113_v50  ;;  %v2116_v57 = vmax.f32 %v1786_v53, 0.0  ;;  %v1778_v59 = vadd.f32 %v4406_v61, %v1777_v55  ;;  %v2771_v60 = vpop.f32.mrf.mxu0 }
 0x1b2   :  { %v2899_v62 = vpop.f32.mrf.mxu1  ;;  %2245 = vst.msk [vmem:[%s5191_s3 + $0x338] sm:$0xff] %vm2141_vm2, %v1988_v56  ;;  %v1986_v52 = vmax.f32 %v1266_v58, 0.0  ;;  %v1287_v0 = vadd.f32 %v4406_v61, %v2771_v60 }
 0x1b3   :  { %2373 = vst.msk [vmem:[%s5191_s3 + $0x738] sm:$0xff] %vm2141_vm2, %v2116_v57  ;;  %v2114_v63 = vmax.f32 %v1778_v59, 0.0  ;;  %v1799_v1 = vadd.f32 %v4406_v61, %v2899_v62  ;;  %v1278_v2 = vpop.f32.mrf.mxu0 }
 0x1b4   :  { %v1790_v3 = vpop.f32.mrf.mxu1  ;;  %2243 = vst.msk [vmem:[%s5191_s3 + $0x328] sm:$0xff] %vm2141_vm2, %v1986_v52  ;;  %v1991_v4 = vmax.f32 %v1287_v0, 0.0  ;;  %v1279_v6 = vadd.f32 %v4406_v61, %v1278_v2 }
 0x1b5   :  { %2371 = vst.msk [vmem:[%s5191_s3 + $0x728] sm:$0xff] %vm2141_vm2, %v2114_v63  ;;  %v2119_v5 = vmax.f32 %v1799_v1, 0.0  ;;  %v1791_v7 = vadd.f32 %v4406_v61, %v1790_v3  ;;  %v2772_v8 = vpop.f32.mrf.mxu0  ;;  %v5048_v3 = vld [vmem:[#allocation4] ss:$0 sm:$0xff] }
 0x1b6   :  { %v2900_v9 = vpop.f32.mrf.mxu1  ;;  %2248 = vst.msk [vmem:[%s5191_s3 + $0x350] sm:$0xff] %vm2141_vm2, %v1991_v4  ;;  %v1989_v10 = vmax.f32 %v1279_v6, 0.0  ;;  %v1290_v12 = vadd.f32 %v4406_v61, %v2772_v8 }
 0x1b7   :  { %2376 = vst.msk [vmem:[%s5191_s3 + $0x750] sm:$0xff] %vm2141_vm2, %v2119_v5  ;;  %v2117_v11 = vmax.f32 %v1791_v7, 0.0  ;;  %v1802_v13 = vadd.f32 %v4406_v61, %v2900_v9  ;;  %v1281_v14 = vpop.f32.mrf.mxu0 }
 0x1b8   :  { %v1793_v15 = vpop.f32.mrf.mxu1  ;;  %2246 = vst.msk [vmem:[%s5191_s3 + $0x340] sm:$0xff] %vm2141_vm2, %v1989_v10  ;;  %v1992_v16 = vmax.f32 %v1290_v12, 0.0  ;;  %v1282_v18 = vadd.f32 %v4406_v61, %v1281_v14 }
 0x1b9   :  { %2374 = vst.msk [vmem:[%s5191_s3 + $0x740] sm:$0xff] %vm2141_vm2, %v2117_v11  ;;  %v2120_v17 = vmax.f32 %v1802_v13, 0.0  ;;  %v1794_v19 = vadd.f32 %v4406_v61, %v1793_v15  ;;  %v2775_v20 = vpop.f32.mrf.mxu0 }
 0x1ba   :  { %v2903_v21 = vpop.f32.mrf.mxu1  ;;  %2249 = vst.msk [vmem:[%s5191_s3 + $0x358] sm:$0xff] %vm2141_vm2, %v1992_v16  ;;  %v1990_v22 = vmax.f32 %v1282_v18, 0.0  ;;  %v1303_v24 = vadd.f32 %v4406_v61, %v2775_v20 }
 0x1bb   :  { %2377 = vst.msk [vmem:[%s5191_s3 + $0x758] sm:$0xff] %vm2141_vm2, %v2120_v17  ;;  %v2118_v23 = vmax.f32 %v1794_v19, 0.0  ;;  %v1815_v25 = vadd.f32 %v4406_v61, %v2903_v21  ;;  %v1294_v26 = vpop.f32.mrf.mxu0 }
 0x1bc   :  { %v1806_v27 = vpop.f32.mrf.mxu1  ;;  %2247 = vst.msk [vmem:[%s5191_s3 + $0x348] sm:$0xff] %vm2141_vm2, %v1990_v22  ;;  %v1995_v28 = vmax.f32 %v1303_v24, 0.0  ;;  %v1295_v30 = vadd.f32 %v4406_v61, %v1294_v26 }
 0x1bd   :  { %2375 = vst.msk [vmem:[%s5191_s3 + $0x748] sm:$0xff] %vm2141_vm2, %v2118_v23  ;;  %v2123_v29 = vmax.f32 %v1815_v25, 0.0  ;;  %v1807_v31 = vadd.f32 %v4406_v61, %v1806_v27  ;;  %v2776_v32 = vpop.f32.mrf.mxu0 }
 0x1be   :  { %v2904_v33 = vpop.f32.mrf.mxu1  ;;  %2252 = vst.msk [vmem:[%s5191_s3 + $0x370] sm:$0xff] %vm2141_vm2, %v1995_v28  ;;  %v1993_v34 = vmax.f32 %v1295_v30, 0.0  ;;  %v1306_v36 = vadd.f32 %v4406_v61, %v2776_v32 }
 0x1bf   :  { %2380 = vst.msk [vmem:[%s5191_s3 + $0x770] sm:$0xff] %vm2141_vm2, %v2123_v29  ;;  %v2121_v35 = vmax.f32 %v1807_v31, 0.0  ;;  %v1818_v37 = vadd.f32 %v4406_v61, %v2904_v33  ;;  %v1297_v38 = vpop.f32.mrf.mxu0 }
 0x1c0   :  { %v1809_v39 = vpop.f32.mrf.mxu1  ;;  %2250 = vst.msk [vmem:[%s5191_s3 + $0x360] sm:$0xff] %vm2141_vm2, %v1993_v34  ;;  %v1996_v40 = vmax.f32 %v1306_v36, 0.0  ;;  %v1298_v42 = vadd.f32 %v4406_v61, %v1297_v38 }
 0x1c1   :  { %2378 = vst.msk [vmem:[%s5191_s3 + $0x760] sm:$0xff] %vm2141_vm2, %v2121_v35  ;;  %v2124_v41 = vmax.f32 %v1818_v37, 0.0  ;;  %v1810_v43 = vadd.f32 %v4406_v61, %v1809_v39  ;;  %v2779_v44 = vpop.f32.mrf.mxu0 }
 0x1c2   :  { %v2907_v45 = vpop.f32.mrf.mxu1  ;;  %2253 = vst.msk [vmem:[%s5191_s3 + $0x378] sm:$0xff] %vm2141_vm2, %v1996_v40  ;;  %v1994_v46 = vmax.f32 %v1298_v42, 0.0  ;;  %v1319_v48 = vadd.f32 %v4406_v61, %v2779_v44 }
 0x1c3   :  { %2381 = vst.msk [vmem:[%s5191_s3 + $0x778] sm:$0xff] %vm2141_vm2, %v2124_v41  ;;  %v2122_v47 = vmax.f32 %v1810_v43, 0.0  ;;  %v1831_v49 = vadd.f32 %v4406_v61, %v2907_v45  ;;  %v1310_v50 = vpop.f32.mrf.mxu0 }
 0x1c4   :  { %v1822_v51 = vpop.f32.mrf.mxu1  ;;  %2251 = vst.msk [vmem:[%s5191_s3 + $0x368] sm:$0xff] %vm2141_vm2, %v1994_v46  ;;  %v1999_v53 = vmax.f32 %v1319_v48, 0.0  ;;  %v1311_v55 = vadd.f32 %v4406_v61, %v1310_v50 }
 0x1c5   :  { %2379 = vst.msk [vmem:[%s5191_s3 + $0x768] sm:$0xff] %vm2141_vm2, %v2122_v47  ;;  %v2127_v54 = vmax.f32 %v1831_v49, 0.0  ;;  %v1823_v56 = vadd.f32 %v4406_v61, %v1822_v51  ;;  %v2780_v57 = vpop.f32.mrf.mxu0 }
 0x1c6   :  { %v2908_v58 = vpop.f32.mrf.mxu1  ;;  %2256 = vst.msk [vmem:[%s5191_s3 + $0x390] sm:$0xff] %vm2141_vm2, %v1999_v53  ;;  %v1997_v59 = vmax.f32 %v1311_v55, 0.0  ;;  %v1322_v62 = vadd.f32 %v4406_v61, %v2780_v57 }
 0x1c7   :  { %2384 = vst.msk [vmem:[%s5191_s3 + $0x790] sm:$0xff] %vm2141_vm2, %v2127_v54  ;;  %v2125_v60 = vmax.f32 %v1823_v56, 0.0  ;;  %v1834_v52 = vadd.f32 %v4406_v61, %v2908_v58  ;;  %v1313_v63 = vpop.f32.mrf.mxu0 }
 0x1c8   :  { %v1825_v0 = vpop.f32.mrf.mxu1  ;;  %2254 = vst.msk [vmem:[%s5191_s3 + $0x380] sm:$0xff] %vm2141_vm2, %v1997_v59  ;;  %v2000_v1 = vmax.f32 %v1322_v62, 0.0  ;;  %v1314_v4 = vadd.f32 %v5048_v3, %v1313_v63 }
 0x1c9   :  { %2382 = vst.msk [vmem:[%s5191_s3 + $0x780] sm:$0xff] %vm2141_vm2, %v2125_v60  ;;  %v2128_v2 = vmax.f32 %v1834_v52, 0.0  ;;  %v1826_v61 = vadd.f32 %v5048_v3, %v1825_v0  ;;  %v2783_v5 = vpop.f32.mrf.mxu0 }
 0x1ca   :  { %v2911_v6 = vpop.f32.mrf.mxu1  ;;  %2257 = vst.msk [vmem:[%s5191_s3 + $0x398] sm:$0xff] %vm2141_vm2, %v2000_v1  ;;  %v1998_v7 = vmax.f32 %v1314_v4, 0.0  ;;  %v1335_v9 = vadd.f32 %v5048_v3, %v2783_v5 }
 0x1cb   :  { %2385 = vst.msk [vmem:[%s5191_s3 + $0x798] sm:$0xff] %vm2141_vm2, %v2128_v2  ;;  %v2126_v8 = vmax.f32 %v1826_v61, 0.0  ;;  %v1847_v10 = vadd.f32 %v5048_v3, %v2911_v6  ;;  %v1326_v11 = vpop.f32.mrf.mxu0 }
 0x1cc   :  { %v1838_v12 = vpop.f32.mrf.mxu1  ;;  %2255 = vst.msk [vmem:[%s5191_s3 + $0x388] sm:$0xff] %vm2141_vm2, %v1998_v7  ;;  %v2003_v13 = vmax.f32 %v1335_v9, 0.0  ;;  %v1327_v15 = vadd.f32 %v5048_v3, %v1326_v11 }
 0x1cd   :  { %2383 = vst.msk [vmem:[%s5191_s3 + $0x788] sm:$0xff] %vm2141_vm2, %v2126_v8  ;;  %v2131_v14 = vmax.f32 %v1847_v10, 0.0  ;;  %v1839_v16 = vadd.f32 %v5048_v3, %v1838_v12  ;;  %v2784_v17 = vpop.f32.mrf.mxu0 }
 0x1ce   :  { %v2912_v18 = vpop.f32.mrf.mxu1  ;;  %2260 = vst.msk [vmem:[%s5191_s3 + $0x3b0] sm:$0xff] %vm2141_vm2, %v2003_v13  ;;  %v2001_v19 = vmax.f32 %v1327_v15, 0.0  ;;  %v1338_v21 = vadd.f32 %v5048_v3, %v2784_v17 }
 0x1cf   :  { %2388 = vst.msk [vmem:[%s5191_s3 + $0x7b0] sm:$0xff] %vm2141_vm2, %v2131_v14  ;;  %v2129_v20 = vmax.f32 %v1839_v16, 0.0  ;;  %v1850_v22 = vadd.f32 %v5048_v3, %v2912_v18  ;;  %v1329_v23 = vpop.f32.mrf.mxu0 }
 0x1d0   :  { %v1841_v24 = vpop.f32.mrf.mxu1  ;;  %2258 = vst.msk [vmem:[%s5191_s3 + $0x3a0] sm:$0xff] %vm2141_vm2, %v2001_v19  ;;  %v2004_v25 = vmax.f32 %v1338_v21, 0.0  ;;  %v1330_v27 = vadd.f32 %v5048_v3, %v1329_v23 }
 0x1d1   :  { %2386 = vst.msk [vmem:[%s5191_s3 + $0x7a0] sm:$0xff] %vm2141_vm2, %v2129_v20  ;;  %v2132_v26 = vmax.f32 %v1850_v22, 0.0  ;;  %v1842_v28 = vadd.f32 %v5048_v3, %v1841_v24  ;;  %v2787_v29 = vpop.f32.mrf.mxu0 }
 0x1d2   :  { %v2915_v30 = vpop.f32.mrf.mxu1  ;;  %2261 = vst.msk [vmem:[%s5191_s3 + $0x3b8] sm:$0xff] %vm2141_vm2, %v2004_v25  ;;  %v2002_v31 = vmax.f32 %v1330_v27, 0.0  ;;  %v1351_v33 = vadd.f32 %v5048_v3, %v2787_v29 }
 0x1d3   :  { %2389 = vst.msk [vmem:[%s5191_s3 + $0x7b8] sm:$0xff] %vm2141_vm2, %v2132_v26  ;;  %v2130_v32 = vmax.f32 %v1842_v28, 0.0  ;;  %v1863_v34 = vadd.f32 %v5048_v3, %v2915_v30  ;;  %v1342_v35 = vpop.f32.mrf.mxu0 }
 0x1d4   :  { %v1854_v36 = vpop.f32.mrf.mxu1  ;;  %2259 = vst.msk [vmem:[%s5191_s3 + $0x3a8] sm:$0xff] %vm2141_vm2, %v2002_v31  ;;  %v2007_v37 = vmax.f32 %v1351_v33, 0.0  ;;  %v1343_v39 = vadd.f32 %v5048_v3, %v1342_v35 }
 0x1d5   :  { %2387 = vst.msk [vmem:[%s5191_s3 + $0x7a8] sm:$0xff] %vm2141_vm2, %v2130_v32  ;;  %v2135_v38 = vmax.f32 %v1863_v34, 0.0  ;;  %v1855_v40 = vadd.f32 %v5048_v3, %v1854_v36  ;;  %v2788_v41 = vpop.f32.mrf.mxu0 }
 0x1d6   :  { %v2916_v42 = vpop.f32.mrf.mxu1  ;;  %2264 = vst.msk [vmem:[%s5191_s3 + $0x3d0] sm:$0xff] %vm2141_vm2, %v2007_v37  ;;  %v2005_v43 = vmax.f32 %v1343_v39, 0.0  ;;  %v1354_v45 = vadd.f32 %v5048_v3, %v2788_v41 }
 0x1d7   :  { %2392 = vst.msk [vmem:[%s5191_s3 + $0x7d0] sm:$0xff] %vm2141_vm2, %v2135_v38  ;;  %v2133_v44 = vmax.f32 %v1855_v40, 0.0  ;;  %v1866_v46 = vadd.f32 %v5048_v3, %v2916_v42  ;;  %v1345_v47 = vpop.f32.mrf.mxu0 }
 0x1d8   :  { %v1857_v48 = vpop.f32.mrf.mxu1  ;;  %2262 = vst.msk [vmem:[%s5191_s3 + $0x3c0] sm:$0xff] %vm2141_vm2, %v2005_v43  ;;  %v2008_v49 = vmax.f32 %v1354_v45, 0.0  ;;  %v1346_v51 = vadd.f32 %v5048_v3, %v1345_v47 }
 0x1d9   :  { %2390 = vst.msk [vmem:[%s5191_s3 + $0x7c0] sm:$0xff] %vm2141_vm2, %v2133_v44  ;;  %v2136_v50 = vmax.f32 %v1866_v46, 0.0  ;;  %v1858_v53 = vadd.f32 %v5048_v3, %v1857_v48  ;;  %v2791_v54 = vpop.f32.mrf.mxu0 }
 0x1da   :  { %v2919_v55 = vpop.f32.mrf.mxu1  ;;  %2265 = vst.msk [vmem:[%s5191_s3 + $0x3d8] sm:$0xff] %vm2141_vm2, %v2008_v49  ;;  %v2006_v56 = vmax.f32 %v1346_v51, 0.0  ;;  %v1367_v58 = vadd.f32 %v5048_v3, %v2791_v54 }
 0x1db   :  { %2393 = vst.msk [vmem:[%s5191_s3 + $0x7d8] sm:$0xff] %vm2141_vm2, %v2136_v50  ;;  %v2134_v57 = vmax.f32 %v1858_v53, 0.0  ;;  %v1879_v59 = vadd.f32 %v5048_v3, %v2919_v55  ;;  %v1358_v60 = vpop.f32.mrf.mxu0 }
 0x1dc   :  { %v1870_v62 = vpop.f32.mrf.mxu1  ;;  %2263 = vst.msk [vmem:[%s5191_s3 + $0x3c8] sm:$0xff] %vm2141_vm2, %v2006_v56  ;;  %v2011_v52 = vmax.f32 %v1367_v58, 0.0  ;;  %v1359_v0 = vadd.f32 %v5048_v3, %v1358_v60 }
 0x1dd   :  { %2391 = vst.msk [vmem:[%s5191_s3 + $0x7c8] sm:$0xff] %vm2141_vm2, %v2134_v57  ;;  %v2139_v63 = vmax.f32 %v1879_v59, 0.0  ;;  %v1871_v1 = vadd.f32 %v5048_v3, %v1870_v62  ;;  %v2792_v2 = vpop.f32.mrf.mxu0 }
 0x1de   :  { %v2920_v4 = vpop.f32.mrf.mxu1  ;;  %2268 = vst.msk [vmem:[%s5191_s3 + $0x3f0] sm:$0xff] %vm2141_vm2, %v2011_v52  ;;  %v2009_v61 = vmax.f32 %v1359_v0, 0.0  ;;  %v1370_v6 = vadd.f32 %v5048_v3, %v2792_v2 }
 0x1df   :  { %2396 = vst.msk [vmem:[%s5191_s3 + $0x7f0] sm:$0xff] %vm2141_vm2, %v2139_v63  ;;  %v2137_v5 = vmax.f32 %v1871_v1, 0.0  ;;  %v1882_v7 = vadd.f32 %v5048_v3, %v2920_v4  ;;  %v1361_v8 = vpop.f32.mrf.mxu0 }
 0x1e0   :  { %v1873_v9 = vpop.f32.mrf.mxu1  ;;  %2266 = vst.msk [vmem:[%s5191_s3 + $0x3e0] sm:$0xff] %vm2141_vm2, %v2009_v61  ;;  %v2012_v10 = vmax.f32 %v1370_v6, 0.0  ;;  %v1362_v12 = vadd.f32 %v5048_v3, %v1361_v8 }
 0x1e1   :  { %2394 = vst.msk [vmem:[%s5191_s3 + $0x7e0] sm:$0xff] %vm2141_vm2, %v2137_v5  ;;  %v2140_v11 = vmax.f32 %v1882_v7, 0.0  ;;  %v1874_v13 = vadd.f32 %v5048_v3, %v1873_v9 }
 0x1e2   :  { %2269 = vst.msk [vmem:[%s5191_s3 + $0x3f8] sm:$0xff] %vm2141_vm2, %v2012_v10  ;;  %v2010_v14 = vmax.f32 %v1362_v12, 0.0 }
 0x1e3   :  { %2397 = vst.msk [vmem:[%s5191_s3 + $0x7f8] sm:$0xff] %vm2141_vm2, %v2140_v11  ;;  %v2138_v15 = vmax.f32 %v1874_v13, 0.0 }
 0x1e4   :  { %2267 = vst.msk [vmem:[%s5191_s3 + $0x3e8] sm:$0xff] %vm2141_vm2, %v2010_v14 }
 0x1e5   :  { %2395 = vst.msk [vmem:[%s5191_s3 + $0x7e8] sm:$0xff] %vm2141_vm2, %v2138_v15 }
 0x1e6   :  { %2402 = vsyncpa [#allocation3], 1 }
 0x1e7   :  { %2403 = vsyncpa [#allocation5], 1 }

// kernel: target_model_forward.13
= control target key start
LH: loop header
LB: loop body
LE: loop exit
PB: predicated region body
PF: predicated region fallthrough
CT: control target
= control target key end

     0   :  { %vm126_vm0 = vcmask 130048   ;;  %vm576_vm1 = vcmask 261120   ;;  %s1353_s1 = inlined_call_operand.vmem [shape: bf16[16,32], index: 1, kind: input, shape index: {}]   ;;  %s1354_s0 = inlined_call_operand.vmem [shape: f32[512,16], index: 0, kind: input, shape index: {}]   ;;  %s1355_s2 = inlined_call_operand.vmem [shape: f32[1,32], index: 2, kind: input, shape index: {}]   ;;  %s1356_s3 = inlined_call_operand.vmem [shape: f32[512,32], index: 3, kind: output, shape index: {}]  }
   0x1   :  { %v780_v0 = vld [vmem:[%s1353_s1] sm:$0xff]   ;;  %v16_v2 = vld [vmem:[%s1354_s0 + $0x8] sm:$0xff]  ;;  %v17_v6 = vld [vmem:[%s1354_s0 + $0x10] sm:$0xff] }
   0x2   :  { %v15_v1 = vld [vmem:[%s1354_s0] sm:$0xff]  ;;  %712 = vmatprep.subr.bf16.mxu0 %v780_v0  ;;  %778 = vmatprep.subr.bf16.mxu1 %v780_v0  ;;  %v48_v5 = vld [vmem:[%s1354_s0 + $0x108] sm:$0xff]  ;;  %v18_v7 = vld [vmem:[%s1354_s0 + $0x18] sm:$0xff] }
   0x3   :  { %v47_v3 = vld [vmem:[%s1354_s0 + $0x100] sm:$0xff]  ;;  %v79_v4 = vpack.c.bf16 %v16_v2, %v15_v1  ;;  %713 = vmatpush3.bf16.msra.mxu0 %v780_v0  ;;  %779 = vmatpush3.bf16.msra.mxu1 %v780_v0  ;;  %v80_v9 = vpack.c.bf16 %v18_v7, %v17_v6  ;;  %v49_v10 = vld [vmem:[%s1354_s0 + $0x110] sm:$0xff]  ;;  %v50_v11 = vld [vmem:[%s1354_s0 + $0x118] sm:$0xff] }
   0x4   :  { %v95_v8 = vpack.c.bf16 %v48_v5, %v47_v3  ;;  %v19_v12 = vld [vmem:[%s1354_s0 + $0x20] sm:$0xff]  ;;  %v96_v13 = vpack.c.bf16 %v50_v11, %v49_v10  ;;  %v20_v14 = vld [vmem:[%s1354_s0 + $0x28] sm:$0xff]  ;;  %v21_v19 = vld [vmem:[%s1354_s0 + $0x30] sm:$0xff] }
   0x5   :  { %714 = vmatprep.mubr.msk.bf16.mxu0 %vm126_vm0, %v79_v4  ;;  %v51_v15 = vld [vmem:[%s1354_s0 + $0x120] sm:$0xff]  ;;  %v52_v16 = vld [vmem:[%s1354_s0 + $0x128] sm:$0xff]  ;;  %v81_v17 = vpack.c.bf16 %v20_v14, %v19_v12  ;;  %v22_v20 = vld [vmem:[%s1354_s0 + $0x38] sm:$0xff] }
   0x6   :  { %746 = vmatprep.mubr.msk.bf16.mxu1 %vm126_vm0, %v95_v8  ;;  %v97_v18 = vpack.c.bf16 %v52_v16, %v51_v15  ;;  %715 = vmatmul.mubr.msk.bf16.vlgmr.msra.gmra.mxu0 %vm126_vm0, %v80_v9  ;;  %v53_v21 = vld [vmem:[%s1354_s0 + $0x130] sm:$0xff]  ;;  %v54_v22 = vld [vmem:[%s1354_s0 + $0x138] sm:$0xff]  ;;  %v23_v23 = vld [vmem:[%s1354_s0 + $0x40] sm:$0xff]  ;;  %v82_v27 = vpack.c.bf16 %v22_v20, %v21_v19 }
   0x7   :  { %747 = vmatmul.mubr.msk.bf16.vlgmr.msra.gmra.mxu1 %vm126_vm0, %v96_v13  ;;  %718 = vmatprep.mubr.msk.bf16.mxu0 %vm126_vm0, %v81_v17  ;;  %v24_v24 = vld [vmem:[%s1354_s0 + $0x48] sm:$0xff]  ;;  %v55_v25 = vld [vmem:[%s1354_s0 + $0x140] sm:$0xff]  ;;  %v98_v28 = vpack.c.bf16 %v54_v22, %v53_v21  ;;  %v25_v31 = vld [vmem:[%s1354_s0 + $0x50] sm:$0xff] }
   0x8   :  { %750 = vmatprep.mubr.msk.bf16.mxu1 %vm126_vm0, %v97_v18  ;;  %v56_v26 = vld [vmem:[%s1354_s0 + $0x148] sm:$0xff]  ;;  %v83_v29 = vpack.c.bf16 %v24_v24, %v23_v23  ;;  %v26_v32 = vld [vmem:[%s1354_s0 + $0x58] sm:$0xff]  ;;  %v57_v33 = vld [vmem:[%s1354_s0 + $0x150] sm:$0xff] }
   0x9   :  { %v99_v30 = vpack.c.bf16 %v56_v26, %v55_v25  ;;  %v58_v34 = vld [vmem:[%s1354_s0 + $0x158] sm:$0xff]  ;;  %v27_v35 = vld [vmem:[%s1354_s0 + $0x60] sm:$0xff]  ;;  %v28_v36 = vld [vmem:[%s1354_s0 + $0x68] sm:$0xff]  ;;  %v84_v39 = vpack.c.bf16 %v26_v32, %v25_v31 }
   0xa   :  { %v59_v37 = vld [vmem:[%s1354_s0 + $0x160] sm:$0xff]  ;;  %v60_v38 = vld [vmem:[%s1354_s0 + $0x168] sm:$0xff]  ;;  %v100_v40 = vpack.c.bf16 %v58_v34, %v57_v33  ;;  %v85_v41 = vpack.c.bf16 %v28_v36, %v27_v35  ;;  %v29_v43 = vld [vmem:[%s1354_s0 + $0x70] sm:$0xff] }
   0xb   :  { %v101_v42 = vpack.c.bf16 %v60_v38, %v59_v37  ;;  %v30_v44 = vld [vmem:[%s1354_s0 + $0x78] sm:$0xff]  ;;  %v61_v45 = vld [vmem:[%s1354_s0 + $0x170] sm:$0xff]  ;;  %v31_v47 = vld [vmem:[%s1354_s0 + $0x80] sm:$0xff] }
   0xc   :  { %v62_v46 = vld [vmem:[%s1354_s0 + $0x178] sm:$0xff]  ;;  %v32_v48 = vld [vmem:[%s1354_s0 + $0x88] sm:$0xff]  ;;  %v63_v49 = vld [vmem:[%s1354_s0 + $0x180] sm:$0xff]  ;;  %v86_v51 = vpack.c.bf16 %v30_v44, %v29_v43 }
   0xd   :  { %v64_v50 = vld [vmem:[%s1354_s0 + $0x188] sm:$0xff]  ;;  %v102_v52 = vpack.c.bf16 %v62_v46, %v61_v45  ;;  %v87_v53 = vpack.c.bf16 %v32_v48, %v31_v47  ;;  %v33_v55 = vld [vmem:[%s1354_s0 + $0x90] sm:$0xff]  ;;  %v34_v56 = vld [vmem:[%s1354_s0 + $0x98] sm:$0xff] }
   0xe   :  { %719 = vmatmul.mubr.msk.bf16.gmra.mxu0 %vm126_vm0, %v82_v27  ;;  %v103_v54 = vpack.c.bf16 %v64_v50, %v63_v49  ;;  %v65_v57 = vld [vmem:[%s1354_s0 + $0x190] sm:$0xff]  ;;  %v66_v58 = vld [vmem:[%s1354_s0 + $0x198] sm:$0xff]  ;;  %v35_v59 = vld [vmem:[%s1354_s0 + $0xa0] sm:$0xff]  ;;  %v88_v63 = vpack.c.bf16 %v34_v56, %v33_v55 }
   0xf   :  { %751 = vmatmul.mubr.msk.bf16.gmra.mxu1 %vm126_vm0, %v98_v28  ;;  %722 = vmatprep.mubr.msk.bf16.mxu0 %vm126_vm0, %v83_v29  ;;  %v36_v60 = vld [vmem:[%s1354_s0 + $0xa8] sm:$0xff]  ;;  %v67_v61 = vld [vmem:[%s1354_s0 + $0x1a0] sm:$0xff]  ;;  %v104_v0 = vpack.c.bf16 %v66_v58, %v65_v57  ;;  %v37_v3 = vld [vmem:[%s1354_s0 + $0xb0] sm:$0xff] }
  0x10   :  { %754 = vmatprep.mubr.msk.bf16.mxu1 %vm126_vm0, %v99_v30  ;;  %v68_v62 = vld [vmem:[%s1354_s0 + $0x1a8] sm:$0xff]  ;;  %v89_v1 = vpack.c.bf16 %v36_v60, %v35_v59  ;;  %v38_v4 = vld [vmem:[%s1354_s0 + $0xb8] sm:$0xff]  ;;  %v69_v5 = vld [vmem:[%s1354_s0 + $0x1b0] sm:$0xff] }
  0x11   :  { %v105_v2 = vpack.c.bf16 %v68_v62, %v67_v61  ;;  %v70_v6 = vld [vmem:[%s1354_s0 + $0x1b8] sm:$0xff]  ;;  %v39_v7 = vld [vmem:[%s1354_s0 + $0xc0] sm:$0xff]  ;;  %v40_v8 = vld [vmem:[%s1354_s0 + $0xc8] sm:$0xff]  ;;  %v90_v11 = vpack.c.bf16 %v38_v4, %v37_v3 }
  0x12   :  { %v71_v9 = vld [vmem:[%s1354_s0 + $0x1c0] sm:$0xff]  ;;  %v72_v10 = vld [vmem:[%s1354_s0 + $0x1c8] sm:$0xff]  ;;  %v106_v12 = vpack.c.bf16 %v70_v6, %v69_v5  ;;  %v91_v13 = vpack.c.bf16 %v40_v8, %v39_v7  ;;  %v41_v15 = vld [vmem:[%s1354_s0 + $0xd0] sm:$0xff] }
  0x13   :  { %v107_v14 = vpack.c.bf16 %v72_v10, %v71_v9  ;;  %v42_v16 = vld [vmem:[%s1354_s0 + $0xd8] sm:$0xff]  ;;  %v73_v17 = vld [vmem:[%s1354_s0 + $0x1d0] sm:$0xff]  ;;  %v43_v19 = vld [vmem:[%s1354_s0 + $0xe0] sm:$0xff] }
  0x14   :  { %v74_v18 = vld [vmem:[%s1354_s0 + $0x1d8] sm:$0xff]  ;;  %v44_v20 = vld [vmem:[%s1354_s0 + $0xe8] sm:$0xff]  ;;  %v75_v21 = vld [vmem:[%s1354_s0 + $0x1e0] sm:$0xff]  ;;  %v92_v23 = vpack.c.bf16 %v42_v16, %v41_v15 }
  0x15   :  { %v76_v22 = vld [vmem:[%s1354_s0 + $0x1e8] sm:$0xff]  ;;  %v108_v24 = vpack.c.bf16 %v74_v18, %v73_v17  ;;  %v93_v25 = vpack.c.bf16 %v44_v20, %v43_v19  ;;  %v45_v27 = vld [vmem:[%s1354_s0 + $0xf0] sm:$0xff]  ;;  %v46_v28 = vld [vmem:[%s1354_s0 + $0xf8] sm:$0xff] }
  0x16   :  { %723 = vmatmul.mubr.msk.bf16.gmra.mxu0 %vm126_vm0, %v84_v39  ;;  %v109_v26 = vpack.c.bf16 %v76_v22, %v75_v21  ;;  %v77_v29 = vld [vmem:[%s1354_s0 + $0x1f0] sm:$0xff]  ;;  %v78_v30 = vld [vmem:[%s1354_s0 + $0x1f8] sm:$0xff]  ;;  %v94_v31 = vpack.c.bf16 %v46_v28, %v45_v27  ;;  %v1031_v33 = vld [vmem:[%s1355_s2] ss:$0 sm:$0xff] }
  0x17   :  { %755 = vmatmul.mubr.msk.bf16.gmra.mxu1 %vm126_vm0, %v100_v40  ;;  %726 = vmatprep.mubr.msk.bf16.mxu0 %vm126_vm0, %v85_v41  ;;  %v110_v32 = vpack.c.bf16 %v78_v30, %v77_v29 }
  0x18   :  { %758 = vmatprep.mubr.msk.bf16.mxu1 %vm126_vm0, %v101_v42 }
  0x1e   :  { %727 = vmatmul.mubr.msk.bf16.gmra.mxu0 %vm126_vm0, %v86_v51 }
  0x1f   :  { %759 = vmatmul.mubr.msk.bf16.gmra.mxu1 %vm126_vm0, %v102_v52  ;;  %730 = vmatprep.mubr.msk.bf16.mxu0 %vm126_vm0, %v87_v53 }
  0x20   :  { %762 = vmatprep.mubr.msk.bf16.mxu1 %vm126_vm0, %v103_v54 }
  0x26   :  { %731 = vmatmul.mubr.msk.bf16.gmra.mxu0 %vm126_vm0, %v88_v63 }
  0x27   :  { %763 = vmatmul.mubr.msk.bf16.gmra.mxu1 %vm126_vm0, %v104_v0  ;;  %734 = vmatprep.mubr.msk.bf16.mxu0 %vm126_vm0, %v89_v1 }
  0x28   :  { %766 = vmatprep.mubr.msk.bf16.mxu1 %vm126_vm0, %v105_v2 }
  0x2e   :  { %735 = vmatmul.mubr.msk.bf16.gmra.mxu0 %vm126_vm0, %v90_v11 }
  0x2f   :  { %767 = vmatmul.mubr.msk.bf16.gmra.mxu1 %vm126_vm0, %v106_v12  ;;  %738 = vmatprep.mubr.msk.bf16.mxu0 %vm126_vm0, %v91_v13 }
  0x30   :  { %770 = vmatprep.mubr.msk.bf16.mxu1 %vm126_vm0, %v107_v14 }
  0x36   :  { %739 = vmatmul.mubr.msk.bf16.gmra.mxu0 %vm126_vm0, %v92_v23 }
  0x37   :  { %771 = vmatmul.mubr.msk.bf16.gmra.mxu1 %vm126_vm0, %v108_v24  ;;  %742 = vmatprep.mubr.msk.bf16.mxu0 %vm126_vm0, %v93_v25 }
  0x38   :  { %774 = vmatprep.mubr.msk.bf16.mxu1 %vm126_vm0, %v109_v26 }
  0x3e   :  { %743 = vmatmul.mubr.msk.bf16.gmra.mxu0 %vm126_vm0, %v94_v31 }
  0x3f   :  { %775 = vmatmul.mubr.msk.bf16.gmra.mxu1 %vm126_vm0, %v110_v32 }
  0xc6   :  { %v716_v34 = vpop.f32.mrf.mxu0 }
  0xc7   :  { %v748_v35 = vpop.f32.mrf.mxu1  ;;  %v266_v36 = vadd.f32 %v716_v34, %v1031_v33 }
  0xc8   :  { %v394_v37 = vadd.f32 %v748_v35, %v1031_v33  ;;  %v257_v38 = vpop.f32.mrf.mxu0 }
  0xc9   :  { %v385_v39 = vpop.f32.mrf.mxu1  ;;  %v514_v40 = vmax.f32 %v266_v36, 0.0  ;;  %v258_v42 = vadd.f32 %v1031_v33, %v257_v38 }
  0xca   :  { %v546_v41 = vmax.f32 %v394_v37, 0.0  ;;  %v386_v43 = vadd.f32 %v1031_v33, %v385_v39  ;;  %v717_v44 = vpop.f32.mrf.mxu0 }
  0xcb   :  { %v749_v45 = vpop.f32.mrf.mxu1  ;;  %579 = vst.msk [vmem:[%s1356_s3 + $0x10] sm:$0xff] %vm576_vm1, %v514_v40  ;;  %v512_v46 = vmax.f32 %v258_v42, 0.0  ;;  %v269_v48 = vadd.f32 %v717_v44, %v1031_v33 }
  0xcc   :  { %611 = vst.msk [vmem:[%s1356_s3 + $0x110] sm:$0xff] %vm576_vm1, %v546_v41  ;;  %v544_v47 = vmax.f32 %v386_v43, 0.0  ;;  %v397_v49 = vadd.f32 %v749_v45, %v1031_v33  ;;  %v260_v50 = vpop.f32.mrf.mxu0 }
  0xcd   :  { %v388_v51 = vpop.f32.mrf.mxu1  ;;  %577 = vst.msk [vmem:[%s1356_s3] sm:$0xff] %vm576_vm1, %v512_v46  ;;  %v515_v52 = vmax.f32 %v269_v48, 0.0  ;;  %v261_v54 = vadd.f32 %v1031_v33, %v260_v50 }
  0xce   :  { %609 = vst.msk [vmem:[%s1356_s3 + $0x100] sm:$0xff] %vm576_vm1, %v544_v47  ;;  %v547_v53 = vmax.f32 %v397_v49, 0.0  ;;  %v389_v55 = vadd.f32 %v1031_v33, %v388_v51  ;;  %v720_v56 = vpop.f32.mrf.mxu0 }
  0xcf   :  { %v752_v57 = vpop.f32.mrf.mxu1  ;;  %580 = vst.msk [vmem:[%s1356_s3 + $0x18] sm:$0xff] %vm576_vm1, %v515_v52  ;;  %v513_v58 = vmax.f32 %v261_v54, 0.0  ;;  %v282_v60 = vadd.f32 %v720_v56, %v1031_v33 }
  0xd0   :  { %612 = vst.msk [vmem:[%s1356_s3 + $0x118] sm:$0xff] %vm576_vm1, %v547_v53  ;;  %v545_v59 = vmax.f32 %v389_v55, 0.0  ;;  %v410_v61 = vadd.f32 %v752_v57, %v1031_v33  ;;  %v273_v62 = vpop.f32.mrf.mxu0 }
  0xd1   :  { %v401_v63 = vpop.f32.mrf.mxu1  ;;  %578 = vst.msk [vmem:[%s1356_s3 + $0x8] sm:$0xff] %vm576_vm1, %v513_v58  ;;  %v518_v0 = vmax.f32 %v282_v60, 0.0  ;;  %v274_v2 = vadd.f32 %v1031_v33, %v273_v62 }
  0xd2   :  { %610 = vst.msk [vmem:[%s1356_s3 + $0x108] sm:$0xff] %vm576_vm1, %v545_v59  ;;  %v550_v1 = vmax.f32 %v410_v61, 0.0  ;;  %v402_v3 = vadd.f32 %v1031_v33, %v401_v63  ;;  %v721_v4 = vpop.f32.mrf.mxu0 }
  0xd3   :  { %v753_v5 = vpop.f32.mrf.mxu1  ;;  %583 = vst.msk [vmem:[%s1356_s3 + $0x30] sm:$0xff] %vm576_vm1, %v518_v0  ;;  %v516_v6 = vmax.f32 %v274_v2, 0.0  ;;  %v285_v8 = vadd.f32 %v721_v4, %v1031_v33 }
  0xd4   :  { %615 = vst.msk [vmem:[%s1356_s3 + $0x130] sm:$0xff] %vm576_vm1, %v550_v1  ;;  %v548_v7 = vmax.f32 %v402_v3, 0.0  ;;  %v413_v9 = vadd.f32 %v753_v5, %v1031_v33  ;;  %v276_v10 = vpop.f32.mrf.mxu0 }
  0xd5   :  { %v404_v11 = vpop.f32.mrf.mxu1  ;;  %581 = vst.msk [vmem:[%s1356_s3 + $0x20] sm:$0xff] %vm576_vm1, %v516_v6  ;;  %v519_v12 = vmax.f32 %v285_v8, 0.0  ;;  %v277_v14 = vadd.f32 %v1031_v33, %v276_v10 }
  0xd6   :  { %613 = vst.msk [vmem:[%s1356_s3 + $0x120] sm:$0xff] %vm576_vm1, %v548_v7  ;;  %v551_v13 = vmax.f32 %v413_v9, 0.0  ;;  %v405_v15 = vadd.f32 %v1031_v33, %v404_v11  ;;  %v724_v16 = vpop.f32.mrf.mxu0 }
  0xd7   :  { %v756_v17 = vpop.f32.mrf.mxu1  ;;  %584 = vst.msk [vmem:[%s1356_s3 + $0x38] sm:$0xff] %vm576_vm1, %v519_v12  ;;  %v517_v18 = vmax.f32 %v277_v14, 0.0  ;;  %v298_v20 = vadd.f32 %v724_v16, %v1031_v33 }
  0xd8   :  { %616 = vst.msk [vmem:[%s1356_s3 + $0x138] sm:$0xff] %vm576_vm1, %v551_v13  ;;  %v549_v19 = vmax.f32 %v405_v15, 0.0  ;;  %v426_v21 = vadd.f32 %v756_v17, %v1031_v33  ;;  %v289_v22 = vpop.f32.mrf.mxu0 }
  0xd9   :  { %v417_v23 = vpop.f32.mrf.mxu1  ;;  %582 = vst.msk [vmem:[%s1356_s3 + $0x28] sm:$0xff] %vm576_vm1, %v517_v18  ;;  %v522_v24 = vmax.f32 %v298_v20, 0.0  ;;  %v290_v26 = vadd.f32 %v1031_v33, %v289_v22 }
  0xda   :  { %614 = vst.msk [vmem:[%s1356_s3 + $0x128] sm:$0xff] %vm576_vm1, %v549_v19  ;;  %v554_v25 = vmax.f32 %v426_v21, 0.0  ;;  %v418_v27 = vadd.f32 %v1031_v33, %v417_v23  ;;  %v725_v28 = vpop.f32.mrf.mxu0 }
  0xdb   :  { %v757_v29 = vpop.f32.mrf.mxu1  ;;  %587 = vst.msk [vmem:[%s1356_s3 + $0x50] sm:$0xff] %vm576_vm1, %v522_v24  ;;  %v520_v30 = vmax.f32 %v290_v26, 0.0  ;;  %v301_v32 = vadd.f32 %v725_v28, %v1031_v33 }
  0xdc   :  { %619 = vst.msk [vmem:[%s1356_s3 + $0x150] sm:$0xff] %vm576_vm1, %v554_v25  ;;  %v552_v31 = vmax.f32 %v418_v27, 0.0  ;;  %v429_v34 = vadd.f32 %v757_v29, %v1031_v33  ;;  %v292_v35 = vpop.f32.mrf.mxu0 }
  0xdd   :  { %v420_v36 = vpop.f32.mrf.mxu1  ;;  %585 = vst.msk [vmem:[%s1356_s3 + $0x40] sm:$0xff] %vm576_vm1, %v520_v30  ;;  %v523_v37 = vmax.f32 %v301_v32, 0.0  ;;  %v293_v39 = vadd.f32 %v1031_v33, %v292_v35 }
  0xde   :  { %617 = vst.msk [vmem:[%s1356_s3 + $0x140] sm:$0xff] %vm576_vm1, %v552_v31  ;;  %v555_v38 = vmax.f32 %v429_v34, 0.0  ;;  %v421_v40 = vadd.f32 %v1031_v33, %v420_v36  ;;  %v728_v41 = vpop.f32.mrf.mxu0 }
  0xdf   :  { %v760_v42 = vpop.f32.mrf.mxu1  ;;  %588 = vst.msk [vmem:[%s1356_s3 + $0x58] sm:$0xff] %vm576_vm1, %v523_v37  ;;  %v521_v43 = vmax.f32 %v293_v39, 0.0  ;;  %v314_v45 = vadd.f32 %v728_v41, %v1031_v33 }
  0xe0   :  { %620 = vst.msk [vmem:[%s1356_s3 + $0x158] sm:$0xff] %vm576_vm1, %v555_v38  ;;  %v553_v44 = vmax.f32 %v421_v40, 0.0  ;;  %v442_v46 = vadd.f32 %v760_v42, %v1031_v33  ;;  %v305_v47 = vpop.f32.mrf.mxu0 }
  0xe1   :  { %v433_v48 = vpop.f32.mrf.mxu1  ;;  %586 = vst.msk [vmem:[%s1356_s3 + $0x48] sm:$0xff] %vm576_vm1, %v521_v43  ;;  %v526_v49 = vmax.f32 %v314_v45, 0.0  ;;  %v306_v51 = vadd.f32 %v1031_v33, %v305_v47 }
  0xe2   :  { %618 = vst.msk [vmem:[%s1356_s3 + $0x148] sm:$0xff] %vm576_vm1, %v553_v44  ;;  %v558_v50 = vmax.f32 %v442_v46, 0.0  ;;  %v434_v52 = vadd.f32 %v1031_v33, %v433_v48  ;;  %v729_v53 = vpop.f32.mrf.mxu0 }
  0xe3   :  { %v761_v54 = vpop.f32.mrf.mxu1  ;;  %591 = vst.msk [vmem:[%s1356_s3 + $0x70] sm:$0xff] %vm576_vm1, %v526_v49  ;;  %v524_v55 = vmax.f32 %v306_v51, 0.0  ;;  %v317_v57 = vadd.f32 %v729_v53, %v1031_v33 }
  0xe4   :  { %623 = vst.msk [vmem:[%s1356_s3 + $0x170] sm:$0xff] %vm576_vm1, %v558_v50  ;;  %v556_v56 = vmax.f32 %v434_v52, 0.0  ;;  %v445_v58 = vadd.f32 %v761_v54, %v1031_v33  ;;  %v308_v59 = vpop.f32.mrf.mxu0 }
  0xe5   :  { %v436_v60 = vpop.f32.mrf.mxu1  ;;  %589 = vst.msk [vmem:[%s1356_s3 + $0x60] sm:$0xff] %vm576_vm1, %v524_v55  ;;  %v527_v61 = vmax.f32 %v317_v57, 0.0  ;;  %v309_v63 = vadd.f32 %v1031_v33, %v308_v59 }
  0xe6   :  { %621 = vst.msk [vmem:[%s1356_s3 + $0x160] sm:$0xff] %vm576_vm1, %v556_v56  ;;  %v559_v62 = vmax.f32 %v445_v58, 0.0  ;;  %v437_v0 = vadd.f32 %v1031_v33, %v436_v60  ;;  %v732_v1 = vpop.f32.mrf.mxu0 }
  0xe7   :  { %v764_v2 = vpop.f32.mrf.mxu1  ;;  %592 = vst.msk [vmem:[%s1356_s3 + $0x78] sm:$0xff] %vm576_vm1, %v527_v61  ;;  %v525_v3 = vmax.f32 %v309_v63, 0.0  ;;  %v330_v5 = vadd.f32 %v732_v1, %v1031_v33 }
  0xe8   :  { %624 = vst.msk [vmem:[%s1356_s3 + $0x178] sm:$0xff] %vm576_vm1, %v559_v62  ;;  %v557_v4 = vmax.f32 %v437_v0, 0.0  ;;  %v458_v6 = vadd.f32 %v764_v2, %v1031_v33  ;;  %v321_v7 = vpop.f32.mrf.mxu0 }
  0xe9   :  { %v449_v8 = vpop.f32.mrf.mxu1  ;;  %590 = vst.msk [vmem:[%s1356_s3 + $0x68] sm:$0xff] %vm576_vm1, %v525_v3  ;;  %v530_v9 = vmax.f32 %v330_v5, 0.0  ;;  %v322_v11 = vadd.f32 %v1031_v33, %v321_v7 }
  0xea   :  { %622 = vst.msk [vmem:[%s1356_s3 + $0x168] sm:$0xff] %vm576_vm1, %v557_v4  ;;  %v562_v10 = vmax.f32 %v458_v6, 0.0  ;;  %v450_v12 = vadd.f32 %v1031_v33, %v449_v8  ;;  %v733_v13 = vpop.f32.mrf.mxu0 }
  0xeb   :  { %v765_v14 = vpop.f32.mrf.mxu1  ;;  %595 = vst.msk [vmem:[%s1356_s3 + $0x90] sm:$0xff] %vm576_vm1, %v530_v9  ;;  %v528_v15 = vmax.f32 %v322_v11, 0.0  ;;  %v333_v17 = vadd.f32 %v733_v13, %v1031_v33 }
  0xec   :  { %627 = vst.msk [vmem:[%s1356_s3 + $0x190] sm:$0xff] %vm576_vm1, %v562_v10  ;;  %v560_v16 = vmax.f32 %v450_v12, 0.0  ;;  %v461_v18 = vadd.f32 %v765_v14, %v1031_v33  ;;  %v324_v19 = vpop.f32.mrf.mxu0 }
  0xed   :  { %v452_v20 = vpop.f32.mrf.mxu1  ;;  %593 = vst.msk [vmem:[%s1356_s3 + $0x80] sm:$0xff] %vm576_vm1, %v528_v15  ;;  %v531_v21 = vmax.f32 %v333_v17, 0.0  ;;  %v325_v23 = vadd.f32 %v1031_v33, %v324_v19 }
  0xee   :  { %625 = vst.msk [vmem:[%s1356_s3 + $0x180] sm:$0xff] %vm576_vm1, %v560_v16  ;;  %v563_v22 = vmax.f32 %v461_v18, 0.0  ;;  %v453_v24 = vadd.f32 %v1031_v33, %v452_v20  ;;  %v736_v25 = vpop.f32.mrf.mxu0 }
  0xef   :  { %v768_v26 = vpop.f32.mrf.mxu1  ;;  %596 = vst.msk [vmem:[%s1356_s3 + $0x98] sm:$0xff] %vm576_vm1, %v531_v21  ;;  %v529_v27 = vmax.f32 %v325_v23, 0.0  ;;  %v346_v29 = vadd.f32 %v736_v25, %v1031_v33 }
  0xf0   :  { %628 = vst.msk [vmem:[%s1356_s3 + $0x198] sm:$0xff] %vm576_vm1, %v563_v22  ;;  %v561_v28 = vmax.f32 %v453_v24, 0.0  ;;  %v474_v30 = vadd.f32 %v768_v26, %v1031_v33  ;;  %v337_v31 = vpop.f32.mrf.mxu0 }
  0xf1   :  { %v465_v32 = vpop.f32.mrf.mxu1  ;;  %594 = vst.msk [vmem:[%s1356_s3 + $0x88] sm:$0xff] %vm576_vm1, %v529_v27  ;;  %v534_v34 = vmax.f32 %v346_v29, 0.0  ;;  %v338_v36 = vadd.f32 %v1031_v33, %v337_v31 }
  0xf2   :  { %626 = vst.msk [vmem:[%s1356_s3 + $0x188] sm:$0xff] %vm576_vm1, %v561_v28  ;;  %v566_v35 = vmax.f32 %v474_v30, 0.0  ;;  %v466_v37 = vadd.f32 %v1031_v33, %v465_v32  ;;  %v737_v38 = vpop.f32.mrf.mxu0 }
  0xf3   :  { %v769_v39 = vpop.f32.mrf.mxu1  ;;  %599 = vst.msk [vmem:[%s1356_s3 + $0xb0] sm:$0xff] %vm576_vm1, %v534_v34  ;;  %v532_v40 = vmax.f32 %v338_v36, 0.0  ;;  %v349_v42 = vadd.f32 %v737_v38, %v1031_v33 }
  0xf4   :  { %631 = vst.msk [vmem:[%s1356_s3 + $0x1b0] sm:$0xff] %vm576_vm1, %v566_v35  ;;  %v564_v41 = vmax.f32 %v466_v37, 0.0  ;;  %v477_v43 = vadd.f32 %v769_v39, %v1031_v33  ;;  %v340_v44 = vpop.f32.mrf.mxu0 }
  0xf5   :  { %v468_v45 = vpop.f32.mrf.mxu1  ;;  %597 = vst.msk [vmem:[%s1356_s3 + $0xa0] sm:$0xff] %vm576_vm1, %v532_v40  ;;  %v535_v46 = vmax.f32 %v349_v42, 0.0  ;;  %v341_v48 = vadd.f32 %v1031_v33, %v340_v44 }
  0xf6   :  { %629 = vst.msk [vmem:[%s1356_s3 + $0x1a0] sm:$0xff] %vm576_vm1, %v564_v41  ;;  %v567_v47 = vmax.f32 %v477_v43, 0.0  ;;  %v469_v49 = vadd.f32 %v1031_v33, %v468_v45  ;;  %v740_v50 = vpop.f32.mrf.mxu0 }
  0xf7   :  { %v772_v51 = vpop.f32.mrf.mxu1  ;;  %600 = vst.msk [vmem:[%s1356_s3 + $0xb8] sm:$0xff] %vm576_vm1, %v535_v46  ;;  %v533_v52 = vmax.f32 %v341_v48, 0.0  ;;  %v362_v54 = vadd.f32 %v740_v50, %v1031_v33 }
  0xf8   :  { %632 = vst.msk [vmem:[%s1356_s3 + $0x1b8] sm:$0xff] %vm576_vm1, %v567_v47  ;;  %v565_v53 = vmax.f32 %v469_v49, 0.0  ;;  %v490_v55 = vadd.f32 %v772_v51, %v1031_v33  ;;  %v353_v56 = vpop.f32.mrf.mxu0 }
  0xf9   :  { %v481_v57 = vpop.f32.mrf.mxu1  ;;  %598 = vst.msk [vmem:[%s1356_s3 + $0xa8] sm:$0xff] %vm576_vm1, %v533_v52  ;;  %v538_v58 = vmax.f32 %v362_v54, 0.0  ;;  %v354_v60 = vadd.f32 %v1031_v33, %v353_v56 }
  0xfa   :  { %630 = vst.msk [vmem:[%s1356_s3 + $0x1a8] sm:$0xff] %vm576_vm1, %v565_v53  ;;  %v570_v59 = vmax.f32 %v490_v55, 0.0  ;;  %v482_v61 = vadd.f32 %v1031_v33, %v481_v57  ;;  %v741_v62 = vpop.f32.mrf.mxu0 }
  0xfb   :  { %v773_v63 = vpop.f32.mrf.mxu1  ;;  %603 = vst.msk [vmem:[%s1356_s3 + $0xd0] sm:$0xff] %vm576_vm1, %v538_v58  ;;  %v536_v0 = vmax.f32 %v354_v60, 0.0  ;;  %v365_v2 = vadd.f32 %v741_v62, %v1031_v33 }
  0xfc   :  { %635 = vst.msk [vmem:[%s1356_s3 + $0x1d0] sm:$0xff] %vm576_vm1, %v570_v59  ;;  %v568_v1 = vmax.f32 %v482_v61, 0.0  ;;  %v493_v3 = vadd.f32 %v773_v63, %v1031_v33  ;;  %v356_v4 = vpop.f32.mrf.mxu0 }
  0xfd   :  { %v484_v5 = vpop.f32.mrf.mxu1  ;;  %601 = vst.msk [vmem:[%s1356_s3 + $0xc0] sm:$0xff] %vm576_vm1, %v536_v0  ;;  %v539_v6 = vmax.f32 %v365_v2, 0.0  ;;  %v357_v8 = vadd.f32 %v1031_v33, %v356_v4 }
  0xfe   :  { %633 = vst.msk [vmem:[%s1356_s3 + $0x1c0] sm:$0xff] %vm576_vm1, %v568_v1  ;;  %v571_v7 = vmax.f32 %v493_v3, 0.0  ;;  %v485_v9 = vadd.f32 %v1031_v33, %v484_v5  ;;  %v744_v10 = vpop.f32.mrf.mxu0 }
  0xff   :  { %v776_v11 = vpop.f32.mrf.mxu1  ;;  %604 = vst.msk [vmem:[%s1356_s3 + $0xd8] sm:$0xff] %vm576_vm1, %v539_v6  ;;  %v537_v12 = vmax.f32 %v357_v8, 0.0  ;;  %v378_v14 = vadd.f32 %v744_v10, %v1031_v33 }
 0x100   :  { %636 = vst.msk [vmem:[%s1356_s3 + $0x1d8] sm:$0xff] %vm576_vm1, %v571_v7  ;;  %v569_v13 = vmax.f32 %v485_v9, 0.0  ;;  %v506_v15 = vadd.f32 %v776_v11, %v1031_v33  ;;  %v369_v16 = vpop.f32.mrf.mxu0 }
 0x101   :  { %v497_v17 = vpop.f32.mrf.mxu1  ;;  %602 = vst.msk [vmem:[%s1356_s3 + $0xc8] sm:$0xff] %vm576_vm1, %v537_v12  ;;  %v542_v18 = vmax.f32 %v378_v14, 0.0  ;;  %v370_v20 = vadd.f32 %v1031_v33, %v369_v16 }
 0x102   :  { %634 = vst.msk [vmem:[%s1356_s3 + $0x1c8] sm:$0xff] %vm576_vm1, %v569_v13  ;;  %v574_v19 = vmax.f32 %v506_v15, 0.0  ;;  %v498_v21 = vadd.f32 %v1031_v33, %v497_v17  ;;  %v745_v22 = vpop.f32.mrf.mxu0 }
 0x103   :  { %v777_v23 = vpop.f32.mrf.mxu1  ;;  %607 = vst.msk [vmem:[%s1356_s3 + $0xf0] sm:$0xff] %vm576_vm1, %v542_v18  ;;  %v540_v24 = vmax.f32 %v370_v20, 0.0  ;;  %v381_v26 = vadd.f32 %v745_v22, %v1031_v33 }
 0x104   :  { %639 = vst.msk [vmem:[%s1356_s3 + $0x1f0] sm:$0xff] %vm576_vm1, %v574_v19  ;;  %v572_v25 = vmax.f32 %v498_v21, 0.0  ;;  %v509_v27 = vadd.f32 %v777_v23, %v1031_v33  ;;  %v372_v28 = vpop.f32.mrf.mxu0 }
 0x105   :  { %v500_v29 = vpop.f32.mrf.mxu1  ;;  %605 = vst.msk [vmem:[%s1356_s3 + $0xe0] sm:$0xff] %vm576_vm1, %v540_v24  ;;  %v543_v30 = vmax.f32 %v381_v26, 0.0  ;;  %v373_v32 = vadd.f32 %v1031_v33, %v372_v28 }
 0x106   :  { %637 = vst.msk [vmem:[%s1356_s3 + $0x1e0] sm:$0xff] %vm576_vm1, %v572_v25  ;;  %v575_v31 = vmax.f32 %v509_v27, 0.0  ;;  %v501_v34 = vadd.f32 %v1031_v33, %v500_v29 }
 0x107   :  { %608 = vst.msk [vmem:[%s1356_s3 + $0xf8] sm:$0xff] %vm576_vm1, %v543_v30  ;;  %v541_v35 = vmax.f32 %v373_v32, 0.0 }
 0x108   :  { %640 = vst.msk [vmem:[%s1356_s3 + $0x1f8] sm:$0xff] %vm576_vm1, %v575_v31  ;;  %v573_v36 = vmax.f32 %v501_v34, 0.0 }
 0x109   :  { %606 = vst.msk [vmem:[%s1356_s3 + $0xe8] sm:$0xff] %vm576_vm1, %v541_v35 }
 0x10a   :  { %638 = vst.msk [vmem:[%s1356_s3 + $0x1e8] sm:$0xff] %vm576_vm1, %v573_v36 }

// kernel: target_model_forward.15
= control target key start
LH: loop header
LB: loop body
LE: loop exit
PB: predicated region body
PF: predicated region fallthrough
CT: control target
= control target key end

     0   :  { %vm134_vm0 = vcmask 261120   ;;  %vm584_vm1 = vcmask 523264   ;;  %s1371_s1 = inlined_call_operand.vmem [shape: bf16[32,64], index: 1, kind: input, shape index: {}]   ;;  %s1372_s0 = inlined_call_operand.vmem [shape: f32[512,32], index: 0, kind: input, shape index: {}]   ;;  %s1373_s2 = inlined_call_operand.vmem [shape: f32[1,64], index: 2, kind: input, shape index: {}]   ;;  %s1374_s3 = inlined_call_operand.vmem [shape: f32[512,64], index: 3, kind: output, shape index: {}]  }
   0x1   :  { %v794_v0 = vld [vmem:[%s1371_s1 + $0x8] sm:$0xff]   ;;  %v795_v1 = vld [vmem:[%s1371_s1] sm:$0xff]   ;;  %v17_v7 = vld [vmem:[%s1372_s0 + $0x10] sm:$0xff] }
   0x2   :  { %722 = vmatprep.subr.bf16.mxu0 %v794_v0  ;;  %790 = vmatprep.subr.bf16.mxu1 %v794_v0  ;;  %v15_v2 = vld [vmem:[%s1372_s0] sm:$0xff]  ;;  %v16_v3 = vld [vmem:[%s1372_s0 + $0x8] sm:$0xff]  ;;  %v18_v8 = vld [vmem:[%s1372_s0 + $0x18] sm:$0xff] }
   0x3   :  { %v47_v4 = vld [vmem:[%s1372_s0 + $0x100] sm:$0xff]  ;;  %723 = vmatpush3.bf16.msra.mxu0 %v794_v0  ;;  %792 = vmatpush3.bf16.msra.mxu1 %v794_v0  ;;  %v79_v5 = vpack.c.bf16 %v16_v3, %v15_v2  ;;  %v48_v6 = vld [vmem:[%s1372_s0 + $0x108] sm:$0xff]  ;;  %v49_v10 = vld [vmem:[%s1372_s0 + $0x110] sm:$0xff]  ;;  %v80_v16 = vpack.c.bf16 %v18_v8, %v17_v7 }
   0x4   :  { %724 = vmatprep.subr.bf16.mxu0 %v795_v1  ;;  %791 = vmatprep.subr.bf16.mxu1 %v795_v1  ;;  %v95_v9 = vpack.c.bf16 %v48_v6, %v47_v4  ;;  %v50_v11 = vld [vmem:[%s1372_s0 + $0x118] sm:$0xff]  ;;  %v19_v12 = vld [vmem:[%s1372_s0 + $0x20] sm:$0xff]  ;;  %v20_v13 = vld [vmem:[%s1372_s0 + $0x28] sm:$0xff] }
   0x5   :  { %726 = vmatprep.mubr.msk.bf16.mxu0 %vm134_vm0, %v79_v5  ;;  %v51_v14 = vld [vmem:[%s1372_s0 + $0x120] sm:$0xff]  ;;  %v52_v15 = vld [vmem:[%s1372_s0 + $0x128] sm:$0xff]  ;;  %v96_v17 = vpack.c.bf16 %v50_v11, %v49_v10  ;;  %v81_v18 = vpack.c.bf16 %v20_v13, %v19_v12  ;;  %v21_v20 = vld [vmem:[%s1372_s0 + $0x30] sm:$0xff] }
   0x6   :  { %758 = vmatprep.mubr.msk.bf16.mxu1 %vm134_vm0, %v95_v9  ;;  %v97_v19 = vpack.c.bf16 %v52_v15, %v51_v14  ;;  %v22_v21 = vld [vmem:[%s1372_s0 + $0x38] sm:$0xff]  ;;  %v53_v22 = vld [vmem:[%s1372_s0 + $0x130] sm:$0xff]  ;;  %v23_v24 = vld [vmem:[%s1372_s0 + $0x40] sm:$0xff] }
   0x7   :  { %725 = vmatpush3.bf16.msra.mxu0 %v795_v1  ;;  %793 = vmatpush3.bf16.msra.mxu1 %v795_v1  ;;  %v54_v23 = vld [vmem:[%s1372_s0 + $0x138] sm:$0xff]  ;;  %v24_v25 = vld [vmem:[%s1372_s0 + $0x48] sm:$0xff]  ;;  %v55_v26 = vld [vmem:[%s1372_s0 + $0x140] sm:$0xff]  ;;  %v82_v28 = vpack.c.bf16 %v22_v21, %v21_v20 }
   0x8   :  { %v56_v27 = vld [vmem:[%s1372_s0 + $0x148] sm:$0xff]  ;;  %v98_v29 = vpack.c.bf16 %v54_v23, %v53_v22  ;;  %v83_v30 = vpack.c.bf16 %v24_v25, %v23_v24  ;;  %v25_v32 = vld [vmem:[%s1372_s0 + $0x50] sm:$0xff]  ;;  %v26_v33 = vld [vmem:[%s1372_s0 + $0x58] sm:$0xff] }
   0x9   :  { %v99_v31 = vpack.c.bf16 %v56_v27, %v55_v26  ;;  %v57_v34 = vld [vmem:[%s1372_s0 + $0x150] sm:$0xff]  ;;  %v58_v35 = vld [vmem:[%s1372_s0 + $0x158] sm:$0xff]  ;;  %v27_v36 = vld [vmem:[%s1372_s0 + $0x60] sm:$0xff]  ;;  %v84_v40 = vpack.c.bf16 %v26_v33, %v25_v32 }
   0xa   :  { %727 = vmatmul.mubr.msk.bf16.vlgmr.msra.gmra.mxu0 %vm134_vm0, %v80_v16  ;;  %759 = vmatmul.mubr.msk.bf16.vlgmr.msra.gmra.mxu1 %vm134_vm0, %v96_v17  ;;  %v28_v37 = vld [vmem:[%s1372_s0 + $0x68] sm:$0xff]  ;;  %v59_v38 = vld [vmem:[%s1372_s0 + $0x160] sm:$0xff]  ;;  %v100_v41 = vpack.c.bf16 %v58_v35, %v57_v34  ;;  %v29_v44 = vld [vmem:[%s1372_s0 + $0x70] sm:$0xff] }
   0xb   :  { %730 = vmatprep.mubr.msk.bf16.mxu0 %vm134_vm0, %v81_v18  ;;  %762 = vmatprep.mubr.msk.bf16.mxu1 %vm134_vm0, %v97_v19  ;;  %v60_v39 = vld [vmem:[%s1372_s0 + $0x168] sm:$0xff]  ;;  %v85_v42 = vpack.c.bf16 %v28_v37, %v27_v36  ;;  %v30_v45 = vld [vmem:[%s1372_s0 + $0x78] sm:$0xff]  ;;  %v61_v46 = vld [vmem:[%s1372_s0 + $0x170] sm:$0xff] }
   0xc   :  { %v101_v43 = vpack.c.bf16 %v60_v39, %v59_v38  ;;  %v62_v47 = vld [vmem:[%s1372_s0 + $0x178] sm:$0xff]  ;;  %v31_v48 = vld [vmem:[%s1372_s0 + $0x80] sm:$0xff]  ;;  %v32_v49 = vld [vmem:[%s1372_s0 + $0x88] sm:$0xff]  ;;  %v86_v52 = vpack.c.bf16 %v30_v45, %v29_v44 }
   0xd   :  { %v63_v50 = vld [vmem:[%s1372_s0 + $0x180] sm:$0xff]  ;;  %v64_v51 = vld [vmem:[%s1372_s0 + $0x188] sm:$0xff]  ;;  %v102_v53 = vpack.c.bf16 %v62_v47, %v61_v46  ;;  %v87_v54 = vpack.c.bf16 %v32_v49, %v31_v48  ;;  %v33_v56 = vld [vmem:[%s1372_s0 + $0x90] sm:$0xff] }
   0xe   :  { %v103_v55 = vpack.c.bf16 %v64_v51, %v63_v50  ;;  %v34_v57 = vld [vmem:[%s1372_s0 + $0x98] sm:$0xff]  ;;  %v65_v58 = vld [vmem:[%s1372_s0 + $0x190] sm:$0xff]  ;;  %v35_v60 = vld [vmem:[%s1372_s0 + $0xa0] sm:$0xff] }
   0xf   :  { %v66_v59 = vld [vmem:[%s1372_s0 + $0x198] sm:$0xff]  ;;  %v36_v61 = vld [vmem:[%s1372_s0 + $0xa8] sm:$0xff]  ;;  %v67_v62 = vld [vmem:[%s1372_s0 + $0x1a0] sm:$0xff]  ;;  %v88_v0 = vpack.c.bf16 %v34_v57, %v33_v56 }
  0x10   :  { %v68_v63 = vld [vmem:[%s1372_s0 + $0x1a8] sm:$0xff]  ;;  %v104_v1 = vpack.c.bf16 %v66_v59, %v65_v58  ;;  %v89_v2 = vpack.c.bf16 %v36_v61, %v35_v60  ;;  %v37_v4 = vld [vmem:[%s1372_s0 + $0xb0] sm:$0xff]  ;;  %v38_v5 = vld [vmem:[%s1372_s0 + $0xb8] sm:$0xff] }
  0x11   :  { %v105_v3 = vpack.c.bf16 %v68_v63, %v67_v62  ;;  %v69_v6 = vld [vmem:[%s1372_s0 + $0x1b0] sm:$0xff]  ;;  %v70_v7 = vld [vmem:[%s1372_s0 + $0x1b8] sm:$0xff]  ;;  %v39_v8 = vld [vmem:[%s1372_s0 + $0xc0] sm:$0xff]  ;;  %v90_v12 = vpack.c.bf16 %v38_v5, %v37_v4 }
  0x12   :  { %731 = vmatmul.mubr.msk.bf16.gmra.mxu0 %vm134_vm0, %v82_v28  ;;  %763 = vmatmul.mubr.msk.bf16.gmra.mxu1 %vm134_vm0, %v98_v29  ;;  %v40_v9 = vld [vmem:[%s1372_s0 + $0xc8] sm:$0xff]  ;;  %v71_v10 = vld [vmem:[%s1372_s0 + $0x1c0] sm:$0xff]  ;;  %v106_v13 = vpack.c.bf16 %v70_v7, %v69_v6  ;;  %v41_v16 = vld [vmem:[%s1372_s0 + $0xd0] sm:$0xff] }
  0x13   :  { %734 = vmatprep.mubr.msk.bf16.mxu0 %vm134_vm0, %v83_v30  ;;  %766 = vmatprep.mubr.msk.bf16.mxu1 %vm134_vm0, %v99_v31  ;;  %v72_v11 = vld [vmem:[%s1372_s0 + $0x1c8] sm:$0xff]  ;;  %v91_v14 = vpack.c.bf16 %v40_v9, %v39_v8  ;;  %v42_v17 = vld [vmem:[%s1372_s0 + $0xd8] sm:$0xff]  ;;  %v73_v18 = vld [vmem:[%s1372_s0 + $0x1d0] sm:$0xff] }
  0x14   :  { %v107_v15 = vpack.c.bf16 %v72_v11, %v71_v10  ;;  %v74_v19 = vld [vmem:[%s1372_s0 + $0x1d8] sm:$0xff]  ;;  %v43_v20 = vld [vmem:[%s1372_s0 + $0xe0] sm:$0xff]  ;;  %v44_v21 = vld [vmem:[%s1372_s0 + $0xe8] sm:$0xff]  ;;  %v92_v24 = vpack.c.bf16 %v42_v17, %v41_v16 }
  0x15   :  { %v75_v22 = vld [vmem:[%s1372_s0 + $0x1e0] sm:$0xff]  ;;  %v76_v23 = vld [vmem:[%s1372_s0 + $0x1e8] sm:$0xff]  ;;  %v108_v25 = vpack.c.bf16 %v74_v19, %v73_v18  ;;  %v93_v26 = vpack.c.bf16 %v44_v21, %v43_v20  ;;  %v45_v28 = vld [vmem:[%s1372_s0 + $0xf0] sm:$0xff] }
  0x16   :  { %v109_v27 = vpack.c.bf16 %v76_v23, %v75_v22  ;;  %v46_v29 = vld [vmem:[%s1372_s0 + $0xf8] sm:$0xff]  ;;  %v77_v30 = vld [vmem:[%s1372_s0 + $0x1f0] sm:$0xff]  ;;  %v1049_v34 = vld [vmem:[%s1373_s2] ss:$0 sm:$0xff] }
  0x17   :  { %v78_v31 = vld [vmem:[%s1372_s0 + $0x1f8] sm:$0xff]  ;;  %v94_v32 = vpack.c.bf16 %v46_v29, %v45_v28 }
  0x18   :  { %v110_v33 = vpack.c.bf16 %v78_v31, %v77_v30 }
  0x1a   :  { %735 = vmatmul.mubr.msk.bf16.gmra.mxu0 %vm134_vm0, %v84_v40  ;;  %767 = vmatmul.mubr.msk.bf16.gmra.mxu1 %vm134_vm0, %v100_v41 }
  0x1b   :  { %738 = vmatprep.mubr.msk.bf16.mxu0 %vm134_vm0, %v85_v42  ;;  %770 = vmatprep.mubr.msk.bf16.mxu1 %vm134_vm0, %v101_v43 }
  0x22   :  { %739 = vmatmul.mubr.msk.bf16.gmra.mxu0 %vm134_vm0, %v86_v52  ;;  %771 = vmatmul.mubr.msk.bf16.gmra.mxu1 %vm134_vm0, %v102_v53 }
  0x23   :  { %742 = vmatprep.mubr.msk.bf16.mxu0 %vm134_vm0, %v87_v54  ;;  %774 = vmatprep.mubr.msk.bf16.mxu1 %vm134_vm0, %v103_v55 }
  0x2a   :  { %743 = vmatmul.mubr.msk.bf16.gmra.mxu0 %vm134_vm0, %v88_v0  ;;  %775 = vmatmul.mubr.msk.bf16.gmra.mxu1 %vm134_vm0, %v104_v1 }
  0x2b   :  { %746 = vmatprep.mubr.msk.bf16.mxu0 %vm134_vm0, %v89_v2  ;;  %778 = vmatprep.mubr.msk.bf16.mxu1 %vm134_vm0, %v105_v3 }
  0x32   :  { %747 = vmatmul.mubr.msk.bf16.gmra.mxu0 %vm134_vm0, %v90_v12  ;;  %779 = vmatmul.mubr.msk.bf16.gmra.mxu1 %vm134_vm0, %v106_v13 }
  0x33   :  { %750 = vmatprep.mubr.msk.bf16.mxu0 %vm134_vm0, %v91_v14  ;;  %782 = vmatprep.mubr.msk.bf16.mxu1 %vm134_vm0, %v107_v15 }
  0x3a   :  { %751 = vmatmul.mubr.msk.bf16.gmra.mxu0 %vm134_vm0, %v92_v24  ;;  %783 = vmatmul.mubr.msk.bf16.gmra.mxu1 %vm134_vm0, %v108_v25 }
  0x3b   :  { %754 = vmatprep.mubr.msk.bf16.mxu0 %vm134_vm0, %v93_v26  ;;  %786 = vmatprep.mubr.msk.bf16.mxu1 %vm134_vm0, %v109_v27 }
  0x42   :  { %755 = vmatmul.mubr.msk.bf16.gmra.mxu0 %vm134_vm0, %v94_v32  ;;  %787 = vmatmul.mubr.msk.bf16.gmra.mxu1 %vm134_vm0, %v110_v33 }
  0xca   :  { %v728_v35 = vpop.f32.mrf.mxu0  ;;  %v760_v36 = vpop.f32.mrf.mxu1 }
  0xcb   :  { %v274_v37 = vadd.f32 %v728_v35, %v1049_v34  ;;  %v402_v38 = vadd.f32 %v760_v36, %v1049_v34 }
  0xcc   :  { %v265_v39 = vpop.f32.mrf.mxu0  ;;  %v393_v40 = vpop.f32.mrf.mxu1 }
  0xcd   :  { %v522_v41 = vmax.f32 %v274_v37, 0.0  ;;  %v554_v42 = vmax.f32 %v402_v38, 0.0  ;;  %v266_v43 = vadd.f32 %v1049_v34, %v265_v39  ;;  %v394_v44 = vadd.f32 %v1049_v34, %v393_v40 }
  0xce   :  { %v729_v45 = vpop.f32.mrf.mxu0  ;;  %v761_v46 = vpop.f32.mrf.mxu1 }
  0xcf   :  { %587 = vst.msk [vmem:[%s1374_s3 + $0x10] sm:$0xff] %vm584_vm1, %v522_v41  ;;  %619 = vst.msk [vmem:[%s1374_s3 + $0x110] sm:$0xff] %vm584_vm1, %v554_v42  ;;  %v520_v47 = vmax.f32 %v266_v43, 0.0  ;;  %v552_v48 = vmax.f32 %v394_v44, 0.0  ;;  %v277_v49 = vadd.f32 %v729_v45, %v1049_v34  ;;  %v405_v50 = vadd.f32 %v761_v46, %v1049_v34 }
  0xd0   :  { %v268_v51 = vpop.f32.mrf.mxu0  ;;  %v396_v52 = vpop.f32.mrf.mxu1 }
  0xd1   :  { %585 = vst.msk [vmem:[%s1374_s3] sm:$0xff] %vm584_vm1, %v520_v47  ;;  %617 = vst.msk [vmem:[%s1374_s3 + $0x100] sm:$0xff] %vm584_vm1, %v552_v48  ;;  %v523_v53 = vmax.f32 %v277_v49, 0.0  ;;  %v555_v54 = vmax.f32 %v405_v50, 0.0  ;;  %v269_v55 = vadd.f32 %v1049_v34, %v268_v51  ;;  %v397_v56 = vadd.f32 %v1049_v34, %v396_v52 }
  0xd2   :  { %v732_v57 = vpop.f32.mrf.mxu0  ;;  %v764_v58 = vpop.f32.mrf.mxu1 }
  0xd3   :  { %588 = vst.msk [vmem:[%s1374_s3 + $0x18] sm:$0xff] %vm584_vm1, %v523_v53  ;;  %620 = vst.msk [vmem:[%s1374_s3 + $0x118] sm:$0xff] %vm584_vm1, %v555_v54  ;;  %v521_v59 = vmax.f32 %v269_v55, 0.0  ;;  %v553_v60 = vmax.f32 %v397_v56, 0.0  ;;  %v290_v61 = vadd.f32 %v732_v57, %v1049_v34  ;;  %v418_v62 = vadd.f32 %v764_v58, %v1049_v34 }
  0xd4   :  { %v281_v63 = vpop.f32.mrf.mxu0  ;;  %v409_v0 = vpop.f32.mrf.mxu1 }
  0xd5   :  { %586 = vst.msk [vmem:[%s1374_s3 + $0x8] sm:$0xff] %vm584_vm1, %v521_v59  ;;  %618 = vst.msk [vmem:[%s1374_s3 + $0x108] sm:$0xff] %vm584_vm1, %v553_v60  ;;  %v526_v1 = vmax.f32 %v290_v61, 0.0  ;;  %v558_v2 = vmax.f32 %v418_v62, 0.0  ;;  %v282_v3 = vadd.f32 %v1049_v34, %v281_v63  ;;  %v410_v4 = vadd.f32 %v1049_v34, %v409_v0 }
  0xd6   :  { %v733_v5 = vpop.f32.mrf.mxu0  ;;  %v765_v6 = vpop.f32.mrf.mxu1 }
  0xd7   :  { %591 = vst.msk [vmem:[%s1374_s3 + $0x30] sm:$0xff] %vm584_vm1, %v526_v1  ;;  %623 = vst.msk [vmem:[%s1374_s3 + $0x130] sm:$0xff] %vm584_vm1, %v558_v2  ;;  %v524_v7 = vmax.f32 %v282_v3, 0.0  ;;  %v556_v8 = vmax.f32 %v410_v4, 0.0  ;;  %v293_v9 = vadd.f32 %v733_v5, %v1049_v34  ;;  %v421_v10 = vadd.f32 %v765_v6, %v1049_v34 }
  0xd8   :  { %v284_v11 = vpop.f32.mrf.mxu0  ;;  %v412_v12 = vpop.f32.mrf.mxu1 }
  0xd9   :  { %589 = vst.msk [vmem:[%s1374_s3 + $0x20] sm:$0xff] %vm584_vm1, %v524_v7  ;;  %621 = vst.msk [vmem:[%s1374_s3 + $0x120] sm:$0xff] %vm584_vm1, %v556_v8  ;;  %v527_v13 = vmax.f32 %v293_v9, 0.0  ;;  %v559_v14 = vmax.f32 %v421_v10, 0.0  ;;  %v285_v15 = vadd.f32 %v1049_v34, %v284_v11  ;;  %v413_v16 = vadd.f32 %v1049_v34, %v412_v12 }
  0xda   :  { %v736_v17 = vpop.f32.mrf.mxu0  ;;  %v768_v18 = vpop.f32.mrf.mxu1 }
  0xdb   :  { %592 = vst.msk [vmem:[%s1374_s3 + $0x38] sm:$0xff] %vm584_vm1, %v527_v13  ;;  %624 = vst.msk [vmem:[%s1374_s3 + $0x138] sm:$0xff] %vm584_vm1, %v559_v14  ;;  %v525_v19 = vmax.f32 %v285_v15, 0.0  ;;  %v557_v20 = vmax.f32 %v413_v16, 0.0  ;;  %v306_v21 = vadd.f32 %v736_v17, %v1049_v34  ;;  %v434_v22 = vadd.f32 %v768_v18, %v1049_v34 }
  0xdc   :  { %v297_v23 = vpop.f32.mrf.mxu0  ;;  %v425_v24 = vpop.f32.mrf.mxu1 }
  0xdd   :  { %590 = vst.msk [vmem:[%s1374_s3 + $0x28] sm:$0xff] %vm584_vm1, %v525_v19  ;;  %622 = vst.msk [vmem:[%s1374_s3 + $0x128] sm:$0xff] %vm584_vm1, %v557_v20  ;;  %v530_v25 = vmax.f32 %v306_v21, 0.0  ;;  %v562_v26 = vmax.f32 %v434_v22, 0.0  ;;  %v298_v27 = vadd.f32 %v1049_v34, %v297_v23  ;;  %v426_v28 = vadd.f32 %v1049_v34, %v425_v24 }
  0xde   :  { %v737_v29 = vpop.f32.mrf.mxu0  ;;  %v769_v30 = vpop.f32.mrf.mxu1 }
  0xdf   :  { %595 = vst.msk [vmem:[%s1374_s3 + $0x50] sm:$0xff] %vm584_vm1, %v530_v25  ;;  %627 = vst.msk [vmem:[%s1374_s3 + $0x150] sm:$0xff] %vm584_vm1, %v562_v26  ;;  %v528_v31 = vmax.f32 %v298_v27, 0.0  ;;  %v560_v32 = vmax.f32 %v426_v28, 0.0  ;;  %v309_v33 = vadd.f32 %v737_v29, %v1049_v34  ;;  %v437_v35 = vadd.f32 %v769_v30, %v1049_v34 }
  0xe0   :  { %v300_v36 = vpop.f32.mrf.mxu0  ;;  %v428_v37 = vpop.f32.mrf.mxu1 }
  0xe1   :  { %593 = vst.msk [vmem:[%s1374_s3 + $0x40] sm:$0xff] %vm584_vm1, %v528_v31  ;;  %625 = vst.msk [vmem:[%s1374_s3 + $0x140] sm:$0xff] %vm584_vm1, %v560_v32  ;;  %v531_v38 = vmax.f32 %v309_v33, 0.0  ;;  %v563_v39 = vmax.f32 %v437_v35, 0.0  ;;  %v301_v40 = vadd.f32 %v1049_v34, %v300_v36  ;;  %v429_v41 = vadd.f32 %v1049_v34, %v428_v37 }
  0xe2   :  { %v740_v42 = vpop.f32.mrf.mxu0  ;;  %v772_v43 = vpop.f32.mrf.mxu1 }
  0xe3   :  { %596 = vst.msk [vmem:[%s1374_s3 + $0x58] sm:$0xff] %vm584_vm1, %v531_v38  ;;  %628 = vst.msk [vmem:[%s1374_s3 + $0x158] sm:$0xff] %vm584_vm1, %v563_v39  ;;  %v529_v44 = vmax.f32 %v301_v40, 0.0  ;;  %v561_v45 = vmax.f32 %v429_v41, 0.0  ;;  %v322_v46 = vadd.f32 %v740_v42, %v1049_v34  ;;  %v450_v47 = vadd.f32 %v772_v43, %v1049_v34 }
  0xe4   :  { %v313_v48 = vpop.f32.mrf.mxu0  ;;  %v441_v49 = vpop.f32.mrf.mxu1 }
  0xe5   :  { %594 = vst.msk [vmem:[%s1374_s3 + $0x48] sm:$0xff] %vm584_vm1, %v529_v44  ;;  %626 = vst.msk [vmem:[%s1374_s3 + $0x148] sm:$0xff] %vm584_vm1, %v561_v45  ;;  %v534_v50 = vmax.f32 %v322_v46, 0.0  ;;  %v566_v51 = vmax.f32 %v450_v47, 0.0  ;;  %v314_v52 = vadd.f32 %v1049_v34, %v313_v48  ;;  %v442_v53 = vadd.f32 %v1049_v34, %v441_v49 }
  0xe6   :  { %v741_v54 = vpop.f32.mrf.mxu0  ;;  %v773_v55 = vpop.f32.mrf.mxu1 }
  0xe7   :  { %599 = vst.msk [vmem:[%s1374_s3 + $0x70] sm:$0xff] %vm584_vm1, %v534_v50  ;;  %631 = vst.msk [vmem:[%s1374_s3 + $0x170] sm:$0xff] %vm584_vm1, %v566_v51  ;;  %v532_v56 = vmax.f32 %v314_v52, 0.0  ;;  %v564_v57 = vmax.f32 %v442_v53, 0.0  ;;  %v325_v58 = vadd.f32 %v741_v54, %v1049_v34  ;;  %v453_v59 = vadd.f32 %v773_v55, %v1049_v34 }
  0xe8   :  { %v316_v60 = vpop.f32.mrf.mxu0  ;;  %v444_v61 = vpop.f32.mrf.mxu1 }
  0xe9   :  { %597 = vst.msk [vmem:[%s1374_s3 + $0x60] sm:$0xff] %vm584_vm1, %v532_v56  ;;  %629 = vst.msk [vmem:[%s1374_s3 + $0x160] sm:$0xff] %vm584_vm1, %v564_v57  ;;  %v535_v62 = vmax.f32 %v325_v58, 0.0  ;;  %v567_v63 = vmax.f32 %v453_v59, 0.0  ;;  %v317_v0 = vadd.f32 %v1049_v34, %v316_v60  ;;  %v445_v1 = vadd.f32 %v1049_v34, %v444_v61 }
  0xea   :  { %v744_v2 = vpop.f32.mrf.mxu0  ;;  %v776_v3 = vpop.f32.mrf.mxu1 }
  0xeb   :  { %600 = vst.msk [vmem:[%s1374_s3 + $0x78] sm:$0xff] %vm584_vm1, %v535_v62  ;;  %632 = vst.msk [vmem:[%s1374_s3 + $0x178] sm:$0xff] %vm584_vm1, %v567_v63  ;;  %v533_v4 = vmax.f32 %v317_v0, 0.0  ;;  %v565_v5 = vmax.f32 %v445_v1, 0.0  ;;  %v338_v6 = vadd.f32 %v744_v2, %v1049_v34  ;;  %v466_v7 = vadd.f32 %v776_v3, %v1049_v34 }
  0xec   :  { %v329_v8 = vpop.f32.mrf.mxu0  ;;  %v457_v9 = vpop.f32.mrf.mxu1 }
  0xed   :  { %598 = vst.msk [vmem:[%s1374_s3 + $0x68] sm:$0xff] %vm584_vm1, %v533_v4  ;;  %630 = vst.msk [vmem:[%s1374_s3 + $0x168] sm:$0xff] %vm584_vm1, %v565_v5  ;;  %v538_v10 = vmax.f32 %v338_v6, 0.0  ;;  %v570_v11 = vmax.f32 %v466_v7, 0.0  ;;  %v330_v12 = vadd.f32 %v1049_v34, %v329_v8  ;;  %v458_v13 = vadd.f32 %v1049_v34, %v457_v9 }
  0xee   :  { %v745_v14 = vpop.f32.mrf.mxu0  ;;  %v777_v15 = vpop.f32.mrf.mxu1 }
  0xef   :  { %603 = vst.msk [vmem:[%s1374_s3 + $0x90] sm:$0xff] %vm584_vm1, %v538_v10  ;;  %635 = vst.msk [vmem:[%s1374_s3 + $0x190] sm:$0xff] %vm584_vm1, %v570_v11  ;;  %v536_v16 = vmax.f32 %v330_v12, 0.0  ;;  %v568_v17 = vmax.f32 %v458_v13, 0.0  ;;  %v341_v18 = vadd.f32 %v745_v14, %v1049_v34  ;;  %v469_v19 = vadd.f32 %v777_v15, %v1049_v34 }
  0xf0   :  { %v332_v20 = vpop.f32.mrf.mxu0  ;;  %v460_v21 = vpop.f32.mrf.mxu1 }
  0xf1   :  { %601 = vst.msk [vmem:[%s1374_s3 + $0x80] sm:$0xff] %vm584_vm1, %v536_v16  ;;  %633 = vst.msk [vmem:[%s1374_s3 + $0x180] sm:$0xff] %vm584_vm1, %v568_v17  ;;  %v539_v22 = vmax.f32 %v341_v18, 0.0  ;;  %v571_v23 = vmax.f32 %v469_v19, 0.0  ;;  %v333_v24 = vadd.f32 %v1049_v34, %v332_v20  ;;  %v461_v25 = vadd.f32 %v1049_v34, %v460_v21 }
  0xf2   :  { %v748_v26 = vpop.f32.mrf.mxu0  ;;  %v780_v27 = vpop.f32.mrf.mxu1 }
  0xf3   :  { %604 = vst.msk [vmem:[%s1374_s3 + $0x98] sm:$0xff] %vm584_vm1, %v539_v22  ;;  %636 = vst.msk [vmem:[%s1374_s3 + $0x198] sm:$0xff] %vm584_vm1, %v571_v23  ;;  %v537_v28 = vmax.f32 %v333_v24, 0.0  ;;  %v569_v29 = vmax.f32 %v461_v25, 0.0  ;;  %v354_v30 = vadd.f32 %v748_v26, %v1049_v34  ;;  %v482_v31 = vadd.f32 %v780_v27, %v1049_v34 }
  0xf4   :  { %v345_v32 = vpop.f32.mrf.mxu0  ;;  %v473_v33 = vpop.f32.mrf.mxu1 }
  0xf5   :  { %602 = vst.msk [vmem:[%s1374_s3 + $0x88] sm:$0xff] %vm584_vm1, %v537_v28  ;;  %634 = vst.msk [vmem:[%s1374_s3 + $0x188] sm:$0xff] %vm584_vm1, %v569_v29  ;;  %v542_v35 = vmax.f32 %v354_v30, 0.0  ;;  %v574_v36 = vmax.f32 %v482_v31, 0.0  ;;  %v346_v37 = vadd.f32 %v1049_v34, %v345_v32  ;;  %v474_v38 = vadd.f32 %v1049_v34, %v473_v33 }
  0xf6   :  { %v749_v39 = vpop.f32.mrf.mxu0  ;;  %v781_v40 = vpop.f32.mrf.mxu1 }
  0xf7   :  { %607 = vst.msk [vmem:[%s1374_s3 + $0xb0] sm:$0xff] %vm584_vm1, %v542_v35  ;;  %639 = vst.msk [vmem:[%s1374_s3 + $0x1b0] sm:$0xff] %vm584_vm1, %v574_v36  ;;  %v540_v41 = vmax.f32 %v346_v37, 0.0  ;;  %v572_v42 = vmax.f32 %v474_v38, 0.0  ;;  %v357_v43 = vadd.f32 %v749_v39, %v1049_v34  ;;  %v485_v44 = vadd.f32 %v781_v40, %v1049_v34 }
  0xf8   :  { %v348_v45 = vpop.f32.mrf.mxu0  ;;  %v476_v46 = vpop.f32.mrf.mxu1 }
  0xf9   :  { %605 = vst.msk [vmem:[%s1374_s3 + $0xa0] sm:$0xff] %vm584_vm1, %v540_v41  ;;  %637 = vst.msk [vmem:[%s1374_s3 + $0x1a0] sm:$0xff] %vm584_vm1, %v572_v42  ;;  %v543_v47 = vmax.f32 %v357_v43, 0.0  ;;  %v575_v48 = vmax.f32 %v485_v44, 0.0  ;;  %v349_v49 = vadd.f32 %v1049_v34, %v348_v45  ;;  %v477_v50 = vadd.f32 %v1049_v34, %v476_v46 }
  0xfa   :  { %v752_v51 = vpop.f32.mrf.mxu0  ;;  %v784_v52 = vpop.f32.mrf.mxu1 }
  0xfb   :  { %608 = vst.msk [vmem:[%s1374_s3 + $0xb8] sm:$0xff] %vm584_vm1, %v543_v47  ;;  %640 = vst.msk [vmem:[%s1374_s3 + $0x1b8] sm:$0xff] %vm584_vm1, %v575_v48  ;;  %v541_v53 = vmax.f32 %v349_v49, 0.0  ;;  %v573_v54 = vmax.f32 %v477_v50, 0.0  ;;  %v370_v55 = vadd.f32 %v752_v51, %v1049_v34  ;;  %v498_v56 = vadd.f32 %v784_v52, %v1049_v34 }
  0xfc   :  { %v361_v57 = vpop.f32.mrf.mxu0  ;;  %v489_v58 = vpop.f32.mrf.mxu1 }
  0xfd   :  { %606 = vst.msk [vmem:[%s1374_s3 + $0xa8] sm:$0xff] %vm584_vm1, %v541_v53  ;;  %638 = vst.msk [vmem:[%s1374_s3 + $0x1a8] sm:$0xff] %vm584_vm1, %v573_v54  ;;  %v546_v59 = vmax.f32 %v370_v55, 0.0  ;;  %v578_v60 = vmax.f32 %v498_v56, 0.0  ;;  %v362_v61 = vadd.f32 %v1049_v34, %v361_v57  ;;  %v490_v62 = vadd.f32 %v1049_v34, %v489_v58 }
  0xfe   :  { %v753_v63 = vpop.f32.mrf.mxu0  ;;  %v785_v0 = vpop.f32.mrf.mxu1 }
  0xff   :  { %611 = vst.msk [vmem:[%s1374_s3 + $0xd0] sm:$0xff] %vm584_vm1, %v546_v59  ;;  %643 = vst.msk [vmem:[%s1374_s3 + $0x1d0] sm:$0xff] %vm584_vm1, %v578_v60  ;;  %v544_v1 = vmax.f32 %v362_v61, 0.0  ;;  %v576_v2 = vmax.f32 %v490_v62, 0.0  ;;  %v373_v3 = vadd.f32 %v753_v63, %v1049_v34  ;;  %v501_v4 = vadd.f32 %v785_v0, %v1049_v34 }
 0x100   :  { %v364_v5 = vpop.f32.mrf.mxu0  ;;  %v492_v6 = vpop.f32.mrf.mxu1 }
 0x101   :  { %609 = vst.msk [vmem:[%s1374_s3 + $0xc0] sm:$0xff] %vm584_vm1, %v544_v1  ;;  %641 = vst.msk [vmem:[%s1374_s3 + $0x1c0] sm:$0xff] %vm584_vm1, %v576_v2  ;;  %v547_v7 = vmax.f32 %v373_v3, 0.0  ;;  %v579_v8 = vmax.f32 %v501_v4, 0.0  ;;  %v365_v9 = vadd.f32 %v1049_v34, %v364_v5  ;;  %v493_v10 = vadd.f32 %v1049_v34, %v492_v6 }
 0x102   :  { %v756_v11 = vpop.f32.mrf.mxu0  ;;  %v788_v12 = vpop.f32.mrf.mxu1 }
 0x103   :  { %612 = vst.msk [vmem:[%s1374_s3 + $0xd8] sm:$0xff] %vm584_vm1, %v547_v7  ;;  %644 = vst.msk [vmem:[%s1374_s3 + $0x1d8] sm:$0xff] %vm584_vm1, %v579_v8  ;;  %v545_v13 = vmax.f32 %v365_v9, 0.0  ;;  %v577_v14 = vmax.f32 %v493_v10, 0.0  ;;  %v386_v15 = vadd.f32 %v756_v11, %v1049_v34  ;;  %v514_v16 = vadd.f32 %v788_v12, %v1049_v34 }
 0x104   :  { %v377_v17 = vpop.f32.mrf.mxu0  ;;  %v505_v18 = vpop.f32.mrf.mxu1 }
 0x105   :  { %610 = vst.msk [vmem:[%s1374_s3 + $0xc8] sm:$0xff] %vm584_vm1, %v545_v13  ;;  %642 = vst.msk [vmem:[%s1374_s3 + $0x1c8] sm:$0xff] %vm584_vm1, %v577_v14  ;;  %v550_v19 = vmax.f32 %v386_v15, 0.0  ;;  %v582_v20 = vmax.f32 %v514_v16, 0.0  ;;  %v378_v21 = vadd.f32 %v1049_v34, %v377_v17  ;;  %v506_v22 = vadd.f32 %v1049_v34, %v505_v18 }
 0x106   :  { %v757_v23 = vpop.f32.mrf.mxu0  ;;  %v789_v24 = vpop.f32.mrf.mxu1 }
 0x107   :  { %615 = vst.msk [vmem:[%s1374_s3 + $0xf0] sm:$0xff] %vm584_vm1, %v550_v19  ;;  %647 = vst.msk [vmem:[%s1374_s3 + $0x1f0] sm:$0xff] %vm584_vm1, %v582_v20  ;;  %v548_v25 = vmax.f32 %v378_v21, 0.0  ;;  %v580_v26 = vmax.f32 %v506_v22, 0.0  ;;  %v389_v27 = vadd.f32 %v757_v23, %v1049_v34  ;;  %v517_v28 = vadd.f32 %v789_v24, %v1049_v34 }
 0x108   :  { %v380_v29 = vpop.f32.mrf.mxu0  ;;  %v508_v30 = vpop.f32.mrf.mxu1 }
 0x109   :  { %613 = vst.msk [vmem:[%s1374_s3 + $0xe0] sm:$0xff] %vm584_vm1, %v548_v25  ;;  %645 = vst.msk [vmem:[%s1374_s3 + $0x1e0] sm:$0xff] %vm584_vm1, %v580_v26  ;;  %v551_v31 = vmax.f32 %v389_v27, 0.0  ;;  %v583_v32 = vmax.f32 %v517_v28, 0.0  ;;  %v381_v33 = vadd.f32 %v1049_v34, %v380_v29  ;;  %v509_v35 = vadd.f32 %v1049_v34, %v508_v30 }
 0x10b   :  { %616 = vst.msk [vmem:[%s1374_s3 + $0xf8] sm:$0xff] %vm584_vm1, %v551_v31  ;;  %648 = vst.msk [vmem:[%s1374_s3 + $0x1f8] sm:$0xff] %vm584_vm1, %v583_v32  ;;  %v549_v36 = vmax.f32 %v381_v33, 0.0  ;;  %v581_v37 = vmax.f32 %v509_v35, 0.0 }
 0x10d   :  { %614 = vst.msk [vmem:[%s1374_s3 + $0xe8] sm:$0xff] %vm584_vm1, %v549_v36  ;;  %646 = vst.msk [vmem:[%s1374_s3 + $0x1e8] sm:$0xff] %vm584_vm1, %v581_v37 }

// kernel: target_model_forward.14
= control target key start
LH: loop header
LB: loop body
LE: loop exit
PB: predicated region body
PF: predicated region fallthrough
CT: control target
= control target key end

     0   :  { %s1273_s12 = smov 0   ;;  %s1855_s0 = inlined_call_operand.vmem [shape: f32[512,32], index: 0, kind: input, shape index: {}]   ;;  %s1856_s1 = inlined_call_operand.vmem [shape: bf16[2,32,32], index: 1, kind: input, shape index: {}]   ;;  %s1857_s2 = inlined_call_operand.vmem [shape: f32[2,1,32], index: 2, kind: input, shape index: {}]   ;;  %s1858_s3 = inlined_call_operand.vmem [shape: f32[2,512,32], index: 3, kind: output, shape index: {}]  }
   0x1 LB: > { %s1080_s13 = sadd.s32 4294967295, %s1251_s12   ;;  %p1084_p0 = scmp.ge.s32.totalorder %s1251_s12, 1  ;;  %s1251_s12 = sphi %s1273_s12, %s13_s12  }
   0x2   : > { %p145_p1 = scmp.lt.s32.totalorder %s1251_s12, 3 }
   0x4   : > { %p146_p2 = pnand %p1084_p0, %p145_p1 }
   0x5   : > { %p172_p3 = scmp.lt.s32.totalorder (!%p146_p2), %s1080_s13, 1  ;;  %p1089_p4 = scmp.ne.s32.totalorder (!%p146_p2), %s1080_s13, 0 }
   0x6   : > { %149 = sbr.rel (%p146_p2) target bundleno = 320 (0x140), region = 32 }
   0xb   : > { %s1281_s14 = scalar_select %p172_p3, %s1080_s13, 1 }
   0xc   : > { %189 = sbr.rel (%p1089_p4) target bundleno = 50 (0x32), region = 36 }
   0xd   : > { %s1127_s15 = sshll.u32 %s1281_s14, 4  ;;  %s179_s18 = scalar_lea.vmem %s1857_s2, %s1281_s14 }
   0xe   : > { %s1291_s21 = scalar_lea.vmem %s1856_s1, %s1127_s15  ;;  %s1128_s22 = sshll.u32 %s1281_s14, 9 }
   0xf   : > { %s1297_s25 = scalar_lea.vmem %s1858_s3, %s1128_s22 }
  0x11   : > { %v190_v0 = vld [vmem:[%s1855_s0] sm:$0xff]  ;;  %vm254_vm0 = vcmask 261120   ;;  %v191_v1 = vld [vmem:[%s1855_s0 + $0x8] sm:$0xff]  ;;  %v192_v2 = vld [vmem:[%s1855_s0 + $0x10] sm:$0xff] }
  0x12   : > { %255 = vst.msk [vmem:[#allocation2] sm:$0xff] %vm254_vm0, %v190_v0  ;;  %256 = vst.msk [vmem:[#allocation2 + $0x8] sm:$0xff] %vm254_vm0, %v191_v1  ;;  %v193_v3 = vld [vmem:[%s1855_s0 + $0x18] sm:$0xff]  ;;  %v194_v4 = vld [vmem:[%s1855_s0 + $0x20] sm:$0xff] }
  0x13   : > { %257 = vst.msk [vmem:[#allocation2 + $0x10] sm:$0xff] %vm254_vm0, %v192_v2  ;;  %v195_v5 = vld [vmem:[%s1855_s0 + $0x28] sm:$0xff]  ;;  %258 = vst.msk [vmem:[#allocation2 + $0x18] sm:$0xff] %vm254_vm0, %v193_v3  ;;  %v196_v6 = vld [vmem:[%s1855_s0 + $0x30] sm:$0xff] }
  0x14   : > { %259 = vst.msk [vmem:[#allocation2 + $0x20] sm:$0xff] %vm254_vm0, %v194_v4  ;;  %260 = vst.msk [vmem:[#allocation2 + $0x28] sm:$0xff] %vm254_vm0, %v195_v5  ;;  %v197_v7 = vld [vmem:[%s1855_s0 + $0x38] sm:$0xff]  ;;  %v198_v8 = vld [vmem:[%s1855_s0 + $0x40] sm:$0xff] }
  0x15   : > { %261 = vst.msk [vmem:[#allocation2 + $0x30] sm:$0xff] %vm254_vm0, %v196_v6  ;;  %262 = vst.msk [vmem:[#allocation2 + $0x38] sm:$0xff] %vm254_vm0, %v197_v7  ;;  %v199_v9 = vld [vmem:[%s1855_s0 + $0x48] sm:$0xff]  ;;  %v200_v10 = vld [vmem:[%s1855_s0 + $0x50] sm:$0xff] }
  0x16   : > { %263 = vst.msk [vmem:[#allocation2 + $0x40] sm:$0xff] %vm254_vm0, %v198_v8  ;;  %v201_v11 = vld [vmem:[%s1855_s0 + $0x58] sm:$0xff]  ;;  %264 = vst.msk [vmem:[#allocation2 + $0x48] sm:$0xff] %vm254_vm0, %v199_v9  ;;  %v202_v12 = vld [vmem:[%s1855_s0 + $0x60] sm:$0xff] }
  0x17   : > { %265 = vst.msk [vmem:[#allocation2 + $0x50] sm:$0xff] %vm254_vm0, %v200_v10  ;;  %266 = vst.msk [vmem:[#allocation2 + $0x58] sm:$0xff] %vm254_vm0, %v201_v11  ;;  %v203_v13 = vld [vmem:[%s1855_s0 + $0x68] sm:$0xff]  ;;  %v204_v14 = vld [vmem:[%s1855_s0 + $0x70] sm:$0xff] }
  0x18   : > { %267 = vst.msk [vmem:[#allocation2 + $0x60] sm:$0xff] %vm254_vm0, %v202_v12  ;;  %268 = vst.msk [vmem:[#allocation2 + $0x68] sm:$0xff] %vm254_vm0, %v203_v13  ;;  %v205_v15 = vld [vmem:[%s1855_s0 + $0x78] sm:$0xff]  ;;  %v206_v16 = vld [vmem:[%s1855_s0 + $0x80] sm:$0xff] }
  0x19   : > { %269 = vst.msk [vmem:[#allocation2 + $0x70] sm:$0xff] %vm254_vm0, %v204_v14  ;;  %v207_v17 = vld [vmem:[%s1855_s0 + $0x88] sm:$0xff]  ;;  %270 = vst.msk [vmem:[#allocation2 + $0x78] sm:$0xff] %vm254_vm0, %v205_v15  ;;  %v208_v18 = vld [vmem:[%s1855_s0 + $0x90] sm:$0xff] }
  0x1a   : > { %271 = vst.msk [vmem:[#allocation2 + $0x80] sm:$0xff] %vm254_vm0, %v206_v16  ;;  %272 = vst.msk [vmem:[#allocation2 + $0x88] sm:$0xff] %vm254_vm0, %v207_v17  ;;  %v209_v19 = vld [vmem:[%s1855_s0 + $0x98] sm:$0xff]  ;;  %v210_v20 = vld [vmem:[%s1855_s0 + $0xa0] sm:$0xff] }
  0x1b   : > { %273 = vst.msk [vmem:[#allocation2 + $0x90] sm:$0xff] %vm254_vm0, %v208_v18  ;;  %274 = vst.msk [vmem:[#allocation2 + $0x98] sm:$0xff] %vm254_vm0, %v209_v19  ;;  %v211_v21 = vld [vmem:[%s1855_s0 + $0xa8] sm:$0xff]  ;;  %v212_v22 = vld [vmem:[%s1855_s0 + $0xb0] sm:$0xff] }
  0x1c   : > { %275 = vst.msk [vmem:[#allocation2 + $0xa0] sm:$0xff] %vm254_vm0, %v210_v20  ;;  %v213_v23 = vld [vmem:[%s1855_s0 + $0xb8] sm:$0xff]  ;;  %276 = vst.msk [vmem:[#allocation2 + $0xa8] sm:$0xff] %vm254_vm0, %v211_v21  ;;  %v214_v24 = vld [vmem:[%s1855_s0 + $0xc0] sm:$0xff] }
  0x1d   : > { %277 = vst.msk [vmem:[#allocation2 + $0xb0] sm:$0xff] %vm254_vm0, %v212_v22  ;;  %278 = vst.msk [vmem:[#allocation2 + $0xb8] sm:$0xff] %vm254_vm0, %v213_v23  ;;  %v215_v25 = vld [vmem:[%s1855_s0 + $0xc8] sm:$0xff]  ;;  %v216_v26 = vld [vmem:[%s1855_s0 + $0xd0] sm:$0xff] }
  0x1e   : > { %279 = vst.msk [vmem:[#allocation2 + $0xc0] sm:$0xff] %vm254_vm0, %v214_v24  ;;  %280 = vst.msk [vmem:[#allocation2 + $0xc8] sm:$0xff] %vm254_vm0, %v215_v25  ;;  %v217_v27 = vld [vmem:[%s1855_s0 + $0xd8] sm:$0xff]  ;;  %v218_v28 = vld [vmem:[%s1855_s0 + $0xe0] sm:$0xff] }
  0x1f   : > { %281 = vst.msk [vmem:[#allocation2 + $0xd0] sm:$0xff] %vm254_vm0, %v216_v26  ;;  %v219_v29 = vld [vmem:[%s1855_s0 + $0xe8] sm:$0xff]  ;;  %282 = vst.msk [vmem:[#allocation2 + $0xd8] sm:$0xff] %vm254_vm0, %v217_v27  ;;  %v220_v30 = vld [vmem:[%s1855_s0 + $0xf0] sm:$0xff] }
  0x20   : > { %283 = vst.msk [vmem:[#allocation2 + $0xe0] sm:$0xff] %vm254_vm0, %v218_v28  ;;  %284 = vst.msk [vmem:[#allocation2 + $0xe8] sm:$0xff] %vm254_vm0, %v219_v29  ;;  %v221_v31 = vld [vmem:[%s1855_s0 + $0xf8] sm:$0xff]  ;;  %v222_v32 = vld [vmem:[%s1855_s0 + $0x100] sm:$0xff] }
  0x21   : > { %285 = vst.msk [vmem:[#allocation2 + $0xf0] sm:$0xff] %vm254_vm0, %v220_v30  ;;  %286 = vst.msk [vmem:[#allocation2 + $0xf8] sm:$0xff] %vm254_vm0, %v221_v31  ;;  %v223_v33 = vld [vmem:[%s1855_s0 + $0x108] sm:$0xff]  ;;  %v224_v34 = vld [vmem:[%s1855_s0 + $0x110] sm:$0xff] }
  0x22   : > { %287 = vst.msk [vmem:[#allocation2 + $0x100] sm:$0xff] %vm254_vm0, %v222_v32  ;;  %v225_v35 = vld [vmem:[%s1855_s0 + $0x118] sm:$0xff]  ;;  %288 = vst.msk [vmem:[#allocation2 + $0x108] sm:$0xff] %vm254_vm0, %v223_v33  ;;  %v226_v36 = vld [vmem:[%s1855_s0 + $0x120] sm:$0xff] }
  0x23   : > { %289 = vst.msk [vmem:[#allocation2 + $0x110] sm:$0xff] %vm254_vm0, %v224_v34  ;;  %290 = vst.msk [vmem:[#allocation2 + $0x118] sm:$0xff] %vm254_vm0, %v225_v35  ;;  %v227_v37 = vld [vmem:[%s1855_s0 + $0x128] sm:$0xff]  ;;  %v228_v38 = vld [vmem:[%s1855_s0 + $0x130] sm:$0xff] }
  0x24   : > { %291 = vst.msk [vmem:[#allocation2 + $0x120] sm:$0xff] %vm254_vm0, %v226_v36  ;;  %292 = vst.msk [vmem:[#allocation2 + $0x128] sm:$0xff] %vm254_vm0, %v227_v37  ;;  %v229_v39 = vld [vmem:[%s1855_s0 + $0x138] sm:$0xff]  ;;  %v230_v40 = vld [vmem:[%s1855_s0 + $0x140] sm:$0xff] }
  0x25   : > { %293 = vst.msk [vmem:[#allocation2 + $0x130] sm:$0xff] %vm254_vm0, %v228_v38  ;;  %v231_v41 = vld [vmem:[%s1855_s0 + $0x148] sm:$0xff]  ;;  %294 = vst.msk [vmem:[#allocation2 + $0x138] sm:$0xff] %vm254_vm0, %v229_v39  ;;  %v232_v42 = vld [vmem:[%s1855_s0 + $0x150] sm:$0xff] }
  0x26   : > { %295 = vst.msk [vmem:[#allocation2 + $0x140] sm:$0xff] %vm254_vm0, %v230_v40  ;;  %296 = vst.msk [vmem:[#allocation2 + $0x148] sm:$0xff] %vm254_vm0, %v231_v41  ;;  %v233_v43 = vld [vmem:[%s1855_s0 + $0x158] sm:$0xff]  ;;  %v234_v44 = vld [vmem:[%s1855_s0 + $0x160] sm:$0xff] }
  0x27   : > { %297 = vst.msk [vmem:[#allocation2 + $0x150] sm:$0xff] %vm254_vm0, %v232_v42  ;;  %298 = vst.msk [vmem:[#allocation2 + $0x158] sm:$0xff] %vm254_vm0, %v233_v43  ;;  %v235_v45 = vld [vmem:[%s1855_s0 + $0x168] sm:$0xff]  ;;  %v236_v46 = vld [vmem:[%s1855_s0 + $0x170] sm:$0xff] }
  0x28   : > { %299 = vst.msk [vmem:[#allocation2 + $0x160] sm:$0xff] %vm254_vm0, %v234_v44  ;;  %v237_v47 = vld [vmem:[%s1855_s0 + $0x178] sm:$0xff]  ;;  %300 = vst.msk [vmem:[#allocation2 + $0x168] sm:$0xff] %vm254_vm0, %v235_v45  ;;  %v238_v48 = vld [vmem:[%s1855_s0 + $0x180] sm:$0xff] }
  0x29   : > { %301 = vst.msk [vmem:[#allocation2 + $0x170] sm:$0xff] %vm254_vm0, %v236_v46  ;;  %302 = vst.msk [vmem:[#allocation2 + $0x178] sm:$0xff] %vm254_vm0, %v237_v47  ;;  %v239_v49 = vld [vmem:[%s1855_s0 + $0x188] sm:$0xff]  ;;  %v240_v50 = vld [vmem:[%s1855_s0 + $0x190] sm:$0xff] }
  0x2a   : > { %303 = vst.msk [vmem:[#allocation2 + $0x180] sm:$0xff] %vm254_vm0, %v238_v48  ;;  %304 = vst.msk [vmem:[#allocation2 + $0x188] sm:$0xff] %vm254_vm0, %v239_v49  ;;  %v241_v51 = vld [vmem:[%s1855_s0 + $0x198] sm:$0xff]  ;;  %v242_v52 = vld [vmem:[%s1855_s0 + $0x1a0] sm:$0xff] }
  0x2b   : > { %305 = vst.msk [vmem:[#allocation2 + $0x190] sm:$0xff] %vm254_vm0, %v240_v50  ;;  %v243_v53 = vld [vmem:[%s1855_s0 + $0x1a8] sm:$0xff]  ;;  %306 = vst.msk [vmem:[#allocation2 + $0x198] sm:$0xff] %vm254_vm0, %v241_v51  ;;  %v244_v54 = vld [vmem:[%s1855_s0 + $0x1b0] sm:$0xff] }
  0x2c   : > { %307 = vst.msk [vmem:[#allocation2 + $0x1a0] sm:$0xff] %vm254_vm0, %v242_v52  ;;  %308 = vst.msk [vmem:[#allocation2 + $0x1a8] sm:$0xff] %vm254_vm0, %v243_v53  ;;  %v245_v55 = vld [vmem:[%s1855_s0 + $0x1b8] sm:$0xff]  ;;  %v246_v56 = vld [vmem:[%s1855_s0 + $0x1c0] sm:$0xff] }
  0x2d   : > { %309 = vst.msk [vmem:[#allocation2 + $0x1b0] sm:$0xff] %vm254_vm0, %v244_v54  ;;  %310 = vst.msk [vmem:[#allocation2 + $0x1b8] sm:$0xff] %vm254_vm0, %v245_v55  ;;  %v247_v57 = vld [vmem:[%s1855_s0 + $0x1c8] sm:$0xff]  ;;  %v248_v58 = vld [vmem:[%s1855_s0 + $0x1d0] sm:$0xff] }
  0x2e   : > { %311 = vst.msk [vmem:[#allocation2 + $0x1c0] sm:$0xff] %vm254_vm0, %v246_v56  ;;  %v249_v59 = vld [vmem:[%s1855_s0 + $0x1d8] sm:$0xff]  ;;  %312 = vst.msk [vmem:[#allocation2 + $0x1c8] sm:$0xff] %vm254_vm0, %v247_v57  ;;  %v250_v60 = vld [vmem:[%s1855_s0 + $0x1e0] sm:$0xff] }
  0x2f   : > { %313 = vst.msk [vmem:[#allocation2 + $0x1d0] sm:$0xff] %vm254_vm0, %v248_v58  ;;  %314 = vst.msk [vmem:[#allocation2 + $0x1d8] sm:$0xff] %vm254_vm0, %v249_v59  ;;  %v251_v61 = vld [vmem:[%s1855_s0 + $0x1e8] sm:$0xff]  ;;  %v252_v62 = vld [vmem:[%s1855_s0 + $0x1f0] sm:$0xff] }
  0x30   : > { %315 = vst.msk [vmem:[#allocation2 + $0x1e0] sm:$0xff] %vm254_vm0, %v250_v60  ;;  %316 = vst.msk [vmem:[#allocation2 + $0x1e8] sm:$0xff] %vm254_vm0, %v251_v61  ;;  %v253_v63 = vld [vmem:[%s1855_s0 + $0x1f8] sm:$0xff] }
  0x31   : > { %317 = vst.msk [vmem:[#allocation2 + $0x1f0] sm:$0xff] %vm254_vm0, %v252_v62  ;;  %318 = vst.msk [vmem:[#allocation2 + $0x1f8] sm:$0xff] %vm254_vm0, %v253_v63 }
  0x32 PF: > { %v1243_v0 = vld [vmem:[%s1291_s21 + $0x8] sm:$0xff]   ;;  %v1244_v1 = vld [vmem:[%s1291_s21] sm:$0xff]   ;;  %vm438_vm1 = vcmask 261120   ;;  %v321_v7 = vld [vmem:[#allocation2 + $0x10] sm:$0xff] }
  0x33   : > { %1163 = vmatprep.subr.bf16.mxu0 %v1243_v0  ;;  %1231 = vmatprep.subr.bf16.mxu1 %v1243_v0  ;;  %v319_v2 = vld [vmem:[#allocation2] sm:$0xff]  ;;  %v320_v3 = vld [vmem:[#allocation2 + $0x8] sm:$0xff]  ;;  %v322_v8 = vld [vmem:[#allocation2 + $0x18] sm:$0xff] }
  0x34   : > { %v351_v4 = vld [vmem:[#allocation2 + $0x100] sm:$0xff]  ;;  %1164 = vmatpush3.bf16.msra.mxu0 %v1243_v0  ;;  %1233 = vmatpush3.bf16.msra.mxu1 %v1243_v0  ;;  %v383_v5 = vpack.c.bf16 %v320_v3, %v319_v2  ;;  %v352_v6 = vld [vmem:[#allocation2 + $0x108] sm:$0xff]  ;;  %v353_v10 = vld [vmem:[#allocation2 + $0x110] sm:$0xff]  ;;  %v384_v16 = vpack.c.bf16 %v322_v8, %v321_v7 }
  0x35   : > { %1165 = vmatprep.subr.bf16.mxu0 %v1244_v1  ;;  %1232 = vmatprep.subr.bf16.mxu1 %v1244_v1  ;;  %v399_v9 = vpack.c.bf16 %v352_v6, %v351_v4  ;;  %v354_v11 = vld [vmem:[#allocation2 + $0x118] sm:$0xff]  ;;  %v323_v12 = vld [vmem:[#allocation2 + $0x20] sm:$0xff]  ;;  %v324_v13 = vld [vmem:[#allocation2 + $0x28] sm:$0xff] }
  0x36   : > { %1167 = vmatprep.mubr.msk.bf16.mxu0 %vm438_vm1, %v383_v5  ;;  %v355_v14 = vld [vmem:[#allocation2 + $0x120] sm:$0xff]  ;;  %v356_v15 = vld [vmem:[#allocation2 + $0x128] sm:$0xff]  ;;  %v400_v17 = vpack.c.bf16 %v354_v11, %v353_v10  ;;  %v385_v18 = vpack.c.bf16 %v324_v13, %v323_v12  ;;  %v325_v20 = vld [vmem:[#allocation2 + $0x30] sm:$0xff] }
  0x37   : > { %1199 = vmatprep.mubr.msk.bf16.mxu1 %vm438_vm1, %v399_v9  ;;  %v401_v19 = vpack.c.bf16 %v356_v15, %v355_v14  ;;  %v326_v21 = vld [vmem:[#allocation2 + $0x38] sm:$0xff]  ;;  %v357_v22 = vld [vmem:[#allocation2 + $0x130] sm:$0xff]  ;;  %v327_v24 = vld [vmem:[#allocation2 + $0x40] sm:$0xff] }
  0x38   : > { %1166 = vmatpush3.bf16.msra.mxu0 %v1244_v1  ;;  %1234 = vmatpush3.bf16.msra.mxu1 %v1244_v1  ;;  %v358_v23 = vld [vmem:[#allocation2 + $0x138] sm:$0xff]  ;;  %v328_v25 = vld [vmem:[#allocation2 + $0x48] sm:$0xff]  ;;  %v359_v26 = vld [vmem:[#allocation2 + $0x140] sm:$0xff]  ;;  %v386_v28 = vpack.c.bf16 %v326_v21, %v325_v20 }
  0x39   : > { %v360_v27 = vld [vmem:[#allocation2 + $0x148] sm:$0xff]  ;;  %v402_v29 = vpack.c.bf16 %v358_v23, %v357_v22  ;;  %v387_v30 = vpack.c.bf16 %v328_v25, %v327_v24  ;;  %v329_v32 = vld [vmem:[#allocation2 + $0x50] sm:$0xff]  ;;  %v330_v33 = vld [vmem:[#allocation2 + $0x58] sm:$0xff] }
  0x3a   : > { %v403_v31 = vpack.c.bf16 %v360_v27, %v359_v26  ;;  %v361_v34 = vld [vmem:[#allocation2 + $0x150] sm:$0xff]  ;;  %v362_v35 = vld [vmem:[#allocation2 + $0x158] sm:$0xff]  ;;  %v331_v36 = vld [vmem:[#allocation2 + $0x60] sm:$0xff]  ;;  %v388_v40 = vpack.c.bf16 %v330_v33, %v329_v32 }
  0x3b   : > { %1168 = vmatmul.mubr.msk.bf16.vlgmr.msra.gmra.mxu0 %vm438_vm1, %v384_v16  ;;  %1200 = vmatmul.mubr.msk.bf16.vlgmr.msra.gmra.mxu1 %vm438_vm1, %v400_v17  ;;  %v332_v37 = vld [vmem:[#allocation2 + $0x68] sm:$0xff]  ;;  %v363_v38 = vld [vmem:[#allocation2 + $0x160] sm:$0xff]  ;;  %v404_v41 = vpack.c.bf16 %v362_v35, %v361_v34  ;;  %v333_v44 = vld [vmem:[#allocation2 + $0x70] sm:$0xff] }
  0x3c   : > { %1171 = vmatprep.mubr.msk.bf16.mxu0 %vm438_vm1, %v385_v18  ;;  %1203 = vmatprep.mubr.msk.bf16.mxu1 %vm438_vm1, %v401_v19  ;;  %v364_v39 = vld [vmem:[#allocation2 + $0x168] sm:$0xff]  ;;  %v389_v42 = vpack.c.bf16 %v332_v37, %v331_v36  ;;  %v334_v45 = vld [vmem:[#allocation2 + $0x78] sm:$0xff]  ;;  %v365_v46 = vld [vmem:[#allocation2 + $0x170] sm:$0xff] }
  0x3d   : > { %v405_v43 = vpack.c.bf16 %v364_v39, %v363_v38  ;;  %v366_v47 = vld [vmem:[#allocation2 + $0x178] sm:$0xff]  ;;  %v335_v48 = vld [vmem:[#allocation2 + $0x80] sm:$0xff]  ;;  %v336_v49 = vld [vmem:[#allocation2 + $0x88] sm:$0xff]  ;;  %v390_v52 = vpack.c.bf16 %v334_v45, %v333_v44 }
  0x3e   : > { %v367_v50 = vld [vmem:[#allocation2 + $0x180] sm:$0xff]  ;;  %v368_v51 = vld [vmem:[#allocation2 + $0x188] sm:$0xff]  ;;  %v406_v53 = vpack.c.bf16 %v366_v47, %v365_v46  ;;  %v391_v54 = vpack.c.bf16 %v336_v49, %v335_v48  ;;  %v337_v56 = vld [vmem:[#allocation2 + $0x90] sm:$0xff] }
  0x3f   : > { %v407_v55 = vpack.c.bf16 %v368_v51, %v367_v50  ;;  %v338_v57 = vld [vmem:[#allocation2 + $0x98] sm:$0xff]  ;;  %v369_v58 = vld [vmem:[#allocation2 + $0x190] sm:$0xff]  ;;  %v339_v60 = vld [vmem:[#allocation2 + $0xa0] sm:$0xff] }
  0x40   : > { %v370_v59 = vld [vmem:[#allocation2 + $0x198] sm:$0xff]  ;;  %v340_v61 = vld [vmem:[#allocation2 + $0xa8] sm:$0xff]  ;;  %v371_v62 = vld [vmem:[#allocation2 + $0x1a0] sm:$0xff]  ;;  %v392_v0 = vpack.c.bf16 %v338_v57, %v337_v56 }
  0x41   : > { %v372_v63 = vld [vmem:[#allocation2 + $0x1a8] sm:$0xff]  ;;  %v408_v1 = vpack.c.bf16 %v370_v59, %v369_v58  ;;  %v393_v2 = vpack.c.bf16 %v340_v61, %v339_v60  ;;  %v341_v4 = vld [vmem:[#allocation2 + $0xb0] sm:$0xff]  ;;  %v342_v5 = vld [vmem:[#allocation2 + $0xb8] sm:$0xff] }
  0x42   : > { %v409_v3 = vpack.c.bf16 %v372_v63, %v371_v62  ;;  %v373_v6 = vld [vmem:[#allocation2 + $0x1b0] sm:$0xff]  ;;  %v374_v7 = vld [vmem:[#allocation2 + $0x1b8] sm:$0xff]  ;;  %v343_v8 = vld [vmem:[#allocation2 + $0xc0] sm:$0xff]  ;;  %v394_v12 = vpack.c.bf16 %v342_v5, %v341_v4 }
  0x43   : > { %1172 = vmatmul.mubr.msk.bf16.gmra.mxu0 %vm438_vm1, %v386_v28  ;;  %1204 = vmatmul.mubr.msk.bf16.gmra.mxu1 %vm438_vm1, %v402_v29  ;;  %v344_v9 = vld [vmem:[#allocation2 + $0xc8] sm:$0xff]  ;;  %v375_v10 = vld [vmem:[#allocation2 + $0x1c0] sm:$0xff]  ;;  %v410_v13 = vpack.c.bf16 %v374_v7, %v373_v6  ;;  %v345_v16 = vld [vmem:[#allocation2 + $0xd0] sm:$0xff] }
  0x44   : > { %1175 = vmatprep.mubr.msk.bf16.mxu0 %vm438_vm1, %v387_v30  ;;  %1207 = vmatprep.mubr.msk.bf16.mxu1 %vm438_vm1, %v403_v31  ;;  %v376_v11 = vld [vmem:[#allocation2 + $0x1c8] sm:$0xff]  ;;  %v395_v14 = vpack.c.bf16 %v344_v9, %v343_v8  ;;  %v346_v17 = vld [vmem:[#allocation2 + $0xd8] sm:$0xff]  ;;  %v377_v18 = vld [vmem:[#allocation2 + $0x1d0] sm:$0xff] }
  0x45   : > { %v411_v15 = vpack.c.bf16 %v376_v11, %v375_v10  ;;  %v378_v19 = vld [vmem:[#allocation2 + $0x1d8] sm:$0xff]  ;;  %v347_v20 = vld [vmem:[#allocation2 + $0xe0] sm:$0xff]  ;;  %v348_v21 = vld [vmem:[#allocation2 + $0xe8] sm:$0xff]  ;;  %v396_v24 = vpack.c.bf16 %v346_v17, %v345_v16 }
  0x46   : > { %v379_v22 = vld [vmem:[#allocation2 + $0x1e0] sm:$0xff]  ;;  %v380_v23 = vld [vmem:[#allocation2 + $0x1e8] sm:$0xff]  ;;  %v412_v25 = vpack.c.bf16 %v378_v19, %v377_v18  ;;  %v397_v26 = vpack.c.bf16 %v348_v21, %v347_v20  ;;  %v349_v28 = vld [vmem:[#allocation2 + $0xf0] sm:$0xff] }
  0x47   : > { %v413_v27 = vpack.c.bf16 %v380_v23, %v379_v22  ;;  %v350_v29 = vld [vmem:[#allocation2 + $0xf8] sm:$0xff]  ;;  %v381_v30 = vld [vmem:[#allocation2 + $0x1f0] sm:$0xff]  ;;  %v1594_v34 = vld [vmem:[%s179_s18] ss:$0 sm:$0xff] }
  0x48   : > { %v382_v31 = vld [vmem:[#allocation2 + $0x1f8] sm:$0xff]  ;;  %v398_v32 = vpack.c.bf16 %v350_v29, %v349_v28 }
  0x49   : > { %v414_v33 = vpack.c.bf16 %v382_v31, %v381_v30 }
  0x4b   : > { %1176 = vmatmul.mubr.msk.bf16.gmra.mxu0 %vm438_vm1, %v388_v40  ;;  %1208 = vmatmul.mubr.msk.bf16.gmra.mxu1 %vm438_vm1, %v404_v41 }
  0x4c   : > { %1179 = vmatprep.mubr.msk.bf16.mxu0 %vm438_vm1, %v389_v42  ;;  %1211 = vmatprep.mubr.msk.bf16.mxu1 %vm438_vm1, %v405_v43 }
  0x53   : > { %1180 = vmatmul.mubr.msk.bf16.gmra.mxu0 %vm438_vm1, %v390_v52  ;;  %1212 = vmatmul.mubr.msk.bf16.gmra.mxu1 %vm438_vm1, %v406_v53 }
  0x54   : > { %1183 = vmatprep.mubr.msk.bf16.mxu0 %vm438_vm1, %v391_v54  ;;  %1215 = vmatprep.mubr.msk.bf16.mxu1 %vm438_vm1, %v407_v55 }
  0x5b   : > { %1184 = vmatmul.mubr.msk.bf16.gmra.mxu0 %vm438_vm1, %v392_v0  ;;  %1216 = vmatmul.mubr.msk.bf16.gmra.mxu1 %vm438_vm1, %v408_v1 }
  0x5c   : > { %1187 = vmatprep.mubr.msk.bf16.mxu0 %vm438_vm1, %v393_v2  ;;  %1219 = vmatprep.mubr.msk.bf16.mxu1 %vm438_vm1, %v409_v3 }
  0x63   : > { %1188 = vmatmul.mubr.msk.bf16.gmra.mxu0 %vm438_vm1, %v394_v12  ;;  %1220 = vmatmul.mubr.msk.bf16.gmra.mxu1 %vm438_vm1, %v410_v13 }
  0x64   : > { %1191 = vmatprep.mubr.msk.bf16.mxu0 %vm438_vm1, %v395_v14  ;;  %1223 = vmatprep.mubr.msk.bf16.mxu1 %vm438_vm1, %v411_v15 }
  0x6b   : > { %1192 = vmatmul.mubr.msk.bf16.gmra.mxu0 %vm438_vm1, %v396_v24  ;;  %1224 = vmatmul.mubr.msk.bf16.gmra.mxu1 %vm438_vm1, %v412_v25 }
  0x6c   : > { %1195 = vmatprep.mubr.msk.bf16.mxu0 %vm438_vm1, %v397_v26  ;;  %1227 = vmatprep.mubr.msk.bf16.mxu1 %vm438_vm1, %v413_v27 }
  0x73   : > { %1196 = vmatmul.mubr.msk.bf16.gmra.mxu0 %vm438_vm1, %v398_v32  ;;  %1228 = vmatmul.mubr.msk.bf16.gmra.mxu1 %vm438_vm1, %v414_v33 }
  0xfb   : > { %v1169_v35 = vpop.f32.mrf.mxu0  ;;  %v1201_v36 = vpop.f32.mrf.mxu1 }
  0xfc   : > { %v578_v37 = vadd.f32 %v1169_v35, %v1594_v34  ;;  %v706_v38 = vadd.f32 %v1201_v36, %v1594_v34 }
  0xfd   : > { %v569_v39 = vpop.f32.mrf.mxu0  ;;  %v697_v40 = vpop.f32.mrf.mxu1 }
  0xfe   : > { %v826_v41 = vmax.f32 %v578_v37, 0.0  ;;  %v858_v42 = vmax.f32 %v706_v38, 0.0  ;;  %v570_v43 = vadd.f32 %v1594_v34, %v569_v39  ;;  %v698_v44 = vadd.f32 %v1594_v34, %v697_v40 }
  0xff   : > { %v1170_v45 = vpop.f32.mrf.mxu0  ;;  %v1202_v46 = vpop.f32.mrf.mxu1 }
 0x100   : > { %890 = vst.msk [vmem:[#allocation2 + $0x10] sm:$0xff] %vm438_vm1, %v826_v41  ;;  %954 = vst.msk [vmem:[%s1297_s25 + $0x10] sm:$0xff] %vm438_vm1, %v826_v41  ;;  %v824_v47 = vmax.f32 %v570_v43, 0.0  ;;  %v856_v48 = vmax.f32 %v698_v44, 0.0  ;;  %v581_v49 = vadd.f32 %v1170_v45, %v1594_v34  ;;  %v709_v50 = vadd.f32 %v1202_v46, %v1594_v34 }
 0x101   : > { %922 = vst.msk [vmem:[#allocation2 + $0x110] sm:$0xff] %vm438_vm1, %v858_v42  ;;  %986 = vst.msk [vmem:[%s1297_s25 + $0x110] sm:$0xff] %vm438_vm1, %v858_v42  ;;  %v572_v51 = vpop.f32.mrf.mxu0  ;;  %v700_v52 = vpop.f32.mrf.mxu1 }
 0x102   : > { %888 = vst.msk [vmem:[#allocation2] sm:$0xff] %vm438_vm1, %v824_v47  ;;  %952 = vst.msk [vmem:[%s1297_s25] sm:$0xff] %vm438_vm1, %v824_v47  ;;  %v827_v53 = vmax.f32 %v581_v49, 0.0  ;;  %v859_v54 = vmax.f32 %v709_v50, 0.0  ;;  %v573_v55 = vadd.f32 %v1594_v34, %v572_v51  ;;  %v701_v56 = vadd.f32 %v1594_v34, %v700_v52 }
 0x103   : > { %920 = vst.msk [vmem:[#allocation2 + $0x100] sm:$0xff] %vm438_vm1, %v856_v48  ;;  %984 = vst.msk [vmem:[%s1297_s25 + $0x100] sm:$0xff] %vm438_vm1, %v856_v48  ;;  %v1173_v57 = vpop.f32.mrf.mxu0  ;;  %v1205_v58 = vpop.f32.mrf.mxu1 }
 0x104   : > { %891 = vst.msk [vmem:[#allocation2 + $0x18] sm:$0xff] %vm438_vm1, %v827_v53  ;;  %955 = vst.msk [vmem:[%s1297_s25 + $0x18] sm:$0xff] %vm438_vm1, %v827_v53  ;;  %v825_v59 = vmax.f32 %v573_v55, 0.0  ;;  %v857_v60 = vmax.f32 %v701_v56, 0.0  ;;  %v594_v61 = vadd.f32 %v1173_v57, %v1594_v34  ;;  %v722_v62 = vadd.f32 %v1205_v58, %v1594_v34 }
 0x105   : > { %923 = vst.msk [vmem:[#allocation2 + $0x118] sm:$0xff] %vm438_vm1, %v859_v54  ;;  %987 = vst.msk [vmem:[%s1297_s25 + $0x118] sm:$0xff] %vm438_vm1, %v859_v54  ;;  %v585_v63 = vpop.f32.mrf.mxu0  ;;  %v713_v0 = vpop.f32.mrf.mxu1 }
 0x106   : > { %889 = vst.msk [vmem:[#allocation2 + $0x8] sm:$0xff] %vm438_vm1, %v825_v59  ;;  %953 = vst.msk [vmem:[%s1297_s25 + $0x8] sm:$0xff] %vm438_vm1, %v825_v59  ;;  %v830_v1 = vmax.f32 %v594_v61, 0.0  ;;  %v862_v2 = vmax.f32 %v722_v62, 0.0  ;;  %v586_v3 = vadd.f32 %v1594_v34, %v585_v63  ;;  %v714_v4 = vadd.f32 %v1594_v34, %v713_v0 }
 0x107   : > { %921 = vst.msk [vmem:[#allocation2 + $0x108] sm:$0xff] %vm438_vm1, %v857_v60  ;;  %985 = vst.msk [vmem:[%s1297_s25 + $0x108] sm:$0xff] %vm438_vm1, %v857_v60  ;;  %v1174_v5 = vpop.f32.mrf.mxu0  ;;  %v1206_v6 = vpop.f32.mrf.mxu1 }
 0x108   : > { %894 = vst.msk [vmem:[#allocation2 + $0x30] sm:$0xff] %vm438_vm1, %v830_v1  ;;  %958 = vst.msk [vmem:[%s1297_s25 + $0x30] sm:$0xff] %vm438_vm1, %v830_v1  ;;  %v828_v7 = vmax.f32 %v586_v3, 0.0  ;;  %v860_v8 = vmax.f32 %v714_v4, 0.0  ;;  %v597_v9 = vadd.f32 %v1174_v5, %v1594_v34  ;;  %v725_v10 = vadd.f32 %v1206_v6, %v1594_v34 }
 0x109   : > { %926 = vst.msk [vmem:[#allocation2 + $0x130] sm:$0xff] %vm438_vm1, %v862_v2  ;;  %990 = vst.msk [vmem:[%s1297_s25 + $0x130] sm:$0xff] %vm438_vm1, %v862_v2  ;;  %v588_v11 = vpop.f32.mrf.mxu0  ;;  %v716_v12 = vpop.f32.mrf.mxu1 }
 0x10a   : > { %892 = vst.msk [vmem:[#allocation2 + $0x20] sm:$0xff] %vm438_vm1, %v828_v7  ;;  %956 = vst.msk [vmem:[%s1297_s25 + $0x20] sm:$0xff] %vm438_vm1, %v828_v7  ;;  %v831_v13 = vmax.f32 %v597_v9, 0.0  ;;  %v863_v14 = vmax.f32 %v725_v10, 0.0  ;;  %v589_v15 = vadd.f32 %v1594_v34, %v588_v11  ;;  %v717_v16 = vadd.f32 %v1594_v34, %v716_v12 }
 0x10b   : > { %924 = vst.msk [vmem:[#allocation2 + $0x120] sm:$0xff] %vm438_vm1, %v860_v8  ;;  %988 = vst.msk [vmem:[%s1297_s25 + $0x120] sm:$0xff] %vm438_vm1, %v860_v8  ;;  %v1177_v17 = vpop.f32.mrf.mxu0  ;;  %v1209_v18 = vpop.f32.mrf.mxu1 }
 0x10c   : > { %895 = vst.msk [vmem:[#allocation2 + $0x38] sm:$0xff] %vm438_vm1, %v831_v13  ;;  %959 = vst.msk [vmem:[%s1297_s25 + $0x38] sm:$0xff] %vm438_vm1, %v831_v13  ;;  %v829_v19 = vmax.f32 %v589_v15, 0.0  ;;  %v861_v20 = vmax.f32 %v717_v16, 0.0  ;;  %v610_v21 = vadd.f32 %v1177_v17, %v1594_v34  ;;  %v738_v22 = vadd.f32 %v1209_v18, %v1594_v34 }
 0x10d   : > { %927 = vst.msk [vmem:[#allocation2 + $0x138] sm:$0xff] %vm438_vm1, %v863_v14  ;;  %991 = vst.msk [vmem:[%s1297_s25 + $0x138] sm:$0xff] %vm438_vm1, %v863_v14  ;;  %v601_v23 = vpop.f32.mrf.mxu0  ;;  %v729_v24 = vpop.f32.mrf.mxu1 }
 0x10e   : > { %893 = vst.msk [vmem:[#allocation2 + $0x28] sm:$0xff] %vm438_vm1, %v829_v19  ;;  %957 = vst.msk [vmem:[%s1297_s25 + $0x28] sm:$0xff] %vm438_vm1, %v829_v19  ;;  %v834_v25 = vmax.f32 %v610_v21, 0.0  ;;  %v866_v26 = vmax.f32 %v738_v22, 0.0  ;;  %v602_v27 = vadd.f32 %v1594_v34, %v601_v23  ;;  %v730_v28 = vadd.f32 %v1594_v34, %v729_v24 }
 0x10f   : > { %925 = vst.msk [vmem:[#allocation2 + $0x128] sm:$0xff] %vm438_vm1, %v861_v20  ;;  %989 = vst.msk [vmem:[%s1297_s25 + $0x128] sm:$0xff] %vm438_vm1, %v861_v20  ;;  %v1178_v29 = vpop.f32.mrf.mxu0  ;;  %v1210_v30 = vpop.f32.mrf.mxu1 }
 0x110   : > { %898 = vst.msk [vmem:[#allocation2 + $0x50] sm:$0xff] %vm438_vm1, %v834_v25  ;;  %962 = vst.msk [vmem:[%s1297_s25 + $0x50] sm:$0xff] %vm438_vm1, %v834_v25  ;;  %v832_v31 = vmax.f32 %v602_v27, 0.0  ;;  %v864_v32 = vmax.f32 %v730_v28, 0.0  ;;  %v613_v33 = vadd.f32 %v1178_v29, %v1594_v34  ;;  %v741_v35 = vadd.f32 %v1210_v30, %v1594_v34 }
 0x111   : > { %930 = vst.msk [vmem:[#allocation2 + $0x150] sm:$0xff] %vm438_vm1, %v866_v26  ;;  %994 = vst.msk [vmem:[%s1297_s25 + $0x150] sm:$0xff] %vm438_vm1, %v866_v26  ;;  %v604_v36 = vpop.f32.mrf.mxu0  ;;  %v732_v37 = vpop.f32.mrf.mxu1 }
 0x112   : > { %896 = vst.msk [vmem:[#allocation2 + $0x40] sm:$0xff] %vm438_vm1, %v832_v31  ;;  %960 = vst.msk [vmem:[%s1297_s25 + $0x40] sm:$0xff] %vm438_vm1, %v832_v31  ;;  %v835_v38 = vmax.f32 %v613_v33, 0.0  ;;  %v867_v39 = vmax.f32 %v741_v35, 0.0  ;;  %v605_v40 = vadd.f32 %v1594_v34, %v604_v36  ;;  %v733_v41 = vadd.f32 %v1594_v34, %v732_v37 }
 0x113   : > { %928 = vst.msk [vmem:[#allocation2 + $0x140] sm:$0xff] %vm438_vm1, %v864_v32  ;;  %992 = vst.msk [vmem:[%s1297_s25 + $0x140] sm:$0xff] %vm438_vm1, %v864_v32  ;;  %v1181_v42 = vpop.f32.mrf.mxu0  ;;  %v1213_v43 = vpop.f32.mrf.mxu1 }
 0x114   : > { %899 = vst.msk [vmem:[#allocation2 + $0x58] sm:$0xff] %vm438_vm1, %v835_v38  ;;  %963 = vst.msk [vmem:[%s1297_s25 + $0x58] sm:$0xff] %vm438_vm1, %v835_v38  ;;  %v833_v44 = vmax.f32 %v605_v40, 0.0  ;;  %v865_v45 = vmax.f32 %v733_v41, 0.0  ;;  %v626_v46 = vadd.f32 %v1181_v42, %v1594_v34  ;;  %v754_v47 = vadd.f32 %v1213_v43, %v1594_v34 }
 0x115   : > { %931 = vst.msk [vmem:[#allocation2 + $0x158] sm:$0xff] %vm438_vm1, %v867_v39  ;;  %995 = vst.msk [vmem:[%s1297_s25 + $0x158] sm:$0xff] %vm438_vm1, %v867_v39  ;;  %v617_v48 = vpop.f32.mrf.mxu0  ;;  %v745_v49 = vpop.f32.mrf.mxu1 }
 0x116   : > { %897 = vst.msk [vmem:[#allocation2 + $0x48] sm:$0xff] %vm438_vm1, %v833_v44  ;;  %961 = vst.msk [vmem:[%s1297_s25 + $0x48] sm:$0xff] %vm438_vm1, %v833_v44  ;;  %v838_v50 = vmax.f32 %v626_v46, 0.0  ;;  %v870_v51 = vmax.f32 %v754_v47, 0.0  ;;  %v618_v52 = vadd.f32 %v1594_v34, %v617_v48  ;;  %v746_v53 = vadd.f32 %v1594_v34, %v745_v49 }
 0x117   : > { %929 = vst.msk [vmem:[#allocation2 + $0x148] sm:$0xff] %vm438_vm1, %v865_v45  ;;  %993 = vst.msk [vmem:[%s1297_s25 + $0x148] sm:$0xff] %vm438_vm1, %v865_v45  ;;  %v1182_v54 = vpop.f32.mrf.mxu0  ;;  %v1214_v55 = vpop.f32.mrf.mxu1 }
 0x118   : > { %902 = vst.msk [vmem:[#allocation2 + $0x70] sm:$0xff] %vm438_vm1, %v838_v50  ;;  %966 = vst.msk [vmem:[%s1297_s25 + $0x70] sm:$0xff] %vm438_vm1, %v838_v50  ;;  %v836_v56 = vmax.f32 %v618_v52, 0.0  ;;  %v868_v57 = vmax.f32 %v746_v53, 0.0  ;;  %v629_v58 = vadd.f32 %v1182_v54, %v1594_v34  ;;  %v757_v59 = vadd.f32 %v1214_v55, %v1594_v34 }
 0x119   : > { %934 = vst.msk [vmem:[#allocation2 + $0x170] sm:$0xff] %vm438_vm1, %v870_v51  ;;  %998 = vst.msk [vmem:[%s1297_s25 + $0x170] sm:$0xff] %vm438_vm1, %v870_v51  ;;  %v620_v60 = vpop.f32.mrf.mxu0  ;;  %v748_v61 = vpop.f32.mrf.mxu1 }
 0x11a   : > { %900 = vst.msk [vmem:[#allocation2 + $0x60] sm:$0xff] %vm438_vm1, %v836_v56  ;;  %964 = vst.msk [vmem:[%s1297_s25 + $0x60] sm:$0xff] %vm438_vm1, %v836_v56  ;;  %v839_v62 = vmax.f32 %v629_v58, 0.0  ;;  %v871_v63 = vmax.f32 %v757_v59, 0.0  ;;  %v621_v0 = vadd.f32 %v1594_v34, %v620_v60  ;;  %v749_v1 = vadd.f32 %v1594_v34, %v748_v61 }
 0x11b   : > { %932 = vst.msk [vmem:[#allocation2 + $0x160] sm:$0xff] %vm438_vm1, %v868_v57  ;;  %996 = vst.msk [vmem:[%s1297_s25 + $0x160] sm:$0xff] %vm438_vm1, %v868_v57  ;;  %v1185_v2 = vpop.f32.mrf.mxu0  ;;  %v1217_v3 = vpop.f32.mrf.mxu1 }
 0x11c   : > { %903 = vst.msk [vmem:[#allocation2 + $0x78] sm:$0xff] %vm438_vm1, %v839_v62  ;;  %967 = vst.msk [vmem:[%s1297_s25 + $0x78] sm:$0xff] %vm438_vm1, %v839_v62  ;;  %v837_v4 = vmax.f32 %v621_v0, 0.0  ;;  %v869_v5 = vmax.f32 %v749_v1, 0.0  ;;  %v642_v6 = vadd.f32 %v1185_v2, %v1594_v34  ;;  %v770_v7 = vadd.f32 %v1217_v3, %v1594_v34 }
 0x11d   : > { %935 = vst.msk [vmem:[#allocation2 + $0x178] sm:$0xff] %vm438_vm1, %v871_v63  ;;  %999 = vst.msk [vmem:[%s1297_s25 + $0x178] sm:$0xff] %vm438_vm1, %v871_v63  ;;  %v633_v8 = vpop.f32.mrf.mxu0  ;;  %v761_v9 = vpop.f32.mrf.mxu1 }
 0x11e   : > { %901 = vst.msk [vmem:[#allocation2 + $0x68] sm:$0xff] %vm438_vm1, %v837_v4  ;;  %965 = vst.msk [vmem:[%s1297_s25 + $0x68] sm:$0xff] %vm438_vm1, %v837_v4  ;;  %v842_v10 = vmax.f32 %v642_v6, 0.0  ;;  %v874_v11 = vmax.f32 %v770_v7, 0.0  ;;  %v634_v12 = vadd.f32 %v1594_v34, %v633_v8  ;;  %v762_v13 = vadd.f32 %v1594_v34, %v761_v9 }
 0x11f   : > { %933 = vst.msk [vmem:[#allocation2 + $0x168] sm:$0xff] %vm438_vm1, %v869_v5  ;;  %997 = vst.msk [vmem:[%s1297_s25 + $0x168] sm:$0xff] %vm438_vm1, %v869_v5  ;;  %v1186_v14 = vpop.f32.mrf.mxu0  ;;  %v1218_v15 = vpop.f32.mrf.mxu1 }
 0x120   : > { %906 = vst.msk [vmem:[#allocation2 + $0x90] sm:$0xff] %vm438_vm1, %v842_v10  ;;  %970 = vst.msk [vmem:[%s1297_s25 + $0x90] sm:$0xff] %vm438_vm1, %v842_v10  ;;  %v840_v16 = vmax.f32 %v634_v12, 0.0  ;;  %v872_v17 = vmax.f32 %v762_v13, 0.0  ;;  %v645_v18 = vadd.f32 %v1186_v14, %v1594_v34  ;;  %v773_v19 = vadd.f32 %v1218_v15, %v1594_v34 }
 0x121   : > { %938 = vst.msk [vmem:[#allocation2 + $0x190] sm:$0xff] %vm438_vm1, %v874_v11  ;;  %1002 = vst.msk [vmem:[%s1297_s25 + $0x190] sm:$0xff] %vm438_vm1, %v874_v11  ;;  %v636_v20 = vpop.f32.mrf.mxu0  ;;  %v764_v21 = vpop.f32.mrf.mxu1 }
 0x122   : > { %904 = vst.msk [vmem:[#allocation2 + $0x80] sm:$0xff] %vm438_vm1, %v840_v16  ;;  %968 = vst.msk [vmem:[%s1297_s25 + $0x80] sm:$0xff] %vm438_vm1, %v840_v16  ;;  %v843_v22 = vmax.f32 %v645_v18, 0.0  ;;  %v875_v23 = vmax.f32 %v773_v19, 0.0  ;;  %v637_v24 = vadd.f32 %v1594_v34, %v636_v20  ;;  %v765_v25 = vadd.f32 %v1594_v34, %v764_v21 }
 0x123   : > { %936 = vst.msk [vmem:[#allocation2 + $0x180] sm:$0xff] %vm438_vm1, %v872_v17  ;;  %1000 = vst.msk [vmem:[%s1297_s25 + $0x180] sm:$0xff] %vm438_vm1, %v872_v17  ;;  %v1189_v26 = vpop.f32.mrf.mxu0  ;;  %v1221_v27 = vpop.f32.mrf.mxu1 }
 0x124   : > { %907 = vst.msk [vmem:[#allocation2 + $0x98] sm:$0xff] %vm438_vm1, %v843_v22  ;;  %971 = vst.msk [vmem:[%s1297_s25 + $0x98] sm:$0xff] %vm438_vm1, %v843_v22  ;;  %v841_v28 = vmax.f32 %v637_v24, 0.0  ;;  %v873_v29 = vmax.f32 %v765_v25, 0.0  ;;  %v658_v30 = vadd.f32 %v1189_v26, %v1594_v34  ;;  %v786_v31 = vadd.f32 %v1221_v27, %v1594_v34 }
 0x125   : > { %939 = vst.msk [vmem:[#allocation2 + $0x198] sm:$0xff] %vm438_vm1, %v875_v23  ;;  %1003 = vst.msk [vmem:[%s1297_s25 + $0x198] sm:$0xff] %vm438_vm1, %v875_v23  ;;  %v649_v32 = vpop.f32.mrf.mxu0  ;;  %v777_v33 = vpop.f32.mrf.mxu1 }
 0x126   : > { %905 = vst.msk [vmem:[#allocation2 + $0x88] sm:$0xff] %vm438_vm1, %v841_v28  ;;  %969 = vst.msk [vmem:[%s1297_s25 + $0x88] sm:$0xff] %vm438_vm1, %v841_v28  ;;  %v846_v35 = vmax.f32 %v658_v30, 0.0  ;;  %v878_v36 = vmax.f32 %v786_v31, 0.0  ;;  %v650_v37 = vadd.f32 %v1594_v34, %v649_v32  ;;  %v778_v38 = vadd.f32 %v1594_v34, %v777_v33 }
 0x127   : > { %937 = vst.msk [vmem:[#allocation2 + $0x188] sm:$0xff] %vm438_vm1, %v873_v29  ;;  %1001 = vst.msk [vmem:[%s1297_s25 + $0x188] sm:$0xff] %vm438_vm1, %v873_v29  ;;  %v1190_v39 = vpop.f32.mrf.mxu0  ;;  %v1222_v40 = vpop.f32.mrf.mxu1 }
 0x128   : > { %910 = vst.msk [vmem:[#allocation2 + $0xb0] sm:$0xff] %vm438_vm1, %v846_v35  ;;  %974 = vst.msk [vmem:[%s1297_s25 + $0xb0] sm:$0xff] %vm438_vm1, %v846_v35  ;;  %v844_v41 = vmax.f32 %v650_v37, 0.0  ;;  %v876_v42 = vmax.f32 %v778_v38, 0.0  ;;  %v661_v43 = vadd.f32 %v1190_v39, %v1594_v34  ;;  %v789_v44 = vadd.f32 %v1222_v40, %v1594_v34 }
 0x129   : > { %942 = vst.msk [vmem:[#allocation2 + $0x1b0] sm:$0xff] %vm438_vm1, %v878_v36  ;;  %1006 = vst.msk [vmem:[%s1297_s25 + $0x1b0] sm:$0xff] %vm438_vm1, %v878_v36  ;;  %v652_v45 = vpop.f32.mrf.mxu0  ;;  %v780_v46 = vpop.f32.mrf.mxu1 }
 0x12a   : > { %908 = vst.msk [vmem:[#allocation2 + $0xa0] sm:$0xff] %vm438_vm1, %v844_v41  ;;  %972 = vst.msk [vmem:[%s1297_s25 + $0xa0] sm:$0xff] %vm438_vm1, %v844_v41  ;;  %v847_v47 = vmax.f32 %v661_v43, 0.0  ;;  %v879_v48 = vmax.f32 %v789_v44, 0.0  ;;  %v653_v49 = vadd.f32 %v1594_v34, %v652_v45  ;;  %v781_v50 = vadd.f32 %v1594_v34, %v780_v46 }
 0x12b   : > { %940 = vst.msk [vmem:[#allocation2 + $0x1a0] sm:$0xff] %vm438_vm1, %v876_v42  ;;  %1004 = vst.msk [vmem:[%s1297_s25 + $0x1a0] sm:$0xff] %vm438_vm1, %v876_v42  ;;  %v1193_v51 = vpop.f32.mrf.mxu0  ;;  %v1225_v52 = vpop.f32.mrf.mxu1 }
 0x12c   : > { %911 = vst.msk [vmem:[#allocation2 + $0xb8] sm:$0xff] %vm438_vm1, %v847_v47  ;;  %975 = vst.msk [vmem:[%s1297_s25 + $0xb8] sm:$0xff] %vm438_vm1, %v847_v47  ;;  %v845_v53 = vmax.f32 %v653_v49, 0.0  ;;  %v877_v54 = vmax.f32 %v781_v50, 0.0  ;;  %v674_v55 = vadd.f32 %v1193_v51, %v1594_v34  ;;  %v802_v56 = vadd.f32 %v1225_v52, %v1594_v34 }
 0x12d   : > { %943 = vst.msk [vmem:[#allocation2 + $0x1b8] sm:$0xff] %vm438_vm1, %v879_v48  ;;  %1007 = vst.msk [vmem:[%s1297_s25 + $0x1b8] sm:$0xff] %vm438_vm1, %v879_v48  ;;  %v665_v57 = vpop.f32.mrf.mxu0  ;;  %v793_v58 = vpop.f32.mrf.mxu1 }
 0x12e   : > { %909 = vst.msk [vmem:[#allocation2 + $0xa8] sm:$0xff] %vm438_vm1, %v845_v53  ;;  %973 = vst.msk [vmem:[%s1297_s25 + $0xa8] sm:$0xff] %vm438_vm1, %v845_v53  ;;  %v850_v59 = vmax.f32 %v674_v55, 0.0  ;;  %v882_v60 = vmax.f32 %v802_v56, 0.0  ;;  %v666_v61 = vadd.f32 %v1594_v34, %v665_v57  ;;  %v794_v62 = vadd.f32 %v1594_v34, %v793_v58 }
 0x12f   : > { %941 = vst.msk [vmem:[#allocation2 + $0x1a8] sm:$0xff] %vm438_vm1, %v877_v54  ;;  %1005 = vst.msk [vmem:[%s1297_s25 + $0x1a8] sm:$0xff] %vm438_vm1, %v877_v54  ;;  %v1194_v63 = vpop.f32.mrf.mxu0  ;;  %v1226_v0 = vpop.f32.mrf.mxu1 }
 0x130   : > { %914 = vst.msk [vmem:[#allocation2 + $0xd0] sm:$0xff] %vm438_vm1, %v850_v59  ;;  %978 = vst.msk [vmem:[%s1297_s25 + $0xd0] sm:$0xff] %vm438_vm1, %v850_v59  ;;  %v848_v1 = vmax.f32 %v666_v61, 0.0  ;;  %v880_v2 = vmax.f32 %v794_v62, 0.0  ;;  %v677_v3 = vadd.f32 %v1194_v63, %v1594_v34  ;;  %v805_v4 = vadd.f32 %v1226_v0, %v1594_v34 }
 0x131   : > { %946 = vst.msk [vmem:[#allocation2 + $0x1d0] sm:$0xff] %vm438_vm1, %v882_v60  ;;  %1010 = vst.msk [vmem:[%s1297_s25 + $0x1d0] sm:$0xff] %vm438_vm1, %v882_v60  ;;  %v668_v5 = vpop.f32.mrf.mxu0  ;;  %v796_v6 = vpop.f32.mrf.mxu1 }
 0x132   : > { %912 = vst.msk [vmem:[#allocation2 + $0xc0] sm:$0xff] %vm438_vm1, %v848_v1  ;;  %976 = vst.msk [vmem:[%s1297_s25 + $0xc0] sm:$0xff] %vm438_vm1, %v848_v1  ;;  %v851_v7 = vmax.f32 %v677_v3, 0.0  ;;  %v883_v8 = vmax.f32 %v805_v4, 0.0  ;;  %v669_v9 = vadd.f32 %v1594_v34, %v668_v5  ;;  %v797_v10 = vadd.f32 %v1594_v34, %v796_v6 }
 0x133   : > { %944 = vst.msk [vmem:[#allocation2 + $0x1c0] sm:$0xff] %vm438_vm1, %v880_v2  ;;  %1008 = vst.msk [vmem:[%s1297_s25 + $0x1c0] sm:$0xff] %vm438_vm1, %v880_v2  ;;  %v1197_v11 = vpop.f32.mrf.mxu0  ;;  %v1229_v12 = vpop.f32.mrf.mxu1 }
 0x134   : > { %915 = vst.msk [vmem:[#allocation2 + $0xd8] sm:$0xff] %vm438_vm1, %v851_v7  ;;  %979 = vst.msk [vmem:[%s1297_s25 + $0xd8] sm:$0xff] %vm438_vm1, %v851_v7  ;;  %v849_v13 = vmax.f32 %v669_v9, 0.0  ;;  %v881_v14 = vmax.f32 %v797_v10, 0.0  ;;  %v690_v15 = vadd.f32 %v1197_v11, %v1594_v34  ;;  %v818_v16 = vadd.f32 %v1229_v12, %v1594_v34 }
 0x135   : > { %947 = vst.msk [vmem:[#allocation2 + $0x1d8] sm:$0xff] %vm438_vm1, %v883_v8  ;;  %1011 = vst.msk [vmem:[%s1297_s25 + $0x1d8] sm:$0xff] %vm438_vm1, %v883_v8  ;;  %v681_v17 = vpop.f32.mrf.mxu0  ;;  %v809_v18 = vpop.f32.mrf.mxu1 }
 0x136   : > { %913 = vst.msk [vmem:[#allocation2 + $0xc8] sm:$0xff] %vm438_vm1, %v849_v13  ;;  %977 = vst.msk [vmem:[%s1297_s25 + $0xc8] sm:$0xff] %vm438_vm1, %v849_v13  ;;  %v854_v19 = vmax.f32 %v690_v15, 0.0  ;;  %v886_v20 = vmax.f32 %v818_v16, 0.0  ;;  %v682_v21 = vadd.f32 %v1594_v34, %v681_v17  ;;  %v810_v22 = vadd.f32 %v1594_v34, %v809_v18 }
 0x137   : > { %945 = vst.msk [vmem:[#allocation2 + $0x1c8] sm:$0xff] %vm438_vm1, %v881_v14  ;;  %1009 = vst.msk [vmem:[%s1297_s25 + $0x1c8] sm:$0xff] %vm438_vm1, %v881_v14  ;;  %v1198_v23 = vpop.f32.mrf.mxu0  ;;  %v1230_v24 = vpop.f32.mrf.mxu1 }
 0x138   : > { %918 = vst.msk [vmem:[#allocation2 + $0xf0] sm:$0xff] %vm438_vm1, %v854_v19  ;;  %982 = vst.msk [vmem:[%s1297_s25 + $0xf0] sm:$0xff] %vm438_vm1, %v854_v19  ;;  %v852_v25 = vmax.f32 %v682_v21, 0.0  ;;  %v884_v26 = vmax.f32 %v810_v22, 0.0  ;;  %v693_v27 = vadd.f32 %v1198_v23, %v1594_v34  ;;  %v821_v28 = vadd.f32 %v1230_v24, %v1594_v34 }
 0x139   : > { %950 = vst.msk [vmem:[#allocation2 + $0x1f0] sm:$0xff] %vm438_vm1, %v886_v20  ;;  %1014 = vst.msk [vmem:[%s1297_s25 + $0x1f0] sm:$0xff] %vm438_vm1, %v886_v20  ;;  %v684_v29 = vpop.f32.mrf.mxu0  ;;  %v812_v30 = vpop.f32.mrf.mxu1 }
 0x13a   : > { %916 = vst.msk [vmem:[#allocation2 + $0xe0] sm:$0xff] %vm438_vm1, %v852_v25  ;;  %980 = vst.msk [vmem:[%s1297_s25 + $0xe0] sm:$0xff] %vm438_vm1, %v852_v25  ;;  %v855_v31 = vmax.f32 %v693_v27, 0.0  ;;  %v887_v32 = vmax.f32 %v821_v28, 0.0  ;;  %v685_v33 = vadd.f32 %v1594_v34, %v684_v29  ;;  %v813_v35 = vadd.f32 %v1594_v34, %v812_v30 }
 0x13b   : > { %948 = vst.msk [vmem:[#allocation2 + $0x1e0] sm:$0xff] %vm438_vm1, %v884_v26  ;;  %1012 = vst.msk [vmem:[%s1297_s25 + $0x1e0] sm:$0xff] %vm438_vm1, %v884_v26 }
 0x13c   : > { %919 = vst.msk [vmem:[#allocation2 + $0xf8] sm:$0xff] %vm438_vm1, %v855_v31  ;;  %983 = vst.msk [vmem:[%s1297_s25 + $0xf8] sm:$0xff] %vm438_vm1, %v855_v31  ;;  %v853_v36 = vmax.f32 %v685_v33, 0.0  ;;  %v885_v37 = vmax.f32 %v813_v35, 0.0 }
 0x13d   : > { %951 = vst.msk [vmem:[#allocation2 + $0x1f8] sm:$0xff] %vm438_vm1, %v887_v32  ;;  %1015 = vst.msk [vmem:[%s1297_s25 + $0x1f8] sm:$0xff] %vm438_vm1, %v887_v32 }
 0x13e   : > { %917 = vst.msk [vmem:[#allocation2 + $0xe8] sm:$0xff] %vm438_vm1, %v853_v36  ;;  %981 = vst.msk [vmem:[%s1297_s25 + $0xe8] sm:$0xff] %vm438_vm1, %v853_v36 }
 0x13f   : > { %949 = vst.msk [vmem:[#allocation2 + $0x1e8] sm:$0xff] %vm438_vm1, %v885_v37  ;;  %1013 = vst.msk [vmem:[%s1297_s25 + $0x1e8] sm:$0xff] %vm438_vm1, %v885_v37 }
 0x140 PF: > { %s13_s12 = sadd.s32 1, %s1251_s12  }
 0x141   : > { %p10_p5 = scmp.ge.s32.totalorder %s13_s12, 4  }
 0x143   :  { %12 = sbr.rel (!%p10_p5) target bundleno = 1 (0x1), region = 69 }

// kernel: target_model_forward.17
= control target key start
LH: loop header
LB: loop body
LE: loop exit
PB: predicated region body
PF: predicated region fallthrough
CT: control target
= control target key end

     0   :  { %vm78_vm0 = vcmask 523264   ;;  %s436_s1 = inlined_call_operand.vmem [shape: bf16[64,128], index: 1, kind: input, shape index: {}]   ;;  %s437_s0 = inlined_call_operand.vmem [shape: f32[128,64], index: 0, kind: input, shape index: {}]   ;;  %s438_s2 = inlined_call_operand.vmem [shape: f32[1,128], index: 2, kind: input, shape index: {}]   ;;  %s439_s3 = inlined_call_operand.vmem [shape: f32[128,128], index: 3, kind: output, shape index: {}]  }
   0x1   :  { %v293_v0 = vld [vmem:[%s436_s1 + $0x18] sm:$0xff]   ;;  %v294_v1 = vld [vmem:[%s436_s1 + $0x10] sm:$0xff]   ;;  %v295_v2 = vld [vmem:[%s436_s1 + $0x8] sm:$0xff]  }
   0x2   :  { %261 = vmatprep.subr.bf16.mxu0 %v293_v0  ;;  %285 = vmatprep.subr.bf16.mxu1 %v293_v0  ;;  %v15_v3 = vld [vmem:[%s437_s0] sm:$0xff]  ;;  %v16_v4 = vld [vmem:[%s437_s0 + $0x8] sm:$0xff]  ;;  %v17_v10 = vld [vmem:[%s437_s0 + $0x10] sm:$0xff] }
   0x3   :  { %262 = vmatpush3.bf16.msra.mxu0 %v293_v0  ;;  %289 = vmatpush3.bf16.msra.mxu1 %v293_v0  ;;  %v23_v5 = vld [vmem:[%s437_s0 + $0x40] sm:$0xff]  ;;  %v31_v6 = vpack.c.bf16 %v16_v4, %v15_v3  ;;  %v24_v7 = vld [vmem:[%s437_s0 + $0x48] sm:$0xff]  ;;  %v18_v11 = vld [vmem:[%s437_s0 + $0x18] sm:$0xff] }
   0x4   :  { %263 = vmatprep.subr.bf16.mxu0 %v294_v1  ;;  %286 = vmatprep.subr.bf16.mxu1 %v294_v1  ;;  %v35_v8 = vpack.c.bf16 %v24_v7, %v23_v5  ;;  %v296_v9 = vld [vmem:[%s436_s1] sm:$0xff]   ;;  %v25_v12 = vld [vmem:[%s437_s0 + $0x50] sm:$0xff]  ;;  %v26_v13 = vld [vmem:[%s437_s0 + $0x58] sm:$0xff]  ;;  %v32_v18 = vpack.c.bf16 %v18_v11, %v17_v10 }
   0x5   :  { %269 = vmatprep.mubr.msk.bf16.mxu0 %vm78_vm0, %v31_v6  ;;  %v19_v14 = vld [vmem:[%s437_s0 + $0x20] sm:$0xff]  ;;  %v20_v15 = vld [vmem:[%s437_s0 + $0x28] sm:$0xff]  ;;  %v36_v19 = vpack.c.bf16 %v26_v13, %v25_v12  ;;  %v21_v22 = vld [vmem:[%s437_s0 + $0x30] sm:$0xff] }
   0x6   :  { %277 = vmatprep.mubr.msk.bf16.mxu1 %vm78_vm0, %v35_v8  ;;  %v27_v16 = vld [vmem:[%s437_s0 + $0x60] sm:$0xff]  ;;  %v28_v17 = vld [vmem:[%s437_s0 + $0x68] sm:$0xff]  ;;  %v33_v20 = vpack.c.bf16 %v20_v15, %v19_v14  ;;  %v22_v23 = vld [vmem:[%s437_s0 + $0x38] sm:$0xff] }
   0x7   :  { %264 = vmatpush3.bf16.msra.mxu0 %v294_v1  ;;  %290 = vmatpush3.bf16.msra.mxu1 %v294_v1  ;;  %v37_v21 = vpack.c.bf16 %v28_v17, %v27_v16  ;;  %v29_v24 = vld [vmem:[%s437_s0 + $0x70] sm:$0xff]  ;;  %v30_v25 = vld [vmem:[%s437_s0 + $0x78] sm:$0xff]  ;;  %v34_v26 = vpack.c.bf16 %v22_v23, %v21_v22  ;;  %v236_v28 = vld [vmem:[%s438_s2] ss:$0 sm:$0xff] }
   0x8   :  { %265 = vmatprep.subr.bf16.mxu0 %v295_v2  ;;  %287 = vmatprep.subr.bf16.mxu1 %v295_v2  ;;  %v38_v27 = vpack.c.bf16 %v30_v25, %v29_v24 }
   0xb   :  { %266 = vmatpush3.bf16.msra.mxu0 %v295_v2  ;;  %291 = vmatpush3.bf16.msra.mxu1 %v295_v2 }
   0xc   :  { %267 = vmatprep.subr.bf16.mxu0 %v296_v9  ;;  %288 = vmatprep.subr.bf16.mxu1 %v296_v9 }
   0xf   :  { %268 = vmatpush3.bf16.msra.mxu0 %v296_v9  ;;  %292 = vmatpush3.bf16.msra.mxu1 %v296_v9 }
  0x12   :  { %270 = vmatmul.mubr.msk.bf16.vlgmr.msra.gmra.mxu0 %vm78_vm0, %v32_v18  ;;  %278 = vmatmul.mubr.msk.bf16.vlgmr.msra.gmra.mxu1 %vm78_vm0, %v36_v19 }
  0x13   :  { %273 = vmatprep.mubr.msk.bf16.mxu0 %vm78_vm0, %v33_v20  ;;  %281 = vmatprep.mubr.msk.bf16.mxu1 %vm78_vm0, %v37_v21 }
  0x1a   :  { %274 = vmatmul.mubr.msk.bf16.gmra.mxu0 %vm78_vm0, %v34_v26  ;;  %282 = vmatmul.mubr.msk.bf16.gmra.mxu1 %vm78_vm0, %v38_v27 }
  0xd2   :  { %v271_v29 = vpop.f32.mrf.mxu0  ;;  %v279_v30 = vpop.f32.mrf.mxu1 }
  0xd3   :  { %v146_v31 = vadd.f32 %v271_v29, %v236_v28  ;;  %v178_v32 = vadd.f32 %v279_v30, %v236_v28 }
  0xd4   :  { %v137_v33 = vpop.f32.mrf.mxu0  ;;  %v169_v34 = vpop.f32.mrf.mxu1 }
  0xd5   :  { %v202_v35 = vmax.f32 %v146_v31, 0.0  ;;  %v210_v36 = vmax.f32 %v178_v32, 0.0  ;;  %v138_v37 = vadd.f32 %v236_v28, %v137_v33  ;;  %v170_v38 = vadd.f32 %v236_v28, %v169_v34 }
  0xd6   :  { %v272_v39 = vpop.f32.mrf.mxu0  ;;  %v280_v40 = vpop.f32.mrf.mxu1 }
  0xd7   :  { %218 = vst [vmem:[%s439_s3 + $0x10] sm:$0xff] %v202_v35  ;;  %226 = vst [vmem:[%s439_s3 + $0x50] sm:$0xff] %v210_v36  ;;  %v200_v41 = vmax.f32 %v138_v37, 0.0  ;;  %v208_v42 = vmax.f32 %v170_v38, 0.0  ;;  %v149_v43 = vadd.f32 %v272_v39, %v236_v28  ;;  %v181_v44 = vadd.f32 %v280_v40, %v236_v28 }
  0xd8   :  { %v140_v45 = vpop.f32.mrf.mxu0  ;;  %v172_v46 = vpop.f32.mrf.mxu1 }
  0xd9   :  { %216 = vst [vmem:[%s439_s3] sm:$0xff] %v200_v41  ;;  %224 = vst [vmem:[%s439_s3 + $0x40] sm:$0xff] %v208_v42  ;;  %v203_v47 = vmax.f32 %v149_v43, 0.0  ;;  %v211_v48 = vmax.f32 %v181_v44, 0.0  ;;  %v141_v49 = vadd.f32 %v236_v28, %v140_v45  ;;  %v173_v50 = vadd.f32 %v236_v28, %v172_v46 }
  0xda   :  { %v275_v51 = vpop.f32.mrf.mxu0  ;;  %v283_v52 = vpop.f32.mrf.mxu1 }
  0xdb   :  { %219 = vst [vmem:[%s439_s3 + $0x18] sm:$0xff] %v203_v47  ;;  %227 = vst [vmem:[%s439_s3 + $0x58] sm:$0xff] %v211_v48  ;;  %v201_v53 = vmax.f32 %v141_v49, 0.0  ;;  %v209_v54 = vmax.f32 %v173_v50, 0.0  ;;  %v162_v55 = vadd.f32 %v275_v51, %v236_v28  ;;  %v194_v56 = vadd.f32 %v283_v52, %v236_v28 }
  0xdc   :  { %v153_v57 = vpop.f32.mrf.mxu0  ;;  %v185_v58 = vpop.f32.mrf.mxu1 }
  0xdd   :  { %217 = vst [vmem:[%s439_s3 + $0x8] sm:$0xff] %v201_v53  ;;  %225 = vst [vmem:[%s439_s3 + $0x48] sm:$0xff] %v209_v54  ;;  %v206_v59 = vmax.f32 %v162_v55, 0.0  ;;  %v214_v60 = vmax.f32 %v194_v56, 0.0  ;;  %v154_v61 = vadd.f32 %v236_v28, %v153_v57  ;;  %v186_v62 = vadd.f32 %v236_v28, %v185_v58 }
  0xde   :  { %v276_v63 = vpop.f32.mrf.mxu0  ;;  %v284_v0 = vpop.f32.mrf.mxu1 }
  0xdf   :  { %222 = vst [vmem:[%s439_s3 + $0x30] sm:$0xff] %v206_v59  ;;  %230 = vst [vmem:[%s439_s3 + $0x70] sm:$0xff] %v214_v60  ;;  %v204_v1 = vmax.f32 %v154_v61, 0.0  ;;  %v212_v2 = vmax.f32 %v186_v62, 0.0  ;;  %v165_v3 = vadd.f32 %v276_v63, %v236_v28  ;;  %v197_v4 = vadd.f32 %v284_v0, %v236_v28 }
  0xe0   :  { %v156_v5 = vpop.f32.mrf.mxu0  ;;  %v188_v6 = vpop.f32.mrf.mxu1 }
  0xe1   :  { %220 = vst [vmem:[%s439_s3 + $0x20] sm:$0xff] %v204_v1  ;;  %228 = vst [vmem:[%s439_s3 + $0x60] sm:$0xff] %v212_v2  ;;  %v207_v7 = vmax.f32 %v165_v3, 0.0  ;;  %v215_v8 = vmax.f32 %v197_v4, 0.0  ;;  %v157_v9 = vadd.f32 %v236_v28, %v156_v5  ;;  %v189_v10 = vadd.f32 %v236_v28, %v188_v6 }
  0xe3   :  { %223 = vst [vmem:[%s439_s3 + $0x38] sm:$0xff] %v207_v7  ;;  %231 = vst [vmem:[%s439_s3 + $0x78] sm:$0xff] %v215_v8  ;;  %v205_v11 = vmax.f32 %v157_v9, 0.0  ;;  %v213_v12 = vmax.f32 %v189_v10, 0.0 }
  0xe5   :  { %221 = vst [vmem:[%s439_s3 + $0x28] sm:$0xff] %v205_v11  ;;  %229 = vst [vmem:[%s439_s3 + $0x68] sm:$0xff] %v213_v12 }

// kernel: target_model_forward.16
= control target key start
LH: loop header
LB: loop body
LE: loop exit
PB: predicated region body
PF: predicated region fallthrough
CT: control target
= control target key end

     0   :  { %s631_s12 = smov 0   ;;  %s807_s0 = inlined_call_operand.vmem [shape: f32[128,64], index: 0, kind: input, shape index: {}]   ;;  %s808_s1 = inlined_call_operand.vmem [shape: bf16[7,64,64], index: 1, kind: input, shape index: {}]   ;;  %s809_s2 = inlined_call_operand.vmem [shape: f32[7,1,64], index: 2, kind: input, shape index: {}]   ;;  %s810_s3 = inlined_call_operand.vmem [shape: f32[7,128,64], index: 3, kind: output, shape index: {}]  }
   0x1 LB: > { %s520_s13 = sadd.s32 4294967295, %s609_s12   ;;  %p524_p0 = scmp.ge.s32.totalorder %s609_s12, 1  ;;  %s609_s12 = sphi %s631_s12, %s13_s12  }
   0x2   : > { %p145_p1 = scmp.lt.s32.totalorder %s609_s12, 8 }
   0x4   : > { %p146_p2 = pnand %p524_p0, %p145_p1 }
   0x5   : > { %p172_p3 = scmp.lt.s32.totalorder (!%p146_p2), %s520_s13, 6  ;;  %p529_p4 = scmp.ne.s32.totalorder (!%p146_p2), %s520_s13, 0 }
   0x6   : > { %149 = sbr.rel (%p146_p2) target bundleno = 256 (0x100), region = 32 }
   0xb   : > { %s639_s14 = scalar_select %p172_p3, %s520_s13, 6 }
   0xc   : > { %189 = sbr.rel (%p529_p4) target bundleno = 26 (0x1a), region = 36 }
   0xd   : > { %s545_s15 = sshll.u32 %s639_s14, 5  ;;  %s179_s18 = scalar_lea.vmem %s809_s2, %s639_s14 }
   0xe   : > { %s649_s21 = scalar_lea.vmem %s808_s1, %s545_s15  ;;  %s546_s22 = sshll.u32 %s639_s14, 7 }
   0xf   : > { %s655_s25 = scalar_lea.vmem %s810_s3, %s546_s22 }
  0x11   : > { %v190_v0 = vld [vmem:[%s807_s0] sm:$0xff]  ;;  %vm206_vm0 = vcmask 523264   ;;  %v191_v1 = vld [vmem:[%s807_s0 + $0x8] sm:$0xff]  ;;  %v192_v2 = vld [vmem:[%s807_s0 + $0x10] sm:$0xff] }
  0x12   : > { %207 = vst.msk [vmem:[#allocation2] sm:$0xff] %vm206_vm0, %v190_v0  ;;  %208 = vst.msk [vmem:[#allocation2 + $0x8] sm:$0xff] %vm206_vm0, %v191_v1  ;;  %v193_v3 = vld [vmem:[%s807_s0 + $0x18] sm:$0xff]  ;;  %v194_v4 = vld [vmem:[%s807_s0 + $0x20] sm:$0xff] }
  0x13   : > { %209 = vst.msk [vmem:[#allocation2 + $0x10] sm:$0xff] %vm206_vm0, %v192_v2  ;;  %v195_v5 = vld [vmem:[%s807_s0 + $0x28] sm:$0xff]  ;;  %210 = vst.msk [vmem:[#allocation2 + $0x18] sm:$0xff] %vm206_vm0, %v193_v3  ;;  %v196_v6 = vld [vmem:[%s807_s0 + $0x30] sm:$0xff] }
  0x14   : > { %211 = vst.msk [vmem:[#allocation2 + $0x20] sm:$0xff] %vm206_vm0, %v194_v4  ;;  %212 = vst.msk [vmem:[#allocation2 + $0x28] sm:$0xff] %vm206_vm0, %v195_v5  ;;  %v197_v7 = vld [vmem:[%s807_s0 + $0x38] sm:$0xff]  ;;  %v198_v8 = vld [vmem:[%s807_s0 + $0x40] sm:$0xff] }
  0x15   : > { %213 = vst.msk [vmem:[#allocation2 + $0x30] sm:$0xff] %vm206_vm0, %v196_v6  ;;  %214 = vst.msk [vmem:[#allocation2 + $0x38] sm:$0xff] %vm206_vm0, %v197_v7  ;;  %v199_v9 = vld [vmem:[%s807_s0 + $0x48] sm:$0xff]  ;;  %v200_v10 = vld [vmem:[%s807_s0 + $0x50] sm:$0xff] }
  0x16   : > { %215 = vst.msk [vmem:[#allocation2 + $0x40] sm:$0xff] %vm206_vm0, %v198_v8  ;;  %v201_v11 = vld [vmem:[%s807_s0 + $0x58] sm:$0xff]  ;;  %216 = vst.msk [vmem:[#allocation2 + $0x48] sm:$0xff] %vm206_vm0, %v199_v9  ;;  %v202_v12 = vld [vmem:[%s807_s0 + $0x60] sm:$0xff] }
  0x17   : > { %217 = vst.msk [vmem:[#allocation2 + $0x50] sm:$0xff] %vm206_vm0, %v200_v10  ;;  %218 = vst.msk [vmem:[#allocation2 + $0x58] sm:$0xff] %vm206_vm0, %v201_v11  ;;  %v203_v13 = vld [vmem:[%s807_s0 + $0x68] sm:$0xff]  ;;  %v204_v14 = vld [vmem:[%s807_s0 + $0x70] sm:$0xff] }
  0x18   : > { %219 = vst.msk [vmem:[#allocation2 + $0x60] sm:$0xff] %vm206_vm0, %v202_v12  ;;  %220 = vst.msk [vmem:[#allocation2 + $0x68] sm:$0xff] %vm206_vm0, %v203_v13  ;;  %v205_v15 = vld [vmem:[%s807_s0 + $0x78] sm:$0xff] }
  0x19   : > { %221 = vst.msk [vmem:[#allocation2 + $0x70] sm:$0xff] %vm206_vm0, %v204_v14  ;;  %222 = vst.msk [vmem:[#allocation2 + $0x78] sm:$0xff] %vm206_vm0, %v205_v15 }
  0x1a PF: > { %v599_v16 = vld [vmem:[%s649_s21 + $0x18] sm:$0xff]   ;;  %v600_v17 = vld [vmem:[%s649_s21 + $0x10] sm:$0xff]   ;;  %v601_v18 = vld [vmem:[%s649_s21 + $0x8] sm:$0xff]   ;;  %vm286_vm1 = vcmask 523264  }
  0x1b   : > { %559 = vmatprep.subr.bf16.mxu0 %v599_v16  ;;  %583 = vmatprep.subr.bf16.mxu1 %v599_v16  ;;  %v223_v19 = vld [vmem:[#allocation2] sm:$0xff]  ;;  %v224_v20 = vld [vmem:[#allocation2 + $0x8] sm:$0xff]  ;;  %v225_v26 = vld [vmem:[#allocation2 + $0x10] sm:$0xff] }
  0x1c   : > { %560 = vmatpush3.bf16.msra.mxu0 %v599_v16  ;;  %587 = vmatpush3.bf16.msra.mxu1 %v599_v16  ;;  %v239_v22 = vpack.c.bf16 %v224_v20, %v223_v19  ;;  %v602_v25 = vld [vmem:[%s649_s21] sm:$0xff]   ;;  %v226_v27 = vld [vmem:[#allocation2 + $0x18] sm:$0xff]  ;;  %v228_v31 = vld [vmem:[#allocation2 + $0x28] sm:$0xff] }
  0x1d   : > { %561 = vmatprep.subr.bf16.mxu0 %v600_v17  ;;  %584 = vmatprep.subr.bf16.mxu1 %v600_v17  ;;  %v231_v21 = vld [vmem:[#allocation2 + $0x40] sm:$0xff]  ;;  %v232_v23 = vld [vmem:[#allocation2 + $0x48] sm:$0xff]  ;;  %v240_v34 = vpack.c.bf16 %v226_v27, %v225_v26  ;;  %v229_v38 = vld [vmem:[#allocation2 + $0x30] sm:$0xff] }
  0x1e   : > { %v243_v24 = vpack.c.bf16 %v232_v23, %v231_v21  ;;  %567 = vmatprep.mubr.msk.bf16.mxu0 %vm286_vm1, %v239_v22  ;;  %v233_v28 = vld [vmem:[#allocation2 + $0x50] sm:$0xff]  ;;  %v234_v29 = vld [vmem:[#allocation2 + $0x58] sm:$0xff]  ;;  %v227_v30 = vld [vmem:[#allocation2 + $0x20] sm:$0xff] }
  0x1f   : > { %v235_v32 = vld [vmem:[#allocation2 + $0x60] sm:$0xff]  ;;  %v236_v33 = vld [vmem:[#allocation2 + $0x68] sm:$0xff]  ;;  %v244_v35 = vpack.c.bf16 %v234_v29, %v233_v28  ;;  %v241_v36 = vpack.c.bf16 %v228_v31, %v227_v30  ;;  %v230_v39 = vld [vmem:[#allocation2 + $0x38] sm:$0xff] }
  0x20   : > { %562 = vmatpush3.bf16.msra.mxu0 %v600_v17  ;;  %588 = vmatpush3.bf16.msra.mxu1 %v600_v17  ;;  %v245_v37 = vpack.c.bf16 %v236_v33, %v235_v32  ;;  %v237_v40 = vld [vmem:[#allocation2 + $0x70] sm:$0xff]  ;;  %v238_v41 = vld [vmem:[#allocation2 + $0x78] sm:$0xff]  ;;  %v242_v42 = vpack.c.bf16 %v230_v39, %v229_v38  ;;  %v738_v44 = vld [vmem:[%s179_s18] ss:$0 sm:$0xff] }
  0x21   : > { %563 = vmatprep.subr.bf16.mxu0 %v601_v18  ;;  %585 = vmatprep.subr.bf16.mxu1 %v601_v18  ;;  %v246_v43 = vpack.c.bf16 %v238_v41, %v237_v40 }
  0x22   : > { %575 = vmatprep.mubr.msk.bf16.mxu1 %vm286_vm1, %v243_v24 }
  0x24   : > { %564 = vmatpush3.bf16.msra.mxu0 %v601_v18  ;;  %589 = vmatpush3.bf16.msra.mxu1 %v601_v18 }
  0x25   : > { %565 = vmatprep.subr.bf16.mxu0 %v602_v25  ;;  %586 = vmatprep.subr.bf16.mxu1 %v602_v25 }
  0x28   : > { %566 = vmatpush3.bf16.msra.mxu0 %v602_v25  ;;  %590 = vmatpush3.bf16.msra.mxu1 %v602_v25 }
  0x2b   : > { %568 = vmatmul.mubr.msk.bf16.vlgmr.msra.gmra.mxu0 %vm286_vm1, %v240_v34  ;;  %576 = vmatmul.mubr.msk.bf16.vlgmr.msra.gmra.mxu1 %vm286_vm1, %v244_v35 }
  0x2c   : > { %571 = vmatprep.mubr.msk.bf16.mxu0 %vm286_vm1, %v241_v36  ;;  %579 = vmatprep.mubr.msk.bf16.mxu1 %vm286_vm1, %v245_v37 }
  0x33   : > { %572 = vmatmul.mubr.msk.bf16.gmra.mxu0 %vm286_vm1, %v242_v42  ;;  %580 = vmatmul.mubr.msk.bf16.gmra.mxu1 %vm286_vm1, %v246_v43 }
  0xeb   : > { %v569_v45 = vpop.f32.mrf.mxu0  ;;  %v577_v46 = vpop.f32.mrf.mxu1 }
  0xec   : > { %v354_v47 = vadd.f32 %v569_v45, %v738_v44  ;;  %v386_v48 = vadd.f32 %v577_v46, %v738_v44 }
  0xed   : > { %v345_v49 = vpop.f32.mrf.mxu0  ;;  %v377_v50 = vpop.f32.mrf.mxu1 }
  0xee   : > { %v410_v51 = vmax.f32 %v354_v47, 0.0  ;;  %v418_v52 = vmax.f32 %v386_v48, 0.0  ;;  %v346_v53 = vadd.f32 %v738_v44, %v345_v49  ;;  %v378_v54 = vadd.f32 %v738_v44, %v377_v50 }
  0xef   : > { %v570_v55 = vpop.f32.mrf.mxu0  ;;  %v578_v56 = vpop.f32.mrf.mxu1 }
  0xf0   : > { %426 = vst.msk [vmem:[#allocation2 + $0x10] sm:$0xff] %vm286_vm1, %v410_v51  ;;  %442 = vst.msk [vmem:[%s655_s25 + $0x10] sm:$0xff] %vm286_vm1, %v410_v51  ;;  %v408_v57 = vmax.f32 %v346_v53, 0.0  ;;  %v416_v58 = vmax.f32 %v378_v54, 0.0  ;;  %v357_v59 = vadd.f32 %v570_v55, %v738_v44  ;;  %v389_v60 = vadd.f32 %v578_v56, %v738_v44 }
  0xf1   : > { %434 = vst.msk [vmem:[#allocation2 + $0x50] sm:$0xff] %vm286_vm1, %v418_v52  ;;  %450 = vst.msk [vmem:[%s655_s25 + $0x50] sm:$0xff] %vm286_vm1, %v418_v52  ;;  %v348_v61 = vpop.f32.mrf.mxu0  ;;  %v380_v62 = vpop.f32.mrf.mxu1 }
  0xf2   : > { %424 = vst.msk [vmem:[#allocation2] sm:$0xff] %vm286_vm1, %v408_v57  ;;  %440 = vst.msk [vmem:[%s655_s25] sm:$0xff] %vm286_vm1, %v408_v57  ;;  %v411_v63 = vmax.f32 %v357_v59, 0.0  ;;  %v419_v0 = vmax.f32 %v389_v60, 0.0  ;;  %v349_v1 = vadd.f32 %v738_v44, %v348_v61  ;;  %v381_v2 = vadd.f32 %v738_v44, %v380_v62 }
  0xf3   : > { %432 = vst.msk [vmem:[#allocation2 + $0x40] sm:$0xff] %vm286_vm1, %v416_v58  ;;  %448 = vst.msk [vmem:[%s655_s25 + $0x40] sm:$0xff] %vm286_vm1, %v416_v58  ;;  %v573_v3 = vpop.f32.mrf.mxu0  ;;  %v581_v4 = vpop.f32.mrf.mxu1 }
  0xf4   : > { %427 = vst.msk [vmem:[#allocation2 + $0x18] sm:$0xff] %vm286_vm1, %v411_v63  ;;  %443 = vst.msk [vmem:[%s655_s25 + $0x18] sm:$0xff] %vm286_vm1, %v411_v63  ;;  %v409_v5 = vmax.f32 %v349_v1, 0.0  ;;  %v417_v6 = vmax.f32 %v381_v2, 0.0  ;;  %v370_v7 = vadd.f32 %v573_v3, %v738_v44  ;;  %v402_v8 = vadd.f32 %v581_v4, %v738_v44 }
  0xf5   : > { %435 = vst.msk [vmem:[#allocation2 + $0x58] sm:$0xff] %vm286_vm1, %v419_v0  ;;  %451 = vst.msk [vmem:[%s655_s25 + $0x58] sm:$0xff] %vm286_vm1, %v419_v0  ;;  %v361_v9 = vpop.f32.mrf.mxu0  ;;  %v393_v10 = vpop.f32.mrf.mxu1 }
  0xf6   : > { %425 = vst.msk [vmem:[#allocation2 + $0x8] sm:$0xff] %vm286_vm1, %v409_v5  ;;  %441 = vst.msk [vmem:[%s655_s25 + $0x8] sm:$0xff] %vm286_vm1, %v409_v5  ;;  %v414_v11 = vmax.f32 %v370_v7, 0.0  ;;  %v422_v12 = vmax.f32 %v402_v8, 0.0  ;;  %v362_v13 = vadd.f32 %v738_v44, %v361_v9  ;;  %v394_v14 = vadd.f32 %v738_v44, %v393_v10 }
  0xf7   : > { %433 = vst.msk [vmem:[#allocation2 + $0x48] sm:$0xff] %vm286_vm1, %v417_v6  ;;  %449 = vst.msk [vmem:[%s655_s25 + $0x48] sm:$0xff] %vm286_vm1, %v417_v6  ;;  %v574_v15 = vpop.f32.mrf.mxu0  ;;  %v582_v16 = vpop.f32.mrf.mxu1 }
  0xf8   : > { %430 = vst.msk [vmem:[#allocation2 + $0x30] sm:$0xff] %vm286_vm1, %v414_v11  ;;  %446 = vst.msk [vmem:[%s655_s25 + $0x30] sm:$0xff] %vm286_vm1, %v414_v11  ;;  %v412_v17 = vmax.f32 %v362_v13, 0.0  ;;  %v420_v18 = vmax.f32 %v394_v14, 0.0  ;;  %v373_v19 = vadd.f32 %v574_v15, %v738_v44  ;;  %v405_v20 = vadd.f32 %v582_v16, %v738_v44 }
  0xf9   : > { %438 = vst.msk [vmem:[#allocation2 + $0x70] sm:$0xff] %vm286_vm1, %v422_v12  ;;  %454 = vst.msk [vmem:[%s655_s25 + $0x70] sm:$0xff] %vm286_vm1, %v422_v12  ;;  %v364_v21 = vpop.f32.mrf.mxu0  ;;  %v396_v22 = vpop.f32.mrf.mxu1 }
  0xfa   : > { %428 = vst.msk [vmem:[#allocation2 + $0x20] sm:$0xff] %vm286_vm1, %v412_v17  ;;  %444 = vst.msk [vmem:[%s655_s25 + $0x20] sm:$0xff] %vm286_vm1, %v412_v17  ;;  %v415_v23 = vmax.f32 %v373_v19, 0.0  ;;  %v423_v24 = vmax.f32 %v405_v20, 0.0  ;;  %v365_v25 = vadd.f32 %v738_v44, %v364_v21  ;;  %v397_v26 = vadd.f32 %v738_v44, %v396_v22 }
  0xfb   : > { %436 = vst.msk [vmem:[#allocation2 + $0x60] sm:$0xff] %vm286_vm1, %v420_v18  ;;  %452 = vst.msk [vmem:[%s655_s25 + $0x60] sm:$0xff] %vm286_vm1, %v420_v18 }
  0xfc   : > { %431 = vst.msk [vmem:[#allocation2 + $0x38] sm:$0xff] %vm286_vm1, %v415_v23  ;;  %447 = vst.msk [vmem:[%s655_s25 + $0x38] sm:$0xff] %vm286_vm1, %v415_v23  ;;  %v413_v27 = vmax.f32 %v365_v25, 0.0  ;;  %v421_v28 = vmax.f32 %v397_v26, 0.0 }
  0xfd   : > { %439 = vst.msk [vmem:[#allocation2 + $0x78] sm:$0xff] %vm286_vm1, %v423_v24  ;;  %455 = vst.msk [vmem:[%s655_s25 + $0x78] sm:$0xff] %vm286_vm1, %v423_v24 }
  0xfe   : > { %429 = vst.msk [vmem:[#allocation2 + $0x28] sm:$0xff] %vm286_vm1, %v413_v27  ;;  %445 = vst.msk [vmem:[%s655_s25 + $0x28] sm:$0xff] %vm286_vm1, %v413_v27 }
  0xff   : > { %437 = vst.msk [vmem:[#allocation2 + $0x68] sm:$0xff] %vm286_vm1, %v421_v28  ;;  %453 = vst.msk [vmem:[%s655_s25 + $0x68] sm:$0xff] %vm286_vm1, %v421_v28 }
 0x100 PF: > { %s13_s12 = sadd.s32 1, %s609_s12  }
 0x101   : > { %p10_p5 = scmp.ge.s32.totalorder %s13_s12, 9  }
 0x103   :  { %12 = sbr.rel (!%p10_p5) target bundleno = 1 (0x1), region = 69 }

// kernel: squeeze.18
= control target key start
LH: loop header
LB: loop body
LE: loop exit
PB: predicated region body
PF: predicated region fallthrough
CT: control target
= control target key end

     0   :  { %s237_s0 = inlined_call_operand.vmem [shape: f32[1,32,128], index: 0, kind: input, shape index: {}]   ;;  %s238_s1 = inlined_call_operand.vmem [shape: f32[1,2,2048], index: 1, kind: output, shape index: {}]  }
   0x1   :  { %v2_v0 = vld [vmem:[%s237_s0] sm:$0xff]   ;;  %v149_v1 = vld [vmem:[%s237_s0 + $0x8] sm:$0xff]   ;;  %v150_v2 = vld [vmem:[%s237_s0 + $0x10] sm:$0xff]  }
   0x2   :  { %3 = vst [vmem:[#allocation0] ss:$8 sm:$0xf] %v2_v0   ;;  %4 = vst [vmem:[#allocation0] ss:$8 sm:$0xf0] %v2_v0  }
   0x3   :  { %8 = vst [vmem:[#allocation0 + $0x40] ss:$8 sm:$0xf] %v149_v1   ;;  %10 = vst [vmem:[#allocation0 + $0x40] ss:$8 sm:$0xf0] %v149_v1  }
   0x4   :  { %14 = vst [vmem:[#allocation0 + $0x1] ss:$8 sm:$0xf] %v150_v2   ;;  %16 = vst [vmem:[#allocation0 + $0x1] ss:$8 sm:$0xf0] %v150_v2  }
   0x5   :  { %v151_v3 = vld [vmem:[%s237_s0 + $0x18] sm:$0xff]  }
   0x6   :  { %20 = vst [vmem:[#allocation0 + $0x41] ss:$8 sm:$0xf] %v151_v3   ;;  %22 = vst [vmem:[#allocation0 + $0x41] ss:$8 sm:$0xf0] %v151_v3  }
   0xb   :  { %v27_v4 = vld [vmem:[#allocation0] sm:$0x3]  ;;  %v32_v5 = vld [vmem:[#allocation0 + $0x8] sm:$0x3]  ;;  %v38_v6 = vld [vmem:[#allocation0 + $0x10] sm:$0x3] }
   0xc   :  { %30 = vst [vmem:[%s238_s1] sm:$0x3] %v27_v4  ;;  %152 = vst [vmem:[%s238_s1 + $0x2] sm:$0x3] %v32_v5  ;;  %v45_v7 = vld [vmem:[#allocation0 + $0x18] sm:$0x3] }
   0xd   :  { %153 = vst [vmem:[%s238_s1 + $0x4] sm:$0x3] %v38_v6  ;;  %v52_v8 = vld [vmem:[#allocation0 + $0x20] sm:$0x3]  ;;  %v59_v9 = vld [vmem:[#allocation0 + $0x28] sm:$0x3] }
   0xe   :  { %154 = vst [vmem:[%s238_s1 + $0x6] sm:$0x3] %v45_v7  ;;  %155 = vst [vmem:[%s238_s1 + $0x8] sm:$0x3] %v52_v8  ;;  %v66_v10 = vld [vmem:[#allocation0 + $0x30] sm:$0x3] }
   0xf   :  { %156 = vst [vmem:[%s238_s1 + $0xa] sm:$0x3] %v59_v9  ;;  %v73_v11 = vld [vmem:[#allocation0 + $0x38] sm:$0x3]  ;;  %v80_v12 = vld [vmem:[#allocation0 + $0x40] sm:$0x3] }
  0x10   :  { %157 = vst [vmem:[%s238_s1 + $0xc] sm:$0x3] %v66_v10  ;;  %158 = vst [vmem:[%s238_s1 + $0xe] sm:$0x3] %v73_v11  ;;  %v87_v13 = vld [vmem:[#allocation0 + $0x48] sm:$0x3] }
  0x11   :  { %159 = vst [vmem:[%s238_s1 + $0x10] sm:$0x3] %v80_v12  ;;  %v94_v14 = vld [vmem:[#allocation0 + $0x50] sm:$0x3]  ;;  %v101_v15 = vld [vmem:[#allocation0 + $0x58] sm:$0x3] }
  0x12   :  { %160 = vst [vmem:[%s238_s1 + $0x12] sm:$0x3] %v87_v13  ;;  %161 = vst [vmem:[%s238_s1 + $0x14] sm:$0x3] %v94_v14  ;;  %v108_v16 = vld [vmem:[#allocation0 + $0x60] sm:$0x3] }
  0x13   :  { %162 = vst [vmem:[%s238_s1 + $0x16] sm:$0x3] %v101_v15  ;;  %v115_v17 = vld [vmem:[#allocation0 + $0x68] sm:$0x3]  ;;  %v122_v18 = vld [vmem:[#allocation0 + $0x70] sm:$0x3] }
  0x14   :  { %163 = vst [vmem:[%s238_s1 + $0x18] sm:$0x3] %v108_v16  ;;  %164 = vst [vmem:[%s238_s1 + $0x1a] sm:$0x3] %v115_v17  ;;  %v129_v19 = vld [vmem:[#allocation0 + $0x78] sm:$0x3] }
  0x15   :  { %165 = vst [vmem:[%s238_s1 + $0x1c] sm:$0x3] %v122_v18  ;;  %166 = vst [vmem:[%s238_s1 + $0x1e] sm:$0x3] %v129_v19 }

// kernel: target_model_forward.18
= control target key start
LH: loop header
LB: loop body
LE: loop exit
PB: predicated region body
PF: predicated region fallthrough
CT: control target
= control target key end

     0   :  { %s497_s12 = smov 0   ;;  %s555_s0 = inlined_call_operand.vmem [shape: f32[32,128], index: 0, kind: input, shape index: {}]   ;;  %s556_s1 = inlined_call_operand.vmem [shape: bf16[35,128,128], index: 1, kind: input, shape index: {}]   ;;  %s557_s2 = inlined_call_operand.vmem [shape: f32[35,1,128], index: 2, kind: input, shape index: {}]   ;;  %s558_s3 = inlined_call_operand.vmem [shape: f32[35,32,128], index: 3, kind: output, shape index: {}]  }
   0x1 LB: > { %s400_s13 = sadd.s32 4294967295, %s475_s12   ;;  %p404_p0 = scmp.ge.s32.totalorder %s475_s12, 1  ;;  %s475_s12 = sphi %s497_s12, %s13_s12  }
   0x2   : > { %p145_p1 = scmp.lt.s32.totalorder %s475_s12, 36 }
   0x4   : > { %p146_p2 = pnand %p404_p0, %p145_p1 }
   0x5   : > { %p172_p3 = scmp.lt.s32.totalorder (!%p146_p2), %s400_s13, 34  ;;  %p409_p4 = scmp.ne.s32.totalorder (!%p146_p2), %s400_s13, 0 }
   0x6   : > { %149 = sbr.rel (%p146_p2) target bundleno = 257 (0x101), region = 32 }
   0xb   : > { %s505_s14 = scalar_select %p172_p3, %s400_s13, 34 }
   0xc   : > { %189 = sbr.rel (%p409_p4) target bundleno = 20 (0x14), region = 36 }
   0xd   : > { %s421_s15 = sshll.u32 %s505_s14, 6  ;;  %s179_s18 = scalar_lea.vmem %s557_s2, %s505_s14 }
   0xe   : > { %s515_s21 = scalar_lea.vmem %s556_s1, %s421_s15  ;;  %s422_s22 = sshll.u32 %s505_s14, 5 }
   0xf   : > { %s521_s25 = scalar_lea.vmem %s558_s3, %s422_s22 }
  0x11   : > { %v190_v0 = vld [vmem:[%s555_s0] sm:$0xff]  ;;  %v191_v1 = vld [vmem:[%s555_s0 + $0x8] sm:$0xff]  ;;  %v192_v2 = vld [vmem:[%s555_s0 + $0x10] sm:$0xff] }
  0x12   : > { %194 = vst [vmem:[#allocation2 + $0x10] sm:$0xff] %v190_v0  ;;  %195 = vst [vmem:[#allocation2] sm:$0xff] %v191_v1  ;;  %v193_v3 = vld [vmem:[%s555_s0 + $0x18] sm:$0xff] }
  0x13   : > { %196 = vst [vmem:[#allocation2 + $0x18] sm:$0xff] %v192_v2  ;;  %197 = vst [vmem:[#allocation2 + $0x8] sm:$0xff] %v193_v3 }
  0x14 PF: > { %v461_v4 = vld [vmem:[%s515_s21 + $0x38] sm:$0xff]   ;;  %v462_v5 = vld [vmem:[%s515_s21 + $0x30] sm:$0xff]   ;;  %v463_v6 = vld [vmem:[%s515_s21 + $0x28] sm:$0xff]  }
  0x15   : > { %433 = vmatprep.subr.bf16.mxu0 %v461_v4  ;;  %v464_v7 = vld [vmem:[%s515_s21 + $0x20] sm:$0xff]   ;;  %v465_v11 = vld [vmem:[%s515_s21 + $0x18] sm:$0xff]   ;;  %v466_v12 = vld [vmem:[%s515_s21 + $0x10] sm:$0xff]  }
  0x16   : > { %434 = vmatpush3.bf16.msra.mxu0 %v461_v4  ;;  %v467_v13 = vld [vmem:[%s515_s21 + $0x8] sm:$0xff]   ;;  %v468_v14 = vld [vmem:[%s515_s21] sm:$0xff]  }
  0x17   : > { %435 = vmatprep.subr.bf16.mxu0 %v462_v5  ;;  %v410_v18 = vld [vmem:[%s179_s18] ss:$0 sm:$0xff] }
  0x19   : > { %v198_v8 = vld [vmem:[#allocation2 + $0x10] sm:$0xff]  ;;  %v199_v9 = vld [vmem:[#allocation2] sm:$0xff] }
  0x1a   : > { %436 = vmatpush3.bf16.msra.mxu0 %v462_v5  ;;  %v202_v10 = vpack.c.bf16 %v199_v9, %v198_v8  ;;  %v200_v15 = vld [vmem:[#allocation2 + $0x18] sm:$0xff]  ;;  %v201_v16 = vld [vmem:[#allocation2 + $0x8] sm:$0xff] }
  0x1b   : > { %437 = vmatprep.subr.bf16.mxu0 %v463_v6  ;;  %v203_v17 = vpack.c.bf16 %v201_v16, %v200_v15 }
  0x1c   : > { %449 = vmatprep.mubr.bf16.mxu0 %v202_v10 }
  0x1e   : > { %438 = vmatpush3.bf16.msra.mxu0 %v463_v6 }
  0x1f   : > { %439 = vmatprep.subr.bf16.mxu0 %v464_v7 }
  0x22   : > { %440 = vmatpush3.bf16.msra.mxu0 %v464_v7 }
  0x23   : > { %441 = vmatprep.subr.bf16.mxu0 %v465_v11 }
  0x26   : > { %442 = vmatpush3.bf16.msra.mxu0 %v465_v11 }
  0x27   : > { %443 = vmatprep.subr.bf16.mxu0 %v466_v12 }
  0x2a   : > { %444 = vmatpush3.bf16.msra.mxu0 %v466_v12 }
  0x2b   : > { %445 = vmatprep.subr.bf16.mxu0 %v467_v13 }
  0x2e   : > { %446 = vmatpush3.bf16.msra.mxu0 %v467_v13 }
  0x2f   : > { %447 = vmatprep.subr.bf16.mxu0 %v468_v14 }
  0x32   : > { %448 = vmatpush3.bf16.msra.mxu0 %v468_v14 }
  0x35   : > { %450 = vmatmul.mubr.bf16.vlgmr.msra.gmra.mxu0 %v203_v17 }
  0xf5   : > { %v451_v19 = vpop.f32.mrf.mxu0 }
  0xf6   : > { %v318_v20 = vadd.f32 %v451_v19, %v410_v18 }
  0xf7   : > { %v309_v21 = vpop.f32.mrf.mxu0 }
  0xf8   : > { %v326_v22 = vmax.f32 %v318_v20, 0.0  ;;  %v310_v23 = vadd.f32 %v410_v18, %v309_v21 }
  0xf9   : > { %v452_v24 = vpop.f32.mrf.mxu0 }
  0xfa   : > { %330 = vst [vmem:[#allocation2 + $0x18] sm:$0xff] %v326_v22  ;;  %334 = vst [vmem:[%s521_s25 + $0x10] sm:$0xff] %v326_v22  ;;  %v324_v25 = vmax.f32 %v310_v23, 0.0  ;;  %v321_v26 = vadd.f32 %v452_v24, %v410_v18 }
  0xfb   : > { %v312_v27 = vpop.f32.mrf.mxu0 }
  0xfc   : > { %328 = vst [vmem:[#allocation2 + $0x10] sm:$0xff] %v324_v25  ;;  %332 = vst [vmem:[%s521_s25] sm:$0xff] %v324_v25  ;;  %v327_v28 = vmax.f32 %v321_v26, 0.0  ;;  %v313_v29 = vadd.f32 %v410_v18, %v312_v27 }
  0xfe   : > { %331 = vst [vmem:[#allocation2 + $0x8] sm:$0xff] %v327_v28  ;;  %335 = vst [vmem:[%s521_s25 + $0x18] sm:$0xff] %v327_v28  ;;  %v325_v30 = vmax.f32 %v313_v29, 0.0 }
 0x100   : > { %329 = vst [vmem:[#allocation2] sm:$0xff] %v325_v30  ;;  %333 = vst [vmem:[%s521_s25 + $0x8] sm:$0xff] %v325_v30 }
 0x101 PF: > { %s13_s12 = sadd.s32 1, %s475_s12  }
 0x102   : > { %p10_p5 = scmp.ge.s32.totalorder %s13_s12, 37  }
 0x104   :  { %12 = sbr.rel (!%p10_p5) target bundleno = 1 (0x1), region = 69 }

// kernel: target_model_forward.19
= control target key start
LH: loop header
LB: loop body
LE: loop exit
PB: predicated region body
PF: predicated region fallthrough
CT: control target
= control target key end

     0   :  { %v259_v1 = vmov 0   ;;  %v39_v23 = vlaneseq  ;;  %s367_s1 = inlined_call_operand.vmem [shape: bf16[128,256], index: 1, kind: input, shape index: {}]   ;;  %s368_s0 = inlined_call_operand.vmem [shape: f32[32,128], index: 0, kind: input, shape index: {}]   ;;  %s369_s2 = inlined_call_operand.vmem [shape: f32[1,256], index: 2, kind: input, shape index: {}]   ;;  %s370_s3 = inlined_call_operand.vmem [shape: f32[32,256], index: 3, kind: output, shape index: {}]  }
   0x1   :  { %v235_v0 = vld [vmem:[%s367_s1 + $0x74] ss:$8 sps:$4 sm:$0xff]   ;;  %161 = vmatprep.mubr.bf16.mxu0 %v259_v1  ;;  %171 = vmatprep.mubr.bf16.mxu1 %v259_v1  ;;  %v237_v2 = vld [vmem:[%s367_s1 + $0x70] ss:$8 sps:$4 sm:$0xff]   ;;  %v238_v3 = vld [vmem:[%s367_s1 + $0x64] ss:$8 sps:$4 sm:$0xff]  }
   0x2   :  { %129 = vmatprep.subr.bf16.mxu0 %v235_v0  ;;  %218 = vmatprep.subr.bf16.mxu1 %v235_v0  ;;  %v240_v4 = vld [vmem:[%s367_s1 + $0x60] ss:$8 sps:$4 sm:$0xff]   ;;  %v241_v5 = vld [vmem:[%s367_s1 + $0x54] ss:$8 sps:$4 sm:$0xff]   ;;  %v243_v6 = vld [vmem:[%s367_s1 + $0x50] ss:$8 sps:$4 sm:$0xff]  }
   0x3   :  { %130 = vmatpush1.bf16.msra.mxu0 %v237_v2  ;;  %226 = vmatpush1.bf16.msra.mxu1 %v237_v2  ;;  %v244_v7 = vld [vmem:[%s367_s1 + $0x44] ss:$8 sps:$4 sm:$0xff]   ;;  %v246_v8 = vld [vmem:[%s367_s1 + $0x40] ss:$8 sps:$4 sm:$0xff]   ;;  %v247_v9 = vld [vmem:[%s367_s1 + $0x34] ss:$8 sps:$4 sm:$0xff]  }
   0x4   :  { %131 = vmatprep.subr.bf16.mxu0 %v238_v3  ;;  %219 = vmatprep.subr.bf16.mxu1 %v238_v3  ;;  %v249_v10 = vld [vmem:[%s367_s1 + $0x30] ss:$8 sps:$4 sm:$0xff]   ;;  %v250_v11 = vld [vmem:[%s367_s1 + $0x24] ss:$8 sps:$4 sm:$0xff]   ;;  %v252_v12 = vld [vmem:[%s367_s1 + $0x20] ss:$8 sps:$4 sm:$0xff]  }
   0x5   :  { %v253_v13 = vld [vmem:[%s367_s1 + $0x14] ss:$8 sps:$4 sm:$0xff]   ;;  %v255_v14 = vld [vmem:[%s367_s1 + $0x10] ss:$8 sps:$4 sm:$0xff]   ;;  %v256_v15 = vld [vmem:[%s367_s1 + $0x4] ss:$8 sps:$4 sm:$0xff]  }
   0x6   :  { %v258_v16 = vld [vmem:[%s367_s1] ss:$8 sps:$4 sm:$0xff]   ;;  %v17_v19 = vld [vmem:[%s368_s0 + $0x10] sm:$0xff]  ;;  %v18_v20 = vld [vmem:[%s368_s0 + $0x18] sm:$0xff]  ;;  %v40_v24 = vshrl.u32 %v39_v23, 7 }
   0x7   :  { %132 = vmatpush1.bf16.msra.mxu0 %v240_v4  ;;  %227 = vmatpush1.bf16.msra.mxu1 %v240_v4  ;;  %v15_v17 = vld [vmem:[%s368_s0] sm:$0xff]  ;;  %v16_v18 = vld [vmem:[%s368_s0 + $0x8] sm:$0xff]  ;;  %v20_v22 = vpack.c.bf16 %v18_v20, %v17_v19 }
   0x8   :  { %133 = vmatprep.subr.bf16.mxu0 %v241_v5  ;;  %220 = vmatprep.subr.bf16.mxu1 %v241_v5  ;;  %v19_v21 = vpack.c.bf16 %v16_v18, %v15_v17  ;;  %v41_v25 = vsub.s32 0, %v40_v24  ;;  %v37_v26 = vld [vmem:[%s369_s2] sm:$0x3]  ;;  %v45_v27 = vsub.s32 1, %v40_v24 }
   0xa   :  { %v42_v28 = vrot.slane %v37_v26, %v41_v25  ;;  %v46_v29 = vrot.slane %v37_v26, %v45_v27 }
   0xb   :  { %134 = vmatpush1.bf16.msra.mxu0 %v243_v6  ;;  %228 = vmatpush1.bf16.msra.mxu1 %v243_v6 }
   0xc   :  { %135 = vmatprep.subr.bf16.mxu0 %v244_v7  ;;  %221 = vmatprep.subr.bf16.mxu1 %v244_v7 }
   0xf   :  { %136 = vmatpush1.bf16.msra.mxu0 %v246_v8  ;;  %229 = vmatpush1.bf16.msra.mxu1 %v246_v8 }
  0x10   :  { %137 = vmatprep.subr.bf16.mxu0 %v247_v9  ;;  %222 = vmatprep.subr.bf16.mxu1 %v247_v9 }
  0x13   :  { %138 = vmatpush1.bf16.msra.mxu0 %v249_v10  ;;  %230 = vmatpush1.bf16.msra.mxu1 %v249_v10 }
  0x14   :  { %139 = vmatprep.subr.bf16.mxu0 %v250_v11  ;;  %223 = vmatprep.subr.bf16.mxu1 %v250_v11 }
  0x17   :  { %140 = vmatpush1.bf16.msra.mxu0 %v252_v12  ;;  %231 = vmatpush1.bf16.msra.mxu1 %v252_v12 }
  0x18   :  { %141 = vmatprep.subr.bf16.mxu0 %v253_v13  ;;  %224 = vmatprep.subr.bf16.mxu1 %v253_v13 }
  0x1b   :  { %142 = vmatpush1.bf16.msra.mxu0 %v255_v14  ;;  %232 = vmatpush1.bf16.msra.mxu1 %v255_v14 }
  0x1c   :  { %143 = vmatprep.subr.bf16.mxu0 %v256_v15  ;;  %225 = vmatprep.subr.bf16.mxu1 %v256_v15 }
  0x1f   :  { %144 = vmatpush1.bf16.msra.mxu0 %v258_v16  ;;  %233 = vmatpush1.bf16.msra.mxu1 %v258_v16 }
  0x22   :  { %162 = vmatmul.mubr.bf16.vlgmr.msra.gmra.mxu0 %v19_v21  ;;  %172 = vmatmul.mubr.bf16.vlgmr.msra.gmra.mxu1 %v20_v22 }
  0xe2   :  { %v163_v30 = vpop.f32.mrf.mxu0  ;;  %v173_v31 = vpop.f32.mrf.mxu1 }
  0xe3   :  { %v164_v32 = vadd.f32 %v163_v30, %v42_v28  ;;  %v174_v33 = vadd.f32 %v173_v31, %v42_v28 }
  0xe4   :  { %v165_v34 = vpop.f32.mrf.mxu0  ;;  %v175_v35 = vpop.f32.mrf.mxu1 }
  0xe5   :  { %v182_v36 = vmax.f32 %v164_v32, 0.0  ;;  %v186_v37 = vmax.f32 %v174_v33, 0.0  ;;  %v166_v38 = vadd.f32 %v165_v34, %v46_v29  ;;  %v176_v39 = vadd.f32 %v175_v35, %v46_v29 }
  0xe6   :  { %v167_v40 = vpop.f32.mrf.mxu0  ;;  %v177_v41 = vpop.f32.mrf.mxu1 }
  0xe7   :  { %190 = vst [vmem:[%s370_s3] sm:$0xff] %v182_v36  ;;  %194 = vst [vmem:[%s370_s3 + $0x20] sm:$0xff] %v186_v37  ;;  %v183_v42 = vmax.f32 %v166_v38, 0.0  ;;  %v187_v43 = vmax.f32 %v176_v39, 0.0  ;;  %v168_v44 = vadd.f32 %v167_v40, %v42_v28  ;;  %v178_v45 = vadd.f32 %v177_v41, %v42_v28 }
  0xe8   :  { %v169_v46 = vpop.f32.mrf.mxu0  ;;  %v179_v47 = vpop.f32.mrf.mxu1 }
  0xe9   :  { %191 = vst [vmem:[%s370_s3 + $0x8] sm:$0xff] %v183_v42  ;;  %195 = vst [vmem:[%s370_s3 + $0x28] sm:$0xff] %v187_v43  ;;  %v184_v48 = vmax.f32 %v168_v44, 0.0  ;;  %v188_v49 = vmax.f32 %v178_v45, 0.0  ;;  %v170_v50 = vadd.f32 %v169_v46, %v46_v29  ;;  %v180_v51 = vadd.f32 %v179_v47, %v46_v29 }
  0xeb   :  { %192 = vst [vmem:[%s370_s3 + $0x10] sm:$0xff] %v184_v48  ;;  %196 = vst [vmem:[%s370_s3 + $0x30] sm:$0xff] %v188_v49  ;;  %v185_v52 = vmax.f32 %v170_v50, 0.0  ;;  %v189_v53 = vmax.f32 %v180_v51, 0.0 }
  0xed   :  { %193 = vst [vmem:[%s370_s3 + $0x18] sm:$0xff] %v185_v52  ;;  %197 = vst [vmem:[%s370_s3 + $0x38] sm:$0xff] %v189_v53 }

// kernel: squeeze.19
= control target key start
LH: loop header
LB: loop body
LE: loop exit
PB: predicated region body
PF: predicated region fallthrough
CT: control target
= control target key end

     0   :  { %s129_s0 = inlined_call_operand.vmem [shape: f32[1,8,256], index: 0, kind: input, shape index: {}]   ;;  %s130_s1 = inlined_call_operand.vmem [shape: f32[1,2,1024], index: 1, kind: output, shape index: {}]  }
   0x1   :  { %v2_v0 = vld [vmem:[%s129_s0] sm:$0xff]   ;;  %v81_v1 = vld [vmem:[%s129_s0 + $0x8] sm:$0xff]  }
   0x2   :  { %3 = vst [vmem:[#allocation0] ss:$16 sm:$0x3] %v2_v0   ;;  %4 = vst [vmem:[#allocation0] ss:$16 sm:$0xc] %v2_v0  }
   0x3   :  { %6 = vst [vmem:[#allocation0 - $0x3f] ss:$16 sm:$0x30] %v2_v0   ;;  %8 = vst [vmem:[#allocation0 - $0x3f] ss:$16 sm:$0xc0] %v2_v0  }
   0x4   :  { %12 = vst [vmem:[#allocation0 + $0x8] ss:$16 sm:$0x3] %v81_v1   ;;  %14 = vst [vmem:[#allocation0 + $0x8] ss:$16 sm:$0xc] %v81_v1  }
   0x5   :  { %16 = vst [vmem:[#allocation0 - $0x37] ss:$16 sm:$0x30] %v81_v1   ;;  %18 = vst [vmem:[#allocation0 - $0x37] ss:$16 sm:$0xc0] %v81_v1  }
   0xa   :  { %v23_v2 = vld [vmem:[#allocation0] sm:$0x3]  ;;  %v34_v4 = vld [vmem:[#allocation0 + $0x10] sm:$0x3] }
   0xb   :  { %26 = vst [vmem:[%s130_s1] sm:$0x3] %v23_v2  ;;  %83 = vst [vmem:[%s130_s1 + $0x4] sm:$0x3] %v34_v4  ;;  %v48_v6 = vld [vmem:[#allocation0 + $0x20] sm:$0x3] }
   0xc   :  { %v28_v3 = vld [vmem:[#allocation0 + $0x8] sm:$0x3]  ;;  %v41_v5 = vld [vmem:[#allocation0 + $0x18] sm:$0x3]  ;;  %85 = vst [vmem:[%s130_s1 + $0x8] sm:$0x3] %v48_v6 }
   0xd   :  { %82 = vst [vmem:[%s130_s1 + $0x2] sm:$0x3] %v28_v3  ;;  %v55_v7 = vld [vmem:[#allocation0 + $0x28] sm:$0x3]  ;;  %84 = vst [vmem:[%s130_s1 + $0x6] sm:$0x3] %v41_v5 }
   0xe   :  { %86 = vst [vmem:[%s130_s1 + $0xa] sm:$0x3] %v55_v7  ;;  %v62_v8 = vld [vmem:[#allocation0 + $0x30] sm:$0x3]  ;;  %v69_v9 = vld [vmem:[#allocation0 + $0x38] sm:$0x3] }
   0xf   :  { %87 = vst [vmem:[%s130_s1 + $0xc] sm:$0x3] %v62_v8  ;;  %88 = vst [vmem:[%s130_s1 + $0xe] sm:$0x3] %v69_v9 }

// kernel: squeeze.13
= control target key start
LH: loop header
LB: loop body
LE: loop exit
PB: predicated region body
PF: predicated region fallthrough
CT: control target
= control target key end

     0   :  { %s130_s0 = inlined_call_operand.vmem [shape: f32[1,8,256], index: 0, kind: input, shape index: {}]   ;;  %s131_s1 = inlined_call_operand.vmem [shape: f32[2,2,2,256], index: 1, kind: output, shape index: {}]  }
   0x1   :  { %v2_v0 = vld [vmem:[%s130_s0] sm:$0xff]   ;;  %v82_v1 = vld [vmem:[%s130_s0 + $0x8] sm:$0xff]  }
   0x2   :  { %3 = vst [vmem:[#allocation0] sm:$0x3] %v2_v0   ;;  %5 = vst [vmem:[#allocation0 + $0xe] sm:$0xc] %v2_v0  }
   0x3   :  { %7 = vst [vmem:[#allocation0 + $0x1c] sm:$0x30] %v2_v0   ;;  %9 = vst [vmem:[#allocation0 + $0x2a] sm:$0xc0] %v2_v0  }
   0x4   :  { %13 = vst [vmem:[#allocation0 + $0x8] sm:$0x3] %v82_v1   ;;  %15 = vst [vmem:[#allocation0 + $0x16] sm:$0xc] %v82_v1  }
   0x5   :  { %17 = vst [vmem:[#allocation0 + $0x24] sm:$0x30] %v82_v1   ;;  %19 = vst [vmem:[#allocation0 + $0x32] sm:$0xc0] %v82_v1  }
   0x9   :  { %v24_v2 = vld [vmem:[#allocation0] sm:$0x3]  ;;  %v35_v4 = vld [vmem:[#allocation0 + $0x10] sm:$0x3] }
   0xa   :  { %27 = vst [vmem:[%s131_s1] sm:$0x3] %v24_v2  ;;  %84 = vst [vmem:[%s131_s1 + $0x4] sm:$0x3] %v35_v4  ;;  %v49_v6 = vld [vmem:[#allocation0 + $0x20] sm:$0x3] }
   0xb   :  { %v29_v3 = vld [vmem:[#allocation0 + $0x8] sm:$0x3]  ;;  %v42_v5 = vld [vmem:[#allocation0 + $0x18] sm:$0x3]  ;;  %86 = vst [vmem:[%s131_s1 + $0x8] sm:$0x3] %v49_v6 }
   0xc   :  { %83 = vst [vmem:[%s131_s1 + $0x2] sm:$0x3] %v29_v3  ;;  %v56_v7 = vld [vmem:[#allocation0 + $0x28] sm:$0x3]  ;;  %85 = vst [vmem:[%s131_s1 + $0x6] sm:$0x3] %v42_v5 }
   0xd   :  { %87 = vst [vmem:[%s131_s1 + $0xa] sm:$0x3] %v56_v7  ;;  %v63_v8 = vld [vmem:[#allocation0 + $0x30] sm:$0x3]  ;;  %v70_v9 = vld [vmem:[#allocation0 + $0x38] sm:$0x3] }
   0xe   :  { %88 = vst [vmem:[%s131_s1 + $0xc] sm:$0x3] %v63_v8  ;;  %89 = vst [vmem:[%s131_s1 + $0xe] sm:$0x3] %v70_v9 }

// kernel: target_model_forward.20
= control target key start
LH: loop header
LB: loop body
LE: loop exit
PB: predicated region body
PF: predicated region fallthrough
CT: control target
= control target key end

     0   :  { %s649_s12 = smov 0   ;;  %s716_s0 = inlined_call_operand.vmem [shape: f32[8,256], index: 0, kind: input, shape index: {}]   ;;  %s717_s1 = inlined_call_operand.vmem [shape: bf16[2,256,256], index: 1, kind: input, shape index: {}]   ;;  %s718_s2 = inlined_call_operand.vmem [shape: f32[2,1,256], index: 2, kind: input, shape index: {}]   ;;  %s719_s3 = inlined_call_operand.vmem [shape: f32[2,8,256], index: 3, kind: output, shape index: {}]  }
   0x1 LB: > { %s518_s13 = sadd.s32 4294967295, %s627_s12   ;;  %p522_p0 = scmp.ge.s32.totalorder %s627_s12, 1  ;;  %s627_s12 = sphi %s649_s12, %s13_s12  }
   0x2   : > { %p146_p1 = scmp.lt.s32.totalorder %s627_s12, 3 }
   0x4   : > { %p147_p2 = pnand %p522_p0, %p146_p1 }
   0x5   : > { %p174_p3 = scmp.lt.s32.totalorder (!%p147_p2), %s518_s13, 1  ;;  %p528_p4 = scmp.ne.s32.totalorder (!%p147_p2), %s518_s13, 0 }
   0x6   : > { %150 = sbr.rel (%p147_p2) target bundleno = 284 (0x11c), region = 32 }
   0xb   : > { %s175_s14 = scalar_select %p174_p3, %s518_s13, 1 }
   0xc   : > { %191 = sbr.rel (%p528_p4) target bundleno = 19 (0x13), region = 36 }
   0xd   : > { %s563_s15 = sshll.u32 %s175_s14, 8  ;;  %s525_s16 = sshll.u32 %s175_s14, 1 }
   0xe   : > { %s660_s19 = scalar_lea.vmem %s717_s1, %s563_s15  ;;  %s665_s22 = scalar_lea.vmem %s718_s2, %s525_s16 }
   0xf   : > { %s564_s23 = sshll.u32 %s175_s14, 4 }
  0x10   : > { %s670_s26 = scalar_lea.vmem %s719_s3, %s564_s23 }
  0x11   : > { %v192_v0 = vld [vmem:[%s716_s0] sm:$0xff]  ;;  %v193_v1 = vld [vmem:[%s716_s0 + $0x8] sm:$0xff] }
  0x12   : > { %194 = vst [vmem:[#allocation2] sm:$0xff] %v192_v0  ;;  %195 = vst [vmem:[#allocation2 + $0x8] sm:$0xff] %v193_v1 }
  0x13 PF: > { %v573_v2 = vld [vmem:[%s660_s19 + $0x74] ss:$8 sps:$4 sm:$0xff]   ;;  %v575_v3 = vld [vmem:[%s660_s19 + $0x70] ss:$8 sps:$4 sm:$0xff]   ;;  %v576_v4 = vld [vmem:[%s660_s19 + $0x64] ss:$8 sps:$4 sm:$0xff]   ;;  %v234_v38 = vlaneseq }
  0x14   : > { %404 = vmatprep.subr.bf16.mxu0 %v573_v2  ;;  %v578_v5 = vld [vmem:[%s660_s19 + $0x60] ss:$8 sps:$4 sm:$0xff]   ;;  %v579_v6 = vld [vmem:[%s660_s19 + $0x54] ss:$8 sps:$4 sm:$0xff]   ;;  %v581_v7 = vld [vmem:[%s660_s19 + $0x50] ss:$8 sps:$4 sm:$0xff]  }
  0x15   : > { %405 = vmatpush1.bf16.msra.mxu0 %v575_v3  ;;  %v582_v8 = vld [vmem:[%s660_s19 + $0x44] ss:$8 sps:$4 sm:$0xff]   ;;  %v584_v9 = vld [vmem:[%s660_s19 + $0x40] ss:$8 sps:$4 sm:$0xff]   ;;  %v585_v10 = vld [vmem:[%s660_s19 + $0x34] ss:$8 sps:$4 sm:$0xff]  }
  0x16   : > { %406 = vmatprep.subr.bf16.mxu0 %v576_v4  ;;  %v587_v11 = vld [vmem:[%s660_s19 + $0x30] ss:$8 sps:$4 sm:$0xff]   ;;  %v588_v12 = vld [vmem:[%s660_s19 + $0x24] ss:$8 sps:$4 sm:$0xff]   ;;  %v590_v13 = vld [vmem:[%s660_s19 + $0x20] ss:$8 sps:$4 sm:$0xff]  }
  0x17   : > { %v591_v14 = vld [vmem:[%s660_s19 + $0x14] ss:$8 sps:$4 sm:$0xff]   ;;  %v593_v17 = vld [vmem:[%s660_s19 + $0x10] ss:$8 sps:$4 sm:$0xff]   ;;  %v594_v18 = vld [vmem:[%s660_s19 + $0x4] ss:$8 sps:$4 sm:$0xff]  }
  0x18   : > { %v596_v19 = vld [vmem:[%s660_s19] ss:$8 sps:$4 sm:$0xff]   ;;  %v597_v20 = vld [vmem:[%s660_s19 + $0xf4] ss:$8 sps:$4 sm:$0xff]   ;;  %v599_v21 = vld [vmem:[%s660_s19 + $0xf0] ss:$8 sps:$4 sm:$0xff]  }
  0x19   : > { %407 = vmatpush1.bf16.msra.mxu0 %v578_v5  ;;  %v197_v15 = vld [vmem:[#allocation2 + $0x8] sm:$0xff]  ;;  %v603_v24 = vld [vmem:[%s660_s19 + $0xd4] ss:$8 sps:$4 sm:$0xff]   ;;  %v605_v25 = vld [vmem:[%s660_s19 + $0xd0] ss:$8 sps:$4 sm:$0xff]   ;;  %v235_v39 = vshrl.u32 %v234_v38, 7 }
  0x1a   : > { %408 = vmatprep.subr.bf16.mxu0 %v579_v6  ;;  %v199_v16 = vpack.c.bf16 %v197_v15, %v197_v15  ;;  %v600_v22 = vld [vmem:[%s660_s19 + $0xe4] ss:$8 sps:$4 sm:$0xff]   ;;  %v602_v23 = vld [vmem:[%s660_s19 + $0xe0] ss:$8 sps:$4 sm:$0xff]   ;;  %v609_v28 = vld [vmem:[%s660_s19 + $0xb4] ss:$8 sps:$4 sm:$0xff]  }
  0x1b   : > { %v606_v26 = vld [vmem:[%s660_s19 + $0xc4] ss:$8 sps:$4 sm:$0xff]   ;;  %v608_v27 = vld [vmem:[%s660_s19 + $0xc0] ss:$8 sps:$4 sm:$0xff]   ;;  %v611_v29 = vld [vmem:[%s660_s19 + $0xb0] ss:$8 sps:$4 sm:$0xff]  }
  0x1c   : > { %436 = vmatprep.mubr.bf16.mxu0 %v199_v16  ;;  %v612_v30 = vld [vmem:[%s660_s19 + $0xa4] ss:$8 sps:$4 sm:$0xff]   ;;  %v614_v31 = vld [vmem:[%s660_s19 + $0xa0] ss:$8 sps:$4 sm:$0xff]   ;;  %v615_v32 = vld [vmem:[%s660_s19 + $0x94] ss:$8 sps:$4 sm:$0xff]  }
  0x1d   : > { %409 = vmatpush1.bf16.msra.mxu0 %v581_v7  ;;  %v617_v33 = vld [vmem:[%s660_s19 + $0x90] ss:$8 sps:$4 sm:$0xff]   ;;  %v618_v34 = vld [vmem:[%s660_s19 + $0x84] ss:$8 sps:$4 sm:$0xff]   ;;  %v620_v35 = vld [vmem:[%s660_s19 + $0x80] ss:$8 sps:$4 sm:$0xff]  }
  0x1e   : > { %410 = vmatprep.subr.bf16.mxu0 %v582_v8  ;;  %v196_v36 = vld [vmem:[#allocation2] sm:$0xff]  ;;  %v236_v40 = vsub.s32 0, %v235_v39  ;;  %v240_v42 = vsub.s32 1, %v235_v39 }
  0x1f   : > { %v198_v37 = vpack.c.bf16 %v196_v36, %v196_v36  ;;  %v232_v41 = vld [vmem:[%s665_s22] sm:$0x3] }
  0x20   : > { %v237_v43 = vrot.slane %v232_v41, %v236_v40  ;;  %v241_v44 = vrot.slane %v232_v41, %v240_v42 }
  0x21   : > { %411 = vmatpush1.bf16.msra.mxu0 %v584_v9 }
  0x22   : > { %412 = vmatprep.subr.bf16.mxu0 %v585_v10 }
  0x25   : > { %413 = vmatpush1.bf16.msra.mxu0 %v587_v11 }
  0x26   : > { %414 = vmatprep.subr.bf16.mxu0 %v588_v12 }
  0x29   : > { %415 = vmatpush1.bf16.msra.mxu0 %v590_v13 }
  0x2a   : > { %416 = vmatprep.subr.bf16.mxu0 %v591_v14 }
  0x2d   : > { %417 = vmatpush1.bf16.msra.mxu0 %v593_v17 }
  0x2e   : > { %418 = vmatprep.subr.bf16.mxu0 %v594_v18 }
  0x31   : > { %419 = vmatpush1.bf16.msra.mxu0 %v596_v19 }
  0x32   : > { %420 = vmatprep.subr.bf16.mxu0 %v597_v20 }
  0x35   : > { %421 = vmatpush2.bf16.msra.mxu0 %v599_v21 }
  0x36   : > { %422 = vmatprep.subr.bf16.mxu0 %v600_v22 }
  0x39   : > { %423 = vmatpush2.bf16.msra.mxu0 %v602_v23 }
  0x3a   : > { %424 = vmatprep.subr.bf16.mxu0 %v603_v24 }
  0x3d   : > { %425 = vmatpush2.bf16.msra.mxu0 %v605_v25 }
  0x3e   : > { %426 = vmatprep.subr.bf16.mxu0 %v606_v26 }
  0x41   : > { %427 = vmatpush2.bf16.msra.mxu0 %v608_v27 }
  0x42   : > { %428 = vmatprep.subr.bf16.mxu0 %v609_v28 }
  0x45   : > { %429 = vmatpush2.bf16.msra.mxu0 %v611_v29 }
  0x46   : > { %430 = vmatprep.subr.bf16.mxu0 %v612_v30 }
  0x49   : > { %431 = vmatpush2.bf16.msra.mxu0 %v614_v31 }
  0x4a   : > { %432 = vmatprep.subr.bf16.mxu0 %v615_v32 }
  0x4d   : > { %433 = vmatpush2.bf16.msra.mxu0 %v617_v33 }
  0x4e   : > { %434 = vmatprep.subr.bf16.mxu0 %v618_v34 }
  0x51   : > { %435 = vmatpush2.bf16.msra.mxu0 %v620_v35 }
  0x54   : > { %437 = vmatmul.mubr.bf16.vlgmr.msra.gmra.mxu0 %v198_v37 }
 0x114   : > { %v438_v45 = vpop.f32.mrf.mxu0 }
 0x115   : > { %v439_v46 = vadd.f32 %v438_v45, %v237_v43 }
 0x116   : > { %v440_v47 = vpop.f32.mrf.mxu0 }
 0x117   : > { %v445_v48 = vmax.f32 %v439_v46, 0.0  ;;  %v441_v49 = vadd.f32 %v440_v47, %v241_v44 }
 0x118   : > { %v442_v50 = vpop.f32.mrf.mxu0 }
 0x119   : > { %447 = vst [vmem:[#allocation2] sm:$0xff] %v445_v48  ;;  %449 = vst [vmem:[%s670_s26] sm:$0xff] %v445_v48  ;;  %v446_v51 = vmax.f32 %v441_v49, 0.0 }
 0x11a   : > { %v443_v52 = vpop.f32.mrf.mxu0 }
 0x11b   : > { %448 = vst [vmem:[#allocation2 + $0x8] sm:$0xff] %v446_v51  ;;  %450 = vst [vmem:[%s670_s26 + $0x8] sm:$0xff] %v446_v51 }
 0x11c PF: > { %s13_s12 = sadd.s32 1, %s627_s12  }
 0x11d   : > { %p10_p5 = scmp.ge.s32.totalorder %s13_s12, 4  }
 0x11f   :  { %12 = sbr.rel (!%p10_p5) target bundleno = 1 (0x1), region = 69 }

// kernel: target_model_forward.21
= control target key start
LH: loop header
LB: loop body
LE: loop exit
PB: predicated region body
PF: predicated region fallthrough
CT: control target
= control target key end

     0   :  { %s342_s1 = inlined_call_operand.vmem [shape: bf16[256,128], index: 1, kind: input, shape index: {}]   ;;  %s343_s0 = inlined_call_operand.vmem [shape: f32[2,256], index: 0, kind: input, shape index: {}]   ;;  %s344_s2 = inlined_call_operand.vmem [shape: f32[1,128], index: 2, kind: input, shape index: {}]   ;;  %s345_s3 = inlined_call_operand.vmem [shape: f32[2,128], index: 3, kind: output, shape index: {}]  }
   0x1   :  { %v249_v0 = vld [vmem:[%s342_s1 + $0x78] sm:$0xff]   ;;  %v251_v2 = vld [vmem:[%s342_s1 + $0x70] sm:$0xff]   ;;  %v253_v4 = vld [vmem:[%s342_s1 + $0x68] sm:$0xff]  }
   0x2   :  { %v250_v1 = vld [vmem:[%s342_s1 + $0x38] sm:$0xff]   ;;  %227 = vmatprep.subr.bf16.mxu0 %v249_v0  ;;  %v252_v3 = vld [vmem:[%s342_s1 + $0x30] sm:$0xff]   ;;  %v254_v5 = vld [vmem:[%s342_s1 + $0x28] sm:$0xff]  }
   0x3   :  { %228 = vmatpush3.bf16.msra.mxu0 %v250_v1  ;;  %v255_v6 = vld [vmem:[%s342_s1 + $0x60] sm:$0xff]   ;;  %v257_v8 = vld [vmem:[%s342_s1 + $0x58] sm:$0xff]   ;;  %v259_v10 = vld [vmem:[%s342_s1 + $0x50] sm:$0xff]  }
   0x4   :  { %229 = vmatprep.subr.bf16.mxu0 %v251_v2  ;;  %v256_v7 = vld [vmem:[%s342_s1 + $0x20] sm:$0xff]   ;;  %v258_v9 = vld [vmem:[%s342_s1 + $0x18] sm:$0xff]   ;;  %v260_v13 = vld [vmem:[%s342_s1 + $0x10] sm:$0xff]  }
   0x5   :  { %v209_v11 = vld.sshfl [vmem:[%s343_s0] sm:$0x33 pattern:$0x76325410]  ;;  %v261_v15 = vld [vmem:[%s342_s1 + $0x48] sm:$0xff]  }
   0x6   :  { %v24_v12 = vcombine.high %v209_v11, %v209_v11  ;;  %v262_v16 = vld [vmem:[%s342_s1 + $0x8] sm:$0xff]   ;;  %v263_v17 = vld [vmem:[%s342_s1 + $0x40] sm:$0xff]   ;;  %v27_v19 = vpack.c.bf16 %v209_v11, %v209_v11 }
   0x7   :  { %230 = vmatpush3.bf16.msra.mxu0 %v252_v3  ;;  %v264_v18 = vld [vmem:[%s342_s1] sm:$0xff]  }
   0x8   :  { %231 = vmatprep.subr.bf16.mxu0 %v253_v4  ;;  %v28_v14 = vpack.c.bf16 %v24_v12, %v24_v12  ;;  %v210_v21 = vld [vmem:[%s344_s2] ss:$0 sm:$0xff] }
   0xa   :  { %196 = vmatprep.mubr.bf16.mxu0 %v28_v14 }
   0xb   :  { %232 = vmatpush3.bf16.msra.mxu0 %v254_v5 }
   0xc   :  { %233 = vmatprep.subr.bf16.mxu0 %v255_v6 }
   0xf   :  { %234 = vmatpush3.bf16.msra.mxu0 %v256_v7 }
  0x10   :  { %235 = vmatprep.subr.bf16.mxu0 %v257_v8 }
  0x13   :  { %236 = vmatpush3.bf16.msra.mxu0 %v258_v9 }
  0x14   :  { %237 = vmatprep.subr.bf16.mxu0 %v259_v10 }
  0x17   :  { %238 = vmatpush3.bf16.msra.mxu0 %v260_v13 }
  0x18   :  { %239 = vmatprep.subr.bf16.mxu0 %v261_v15 }
  0x1b   :  { %240 = vmatpush3.bf16.msra.mxu0 %v262_v16 }
  0x1c   :  { %241 = vmatprep.subr.bf16.mxu0 %v263_v17 }
  0x1f   :  { %242 = vmatpush3.bf16.msra.mxu0 %v264_v18 }
  0x22   :  { %197 = vmatmul.mubr.bf16.vlgmr.msra.gmra.mxu0 %v27_v19 }
  0xe2   :  { %v243_v20 = vpop.f32.mrf.mxu0 }
  0xe4   :  { %v244_v22 = vpop.f32.mrf.mxu0 }
  0xe5   :  { %v245_v23 = vadd.f32 %v244_v22, %v243_v20 }
  0xe6   :  { %v246_v24 = vpop.f32.mrf.mxu0 }
  0xe7   :  { %v199_v25 = vadd.f32 %v245_v23, %v210_v21 }
  0xe8   :  { %v247_v26 = vpop.f32.mrf.mxu0 }
  0xe9   :  { %204 = vst [vmem:[%s345_s3] sm:$0x3] %v199_v25 }

// kernel: target_model_forward.23
= control target key start
LH: loop header
LB: loop body
LE: loop exit
PB: predicated region body
PF: predicated region fallthrough
CT: control target
= control target key end

     0   :  { %v17_v0 = vlaneseq  ;;  %vm28_vm0 = vcmask 1041408   ;;  %s234_s0 = inlined_call_operand.vmem [shape: f32[8,2,128], index: 0, kind: input, shape index: {}]   ;;  %s235_s1 = inlined_call_operand.hbm [shape: f32[2,128], index: 1, kind: output, shape index: {}]  }
   0x1   :  { %v11_v1 = vld [vmem:[%s234_s0 + $0x4] sm:$0x3]  ;;  %v9_v3 = vld [vmem:[%s234_s0] sm:$0x3]  ;;  %v12_v4 = vld [vmem:[%s234_s0 + $0x6] sm:$0x3] }
   0x2   :  { %v18_v2 = vand.u32 127, %v17_v0  ;;  %v10_v5 = vld [vmem:[%s234_s0 + $0x2] sm:$0x3] }
   0x3   :  { %6 = vsyncpa [#allocation3], 0  ;;  %v14_v6 = vld [vmem:[%s234_s0 + $0xa] sm:$0x3]  ;;  %v13_v13 = vld [vmem:[%s234_s0 + $0x8] sm:$0x3] }
   0x4   :  { %vm19_vm1 = vcmp.lt.s32.totalorder %v18_v2, 10  ;;  %v16_v18 = vld [vmem:[%s234_s0 + $0xe] sm:$0x3]  ;;  %v15_v19 = vld [vmem:[%s234_s0 + $0xc] sm:$0x3]  ;;  %s172_s0 = smov [#allocation2]  }
   0x5   :  { %v22_v7 = vsel %vm19_vm1, %v11_v1, -1e+30  ;;  %v20_v8 = vsel %vm19_vm1, %v9_v3, -1e+30  ;;  %v23_v9 = vsel %vm19_vm1, %v12_v4, -1e+30 }
   0x6   :  { %v35_v10 = vsel %vm28_vm0, %v22_v7, -inf  ;;  %v29_v11 = vsel %vm28_vm0, %v20_v8, -inf  ;;  %v21_v12 = vsel %vm19_vm1, %v10_v5, -1e+30  ;;  %v38_v14 = vsel %vm28_vm0, %v23_v9, -inf  ;;  %s141_s22 = sshll.u32 %s172_s0, 4  ;;  %s142_s22 = int_to_ptr.vmem [resolvable:$true] %s141_s22 }
   0x7   :  { %36 = vmax.xlane.f32.xlu1 %v35_v10  ;;  %30 = vmax.xlane.f32.xlu0 %v29_v11  ;;  %v32_v15 = vsel %vm28_vm0, %v21_v12, -inf  ;;  %v25_v16 = vsel %vm19_vm1, %v14_v6, -1e+30  ;;  %v24_v17 = vsel %vm19_vm1, %v13_v13, -1e+30  ;;  %s150_s23 = scalar_lea.vmem %s142_s22, 32  ;;  %p155_p1 = scmp.lt.s32.totalorder %s142_s22, %s142_s22 }
   0x8   :  { %v44_v20 = vsel %vm28_vm0, %v25_v16, -inf  ;;  %v41_v21 = vsel %vm28_vm0, %v24_v17, -inf  ;;  %v27_v22 = vsel %vm19_vm1, %v16_v18, -1e+30  ;;  %v26_v23 = vsel %vm19_vm1, %v15_v19, -1e+30  ;;  %p151_p0 = scmp.ne.s32.totalorder %s142_s22, %s150_s23  ;;  %p156_p2 = scmp.lt.s32.totalorder %s150_s23, %s150_s23 }
   0x9   :  { %v50_v24 = vsel %vm28_vm0, %v27_v22, -inf  ;;  %v47_v25 = vsel %vm28_vm0, %v26_v23, -inf }
   0xa   :  { %p157_p3 = por %p156_p2, %p155_p1 }
   0xb   :  { %39 = vmax.xlane.f32.xlu1 %v38_v14  ;;  %33 = vmax.xlane.f32.xlu0 %v32_v15 }
   0xc   :  { %p158_p4 = pnand %p157_p3, %p151_p0 }
   0xf   :  { %45 = vmax.xlane.f32.xlu1 %v44_v20  ;;  %42 = vmax.xlane.f32.xlu0 %v41_v21 }
  0x13   :  { %51 = vmax.xlane.f32.xlu1 %v50_v24  ;;  %48 = vmax.xlane.f32.xlu0 %v47_v25 }
  0x90   :  { %v37_v26 = vpop.xlane.xlu1 %36  ;;  %v31_v27 = vpop.xlane.xlu0 %30 }
  0x91   :  { %v53_v32 = vsub.f32 %v20_v8, %v31_v27  ;;  %v55_v36 = vsub.f32 %v22_v7, %v37_v26 }
  0x93   :  { %v61_v42 = vsel %vm28_vm0, %v53_v32, -inf  ;;  %v63_v48 = vsel %vm28_vm0, %v55_v36, -inf }
  0x94   :  { %v40_v28 = vpop.xlane.xlu1 %39  ;;  %v34_v29 = vpop.xlane.xlu0 %33 }
  0x95   :  { %v54_v33 = vsub.f32 %v21_v12, %v34_v29  ;;  %v56_v37 = vsub.f32 %v23_v9, %v40_v28 }
  0x97   :  { %v62_v43 = vsel %vm28_vm0, %v54_v33, -inf  ;;  %v64_v49 = vsel %vm28_vm0, %v56_v37, -inf }
  0x98   :  { %v46_v30 = vpop.xlane.xlu1 %45  ;;  %v43_v31 = vpop.xlane.xlu0 %42 }
  0x99   :  { %v58_v34 = vsub.f32 %v25_v16, %v46_v30  ;;  %v57_v35 = vsub.f32 %v24_v17, %v43_v31 }
  0x9b   :  { %v67_v38 = vsel %vm28_vm0, %v58_v34, -inf  ;;  %v65_v39 = vsel %vm28_vm0, %v57_v35, -inf }
  0x9c   :  { %v52_v40 = vpop.xlane.xlu1 %51  ;;  %v49_v41 = vpop.xlane.xlu0 %48  ;;  %v68_v46 = vmax.f32 %v62_v43, %v67_v38  ;;  %v66_v47 = vmax.f32 %v61_v42, %v65_v39 }
  0x9d   :  { %v60_v44 = vsub.f32 %v27_v22, %v52_v40  ;;  %v59_v45 = vsub.f32 %v26_v23, %v49_v41 }
  0x9e   :  { %v73_v54 = vmax.f32 %v66_v47, %v68_v46 }
  0x9f   :  { %v71_v50 = vsel %vm28_vm0, %v60_v44, -inf  ;;  %v69_v51 = vsel %vm28_vm0, %v59_v45, -inf }
  0xa0   :  { %v72_v52 = vmax.f32 %v64_v49, %v71_v50  ;;  %v70_v53 = vmax.f32 %v63_v48, %v69_v51 }
  0xa2   :  { %v74_v55 = vmax.f32 %v70_v53, %v72_v52 }
  0xa4   :  { %v75_v56 = vmax.f32 %v73_v54, %v74_v55 }
  0xa6   :  { %v76_v57 = vsub.f32 %v53_v32, %v75_v56  ;;  %v77_v58 = vsub.f32 %v54_v33, %v75_v56  ;;  %v78_v59 = vsub.f32 %v55_v36, %v75_v56  ;;  %v79_v0 = vsub.f32 %v56_v37, %v75_v56 }
  0xa7   :  { %v80_v5 = vsub.f32 %v57_v35, %v75_v56  ;;  %v81_v11 = vsub.f32 %v58_v34, %v75_v56  ;;  %v82_v18 = vsub.f32 %v59_v45, %v75_v56  ;;  %v83_v24 = vsub.f32 %v60_v44, %v75_v56 }
  0xa8   :  { %vm84_vm2 = vcmp.gt.f32.partialorder %v76_v57, -1e+30  ;;  %vm87_vm3 = vcmp.gt.f32.partialorder %v77_v58, -1e+30  ;;  %vm93_vm4 = vcmp.gt.f32.partialorder %v78_v59, -1e+30 }
  0xa9   :  { %v85_v60 = vsel %vm84_vm2, %v76_v57, -1e+30  ;;  %v89_v61 = vsel %vm87_vm3, %v77_v58, -1e+30  ;;  %v97_v1 = vsel %vm93_vm4, %v78_v59, -1e+30 }
  0xaa   :  { %vm86_vm5 = vcmp.gt.f32.partialorder %v77_v58, %v85_v60 }
  0xab   :  { %v88_v62 = vsel %vm86_vm5, %v77_v58, %v85_v60  ;;  %v90_v63 = vsel %vm86_vm5, %v85_v60, %v89_v61 }
  0xac   :  { %vm91_vm6 = vcmp.gt.f32.partialorder %v78_v59, %v88_v62  ;;  %vm92_vm7 = vcmp.gt.f32.partialorder %v78_v59, %v90_v63 }
  0xad   :  { %v94_v2 = vsel %vm91_vm6, %v78_v59, %v88_v62  ;;  %v95_v3 = vsel %vm92_vm7, %v78_v59, %v90_v63  ;;  %v98_v4 = vsel %vm92_vm7, %v90_v63, %v97_v1 }
  0xae   :  { %v96_v6 = vsel %vm91_vm6, %v88_v62, %v95_v3  ;;  %vm99_vm8 = vcmp.gt.f32.partialorder %v79_v0, %v94_v2  ;;  %vm101_vm9 = vcmp.gt.f32.partialorder %v79_v0, %v98_v4 }
  0xaf   :  { %vm100_vm10 = vcmp.gt.f32.partialorder %v79_v0, %v96_v6  ;;  %v102_v7 = vsel %vm99_vm8, %v79_v0, %v94_v2  ;;  %v105_v8 = vsel %vm101_vm9, %v79_v0, %v98_v4 }
  0xb0   :  { %v103_v9 = vsel %vm100_vm10, %v79_v0, %v96_v6  ;;  %v106_v10 = vsel %vm100_vm10, %v96_v6, %v105_v8  ;;  %vm107_vm11 = vcmp.gt.f32.partialorder %v80_v5, %v102_v7 }
  0xb1   :  { %v104_v12 = vsel %vm99_vm8, %v94_v2, %v103_v9  ;;  %vm109_vm12 = vcmp.gt.f32.partialorder %v80_v5, %v106_v10  ;;  %v110_v13 = vsel %vm107_vm11, %v80_v5, %v102_v7 }
  0xb2   :  { %vm108_vm13 = vcmp.gt.f32.partialorder %v80_v5, %v104_v12  ;;  %v113_v14 = vsel %vm109_vm12, %v80_v5, %v106_v10  ;;  %vm115_vm14 = vcmp.gt.f32.partialorder %v81_v11, %v110_v13 }
  0xb3   :  { %v111_v15 = vsel %vm108_vm13, %v80_v5, %v104_v12  ;;  %v114_v16 = vsel %vm108_vm13, %v104_v12, %v113_v14  ;;  %v118_v20 = vsel %vm115_vm14, %v81_v11, %v110_v13 }
  0xb4   :  { %v112_v17 = vsel %vm107_vm11, %v102_v7, %v111_v15  ;;  %vm117_vm15 = vcmp.gt.f32.partialorder %v81_v11, %v114_v16  ;;  %vm123_vm3 = vcmp.gt.f32.partialorder %v82_v18, %v118_v20 }
  0xb5   :  { %vm116_vm0 = vcmp.gt.f32.partialorder %v81_v11, %v112_v17  ;;  %v121_v19 = vsel %vm117_vm15, %v81_v11, %v114_v16 }
  0xb6   :  { %v119_v21 = vsel %vm116_vm0, %v81_v11, %v112_v17  ;;  %v122_v22 = vsel %vm116_vm0, %v112_v17, %v121_v19 }
  0xb7   :  { %v120_v23 = vsel %vm115_vm14, %v110_v13, %v119_v21  ;;  %vm125_vm1 = vcmp.gt.f32.partialorder %v82_v18, %v122_v22 }
  0xb8   :  { %vm124_vm2 = vcmp.gt.f32.partialorder %v82_v18, %v120_v23  ;;  %v128_v25 = vsel %vm125_vm1, %v82_v18, %v122_v22 }
  0xb9   :  { %v126_v26 = vsel %vm124_vm2, %v82_v18, %v120_v23  ;;  %v129_v27 = vsel %vm124_vm2, %v120_v23, %v128_v25 }
  0xba   :  { %v127_v28 = vsel %vm123_vm3, %v118_v20, %v126_v26  ;;  %vm131_vm4 = vcmp.gt.f32.partialorder %v83_v24, %v129_v27 }
  0xbb   :  { %vm130_vm5 = vcmp.gt.f32.partialorder %v83_v24, %v127_v28  ;;  %v132_v29 = vsel %vm131_vm4, %v83_v24, %v129_v27 }
  0xbc   :  { %v133_v30 = vsel %vm130_vm5, %v127_v28, %v132_v29 }
  0xbd   :  { %134 = vst [vmem:[#allocation2] sm:$0x3] %v133_v30 }
  0xbe   :  { %161 = shalt.err (!%p158_p4)
}
  0xbf   :  { %144 = dma.vmem_to_hbm [thread:$0]  %s142_s22, 32, %s235_s1, [#allocation3]  }
  0xc0   :  { %170 = dma.done.wait [#allocation3], 32  }
  0xc1   :  { %171 = vsyncadd [#allocation3], 4294967264 }
  0xc2   :  { %148 = vsyncpa [#allocation3], 1 }

// kernel: target_model_forward.22
= control target key start
LH: loop header
LB: loop body
LE: loop exit
PB: predicated region body
PF: predicated region fallthrough
CT: control target
= control target key end

     0   :  { %s3325_s18 = smov 0   ;;  %s3763_s0 = inlined_call_operand.vmem [shape: f32[7,2,2048], index: 0, kind: input, shape index: {}]   ;;  %s3764_s1 = inlined_call_operand.vmem [shape: f32[7,1,2048], index: 1, kind: input, shape index: {}]   ;;  %s3765_s2 = inlined_call_operand.vmem [shape: f32[7,1,2048], index: 2, kind: input, shape index: {}]   ;;  %s3766_s3 = inlined_call_operand.vmem [shape: bf16[7,2048,128], index: 3, kind: input, shape index: {}]   ;;  %s3767_s4 = inlined_call_operand.vmem [shape: f32[7,1,128], index: 4, kind: input, shape index: {}]   ;;  %s3768_s5 = inlined_call_operand.vmem [shape: f32[7,2,128], index: 5, kind: output, shape index: {}]  }
   0x1 LB: > { %s2792_s19 = sadd.s32 4294967295, %s3292_s18   ;;  %p2796_p0 = scmp.ge.s32.totalorder %s3292_s18, 1  ;;  %s3292_s18 = sphi %s3325_s18, %s15_s18  }
   0x2   : > { %p223_p1 = scmp.lt.s32.totalorder %s3292_s18, 8 }
   0x4   : > { %p224_p2 = pnand %p2796_p0, %p223_p1 }
   0x5   : > { %p266_p3 = scmp.lt.s32.totalorder (!%p224_p2), %s2792_s19, 6 }
   0x6   : > { %227 = sbr.rel (%p224_p2) target bundleno = 423 (0x1a7), region = 40 }
   0xb   : > { %s3770_s19 = smov (!%p266_p3, %s2792_s19), 6  ;;  %v3294_v22 = vmov 1983009808   ;;  %v304_v24 = vlaneseq  ;;  %vm384_vm0 = vcmask 1041408  }
   0xc   : > { %s2936_s20 = sshll.u32 %s3770_s19, 10  ;;  %v302_v23 = vunpack.c.l.s4 %v3294_v22  ;;  %s2935_s24 = sshll.u32 %s3770_s19, 5 }
   0xd   : > { %s3339_s23 = scalar_lea.vmem %s3766_s3, %s2936_s20  ;;  %v3367_v30 = vshrl.u32 %v304_v24, 7  ;;  %s3377_s27 = scalar_lea.vmem %s3763_s0, %s2935_s24 }
   0xe   : > { %v3122_v0 = vld [vmem:[%s3339_s23 + $0x78] sm:$0xff]   ;;  %v3126_v4 = vld [vmem:[%s3339_s23 + $0x70] sm:$0xff]   ;;  %v3130_v8 = vld [vmem:[%s3339_s23 + $0x68] sm:$0xff]   ;;  %v303_v29 = vunpack.c.0.s8 %v302_v23  ;;  %s2799_s28 = sshll.u32 %s3770_s19, 4  ;;  %s286_s12 = scalar_lea.vmem %s3767_s4, %s3770_s19 }
   0xf   : > { %v3123_v1 = vld [vmem:[%s3339_s23 + $0x38] sm:$0xff]   ;;  %2937 = vmatprep.subr.bf16.mxu0 %v3122_v0  ;;  %v3127_v5 = vld [vmem:[%s3339_s23 + $0x30] sm:$0xff]   ;;  %v3131_v9 = vld [vmem:[%s3339_s23 + $0x28] sm:$0xff]   ;;  %v3399_v58 = vsub.s32 0, %v3367_v30  ;;  %s3408_s6 = scalar_lea.vmem %s3764_s1, %s2799_s28  ;;  %s3416_s9 = scalar_lea.vmem %s3765_s2, %s2799_s28 }
  0x10   : > { %v3124_v2 = vld [vmem:[%s3339_s23 + $0xf8] sm:$0xff]   ;;  %2938 = vmatpush3.bf16.msra.mxu0 %v3123_v1  ;;  %v3128_v6 = vld [vmem:[%s3339_s23 + $0xf0] sm:$0xff]   ;;  %v3132_v10 = vld [vmem:[%s3339_s23 + $0xe8] sm:$0xff]   ;;  %v3380_v35 = vsub.s32 %v303_v29, %v3367_v30  ;;  %s2803_s13 = sshll.u32 %s3770_s19, 1 }
  0x11   : > { %v3125_v3 = vld [vmem:[%s3339_s23 + $0xb8] sm:$0xff]   ;;  %2959 = vmatprep.subr.bf16.mxu1 %v3124_v2  ;;  %2939 = vmatprep.subr.bf16.mxu0 %v3126_v4  ;;  %v3129_v7 = vld [vmem:[%s3339_s23 + $0xb0] sm:$0xff]   ;;  %v3133_v11 = vld [vmem:[%s3339_s23 + $0xa8] sm:$0xff]   ;;  %s290_s16 = scalar_lea.vmem %s3768_s5, %s2803_s13 }
  0x12   : > { %2960 = vmatpush3.bf16.msra.mxu1 %v3125_v3  ;;  %v3134_v12 = vld [vmem:[%s3339_s23 + $0x60] sm:$0xff]   ;;  %v3138_v16 = vld [vmem:[%s3339_s23 + $0x58] sm:$0xff]   ;;  %v3142_v20 = vld [vmem:[%s3339_s23 + $0x50] sm:$0xff]  }
  0x13   : > { %2961 = vmatprep.subr.bf16.mxu1 %v3128_v6  ;;  %v3135_v13 = vld [vmem:[%s3339_s23 + $0x20] sm:$0xff]   ;;  %v3139_v17 = vld [vmem:[%s3339_s23 + $0x18] sm:$0xff]   ;;  %v3143_v21 = vld [vmem:[%s3339_s23 + $0x10] sm:$0xff]  }
  0x14   : > { %2940 = vmatpush3.bf16.msra.mxu0 %v3127_v5  ;;  %v3136_v14 = vld [vmem:[%s3339_s23 + $0xe0] sm:$0xff]   ;;  %v3140_v18 = vld [vmem:[%s3339_s23 + $0xd8] sm:$0xff]   ;;  %v3144_v25 = vld [vmem:[%s3339_s23 + $0xd0] sm:$0xff]  }
  0x15   : > { %2941 = vmatprep.subr.bf16.mxu0 %v3130_v8  ;;  %v3137_v15 = vld [vmem:[%s3339_s23 + $0xa0] sm:$0xff]   ;;  %v3141_v19 = vld [vmem:[%s3339_s23 + $0x98] sm:$0xff]   ;;  %v3145_v26 = vld [vmem:[%s3339_s23 + $0x90] sm:$0xff]  }
  0x16   : > { %2962 = vmatpush3.bf16.msra.mxu1 %v3129_v7  ;;  %v3146_v27 = vld [vmem:[%s3339_s23 + $0x48] sm:$0xff]   ;;  %v3150_v33 = vld [vmem:[%s3339_s23 + $0x40] sm:$0xff]   ;;  %v3155_v41 = vld [vmem:[%s3339_s23 + $0x178] sm:$0xff]  }
  0x17   : > { %2963 = vmatprep.subr.bf16.mxu1 %v3132_v10  ;;  %v3147_v28 = vld [vmem:[%s3339_s23 + $0x8] sm:$0xff]   ;;  %v3151_v34 = vld [vmem:[%s3339_s23] sm:$0xff]   ;;  %v3157_v46 = vld [vmem:[%s3339_s23 + $0x1f8] sm:$0xff]  }
  0x18   : > { %2942 = vmatpush3.bf16.msra.mxu0 %v3131_v9  ;;  %v3148_v31 = vld [vmem:[%s3339_s23 + $0xc8] sm:$0xff]   ;;  %v3152_v36 = vld [vmem:[%s3339_s23 + $0xc0] sm:$0xff]  }
  0x19   : > { %2943 = vmatprep.subr.bf16.mxu0 %v3134_v12  ;;  %v3149_v32 = vld [vmem:[%s3339_s23 + $0x88] sm:$0xff]   ;;  %v3153_v37 = vld [vmem:[%s3339_s23 + $0x80] sm:$0xff]  }
  0x1a   : > { %2964 = vmatpush3.bf16.msra.mxu1 %v3133_v11  ;;  %v3385_v38 = vld [vmem:[%s3377_s27] sm:$0xff]  ;;  %v3426_v22 = vld [vmem:[%s3416_s9 + $0x8] sm:$0xff] }
  0x1b   : > { %2965 = vmatprep.subr.bf16.mxu1 %v3136_v14  ;;  %v300_v39 = vcombine.high %v3385_v38, %v3385_v38  ;;  %v307_v40 = vrot.slane %v3385_v38, %v3380_v35  ;;  %v3403_v14 = vsub.s32 1, %v3367_v30 }
  0x1c   : > { %2944 = vmatpush3.bf16.msra.mxu0 %v3135_v13 }
  0x1d   : > { %2945 = vmatprep.subr.bf16.mxu0 %v3138_v16  ;;  %v314_v42 = vrot.slane %v300_v39, %v3380_v35  ;;  %v315_v43 = vcombine.high %v307_v40, %v307_v40  ;;  %v385_v44 = vsel %vm384_vm0, %v307_v40, 0.0 }
  0x1e   : > { %2966 = vmatpush3.bf16.msra.mxu1 %v3137_v15  ;;  %v386_v45 = vrot.slane %v385_v44, 4 }
  0x1f   : > { %2967 = vmatprep.subr.bf16.mxu1 %v3140_v18  ;;  %v316_v47 = vcombine.high %v314_v42, %v314_v42  ;;  %v392_v48 = vsel %vm384_vm0, %v315_v43, 0.0  ;;  %v399_v49 = vsel %vm384_vm0, %v314_v42, 0.0  ;;  %v3419_v18 = vsub.s32 2, %v3367_v30 }
  0x20   : > { %2946 = vmatpush3.bf16.msra.mxu0 %v3139_v17  ;;  %v387_v50 = vadd.f32 %v386_v45, %v385_v44  ;;  %v393_v51 = vrot.slane %v392_v48, 4  ;;  %v400_v52 = vrot.slane %v399_v49, 4  ;;  %v3411_v17 = vld [vmem:[%s3408_s6 + $0x8] sm:$0xff] }
  0x21   : > { %2947 = vmatprep.subr.bf16.mxu0 %v3142_v20  ;;  %v406_v53 = vsel %vm384_vm0, %v316_v47, 0.0  ;;  %v989_v23 = vrot.slane %v3411_v17, %v3399_v58  ;;  %v993_v24 = vrot.slane %v3411_v17, %v3403_v14 }
  0x22   : > { %2968 = vmatpush3.bf16.msra.mxu1 %v3141_v19  ;;  %v388_v54 = vrot.slane %v387_v50, 2  ;;  %v394_v55 = vadd.f32 %v393_v51, %v392_v48  ;;  %v401_v56 = vadd.f32 %v400_v52, %v399_v49  ;;  %v407_v57 = vrot.slane %v406_v53, 4 }
  0x23   : > { %2969 = vmatprep.subr.bf16.mxu1 %v3144_v25  ;;  %v3422_v19 = vsub.s32 3, %v3367_v30  ;;  %v997_v25 = vrot.slane %v3411_v17, %v3419_v18 }
  0x24   : > { %2948 = vmatpush3.bf16.msra.mxu0 %v3143_v21  ;;  %v389_v59 = vadd.f32 %v388_v54, %v387_v50  ;;  %v395_v60 = vrot.slane %v394_v55, 2  ;;  %v402_v61 = vrot.slane %v401_v56, 2  ;;  %v408_v62 = vadd.f32 %v407_v57, %v406_v53  ;;  %v3460_v50 = vld [vmem:[%s3377_s27 + $0x8] sm:$0xff] }
  0x25   : > { %2949 = vmatprep.subr.bf16.mxu0 %v3146_v27  ;;  %v317_v53 = vcombine.high %v3460_v50, %v3460_v50 }
  0x26   : > { %2970 = vmatpush3.bf16.msra.mxu1 %v3145_v26  ;;  %v390_v63 = vrot.slane %v389_v59, 1  ;;  %v396_v0 = vadd.f32 %v395_v60, %v394_v55  ;;  %v403_v1 = vadd.f32 %v402_v61, %v401_v56  ;;  %v409_v2 = vrot.slane %v408_v62, 2 }
  0x27   : > { %2971 = vmatprep.subr.bf16.mxu1 %v3148_v31  ;;  %v1001_v26 = vrot.slane %v3411_v17, %v3422_v19  ;;  %v1133_v31 = vrot.slane %v3426_v22, %v3399_v58  ;;  %v324_v55 = vrot.slane %v3460_v50, %v3380_v35  ;;  %v331_v60 = vrot.slane %v317_v53, %v3380_v35 }
  0x28   : > { %2950 = vmatpush3.bf16.msra.mxu0 %v3147_v28  ;;  %v391_v3 = vadd.f32 %v390_v63, %v389_v59  ;;  %v397_v4 = vrot.slane %v396_v0, 1  ;;  %v404_v5 = vrot.slane %v403_v1, 1  ;;  %v410_v6 = vadd.f32 %v409_v2, %v408_v62 }
  0x29   : > { %2951 = vmatprep.subr.bf16.mxu0 %v3150_v33  ;;  %v1052_v28 = vcombine.low %v989_v23, %v993_v24  ;;  %v1053_v29 = vcombine.low %v997_v25, %v1001_v26  ;;  %v333_v2 = vcombine.high %v331_v60, %v331_v60 }
  0x2a   : > { %2972 = vmatpush3.bf16.msra.mxu1 %v3149_v32  ;;  %v398_v7 = vadd.f32 %v397_v4, %v396_v0  ;;  %v405_v8 = vadd.f32 %v404_v5, %v403_v1  ;;  %v411_v9 = vrot.slane %v410_v6, 1  ;;  %v498_v10 = vmul.f32 0.5, %v391_v3 }
  0x2b   : > { %2973 = vmatprep.subr.bf16.mxu1 %v3152_v36  ;;  %v1137_v32 = vrot.slane %v3426_v22, %v3403_v14  ;;  %v1145_v36 = vrot.slane %v3426_v22, %v3422_v19  ;;  %v1067_v39 = vrot.slane %v1053_v29, %v3380_v35  ;;  %v332_v0 = vcombine.high %v324_v55, %v324_v55 }
  0x2c   : > { %2952 = vmatpush3.bf16.msra.mxu0 %v3151_v34  ;;  %v412_v11 = vadd.f32 %v411_v9, %v410_v6  ;;  %v499_v12 = vmul.f32 0.5, %v398_v7  ;;  %v500_v13 = vmul.f32 0.5, %v405_v8  ;;  %v1141_v34 = vrot.slane %v3426_v22, %v3419_v18 }
  0x2d   : > { %2981 = vmatprep.subr.bf16.mxu0 %v3155_v41  ;;  %v1196_v40 = vcombine.low %v1133_v31, %v1137_v32  ;;  %v413_v3 = vsel %vm384_vm0, %v324_v55, 0.0  ;;  %v427_v4 = vsel %vm384_vm0, %v331_v60, 0.0 }
  0x2e   : > { %2974 = vmatpush3.bf16.msra.mxu1 %v3153_v37  ;;  %v501_v15 = vmul.f32 0.5, %v412_v11  ;;  %v530_v16 = vcombine.low %v498_v10, %v499_v12  ;;  %v1060_v37 = vrot.slane %v1052_v28, %v3380_v35  ;;  %v1197_v42 = vcombine.low %v1141_v34, %v1145_v36 }
  0x2f   : > { %3003 = vmatprep.subr.bf16.mxu1 %v3157_v46  ;;  %v1204_v44 = vrot.slane %v1196_v40, %v3380_v35  ;;  %v414_v9 = vrot.slane %v413_v3, 4  ;;  %v420_v10 = vsel %vm384_vm0, %v332_v0, 0.0  ;;  %v428_v11 = vrot.slane %v427_v4, 4 }
  0x30   : > { %v531_v20 = vcombine.low %v500_v13, %v501_v15  ;;  %v538_v21 = vrot.slane %v530_v16, %v3380_v35  ;;  %v3450_v43 = vcombine.low %v1060_v37, %v1067_v39  ;;  %v1211_v46 = vrot.slane %v1197_v42, %v3380_v35 }
  0x31   : > { %v434_v12 = vsel %vm384_vm0, %v333_v2, 0.0  ;;  %v421_v23 = vrot.slane %v420_v10, 4  ;;  %v429_v24 = vadd.f32 %v428_v11, %v427_v4  ;;  %v3477_v4 = vld [vmem:[%s3408_s6] sm:$0xff]  ;;  %v3483_v11 = vsub.s32 4, %v3367_v30 }
  0x32   : > { %v545_v27 = vrot.slane %v531_v20, %v3380_v35  ;;  %v3457_v49 = vcombine.low %v1204_v44, %v1211_v46  ;;  %v435_v25 = vrot.slane %v434_v12, 4 }
  0x33   : > { %v422_v32 = vadd.f32 %v421_v23, %v420_v10  ;;  %v3480_v10 = vld [vmem:[%s3416_s9] sm:$0xff]  ;;  %v969_v23 = vrot.slane %v3477_v4, %v3422_v19 }
  0x34   : > { %v546_v33 = vcombine.low %v538_v21, %v545_v27  ;;  %v415_v21 = vadd.f32 %v414_v9, %v413_v3  ;;  %v436_v34 = vadd.f32 %v435_v25, %v434_v12 }
  0x35   : > { %v423_v44 = vrot.slane %v422_v32, 2 }
  0x36   : > { %v3448_v41 = vsub.f32 %v3385_v38, %v546_v33  ;;  %v416_v31 = vrot.slane %v415_v21, 2  ;;  %v430_v33 = vrot.slane %v429_v24, 2  ;;  %v437_v46 = vrot.slane %v436_v34, 2 }
  0x37   : > { %v424_v53 = vadd.f32 %v423_v44, %v422_v32  ;;  %v1113_v32 = vrot.slane %v3480_v10, %v3422_v19 }
  0x38   : > { %v606_v45 = vmul.f32 %v3448_v41, %v3448_v41  ;;  %v417_v42 = vadd.f32 %v416_v31, %v415_v21  ;;  %v438_v55 = vadd.f32 %v437_v46, %v436_v34  ;;  %v965_v21 = vrot.slane %v3477_v4, %v3419_v18 }
  0x39   : > { %v1109_v31 = vrot.slane %v3480_v10, %v3419_v18 }
  0x3a   : > { %v614_v47 = vcombine.high %v606_v45, %v606_v45  ;;  %v621_v48 = vrot.slane %v606_v45, %v3380_v35  ;;  %v431_v45 = vadd.f32 %v430_v33, %v429_v24  ;;  %v439_v0 = vrot.slane %v438_v55, 1 }
  0x3c   : > { %v628_v38 = vrot.slane %v614_v47, %v3380_v35  ;;  %v629_v51 = vcombine.high %v621_v48, %v621_v48  ;;  %v698_v52 = vsel %vm384_vm0, %v621_v48, 0.0 }
  0x3d   : > { %v699_v54 = vrot.slane %v698_v52, 4 }
  0x3e   : > { %v630_v56 = vcombine.high %v628_v38, %v628_v38  ;;  %v705_v57 = vsel %vm384_vm0, %v629_v51, 0.0  ;;  %v712_v59 = vsel %vm384_vm0, %v628_v38, 0.0 }
  0x3f   : > { %v700_v61 = vadd.f32 %v699_v54, %v698_v52  ;;  %v706_v62 = vrot.slane %v705_v57, 4  ;;  %v713_v63 = vrot.slane %v712_v59, 4  ;;  %v418_v52 = vrot.slane %v417_v42, 1 }
  0x40   : > { %v719_v1 = vsel %vm384_vm0, %v630_v56, 0.0  ;;  %v432_v54 = vrot.slane %v431_v45, 1 }
  0x41   : > { %v701_v5 = vrot.slane %v700_v61, 2  ;;  %v707_v6 = vadd.f32 %v706_v62, %v705_v57  ;;  %v714_v7 = vadd.f32 %v713_v63, %v712_v59  ;;  %v720_v8 = vrot.slane %v719_v1, 4 }
  0x42   : > { %v425_v62 = vrot.slane %v424_v53, 1  ;;  %v433_v63 = vadd.f32 %v432_v54, %v431_v45 }
  0x43   : > { %v702_v13 = vadd.f32 %v701_v5, %v700_v61  ;;  %v708_v15 = vrot.slane %v707_v6, 2  ;;  %v715_v16 = vrot.slane %v714_v7, 2  ;;  %v721_v20 = vadd.f32 %v720_v8, %v719_v1 }
  0x44   : > { %v419_v61 = vadd.f32 %v418_v52, %v417_v42  ;;  %v426_v5 = vadd.f32 %v425_v62, %v424_v53  ;;  %v504_v8 = vmul.f32 0.5, %v433_v63  ;;  %v1149_v42 = vrot.slane %v3426_v22, %v3483_v11 }
  0x45   : > { %v703_v26 = vrot.slane %v702_v13, 1  ;;  %v709_v27 = vadd.f32 %v708_v15, %v707_v6  ;;  %v716_v28 = vadd.f32 %v715_v16, %v714_v7  ;;  %v722_v29 = vrot.slane %v721_v20, 2 }
  0x46   : > { %v440_v6 = vadd.f32 %v439_v0, %v438_v55  ;;  %v502_v7 = vmul.f32 0.5, %v419_v61  ;;  %v503_v12 = vmul.f32 0.5, %v426_v5  ;;  %v957_v15 = vrot.slane %v3477_v4, %v3399_v58 }
  0x47   : > { %v704_v36 = vadd.f32 %v703_v26, %v702_v13  ;;  %v710_v37 = vrot.slane %v709_v27, 1  ;;  %v717_v39 = vrot.slane %v716_v28, 1  ;;  %v723_v40 = vadd.f32 %v722_v29, %v721_v20 }
  0x48   : > { %v505_v13 = vmul.f32 0.5, %v440_v6  ;;  %v961_v16 = vrot.slane %v3477_v4, %v3403_v14  ;;  %v3490_v20 = vsub.s32 5, %v3367_v30  ;;  %v547_v24 = vcombine.low %v502_v7, %v503_v12 }
  0x49   : > { %v711_v47 = vadd.f32 %v710_v37, %v709_v27  ;;  %v718_v48 = vadd.f32 %v717_v39, %v716_v28  ;;  %v724_v38 = vrot.slane %v723_v40, 1  ;;  %v810_v51 = vmul.f32 0.5, %v704_v36 }
  0x4a   : > { %v548_v25 = vcombine.low %v504_v8, %v505_v13  ;;  %v1101_v26 = vrot.slane %v3480_v10, %v3399_v58  ;;  %v1105_v27 = vrot.slane %v3480_v10, %v3403_v14  ;;  %v3501_v28 = vsub.s32 6, %v3367_v30 }
  0x4b   : > { %v725_v56 = vadd.f32 %v724_v38, %v723_v40  ;;  %v811_v57 = vmul.f32 0.5, %v711_v47  ;;  %v812_v59 = vmul.f32 0.5, %v718_v48  ;;  %v826_v60 = vadd.f32 1e-05, %v810_v51 }
  0x4c   : > { %v3504_v29 = vsub.s32 7, %v3367_v30  ;;  %v555_v33 = vrot.slane %v547_v24, %v3380_v35  ;;  %v562_v34 = vrot.slane %v548_v25, %v3380_v35  ;;  %v1005_v58 = vrot.slane %v3411_v17, %v3483_v11 }
  0x4d   : > { %v813_v1 = vmul.f32 0.5, %v725_v56  ;;  %v827_v2 = vadd.f32 1e-05, %v811_v57  ;;  %v828_v3 = vadd.f32 1e-05, %v812_v59  ;;  %3254 = vrsqrt.f32 %v826_v60 }
  0x4e   : > { %v1009_v14 = vrot.slane %v3411_v17, %v3490_v20  ;;  %v1013_v30 = vrot.slane %v3411_v17, %v3501_v28  ;;  %v1017_v36 = vrot.slane %v3411_v17, %v3504_v29  ;;  %v1018_v18 = vcombine.low %v957_v15, %v961_v16 }
  0x4f   : > { %v829_v9 = vadd.f32 1e-05, %v813_v1  ;;  %3256 = vrsqrt.f32 %v827_v2  ;;  %v1019_v37 = vcombine.low %v965_v21, %v969_v23  ;;  %v563_v39 = vcombine.low %v555_v33, %v562_v34 }
  0x50   : > { %3258 = vrsqrt.f32 %v828_v3  ;;  %v1069_v19 = vcombine.low %v1005_v58, %v1009_v14  ;;  %v1070_v40 = vcombine.low %v1013_v30, %v1017_v36  ;;  %v1153_v44 = vrot.slane %v3426_v22, %v3490_v20 }
  0x51   : > { %3260 = vrsqrt.f32 %v829_v9  ;;  %v1162_v45 = vcombine.low %v1101_v26, %v1105_v27  ;;  %v3525_v46 = vsub.f32 %v3460_v50, %v563_v39  ;;  %v1157_v47 = vrot.slane %v3426_v22, %v3501_v28 }
  0x52   : > { %v1161_v17 = vrot.slane %v3426_v22, %v3504_v29  ;;  %v1163_v48 = vcombine.low %v1109_v31, %v1113_v32  ;;  %v1077_v38 = vrot.slane %v1069_v19, %v3380_v35  ;;  %v1084_v51 = vrot.slane %v1070_v40, %v3380_v35  ;;  %v3553_v31 = vld [vmem:[%s3377_s27 + $0x10] sm:$0xff] }
  0x53   : > { %v1213_v52 = vcombine.low %v1149_v42, %v1153_v44  ;;  %v607_v54 = vmul.f32 %v3525_v46, %v3525_v46  ;;  %v1026_v50 = vrot.slane %v1018_v18, %v3380_v35  ;;  %v1033_v22 = vrot.slane %v1019_v37, %v3380_v35 }
  0x54   : > { %v1214_v55 = vcombine.low %v1157_v47, %v1161_v17  ;;  %v3536_v56 = vcombine.low %v1077_v38, %v1084_v51  ;;  %v1170_v1 = vrot.slane %v1162_v45, %v3380_v35  ;;  %v1177_v2 = vrot.slane %v1163_v48, %v3380_v35 }
  0x55   : > { %v1221_v57 = vrot.slane %v1213_v52, %v3380_v35  ;;  %v631_v60 = vcombine.high %v607_v54, %v607_v54  ;;  %v638_v61 = vrot.slane %v607_v54, %v3380_v35  ;;  %v1034_v15 = vcombine.low %v1026_v50, %v1033_v22 }
  0x56   : > { %v1228_v62 = vrot.slane %v1214_v55, %v3380_v35  ;;  %v1178_v32 = vcombine.low %v1170_v1, %v1177_v2  ;;  %v334_v34 = vcombine.high %v3553_v31, %v3553_v31  ;;  %v341_v58 = vrot.slane %v3553_v31, %v3380_v35 }
  0x57   : > { %v645_v5 = vrot.slane %v631_v60, %v3380_v35  ;;  %v646_v6 = vcombine.high %v638_v61, %v638_v61  ;;  %v726_v7 = vsel %vm384_vm0, %v638_v61, 0.0 }
  0x58   : > { %v3546_v8 = vcombine.low %v1221_v57, %v1228_v62  ;;  %v727_v13 = vrot.slane %v726_v7, 4  ;;  %v3561_v39 = vrot.slane %v334_v34, %v3380_v35  ;;  %v349_v19 = vcombine.high %v341_v58, %v341_v58 }
  0x59   : > { %v647_v16 = vcombine.high %v645_v5, %v645_v5  ;;  %v733_v21 = vsel %vm384_vm0, %v646_v6, 0.0  ;;  %v740_v23 = vsel %vm384_vm0, %v645_v5, 0.0  ;;  %v441_v40 = vsel %vm384_vm0, %v341_v58, 0.0 }
  0x5a   : > { %v3255_v53 = vpop.eup %3254  ;;  %v728_v25 = vadd.f32 %v727_v13, %v726_v7  ;;  %v734_v26 = vrot.slane %v733_v21, 4  ;;  %v741_v27 = vrot.slane %v740_v23, 4  ;;  %v350_v48 = vcombine.high %v3561_v39, %v3561_v39 }
  0x5b   : > { %v747_v33 = vsel %vm384_vm0, %v647_v16, 0.0  ;;  %v442_v38 = vrot.slane %v441_v40, 4  ;;  %v448_v51 = vsel %vm384_vm0, %v349_v19, 0.0  ;;  %v3158_v19 = vld [vmem:[%s3339_s23 + $0x1b8] sm:$0xff]  }
  0x5c   : > { %v3257_v59 = vpop.eup %3256  ;;  %v729_v30 = vrot.slane %v728_v25, 2  ;;  %v735_v36 = vadd.f32 %v734_v26, %v733_v21  ;;  %v742_v18 = vadd.f32 %v741_v27, %v740_v23  ;;  %v748_v37 = vrot.slane %v747_v33, 4  ;;  %v3156_v23 = vld [vmem:[%s3339_s23 + $0x138] sm:$0xff]  }
  0x5d   : > { %v3259_v63 = vpop.eup %3258  ;;  %v874_v0 = vcombine.low %v3255_v53, %v3257_v59  ;;  %v443_v57 = vadd.f32 %v442_v38, %v441_v40  ;;  %v449_v59 = vrot.slane %v448_v51, 4 }
  0x5e   : > { %v3261_v3 = vpop.eup %3260  ;;  %v730_v44 = vadd.f32 %v729_v30, %v728_v25  ;;  %v736_v45 = vrot.slane %v735_v36, 2  ;;  %v743_v47 = vrot.slane %v742_v18, 2  ;;  %v749_v17 = vadd.f32 %v748_v37, %v747_v33 }
  0x5f   : > { %v875_v9 = vcombine.low %v3259_v63, %v3261_v3  ;;  %v882_v12 = vrot.slane %v874_v0, %v3380_v35  ;;  %v444_v0 = vrot.slane %v443_v57, 2  ;;  %v450_v1 = vadd.f32 %v449_v59, %v448_v51  ;;  %v3165_v59 = vld [vmem:[%s3339_s23 + $0x1e8] sm:$0xff]  }
  0x60   : > { %v731_v53 = vrot.slane %v730_v44, 1  ;;  %v737_v54 = vadd.f32 %v736_v45, %v735_v36  ;;  %v744_v55 = vadd.f32 %v743_v47, %v742_v18  ;;  %v750_v50 = vrot.slane %v749_v17, 2  ;;  %v3159_v36 = vld [vmem:[%s3339_s23 + $0x170] sm:$0xff]  }
  0x61   : > { %v889_v24 = vrot.slane %v875_v9, %v3380_v35  ;;  %v445_v13 = vadd.f32 %v444_v0, %v443_v57  ;;  %v462_v47 = vsel %vm384_vm0, %v350_v48, 0.0 }
  0x62   : > { %v732_v60 = vadd.f32 %v731_v53, %v730_v44  ;;  %v738_v61 = vrot.slane %v737_v54, 1  ;;  %v745_v62 = vrot.slane %v744_v55, 1  ;;  %v751_v63 = vadd.f32 %v750_v50, %v749_v17  ;;  %v3161_v44 = vld [vmem:[%s3339_s23 + $0x1f0] sm:$0xff]   ;;  %v3163_v53 = vld [vmem:[%s3339_s23 + $0x168] sm:$0xff]  }
  0x63   : > { %v890_v14 = vcombine.low %v882_v12, %v889_v24  ;;  %v446_v33 = vrot.slane %v445_v13, 1  ;;  %v3160_v17 = vld [vmem:[%s3339_s23 + $0x130] sm:$0xff]  }
  0x64   : > { %v739_v6 = vadd.f32 %v738_v61, %v737_v54  ;;  %v746_v7 = vadd.f32 %v745_v62, %v744_v55  ;;  %v752_v9 = vrot.slane %v751_v63, 1  ;;  %v814_v12 = vmul.f32 0.5, %v732_v60  ;;  %v3162_v54 = vld [vmem:[%s3339_s23 + $0x1b0] sm:$0xff]   ;;  %v3167_v62 = vld [vmem:[%s3339_s23 + $0x160] sm:$0xff]  }
  0x65   : > { %v946_v42 = vmul.f32 %v890_v14, %v3448_v41  ;;  %v455_v41 = vsel %vm384_vm0, %v3561_v39, 0.0  ;;  %v447_v55 = vadd.f32 %v446_v33, %v445_v13 }
  0x66   : > { %v456_v2 = vrot.slane %v455_v41, 4  ;;  %v815_v25 = vmul.f32 0.5, %v739_v6  ;;  %v753_v26 = vadd.f32 %v752_v9, %v751_v63  ;;  %v816_v27 = vmul.f32 0.5, %v746_v7 }
  0x67   : > { %v1090_v52 = vmul.f32 %v1034_v15, %v946_v42  ;;  %v451_v15 = vrot.slane %v450_v1, 2  ;;  %v977_v6 = vrot.slane %v3477_v4, %v3490_v20  ;;  %v981_v7 = vrot.slane %v3477_v4, %v3501_v28 }
  0x68   : > { %v831_v14 = vadd.f32 1e-05, %v815_v25  ;;  %v817_v18 = vmul.f32 0.5, %v753_v26  ;;  %v832_v37 = vadd.f32 1e-05, %v816_v27  ;;  %v457_v42 = vadd.f32 %v456_v2, %v455_v41  ;;  %v3164_v41 = vld [vmem:[%s3339_s23 + $0x128] sm:$0xff]  }
  0x69   : > { %v1234_v22 = vadd.f32 %v1178_v32, %v1090_v52  ;;  %v830_v32 = vadd.f32 1e-05, %v814_v12  ;;  %v452_v40 = vadd.f32 %v451_v15, %v450_v1  ;;  %v463_v52 = vrot.slane %v462_v47, 4  ;;  %v3168_v12 = vld [vmem:[%s3339_s23 + $0x120] sm:$0xff]   ;;  %v3171_v15 = vld [vmem:[%s3339_s23 + $0x158] sm:$0xff]  }
  0x6a   : > { %v833_v45 = vadd.f32 1e-05, %v817_v18  ;;  %v458_v51 = vrot.slane %v457_v42, 2  ;;  %v506_v1 = vmul.f32 0.5, %v447_v55  ;;  %v985_v9 = vrot.slane %v3477_v4, %v3504_v29  ;;  %v3170_v25 = vld [vmem:[%s3339_s23 + $0x1a0] sm:$0xff]   ;;  %v3178_v55 = vld [vmem:[%s3339_s23 + $0x190] sm:$0xff]  }
  0x6b   : > { %v1249_v3 = vrot.slane %v1234_v22, %v3380_v35  ;;  %v1242_v5 = vcombine.high %v1234_v22, %v1234_v22  ;;  %3262 = vrsqrt.f32 %v830_v32  ;;  %v453_v38 = vrot.slane %v452_v40, 1  ;;  %v3166_v22 = vld [vmem:[%s3339_s23 + $0x1a8] sm:$0xff]  }
  0x6c   : > { %3264 = vrsqrt.f32 %v831_v14  ;;  %v459_v57 = vadd.f32 %v458_v51, %v457_v42  ;;  %v464_v48 = vadd.f32 %v463_v52, %v462_v47  ;;  %v3179_v51 = vld [vmem:[%s3339_s23 + $0x148] sm:$0xff]  }
  0x6d   : > { %v1257_v16 = vcombine.high %v1249_v3, %v1249_v3  ;;  %v1326_v21 = vpack.c.bf16 %v1249_v3, %v1249_v3  ;;  %v1256_v24 = vrot.slane %v1242_v5, %v3380_v35  ;;  %3266 = vrsqrt.f32 %v832_v37  ;;  %v3169_v3 = vld [vmem:[%s3339_s23 + $0x1e0] sm:$0xff]   ;;  %v3174_v37 = vld [vmem:[%s3339_s23 + $0x198] sm:$0xff]  }
  0x6e   : > { %3268 = vrsqrt.f32 %v833_v45  ;;  %v454_v50 = vadd.f32 %v453_v38, %v452_v40  ;;  %v460_v60 = vrot.slane %v459_v57, 1  ;;  %v465_v61 = vrot.slane %v464_v48, 2  ;;  %v3177_v40 = vld [vmem:[%s3339_s23 + $0x1d0] sm:$0xff]  }
  0x6f   : > { %v1327_v34 = vpack.c.bf16 %v1257_v16, %v1257_v16  ;;  %v1258_v58 = vcombine.high %v1256_v24, %v1256_v24  ;;  %v1328_v30 = vpack.c.bf16 %v1256_v24, %v1256_v24  ;;  %v973_v5 = vrot.slane %v3477_v4, %v3483_v11 }
  0x70   : > { %v461_v63 = vadd.f32 %v460_v60, %v459_v57  ;;  %v466_v0 = vadd.f32 %v465_v61, %v464_v48  ;;  %v507_v2 = vmul.f32 0.5, %v454_v50  ;;  %v1117_v16 = vrot.slane %v3480_v10, %v3483_v11  ;;  %v3173_v11 = vld [vmem:[%s3339_s23 + $0x1d8] sm:$0xff]   ;;  %v3181_v57 = vld [vmem:[%s3339_s23 + $0x1c8] sm:$0xff]  }
  0x71   : > { %2405 = vmatprep.mubr.bf16.mxu0 %v1327_v34  ;;  %v1329_v39 = vpack.c.bf16 %v1258_v58, %v1258_v58  ;;  %v1129_v24 = vrot.slane %v3480_v10, %v3504_v29  ;;  %v1035_v34 = vcombine.low %v973_v5, %v977_v6 }
  0x72   : > { %2406 = vmatmul.mubr.bf16.vlgmr.msra.gmra.mxu0 %v1326_v21  ;;  %v467_v13 = vrot.slane %v466_v0, 1  ;;  %v1121_v21 = vrot.slane %v3480_v10, %v3490_v20  ;;  %v508_v27 = vmul.f32 0.5, %v461_v63  ;;  %v564_v32 = vcombine.low %v506_v1, %v507_v2  ;;  %v3183_v63 = vld [vmem:[%s3339_s23 + $0x140] sm:$0xff]   ;;  %v3182_v2 = vld [vmem:[%s3339_s23 + $0x188] sm:$0xff]  }
  0x73   : > { %2982 = vmatpush3.bf16.msra.mxu0 %v3156_v23  ;;  %2445 = vmatprep.mubr.bf16.mxu1 %v1329_v39  ;;  %v1125_v23 = vrot.slane %v3480_v10, %v3501_v28  ;;  %v1036_v20 = vcombine.low %v981_v7, %v985_v9  ;;  %v3172_v28 = vld [vmem:[%s3339_s23 + $0x118] sm:$0xff]   ;;  %v3175_v10 = vld [vmem:[%s3339_s23 + $0x150] sm:$0xff]   ;;  %v1043_v45 = vrot.slane %v1035_v34, %v3380_v35  ;;  %v3185_v7 = vld [vmem:[%s3339_s23 + $0x1c0] sm:$0xff]  }
  0x74   : > { %2446 = vmatmul.mubr.bf16.vlgmr.msra.gmra.mxu1 %v1328_v30  ;;  %2983 = vmatprep.subr.bf16.mxu0 %v3159_v36  ;;  %v468_v26 = vadd.f32 %v467_v13, %v466_v0  ;;  %v1179_v29 = vcombine.low %v1117_v16, %v1121_v21 }
  0x75   : > { %3004 = vmatpush3.bf16.msra.mxu1 %v3158_v19  ;;  %v1180_v36 = vcombine.low %v1125_v23, %v1129_v24  ;;  %v572_v19 = vrot.slane %v564_v32, %v3380_v35  ;;  %v1050_v47 = vrot.slane %v1036_v20, %v3380_v35  ;;  %v3188_v24 = vld [vmem:[%s3339_s23 + $0x278] sm:$0xff]  }
  0x76   : > { %3005 = vmatprep.subr.bf16.mxu1 %v3161_v44  ;;  %v509_v30 = vmul.f32 0.5, %v468_v26 }
  0x77   : > { %2984 = vmatpush3.bf16.msra.mxu0 %v3160_v17  ;;  %v3176_v17 = vld [vmem:[%s3339_s23 + $0x110] sm:$0xff]  }
  0x78   : > { %2985 = vmatprep.subr.bf16.mxu0 %v3163_v53  ;;  %v3263_v4 = vpop.eup %3262  ;;  %v565_v39 = vcombine.low %v508_v27, %v509_v30  ;;  %v1187_v53 = vrot.slane %v1179_v29, %v3380_v35  ;;  %v3187_v27 = vld [vmem:[%s3339_s23 + $0x180] sm:$0xff]  }
  0x79   : > { %3006 = vmatpush3.bf16.msra.mxu1 %v3162_v54  ;;  %v3265_v33 = vpop.eup %3264  ;;  %v1194_v54 = vrot.slane %v1180_v36, %v3380_v35 }
  0x7a   : > { %3007 = vmatprep.subr.bf16.mxu1 %v3165_v59  ;;  %v3267_v58 = vpop.eup %3266  ;;  %v891_v14 = vcombine.low %v3263_v4, %v3265_v33  ;;  %v579_v38 = vrot.slane %v565_v39, %v3380_v35  ;;  %v1051_v59 = vcombine.low %v1043_v45, %v1050_v47 }
  0x7b   : > { %2986 = vmatpush3.bf16.msra.mxu0 %v3164_v41  ;;  %v3269_v18 = vpop.eup %3268  ;;  %v3622_v41 = vld [vmem:[%s3377_s27 + $0x18] sm:$0xff]  ;;  %v1195_v1 = vcombine.low %v1187_v53, %v1194_v54  ;;  %v3192_v54 = vld [vmem:[%s3339_s23 + $0x270] sm:$0xff]  }
  0x7c   : > { %2987 = vmatprep.subr.bf16.mxu0 %v3167_v62  ;;  %v892_v42 = vcombine.low %v3267_v58, %v3269_v18  ;;  %v899_v44 = vrot.slane %v891_v14, %v3380_v35  ;;  %v580_v50 = vcombine.low %v572_v19, %v579_v38  ;;  %v351_v61 = vcombine.high %v3622_v41, %v3622_v41 }
  0x7d   : > { %3008 = vmatpush3.bf16.msra.mxu1 %v3166_v22  ;;  %v3180_v22 = vld [vmem:[%s3339_s23 + $0x108] sm:$0xff]   ;;  %v358_v62 = vrot.slane %v3622_v41, %v3380_v35 }
  0x7e   : > { %3009 = vmatprep.subr.bf16.mxu1 %v3169_v3  ;;  %v906_v52 = vrot.slane %v892_v42, %v3380_v35  ;;  %v3626_v60 = vsub.f32 %v3553_v31, %v580_v50  ;;  %v3638_v31 = vrot.slane %v351_v61, %v3380_v35 }
  0x7f   : > { %2988 = vmatpush3.bf16.msra.mxu0 %v3168_v12  ;;  %v366_v5 = vcombine.high %v358_v62, %v358_v62  ;;  %v469_v6 = vsel %vm384_vm0, %v358_v62, 0.0 }
  0x80   : > { %2989 = vmatprep.subr.bf16.mxu0 %v3171_v15  ;;  %v907_v48 = vcombine.low %v899_v44, %v906_v52  ;;  %v608_v3 = vmul.f32 %v3626_v60, %v3626_v60  ;;  %v470_v12 = vrot.slane %v469_v6, 4  ;;  %v367_v16 = vcombine.high %v3638_v31, %v3638_v31 }
  0x81   : > { %3010 = vmatpush3.bf16.msra.mxu1 %v3170_v25  ;;  %v476_v21 = vsel %vm384_vm0, %v366_v5, 0.0  ;;  %v483_v26 = vsel %vm384_vm0, %v3638_v31, 0.0  ;;  %v3193_v5 = vld [vmem:[%s3339_s23 + $0x230] sm:$0xff]   ;;  %v3198_v31 = vld [vmem:[%s3339_s23 + $0x2e8] sm:$0xff]  }
  0x82   : > { %3011 = vmatprep.subr.bf16.mxu1 %v3173_v11  ;;  %v947_v0 = vmul.f32 %v907_v48, %v3525_v46  ;;  %v3184_v46 = vld [vmem:[%s3339_s23 + $0x100] sm:$0xff]   ;;  %v648_v13 = vcombine.high %v608_v3, %v608_v3  ;;  %v655_v15 = vrot.slane %v608_v3, %v3380_v35  ;;  %v471_v4 = vadd.f32 %v470_v12, %v469_v6 }
  0x83   : > { %2990 = vmatpush3.bf16.msra.mxu0 %v3172_v28  ;;  %v477_v25 = vrot.slane %v476_v21, 4  ;;  %v484_v34 = vrot.slane %v483_v26, 4  ;;  %v3190_v28 = vld [vmem:[%s3339_s23 + $0x2f8] sm:$0xff]   ;;  %v490_v12 = vsel %vm384_vm0, %v367_v16, 0.0 }
  0x84   : > { %2991 = vmatprep.subr.bf16.mxu0 %v3175_v10  ;;  %v1091_v9 = vmul.f32 %v1051_v59, %v947_v0  ;;  %v662_v32 = vrot.slane %v648_v13, %v3380_v35  ;;  %v663_v33 = vcombine.high %v655_v15, %v655_v15  ;;  %v754_v11 = vsel %vm384_vm0, %v655_v15, 0.0  ;;  %v3194_v0 = vld [vmem:[%s3339_s23 + $0x2f0] sm:$0xff]  }
  0x85   : > { %3012 = vmatpush3.bf16.msra.mxu1 %v3174_v37  ;;  %v755_v14 = vrot.slane %v754_v11, 4  ;;  %v472_v30 = vrot.slane %v471_v4, 2  ;;  %v478_v18 = vadd.f32 %v477_v25, %v476_v21 }
  0x86   : > { %3013 = vmatprep.subr.bf16.mxu1 %v3177_v40  ;;  %v1235_v23 = vadd.f32 %v1195_v1, %v1091_v9  ;;  %v664_v10 = vcombine.high %v662_v32, %v662_v32  ;;  %v761_v29 = vsel %vm384_vm0, %v663_v33, 0.0  ;;  %v768_v36 = vsel %vm384_vm0, %v662_v32, 0.0 }
  0x87   : > { %2992 = vmatpush3.bf16.msra.mxu0 %v3176_v17  ;;  %v756_v40 = vadd.f32 %v755_v14, %v754_v11  ;;  %v762_v42 = vrot.slane %v761_v29, 4  ;;  %v769_v44 = vrot.slane %v768_v36, 4  ;;  %v473_v47 = vadd.f32 %v472_v30, %v471_v4  ;;  %v3200_v14 = vld [vmem:[%s3339_s23 + $0x260] sm:$0xff]  }
  0x88   : > { %2993 = vmatprep.subr.bf16.mxu0 %v3179_v51  ;;  %v1266_v20 = vrot.slane %v1235_v23, %v3380_v35  ;;  %v1259_v58 = vcombine.high %v1235_v23, %v1235_v23  ;;  %v775_v45 = vsel %vm384_vm0, %v664_v10, 0.0  ;;  %v3189_v51 = vld [vmem:[%s3339_s23 + $0x238] sm:$0xff]   ;;  %v479_v62 = vrot.slane %v478_v18, 2 }
  0x89   : > { %3014 = vmatpush3.bf16.msra.mxu1 %v3178_v55  ;;  %v757_v53 = vrot.slane %v756_v40, 2  ;;  %v763_v55 = vadd.f32 %v762_v42, %v761_v29  ;;  %v770_v50 = vadd.f32 %v769_v44, %v768_v36  ;;  %v474_v48 = vrot.slane %v473_v47, 1  ;;  %v3202_v42 = vld [vmem:[%s3339_s23 + $0x2e0] sm:$0xff]  }
  0x8a   : > { %3015 = vmatprep.subr.bf16.mxu1 %v3181_v57  ;;  %v1274_v37 = vcombine.high %v1266_v20, %v1266_v20  ;;  %v1330_v39 = vpack.c.bf16 %v1266_v20, %v1266_v20  ;;  %v1273_v19 = vrot.slane %v1259_v58, %v3380_v35  ;;  %v776_v57 = vrot.slane %v775_v45, 4 }
  0x8b   : > { %2994 = vmatpush3.bf16.msra.mxu0 %v3180_v22  ;;  %v3191_v22 = vld [vmem:[%s3339_s23 + $0x2b8] sm:$0xff]   ;;  %v758_v61 = vadd.f32 %v757_v53, %v756_v40  ;;  %v764_v1 = vrot.slane %v763_v55, 2  ;;  %v491_v23 = vrot.slane %v490_v12, 4  ;;  %v475_v25 = vadd.f32 %v474_v48, %v473_v47 }
  0x8c   : > { %2995 = vmatprep.subr.bf16.mxu0 %v3183_v63  ;;  %v1331_v17 = vpack.c.bf16 %v1274_v37, %v1274_v37  ;;  %v1275_v38 = vcombine.high %v1273_v19, %v1273_v19  ;;  %v1332_v52 = vpack.c.bf16 %v1273_v19, %v1273_v19  ;;  %v485_v63 = vadd.f32 %v484_v34, %v483_v26  ;;  %v3197_v34 = vld [vmem:[%s3339_s23 + $0x228] sm:$0xff]   ;;  %v3206_v48 = vld [vmem:[%s3339_s23 + $0x2d8] sm:$0xff]  }
  0x8d   : > { %3016 = vmatpush3.bf16.msra.mxu1 %v3182_v2  ;;  %v771_v2 = vrot.slane %v770_v50, 2  ;;  %v777_v3 = vadd.f32 %v776_v57, %v775_v45  ;;  %v759_v6 = vrot.slane %v758_v61, 1  ;;  %v765_v13 = vadd.f32 %v764_v1, %v763_v55  ;;  %v3207_v1 = vld [vmem:[%s3339_s23 + $0x298] sm:$0xff]  }
  0x8e   : > { %3017 = vmatprep.subr.bf16.mxu1 %v3185_v7  ;;  %2485 = vmatprep.mubr.bf16.mxu0 %v1331_v17  ;;  %v1333_v59 = vpack.c.bf16 %v1275_v38, %v1275_v38  ;;  %v480_v7 = vadd.f32 %v479_v62, %v478_v18  ;;  %v486_v9 = vrot.slane %v485_v63, 2  ;;  %v492_v11 = vadd.f32 %v491_v23, %v490_v12  ;;  %v3199_v18 = vld [vmem:[%s3339_s23 + $0x2a8] sm:$0xff]   ;;  %v3201_v38 = vld [vmem:[%s3339_s23 + $0x220] sm:$0xff]   ;;  %v3205_v62 = vld [vmem:[%s3339_s23 + $0x218] sm:$0xff]  }
  0x8f   : > { %2996 = vmatpush3.bf16.msra.mxu0 %v3184_v46  ;;  %v3196_v46 = vld [vmem:[%s3339_s23 + $0x268] sm:$0xff]   ;;  %v772_v15 = vadd.f32 %v771_v2, %v770_v50  ;;  %v778_v21 = vrot.slane %v777_v3, 2  ;;  %v760_v4 = vadd.f32 %v759_v6, %v758_v61  ;;  %v766_v32 = vrot.slane %v765_v13, 1  ;;  %v3203_v50 = vld [vmem:[%s3339_s23 + $0x2a0] sm:$0xff]   ;;  %v3210_v2 = vld [vmem:[%s3339_s23 + $0x2d0] sm:$0xff]  }
  0x90   : > { %3025 = vmatprep.subr.bf16.mxu0 %v3188_v24  ;;  %2525 = vmatprep.mubr.bf16.mxu1 %v1333_v59  ;;  %v3195_v24 = vld [vmem:[%s3339_s23 + $0x2b0] sm:$0xff]   ;;  %v481_v26 = vrot.slane %v480_v7, 1  ;;  %v493_v36 = vrot.slane %v492_v11, 2  ;;  %v510_v19 = vmul.f32 0.5, %v475_v25  ;;  %v3216_v23 = vld [vmem:[%s3339_s23 + $0x240] sm:$0xff]  }
  0x91   : > { %3018 = vmatpush3.bf16.msra.mxu1 %v3187_v27  ;;  %v487_v27 = vadd.f32 %v486_v9, %v485_v63  ;;  %v773_v16 = vrot.slane %v772_v15, 1  ;;  %v779_v33 = vadd.f32 %v778_v21, %v777_v3  ;;  %v818_v20 = vmul.f32 0.5, %v760_v4  ;;  %v3208_v63 = vld [vmem:[%s3339_s23 + $0x250] sm:$0xff]   ;;  %v3215_v4 = vld [vmem:[%s3339_s23 + $0x288] sm:$0xff]   ;;  %v3218_v25 = vld [vmem:[%s3339_s23 + $0x2c0] sm:$0xff]  }
  0x92   : > { %3047 = vmatprep.subr.bf16.mxu1 %v3190_v28  ;;  %2486 = vmatmul.mubr.bf16.vlgmr.msra.gmra.mxu0 %v1330_v39  ;;  %v482_v58 = vadd.f32 %v481_v26, %v480_v7  ;;  %v767_v30 = vadd.f32 %v766_v32, %v765_v13  ;;  %v494_v17 = vadd.f32 %v493_v36, %v492_v11  ;;  %v3209_v6 = vld [vmem:[%s3339_s23 + $0x210] sm:$0xff]   ;;  %v3212_v7 = vld [vmem:[%s3339_s23 + $0x248] sm:$0xff]  }
  0x93   : > { %3026 = vmatpush3.bf16.msra.mxu0 %v3189_v51  ;;  %v488_v28 = vrot.slane %v487_v27, 1  ;;  %v774_v10 = vadd.f32 %v773_v16, %v772_v15  ;;  %v780_v29 = vrot.slane %v779_v33, 1  ;;  %v834_v37 = vadd.f32 1e-05, %v818_v20  ;;  %v3204_v51 = vld [vmem:[%s3339_s23 + $0x258] sm:$0xff]   ;;  %v3211_v12 = vld [vmem:[%s3339_s23 + $0x290] sm:$0xff]  }
  0x94   : > { %2526 = vmatmul.mubr.bf16.vlgmr.msra.gmra.mxu1 %v1332_v52  ;;  %3027 = vmatprep.subr.bf16.mxu0 %v3192_v54  ;;  %v511_v40 = vmul.f32 0.5, %v482_v58  ;;  %v819_v45 = vmul.f32 0.5, %v767_v30  ;;  %v495_v55 = vrot.slane %v494_v17, 1  ;;  %v3213_v15 = vld [vmem:[%s3339_s23 + $0x208] sm:$0xff]   ;;  %v3220_v20 = vld [vmem:[%s3339_s23 + $0x280] sm:$0xff]  }
  0x95   : > { %3048 = vmatpush3.bf16.msra.mxu1 %v3191_v22  ;;  %v489_v39 = vadd.f32 %v488_v28, %v487_v27  ;;  %v781_v44 = vadd.f32 %v780_v29, %v779_v33  ;;  %v820_v47 = vmul.f32 0.5, %v774_v10  ;;  %3270 = vrsqrt.f32 %v834_v37  ;;  %v3221_v33 = vld [vmem:[%s3339_s23 + $0x378] sm:$0xff]  }
  0x96   : > { %3049 = vmatprep.subr.bf16.mxu1 %v3194_v0  ;;  %v835_v53 = vadd.f32 1e-05, %v819_v45  ;;  %v496_v22 = vadd.f32 %v495_v55, %v494_v17  ;;  %v581_v61 = vcombine.low %v510_v19, %v511_v40 }
  0x97   : > { %3028 = vmatpush3.bf16.msra.mxu0 %v3193_v5  ;;  %v821_v52 = vmul.f32 0.5, %v781_v44  ;;  %v836_v54 = vadd.f32 1e-05, %v820_v47  ;;  %v512_v57 = vmul.f32 0.5, %v489_v39 }
  0x98   : > { %3029 = vmatprep.subr.bf16.mxu0 %v3196_v46  ;;  %3272 = vrsqrt.f32 %v835_v53  ;;  %v513_v0 = vmul.f32 0.5, %v496_v22  ;;  %v589_v5 = vrot.slane %v581_v61, %v3380_v35  ;;  %v3214_v46 = vld [vmem:[%s3339_s23 + $0x2c8] sm:$0xff]  }
  0x99   : > { %3050 = vmatpush3.bf16.msra.mxu1 %v3195_v24  ;;  %v837_v59 = vadd.f32 1e-05, %v821_v52  ;;  %3274 = vrsqrt.f32 %v836_v54 }
  0x9a   : > { %3051 = vmatprep.subr.bf16.mxu1 %v3198_v31  ;;  %v582_v3 = vcombine.low %v512_v57, %v513_v0  ;;  %v3217_v31 = vld [vmem:[%s3339_s23 + $0x200] sm:$0xff]  }
  0x9b   : > { %3030 = vmatpush3.bf16.msra.mxu0 %v3197_v34  ;;  %3276 = vrsqrt.f32 %v837_v59 }
  0x9c   : > { %3031 = vmatprep.subr.bf16.mxu0 %v3200_v14  ;;  %v596_v9 = vrot.slane %v582_v3, %v3380_v35  ;;  %v3223_v14 = vld [vmem:[%s3339_s23 + $0x3f8] sm:$0xff]  }
  0x9d   : > { %3052 = vmatpush3.bf16.msra.mxu1 %v3199_v18 }
  0x9e   : > { %3053 = vmatprep.subr.bf16.mxu1 %v3202_v42  ;;  %v597_v13 = vcombine.low %v589_v5, %v596_v9 }
  0x9f   : > { %3032 = vmatpush3.bf16.msra.mxu0 %v3201_v38 }
  0xa0   : > { %3033 = vmatprep.subr.bf16.mxu0 %v3204_v51  ;;  %v3692_v24 = vsub.f32 %v3622_v41, %v597_v13 }
  0xa1   : > { %3054 = vmatpush3.bf16.msra.mxu1 %v3203_v50 }
  0xa2   : > { %3055 = vmatprep.subr.bf16.mxu1 %v3206_v48  ;;  %v3271_v21 = vpop.eup %3270  ;;  %v609_v26 = vmul.f32 %v3692_v24, %v3692_v24 }
  0xa3   : > { %3034 = vmatpush3.bf16.msra.mxu0 %v3205_v62 }
  0xa4   : > { %3035 = vmatprep.subr.bf16.mxu0 %v3208_v63  ;;  %v665_v11 = vcombine.high %v609_v26, %v609_v26  ;;  %v672_v41 = vrot.slane %v609_v26, %v3380_v35 }
  0xa5   : > { %3056 = vmatpush3.bf16.msra.mxu1 %v3207_v1  ;;  %v3273_v27 = vpop.eup %3272 }
  0xa6   : > { %3057 = vmatprep.subr.bf16.mxu1 %v3210_v2  ;;  %v3275_v32 = vpop.eup %3274  ;;  %v908_v16 = vcombine.low %v3271_v21, %v3273_v27  ;;  %v679_v30 = vrot.slane %v665_v11, %v3380_v35  ;;  %v680_v10 = vcombine.high %v672_v41, %v672_v41  ;;  %v782_v29 = vsel %vm384_vm0, %v672_v41, 0.0  ;;  %v3225_v27 = vld [vmem:[%s3339_s23 + $0x370] sm:$0xff]   ;;  %v3224_v11 = vld [vmem:[%s3339_s23 + $0x3b8] sm:$0xff]  }
  0xa7   : > { %3036 = vmatpush3.bf16.msra.mxu0 %v3209_v6  ;;  %v783_v37 = vrot.slane %v782_v29, 4 }
  0xa8   : > { %3037 = vmatprep.subr.bf16.mxu0 %v3212_v7  ;;  %v3277_v34 = vpop.eup %3276  ;;  %v916_v28 = vrot.slane %v908_v16, %v3380_v35  ;;  %v681_v18 = vcombine.high %v679_v30, %v679_v30  ;;  %v789_v39 = vsel %vm384_vm0, %v680_v10, 0.0  ;;  %v796_v40 = vsel %vm384_vm0, %v679_v30, 0.0  ;;  %v3231_v30 = vld [vmem:[%s3339_s23 + $0x3e8] sm:$0xff]  }
  0xa9   : > { %3058 = vmatpush3.bf16.msra.mxu1 %v3211_v12  ;;  %v909_v58 = vcombine.low %v3275_v32, %v3277_v34  ;;  %v790_v19 = vrot.slane %v789_v39, 4  ;;  %v784_v44 = vadd.f32 %v783_v37, %v782_v29  ;;  %v797_v45 = vrot.slane %v796_v40, 4  ;;  %v3227_v34 = vld [vmem:[%s3339_s23 + $0x3f0] sm:$0xff]   ;;  %v3230_v10 = vld [vmem:[%s3339_s23 + $0x328] sm:$0xff]   ;;  %v3233_v29 = vld [vmem:[%s3339_s23 + $0x360] sm:$0xff]  }
  0xaa   : > { %3059 = vmatprep.subr.bf16.mxu1 %v3214_v46  ;;  %v803_v47 = vsel %vm384_vm0, %v681_v18, 0.0  ;;  %v3235_v18 = vld [vmem:[%s3339_s23 + $0x3e0] sm:$0xff]  }
  0xab   : > { %3038 = vmatpush3.bf16.msra.mxu0 %v3213_v15  ;;  %v923_v36 = vrot.slane %v909_v58, %v3380_v35  ;;  %v791_v17 = vadd.f32 %v790_v19, %v789_v39  ;;  %v804_v38 = vrot.slane %v803_v47, 4  ;;  %v785_v52 = vrot.slane %v784_v44, 2  ;;  %v3226_v58 = vld [vmem:[%s3339_s23 + $0x330] sm:$0xff]   ;;  %v3234_v37 = vld [vmem:[%s3339_s23 + $0x320] sm:$0xff]   ;;  %v3237_v39 = vld [vmem:[%s3339_s23 + $0x358] sm:$0xff]  }
  0xac   : > { %3039 = vmatprep.subr.bf16.mxu0 %v3216_v23  ;;  %v798_v53 = vadd.f32 %v797_v45, %v796_v40  ;;  %v3236_v19 = vld [vmem:[%s3339_s23 + $0x3a0] sm:$0xff]   ;;  %v3239_v40 = vld [vmem:[%s3339_s23 + $0x3d8] sm:$0xff]  }
  0xad   : > { %3060 = vmatpush3.bf16.msra.mxu1 %v3215_v4  ;;  %v924_v42 = vcombine.low %v916_v28, %v923_v36  ;;  %v792_v54 = vrot.slane %v791_v17, 2  ;;  %v805_v55 = vadd.f32 %v804_v38, %v803_v47  ;;  %v786_v57 = vadd.f32 %v785_v52, %v784_v44  ;;  %v3222_v4 = vld [vmem:[%s3339_s23 + $0x338] sm:$0xff]   ;;  %v3229_v28 = vld [vmem:[%s3339_s23 + $0x368] sm:$0xff]   ;;  %v3241_v47 = vld [vmem:[%s3339_s23 + $0x350] sm:$0xff]  }
  0xae   : > { %3061 = vmatprep.subr.bf16.mxu1 %v3218_v25  ;;  %v799_v48 = vrot.slane %v798_v53, 2  ;;  %v3232_v36 = vld [vmem:[%s3339_s23 + $0x3a8] sm:$0xff]   ;;  %v3238_v44 = vld [vmem:[%s3339_s23 + $0x318] sm:$0xff]  }
  0xaf   : > { %3040 = vmatpush3.bf16.msra.mxu0 %v3217_v31  ;;  %v948_v51 = vmul.f32 %v924_v42, %v3626_v60  ;;  %v793_v59 = vadd.f32 %v792_v54, %v791_v17  ;;  %v806_v22 = vrot.slane %v805_v55, 2  ;;  %v787_v62 = vrot.slane %v786_v57, 1  ;;  %v3240_v38 = vld [vmem:[%s3339_s23 + $0x398] sm:$0xff]   ;;  %v3242_v54 = vld [vmem:[%s3339_s23 + $0x310] sm:$0xff]  }
  0xb0   : > { %3069 = vmatprep.subr.bf16.mxu0 %v3221_v33  ;;  %v800_v63 = vadd.f32 %v799_v48, %v798_v53  ;;  %v3243_v53 = vld [vmem:[%s3339_s23 + $0x3d0] sm:$0xff]  }
  0xb1   : > { %3062 = vmatpush3.bf16.msra.mxu1 %v3220_v20  ;;  %v1092_v50 = vmul.f32 %v3450_v43, %v948_v51  ;;  %v794_v0 = vrot.slane %v793_v59, 1  ;;  %v807_v1 = vadd.f32 %v806_v22, %v805_v55  ;;  %v788_v3 = vadd.f32 %v787_v62, %v786_v57  ;;  %v3245_v57 = vld [vmem:[%s3339_s23 + $0x348] sm:$0xff]   ;;  %v3244_v48 = vld [vmem:[%s3339_s23 + $0x390] sm:$0xff]  }
  0xb2   : > { %3091 = vmatprep.subr.bf16.mxu1 %v3223_v14  ;;  %v801_v5 = vrot.slane %v800_v63, 1  ;;  %v3228_v14 = vld [vmem:[%s3339_s23 + $0x3b0] sm:$0xff]   ;;  %v3247_v22 = vld [vmem:[%s3339_s23 + $0x3c8] sm:$0xff]  }
  0xb3   : > { %v1236_v61 = vadd.f32 %v3457_v49, %v1092_v50  ;;  %v795_v6 = vadd.f32 %v794_v0, %v793_v59  ;;  %v808_v7 = vrot.slane %v807_v1, 1  ;;  %v822_v13 = vmul.f32 0.5, %v788_v3  ;;  %v3248_v0 = vld [vmem:[%s3339_s23 + $0x388] sm:$0xff]  }
  0xb4   : > { %v802_v12 = vadd.f32 %v801_v5, %v800_v63  ;;  %v3249_v63 = vld [vmem:[%s3339_s23 + $0x340] sm:$0xff]  }
  0xb5   : > { %v1283_v2 = vrot.slane %v1236_v61, %v3380_v35  ;;  %v1276_v60 = vcombine.high %v1236_v61, %v1236_v61  ;;  %v809_v49 = vadd.f32 %v808_v7, %v807_v1  ;;  %v823_v15 = vmul.f32 0.5, %v795_v6  ;;  %v3246_v61 = vld [vmem:[%s3339_s23 + $0x308] sm:$0xff]   ;;  %v3253_v6 = vld [vmem:[%s3339_s23 + $0x380] sm:$0xff]  }
  0xb6   : > { %v824_v25 = vmul.f32 0.5, %v802_v12  ;;  %v838_v32 = vadd.f32 1e-05, %v822_v13 }
  0xb7   : > { %v1291_v43 = vcombine.high %v1283_v2, %v1283_v2  ;;  %v1290_v9 = vrot.slane %v1276_v60, %v3380_v35  ;;  %v1334_v46 = vpack.c.bf16 %v1283_v2, %v1283_v2  ;;  %v825_v31 = vmul.f32 0.5, %v809_v49  ;;  %v3251_v2 = vld [vmem:[%s3339_s23 + $0x3c0] sm:$0xff]  }
  0xb8   : > { %v839_v16 = vadd.f32 1e-05, %v823_v15  ;;  %v840_v41 = vadd.f32 1e-05, %v824_v25  ;;  %3278 = vrsqrt.f32 %v838_v32  ;;  %v3250_v60 = vld [vmem:[%s3339_s23 + $0x300] sm:$0xff]  }
  0xb9   : > { %v1335_v21 = vpack.c.bf16 %v1291_v43, %v1291_v43  ;;  %v1292_v23 = vcombine.high %v1290_v9, %v1290_v9  ;;  %v1336_v26 = vpack.c.bf16 %v1290_v9, %v1290_v9  ;;  %v841_v20 = vadd.f32 1e-05, %v825_v31  ;;  %v2804_v15 = vld [vmem:[%s286_s12] ss:$0 sm:$0xff] }
  0xba   : > { %3280 = vrsqrt.f32 %v839_v16 }
  0xbb   : > { %2565 = vmatprep.mubr.bf16.mxu0 %v1335_v21  ;;  %v1337_v33 = vpack.c.bf16 %v1292_v23, %v1292_v23  ;;  %3282 = vrsqrt.f32 %v840_v41 }
  0xbc   : > { %2566 = vmatmul.mubr.bf16.vlgmr.msra.gmra.mxu0 %v1334_v46  ;;  %3284 = vrsqrt.f32 %v841_v20 }
  0xbd   : > { %2605 = vmatprep.mubr.bf16.mxu1 %v1337_v33  ;;  %3070 = vmatpush3.bf16.msra.mxu0 %v3222_v4 }
  0xbe   : > { %2606 = vmatmul.mubr.bf16.vlgmr.msra.gmra.mxu1 %v1336_v26  ;;  %3071 = vmatprep.subr.bf16.mxu0 %v3225_v27 }
  0xbf   : > { %3092 = vmatpush3.bf16.msra.mxu1 %v3224_v11 }
  0xc0   : > { %3093 = vmatprep.subr.bf16.mxu1 %v3227_v34 }
  0xc1   : > { %3072 = vmatpush3.bf16.msra.mxu0 %v3226_v58 }
  0xc2   : > { %3073 = vmatprep.subr.bf16.mxu0 %v3229_v28 }
  0xc3   : > { %3094 = vmatpush3.bf16.msra.mxu1 %v3228_v14 }
  0xc4   : > { %3095 = vmatprep.subr.bf16.mxu1 %v3231_v30 }
  0xc5   : > { %3074 = vmatpush3.bf16.msra.mxu0 %v3230_v10  ;;  %v3279_v42 = vpop.eup %3278 }
  0xc6   : > { %3075 = vmatprep.subr.bf16.mxu0 %v3233_v29 }
  0xc7   : > { %3096 = vmatpush3.bf16.msra.mxu1 %v3232_v36  ;;  %v3281_v45 = vpop.eup %3280 }
  0xc8   : > { %3097 = vmatprep.subr.bf16.mxu1 %v3235_v18  ;;  %v3283_v17 = vpop.eup %3282  ;;  %v925_v51 = vcombine.low %v3279_v42, %v3281_v45 }
  0xc9   : > { %3076 = vmatpush3.bf16.msra.mxu0 %v3234_v37  ;;  %v3285_v52 = vpop.eup %3284 }
  0xca   : > { %3077 = vmatprep.subr.bf16.mxu0 %v3237_v39  ;;  %v926_v55 = vcombine.low %v3283_v17, %v3285_v52  ;;  %v933_v50 = vrot.slane %v925_v51, %v3380_v35 }
  0xcb   : > { %3098 = vmatpush3.bf16.msra.mxu1 %v3236_v19 }
  0xcc   : > { %3099 = vmatprep.subr.bf16.mxu1 %v3239_v40  ;;  %v940_v59 = vrot.slane %v926_v55, %v3380_v35 }
  0xcd   : > { %3078 = vmatpush3.bf16.msra.mxu0 %v3238_v44 }
  0xce   : > { %3079 = vmatprep.subr.bf16.mxu0 %v3241_v47  ;;  %v941_v62 = vcombine.low %v933_v50, %v940_v59 }
  0xcf   : > { %3100 = vmatpush3.bf16.msra.mxu1 %v3240_v38 }
  0xd0   : > { %3101 = vmatprep.subr.bf16.mxu1 %v3243_v53  ;;  %v949_v1 = vmul.f32 %v941_v62, %v3692_v24 }
  0xd1   : > { %3080 = vmatpush3.bf16.msra.mxu0 %v3242_v54 }
  0xd2   : > { %3081 = vmatprep.subr.bf16.mxu0 %v3245_v57  ;;  %v1093_v3 = vmul.f32 %v3536_v56, %v949_v1 }
  0xd3   : > { %3102 = vmatpush3.bf16.msra.mxu1 %v3244_v48 }
  0xd4   : > { %3103 = vmatprep.subr.bf16.mxu1 %v3247_v22  ;;  %v1237_v5 = vadd.f32 %v3546_v8, %v1093_v3 }
  0xd5   : > { %3082 = vmatpush3.bf16.msra.mxu0 %v3246_v61 }
  0xd6   : > { %3083 = vmatprep.subr.bf16.mxu0 %v3249_v63  ;;  %v1300_v7 = vrot.slane %v1237_v5, %v3380_v35  ;;  %v1293_v43 = vcombine.high %v1237_v5, %v1237_v5 }
  0xd7   : > { %3104 = vmatpush3.bf16.msra.mxu1 %v3248_v0 }
  0xd8   : > { %3105 = vmatprep.subr.bf16.mxu1 %v3251_v2  ;;  %v1308_v9 = vcombine.high %v1300_v7, %v1300_v7  ;;  %v1307_v24 = vrot.slane %v1293_v43, %v3380_v35  ;;  %v1338_v12 = vpack.c.bf16 %v1300_v7, %v1300_v7 }
  0xd9   : > { %3084 = vmatpush3.bf16.msra.mxu0 %v3250_v60 }
  0xda   : > { %v1339_v46 = vpack.c.bf16 %v1308_v9, %v1308_v9  ;;  %v1309_v49 = vcombine.high %v1307_v24, %v1307_v24  ;;  %v1340_v13 = vpack.c.bf16 %v1307_v24, %v1307_v24 }
  0xdb   : > { %3106 = vmatpush3.bf16.msra.mxu1 %v3253_v6 }
  0xdc   : > { %2645 = vmatprep.mubr.bf16.mxu0 %v1339_v46  ;;  %v1341_v56 = vpack.c.bf16 %v1309_v49, %v1309_v49 }
  0xdd   : > { %2646 = vmatmul.mubr.bf16.vlgmr.msra.gmra.mxu0 %v1338_v12 }
  0xde   : > { %2685 = vmatprep.mubr.bf16.mxu1 %v1341_v56 }
  0xdf   : > { %2686 = vmatmul.mubr.bf16.vlgmr.msra.gmra.mxu1 %v1340_v13 }
 0x132   : > { %v2953_v8 = vpop.f32.mrf.mxu0 }
 0x134   : > { %v2954_v21 = vpop.f32.mrf.mxu0  ;;  %v2975_v23 = vpop.f32.mrf.mxu1 }
 0x135   : > { %v2955_v4 = vadd.f32 %v2954_v21, %v2953_v8 }
 0x136   : > { %v2956_v25 = vpop.f32.mrf.mxu0  ;;  %v2976_v35 = vpop.f32.mrf.mxu1 }
 0x137   : > { %v2408_v26 = vadd.f32 %v2955_v4, %v2804_v15  ;;  %v2977_v27 = vadd.f32 %v2976_v35, %v2975_v23 }
 0x138   : > { %v2957_v31 = vpop.f32.mrf.mxu0  ;;  %v2978_v32 = vpop.f32.mrf.mxu1 }
 0x139   : > { %v2448_v16 = vadd.f32 %v2977_v27, %v2408_v26 }
 0x13a   : > { %v2979_v33 = vpop.f32.mrf.mxu1 }
 0x152   : > { %v2997_v11 = vpop.f32.mrf.mxu0 }
 0x154   : > { %v2998_v41 = vpop.f32.mrf.mxu0  ;;  %v3019_v34 = vpop.f32.mrf.mxu1 }
 0x155   : > { %v2999_v20 = vadd.f32 %v2998_v41, %v2997_v11 }
 0x156   : > { %v3000_v58 = vpop.f32.mrf.mxu0  ;;  %v3020_v28 = vpop.f32.mrf.mxu1 }
 0x157   : > { %v2488_v14 = vadd.f32 %v2999_v20, %v2448_v16  ;;  %v3021_v30 = vadd.f32 %v3020_v28, %v3019_v34 }
 0x158   : > { %v3001_v10 = vpop.f32.mrf.mxu0  ;;  %v3022_v29 = vpop.f32.mrf.mxu1 }
 0x159   : > { %v2528_v36 = vadd.f32 %v3021_v30, %v2488_v14 }
 0x15a   : > { %v3023_v18 = vpop.f32.mrf.mxu1 }
 0x17c   : > { %v3041_v37 = vpop.f32.mrf.mxu0 }
 0x17e   : > { %v3042_v39 = vpop.f32.mrf.mxu0  ;;  %v3063_v19 = vpop.f32.mrf.mxu1 }
 0x17f   : > { %v3043_v17 = vadd.f32 %v3042_v39, %v3041_v37 }
 0x180   : > { %v3044_v40 = vpop.f32.mrf.mxu0  ;;  %v3064_v42 = vpop.f32.mrf.mxu1 }
 0x181   : > { %v2568_v38 = vadd.f32 %v3043_v17, %v2528_v36  ;;  %v3065_v51 = vadd.f32 %v3064_v42, %v3063_v19 }
 0x182   : > { %v3045_v44 = vpop.f32.mrf.mxu0  ;;  %v3066_v45 = vpop.f32.mrf.mxu1 }
 0x183   : > { %v2608_v55 = vadd.f32 %v3065_v51, %v2568_v38 }
 0x184   : > { %v3067_v47 = vpop.f32.mrf.mxu1 }
 0x19d   : > { %v3085_v52 = vpop.f32.mrf.mxu0 }
 0x19f   : > { %v3086_v53 = vpop.f32.mrf.mxu0  ;;  %v3107_v54 = vpop.f32.mrf.mxu1 }
 0x1a0   : > { %v3087_v50 = vadd.f32 %v3086_v53, %v3085_v52 }
 0x1a1   : > { %v3088_v57 = vpop.f32.mrf.mxu0  ;;  %v3108_v48 = vpop.f32.mrf.mxu1 }
 0x1a2   : > { %v2648_v59 = vadd.f32 %v3087_v50, %v2608_v55  ;;  %v3109_v22 = vadd.f32 %v3108_v48, %v3107_v54 }
 0x1a3   : > { %v3089_v61 = vpop.f32.mrf.mxu0  ;;  %v3110_v62 = vpop.f32.mrf.mxu1 }
 0x1a4   : > { %v2688_v63 = vadd.f32 %v3109_v22, %v2648_v59 }
 0x1a5   : > { %v3111_v0 = vpop.f32.mrf.mxu1 }
 0x1a6   : > { %2693 = vst [vmem:[%s290_s16] sm:$0x3] %v2688_v63 }
 0x1a7 PF: > { %s15_s18 = sadd.s32 1, %s3292_s18  }
 0x1a8   : > { %p12_p4 = scmp.ge.s32.totalorder %s15_s18, 9  }
 0x1aa   :  { %14 = sbr.rel (!%p12_p4) target bundleno = 1 (0x1), region = 82 }

</bundles_post_ra>
